<compile_context>
chip_gen: v5e
topology: v5e:2x2
jax: 0.10.0
libtpu: 0.0.40
codegen_flags: <defaults>
</compile_context>

<pallas_src>
import jax
import jax.numpy as jnp
from jax.experimental import pallas as pl
from jax.experimental.pallas import tpu as pltpu


# Geometry implied by the module (Linear(32*4*4) => 32x32 spatial input).
_H_IN = 32
_C = 32                      # conv channel count (fixed by the module)
_HO1, _HO2, _HO3 = 16, 8, 4  # spatial extent after each stride-2 conv
_N1 = _HO1 * _C              # 512 : lane width of a conv1 output row
_N2 = _HO2 * _C              # 256 : conv2 output row
_N3 = _HO3 * _C              # 128 : conv3 output row
_FEAT = _C * _HO3 * _HO3     # 512 : flattened feature size feeding the heads


# ---------------------------------------------------------------------------
# Fused encoder kernel (one grid step == one batch element)
# ---------------------------------------------------------------------------
def _encoder_kernel(patches_ref, w1_ref, b1_ref, w2_ref, b2_ref, w3_ref, b3_ref,
                    wh_ref, bh_ref, out_ref, p2_ref, p3_ref):
    f32 = jnp.float32

    # Zero the row-phase-split activation scratches: rows that stay zero are the
    # conv's *vertical* padding (horizontal padding is folded into the banded
    # weights, so rows are stored unpadded and lane-aligned).
    p2_ref[...] = jnp.zeros_like(p2_ref)
    p3_ref[...] = jnp.zeros_like(p3_ref)

    # --- conv1: im2col rows @ block-diagonal weight -> whole output rows [*, 512].
    # Patch rows arrive grouped by (output row % 4); group g row t is output row
    # ho = 4*t + g, so every scratch write below is a static unit-stride slice.
    w1 = w1_ref[...]
    b1 = b1_ref[...]
    y1 = []
    for g in range(4):
        y = jnp.dot(patches_ref[0, g, :, :], w1, preferred_element_type=f32) + b1
        y1.append(jnp.maximum(y, 0.0))                      # [4, 512]
    # p2_ref[q, j, :] holds (vertically) padded conv1 row p = 4*j + q.
    # Output row ho -> padded row ho + 1; padded rows 0 and 17 stay zero.
    p2_ref[1, 0:4, :] = y1[0]
    p2_ref[2, 0:4, :] = y1[1]
    p2_ref[3, 0:4, :] = y1[2]
    p2_ref[0, 1:5, :] = y1[3]

    # --- conv2: width-banded weights, computed per output-row parity.
    # Output row ho = a + 2*t needs padded input rows 4*t + 2*a + kh, which are
    # unit-stride slices of the phase buffers above.
    b2 = b2_ref[...]
    y2_even = jnp.maximum(                                   # rows 0,2,4,6 -> [4, 256]
        jnp.dot(p2_ref[0, 0:4, :], w2_ref[0, :, :], preferred_element_type=f32)
        + jnp.dot(p2_ref[1, 0:4, :], w2_ref[1, :, :], preferred_element_type=f32)
        + jnp.dot(p2_ref[2, 0:4, :], w2_ref[2, :, :], preferred_element_type=f32)
        + b2, 0.0)
    y2_odd = jnp.maximum(                                    # rows 1,3,5,7 -> [4, 256]
        jnp.dot(p2_ref[2, 0:4, :], w2_ref[0, :, :], preferred_element_type=f32)
        + jnp.dot(p2_ref[3, 0:4, :], w2_ref[1, :, :], preferred_element_type=f32)
        + jnp.dot(p2_ref[0, 1:5, :], w2_ref[2, :, :], preferred_element_type=f32)
        + b2, 0.0)
    # p3_ref[q, j, :] holds padded conv2 row p = 2*j + q; rows 0 and 9 stay zero.
    p3_ref[1, 0:4, :] = y2_even
    p3_ref[0, 1:5, :] = y2_odd

    # --- conv3 -> [4, 128]: the full 4x4x32 feature map, one output row per row.
    y3 = jnp.maximum(
        jnp.dot(p3_ref[0, 0:4, :], w3_ref[0, :, :], preferred_element_type=f32)
        + jnp.dot(p3_ref[1, 0:4, :], w3_ref[1, :, :], preferred_element_type=f32)
        + jnp.dot(p3_ref[0, 1:5, :], w3_ref[2, :, :], preferred_element_type=f32)
        + b3_ref[...], 0.0)

    # --- both heads fused into one [512, 2D] matmul (flatten permutation folded
    # into the weight rows at pack time).  Accumulate per y3 row block so no
    # in-kernel reshape of y3 is needed.
    acc = bh_ref[...]                                        # [1, 2D]
    for r in range(4):
        acc = acc + jnp.dot(y3[r:r + 1, :], wh_ref[r * _N3:(r + 1) * _N3, :],
                            preferred_element_type=f32)
    out_ref[0, :, :] = acc


# ---------------------------------------------------------------------------
# Wrapper-side im2col for conv1 only (cheap XLA strided slices on the raw input)
# ---------------------------------------------------------------------------
def _conv1_row_patches(x_nhwc):
    """Returns [B, 4, 4, Wo*9*Cin]: element [b, g, t, :] is the concatenation over
    wo of the (kh, kw, ci)-ordered 3x3 patch for conv1 output row ho = 4*t + g."""
    B, H, W, Cin = x_nhwc.shape
    assert H == _H_IN and W == _H_IN, "CNNFastEncoder implies a 32x32 input"
    ho, wo = _HO1, _HO1
    xp = jnp.pad(x_nhwc, ((0, 0), (1, 1), (1, 1), (0, 0)))
    taps = [xp[:, kh:kh + 2 * ho:2, kw:kw + 2 * wo:2, :]
            for kh in range(3) for kw in range(3)]
    patches = jnp.concatenate(taps, axis=-1)                 # [B, 16, 16, 9*Cin]
    rows = patches.reshape(B, ho, wo * 9 * Cin)              # row-major over wo
    # [b, u, v] = row 4u+v  ->  transpose so [b, g, t] = row 4t+g.
    return rows.reshape(B, 4, 4, wo * 9 * Cin).transpose(0, 2, 1, 3)


# ---------------------------------------------------------------------------
# Full forward pass
# ---------------------------------------------------------------------------
def cnn_fast_encoder_forward(x_nchw, packed, log_var=True):
    """x_nchw: [B, Cin, 32, 32] f32 -> (mean, log_var) each [B, output_dim]."""
    B = x_nchw.shape[0]
    x = jnp.transpose(x_nchw, (0, 2, 3, 1))                  # NHWC
    patches = _conv1_row_patches(x)                          # [B, 4, 4, K1]
    K1 = patches.shape[-1]
    D2 = packed["wh"].shape[1]                               # 2 * output_dim

    weight_elems = sum(int(v.size) for v in packed.values())
    cost = pl.CostEstimate(
        flops=2 * B * (4 * 4 * K1 * _N1 + 6 * 4 * _N1 * _N2
                       + 3 * 4 * _N2 * _N3 + 4 * _N3 * D2),
        transcendentals=0,
        bytes_accessed=4 * (patches.size + weight_elems + B * D2),
    )

    out = pl.pallas_call(
        _encoder_kernel,
        out_shape=jax.ShapeDtypeStruct((B, 1, D2), jnp.float32),
        grid_spec=pltpu.PrefetchScalarGridSpec(
            num_scalar_prefetch=0,
            grid=(B,),
            in_specs=[
                # streamed per-batch im2col rows for conv1
                pl.BlockSpec((1, 4, 4, K1), lambda i: (i, 0, 0, 0)),
                # VMEM-resident packed weights / biases (constant index maps)
                pl.BlockSpec((K1, _N1), lambda i: (0, 0)),
                pl.BlockSpec((1, _N1), lambda i: (0, 0)),
                pl.BlockSpec((3, _N1, _N2), lambda i: (0, 0, 0)),
                pl.BlockSpec((1, _N2), lambda i: (0, 0)),
                pl.BlockSpec((3, _N2, _N3), lambda i: (0, 0, 0)),
                pl.BlockSpec((1, _N3), lambda i: (0, 0)),
                pl.BlockSpec((_FEAT, D2), lambda i: (0, 0)),
                pl.BlockSpec((1, D2), lambda i: (0, 0)),
            ],
            out_specs=pl.BlockSpec((1, 1, D2), lambda i: (i, 0, 0)),
            scratch_shapes=[
                pltpu.VMEM((4, 5, _N1), jnp.float32),   # conv1 out, row-phase split
                pltpu.VMEM((2, 5, _N2), jnp.float32),   # conv2 out, row-phase split
            ],
        ),
        compiler_params=pltpu.CompilerParams(dimension_semantics=("parallel",)),
        cost_estimate=cost,
    )(patches, packed["w1"], packed["b1"], packed["w2"], packed["b2"],
      packed["w3"], packed["b3"], packed["wh"], packed["bh"])

    out = out.reshape(B, D2)
    d = D2 // 2
    mean = out[:, :d]
    if not log_var:
        return mean
    return mean, out[:, d:]


# ---------------------------------------------------------------------------
# Parameter packing (done once, outside the forward pass)
# ---------------------------------------------------------------------------
def _banded_conv_weight(w_hwio, wo_count):
    """Fold kw taps + stride-2 width downsampling into one banded matrix per kh:
    band[kh][(2*wo+kw-1)*Cin + ci, wo*Cout + c] = w[kh, kw, ci, c].
    Taps falling in the horizontal zero padding are simply dropped (zero rows)."""
    _, _, cin, cout = w_hwio.shape
    win = 2 * wo_count
    band = jnp.zeros((3, win * cin, wo_count * cout), w_hwio.dtype)
    for kh in range(3):
        for kw in range(3):
            for wo in range(wo_count):
                wi = 2 * wo + kw - 1
                if 0 <= wi < win:
                    band = band.at[kh, wi * cin:(wi + 1) * cin,
                                   wo * cout:(wo + 1) * cout].set(w_hwio[kh, kw])
    return band


def pack_params(params):
    """Convert PyTorch-layout params into the fused kernel's packed weights."""
    cin = params["conv1"]["w"].shape[2]
    w1 = params["conv1"]["w"].reshape(9 * cin, _C)             # (kh, kw, ci) major
    packed = {
        # conv1: block-diagonal over the 16 output columns of a row.
        "w1": jnp.kron(jnp.eye(_HO1, dtype=w1.dtype), w1),     # [16*9*cin, 512]
        "b1": jnp.tile(params["conv1"]["b"], _HO1).reshape(1, _N1),
        "w2": _banded_conv_weight(params["conv2"]["w"], _HO2),  # [3, 512, 256]
        "b2": jnp.tile(params["conv2"]["b"], _HO2).reshape(1, _N2),
        "w3": _banded_conv_weight(params["conv3"]["w"], _HO3),  # [3, 256, 128]
        "b3": jnp.tile(params["conv3"]["b"], _HO3).reshape(1, _N3),
    }

    def head(p):
        w, d = p["w"], p["w"].shape[1]
        # Rows are in PyTorch's NCHW flatten order (c*16 + ho*4 + wo); permute to
        # the kernel's (ho*128 + wo*32 + c) feature order.
        w = w.reshape(_C, _HO3, _HO3, d).transpose(1, 2, 0, 3).reshape(_FEAT, d)
        return w, p["b"].reshape(1, d)

    wm, bm = head(params["out_mean"])
    wv, bv = head(params["out_log_var"])
    packed["wh"] = jnp.concatenate([wm, wv], axis=1)            # [512, 2*D]
    packed["bh"] = jnp.concatenate([bm, bv], axis=1)            # [1, 2*D]
    return packed


# ---------------------------------------------------------------------------
# Parameter init (PyTorch-like layouts: conv HWIO, linear [in, out])
# ---------------------------------------------------------------------------
def init_params(key, input_channels, output_dim):
    ks = jax.random.split(key, 5)

    def conv_p(k, cin, cout):
        kw_, kb_ = jax.random.split(k)
        w = jax.random.normal(kw_, (3, 3, cin, cout), jnp.float32) / jnp.sqrt(9 * cin)
        b = jax.random.normal(kb_, (cout,), jnp.float32) * 0.05
        return {"w": w, "b": b}

    def lin_p(k, din, dout):
        kw_, kb_ = jax.random.split(k)
        w = jax.random.normal(kw_, (din, dout), jnp.float32) / jnp.sqrt(din)
        b = jax.random.normal(kb_, (dout,), jnp.float32) * 0.05
        return {"w": w, "b": b}

    return {
        "conv1": conv_p(ks[0], input_channels, _C),
        "conv2": conv_p(ks[1], _C, _C),
        "conv3": conv_p(ks[2], _C, _C),
        "out_mean": lin_p(ks[3], _FEAT, output_dim),
        "out_log_var": lin_p(ks[4], _FEAT, output_dim),
    }


# ---------------------------------------------------------------------------
# Pure-JAX reference (real convolutions) for correctness checking
# ---------------------------------------------------------------------------
def _reference_forward(x_nchw, params, log_var=True):
    x = jnp.transpose(x_nchw, (0, 2, 3, 1))
    for name in ("conv1", "conv2", "conv3"):
        w, b = params[name]["w"], params[name]["b"]
        y = jax.lax.conv_general_dilated(
            x, w, window_strides=(2, 2), padding=((1, 1), (1, 1)),
            dimension_numbers=("NHWC", "HWIO", "NHWC"))
        x = jnp.maximum(y + b.reshape(1, 1, 1, -1), 0.0)
    B = x.shape[0]
    feat = jnp.transpose(x, (0, 3, 1, 2)).reshape(B, -1)        # NCHW flatten
    mean = feat @ params["out_mean"]["w"] + params["out_mean"]["b"]
    lv = feat @ params["out_log_var"]["w"] + params["out_log_var"]["b"]
    if not log_var:
        return mean
    return mean, lv


if __name__ == "__main__":
    # The module's Linear(32*4*4, D) implies a 32x32 spatial input
    # (32 -> 16 -> 8 -> 4 under three stride-2 convs).
    B, Cin, H, W = 2, 3, 32, 32
    output_dim = 16

    key = jax.random.PRNGKey(0)
    k_params, k_x = jax.random.split(key)
    params = init_params(k_params, Cin, output_dim)
    packed = pack_params(params)
    x = jax.random.normal(k_x, (B, Cin, H, W), dtype=jnp.float32)

    fwd = jax.jit(cnn_fast_encoder_forward, static_argnames=("log_var",))
    mean, log_var_out = fwd(x, packed, log_var=True)
    mean = jax.block_until_ready(mean)
    log_var_out = jax.block_until_ready(log_var_out)

    mean_ref, lv_ref = _reference_forward(x, params, log_var=True)

    assert mean.shape == (B, output_dim) and log_var_out.shape == (B, output_dim)
    assert jnp.allclose(mean, mean_ref, atol=1e-3, rtol=1e-3), "mean mismatch"
    assert jnp.allclose(log_var_out, lv_ref, atol=1e-3, rtol=1e-3), "log_var mismatch"

    # Also exercise the log_var=False path (single-head output).
    mean_only = jax.block_until_ready(fwd(x, packed, log_var=False))
    assert jnp.allclose(mean_only, mean_ref, atol=1e-3, rtol=1e-3)

    print("KERNEL_OK")
</pallas_src>

<mosaic_0001>
module attributes {stable_mosaic.version = 11 : i64} {
  func.func @_encoder_kernel(%arg0: i32, %arg1: memref<1x4x4x432xf32, #tpu.memory_space<vmem>>, %arg2: memref<432x512xf32, #tpu.memory_space<vmem>>, %arg3: memref<1x512xf32, #tpu.memory_space<vmem>>, %arg4: memref<3x512x256xf32, #tpu.memory_space<vmem>>, %arg5: memref<1x256xf32, #tpu.memory_space<vmem>>, %arg6: memref<3x256x128xf32, #tpu.memory_space<vmem>>, %arg7: memref<1x128xf32, #tpu.memory_space<vmem>>, %arg8: memref<512x32xf32, #tpu.memory_space<vmem>>, %arg9: memref<1x32xf32, #tpu.memory_space<vmem>>, %arg10: memref<1x1x32xf32, #tpu.memory_space<vmem>>, %arg11: memref<4x5x512xf32, #tpu.memory_space<vmem>>, %arg12: memref<2x5x256xf32, #tpu.memory_space<vmem>>) attributes {dimension_semantics = [#tpu.dimension_semantics<parallel>], iteration_bounds = array<i64: 2>, scalar_prefetch = 0 : i64, scratch_operands = 2 : i64, tpu.core_type = #tpu.core_type<tc>, window_params = [{transform_indices = @transform_0, window_bounds = array<i64: 1, 4, 4, 432>}, {pipeline_mode = #tpu.pipeline_mode<synchronous>, transform_indices = @transform_1, window_bounds = array<i64: 432, 512>}, {pipeline_mode = #tpu.pipeline_mode<synchronous>, transform_indices = @transform_2, window_bounds = array<i64: 1, 512>}, {pipeline_mode = #tpu.pipeline_mode<synchronous>, transform_indices = @transform_3, window_bounds = array<i64: 3, 512, 256>}, {pipeline_mode = #tpu.pipeline_mode<synchronous>, transform_indices = @transform_4, window_bounds = array<i64: 1, 256>}, {pipeline_mode = #tpu.pipeline_mode<synchronous>, transform_indices = @transform_5, window_bounds = array<i64: 3, 256, 128>}, {pipeline_mode = #tpu.pipeline_mode<synchronous>, transform_indices = @transform_6, window_bounds = array<i64: 1, 128>}, {pipeline_mode = #tpu.pipeline_mode<synchronous>, transform_indices = @transform_7, window_bounds = array<i64: 512, 32>}, {pipeline_mode = #tpu.pipeline_mode<synchronous>, transform_indices = @transform_8, window_bounds = array<i64: 1, 32>}, {transform_indices = @transform_9, window_bounds = array<i64: 1, 1, 32>}]} {
    %cst = arith.constant 0.000000e+00 : f32
    %0 = vector.broadcast %cst : f32 to vector<4x5x512xf32>
    %c0 = arith.constant 0 : index
    %c0_0 = arith.constant 0 : index
    %c0_1 = arith.constant 0 : index
    %1 = vector.load %arg11[%c0, %c0_0, %c0_1] : memref<4x5x512xf32, #tpu.memory_space<vmem>>, vector<4x5x512xf32>
    tpu.vector_store %arg11[%c0, %c0_0, %c0_1], %0 {strides = array<i32>} : memref<4x5x512xf32, #tpu.memory_space<vmem>>, vector<4x5x512xf32>,
    %cst_2 = arith.constant 0.000000e+00 : f32
    %2 = vector.broadcast %cst_2 : f32 to vector<2x5x256xf32>
    %c0_3 = arith.constant 0 : index
    %c0_4 = arith.constant 0 : index
    %c0_5 = arith.constant 0 : index
    %3 = vector.load %arg12[%c0_3, %c0_4, %c0_5] : memref<2x5x256xf32, #tpu.memory_space<vmem>>, vector<2x5x256xf32>
    tpu.vector_store %arg12[%c0_3, %c0_4, %c0_5], %2 {strides = array<i32>} : memref<2x5x256xf32, #tpu.memory_space<vmem>>, vector<2x5x256xf32>,
    %c0_6 = arith.constant 0 : index
    %c0_7 = arith.constant 0 : index
    %4 = vector.load %arg2[%c0_6, %c0_7] : memref<432x512xf32, #tpu.memory_space<vmem>>, vector<432x512xf32>
    %c0_8 = arith.constant 0 : index
    %c0_9 = arith.constant 0 : index
    %5 = vector.load %arg3[%c0_8, %c0_9] : memref<1x512xf32, #tpu.memory_space<vmem>>, vector<1x512xf32>
    %c0_10 = arith.constant 0 : index
    %c0_11 = arith.constant 0 : index
    %c0_12 = arith.constant 0 : index
    %c0_13 = arith.constant 0 : index
    %6 = vector.load %arg1[%c0_10, %c0_11, %c0_12, %c0_13] : memref<1x4x4x432xf32, #tpu.memory_space<vmem>>, vector<1x1x4x432xf32>
    %7 = vector.shape_cast %6 : vector<1x1x4x432xf32> to vector<4x432xf32>
    %cst_14 = arith.constant dense<0.000000e+00> : vector<4x512xf32>
    %8 = tpu.matmul %7, %4, %cst_14 {dimension_numbers = #tpu.dot_dimension_numbers<[1], [0], [0], [1], [0, 0, 1, 1], [], []>} : vector<4x432xf32>, vector<432x512xf32>, vector<4x512xf32> -> vector<4x512xf32>
    %9 = vector.broadcast %5 : vector<1x512xf32> to vector<4x512xf32>
    %10 = arith.addf %8, %9 : vector<4x512xf32>
    %cst_15 = arith.constant 0.000000e+00 : f32
    %11 = vector.broadcast %cst_15 : f32 to vector<4x512xf32>
    %12 = arith.maximumf %10, %11 : vector<4x512xf32>
    %c0_16 = arith.constant 0 : index
    %c1 = arith.constant 1 : index
    %c0_17 = arith.constant 0 : index
    %c0_18 = arith.constant 0 : index
    %13 = vector.load %arg1[%c0_16, %c1, %c0_17, %c0_18] : memref<1x4x4x432xf32, #tpu.memory_space<vmem>>, vector<1x1x4x432xf32>
    %14 = vector.shape_cast %13 : vector<1x1x4x432xf32> to vector<4x432xf32>
    %cst_19 = arith.constant dense<0.000000e+00> : vector<4x512xf32>
    %15 = tpu.matmul %14, %4, %cst_19 {dimension_numbers = #tpu.dot_dimension_numbers<[1], [0], [0], [1], [0, 0, 1, 1], [], []>} : vector<4x432xf32>, vector<432x512xf32>, vector<4x512xf32> -> vector<4x512xf32>
    %16 = vector.broadcast %5 : vector<1x512xf32> to vector<4x512xf32>
    %17 = arith.addf %15, %16 : vector<4x512xf32>
    %cst_20 = arith.constant 0.000000e+00 : f32
    %18 = vector.broadcast %cst_20 : f32 to vector<4x512xf32>
    %19 = arith.maximumf %17, %18 : vector<4x512xf32>
    %c0_21 = arith.constant 0 : index
    %c2 = arith.constant 2 : index
    %c0_22 = arith.constant 0 : index
    %c0_23 = arith.constant 0 : index
    %20 = vector.load %arg1[%c0_21, %c2, %c0_22, %c0_23] : memref<1x4x4x432xf32, #tpu.memory_space<vmem>>, vector<1x1x4x432xf32>
    %21 = vector.shape_cast %20 : vector<1x1x4x432xf32> to vector<4x432xf32>
    %cst_24 = arith.constant dense<0.000000e+00> : vector<4x512xf32>
    %22 = tpu.matmul %21, %4, %cst_24 {dimension_numbers = #tpu.dot_dimension_numbers<[1], [0], [0], [1], [0, 0, 1, 1], [], []>} : vector<4x432xf32>, vector<432x512xf32>, vector<4x512xf32> -> vector<4x512xf32>
    %23 = vector.broadcast %5 : vector<1x512xf32> to vector<4x512xf32>
    %24 = arith.addf %22, %23 : vector<4x512xf32>
    %cst_25 = arith.constant 0.000000e+00 : f32
    %25 = vector.broadcast %cst_25 : f32 to vector<4x512xf32>
    %26 = arith.maximumf %24, %25 : vector<4x512xf32>
    %c0_26 = arith.constant 0 : index
    %c3 = arith.constant 3 : index
    %c0_27 = arith.constant 0 : index
    %c0_28 = arith.constant 0 : index
    %27 = vector.load %arg1[%c0_26, %c3, %c0_27, %c0_28] : memref<1x4x4x432xf32, #tpu.memory_space<vmem>>, vector<1x1x4x432xf32>
    %28 = vector.shape_cast %27 : vector<1x1x4x432xf32> to vector<4x432xf32>
    %cst_29 = arith.constant dense<0.000000e+00> : vector<4x512xf32>
    %29 = tpu.matmul %28, %4, %cst_29 {dimension_numbers = #tpu.dot_dimension_numbers<[1], [0], [0], [1], [0, 0, 1, 1], [], []>} : vector<4x432xf32>, vector<432x512xf32>, vector<4x512xf32> -> vector<4x512xf32>
    %30 = vector.broadcast %5 : vector<1x512xf32> to vector<4x512xf32>
    %31 = arith.addf %29, %30 : vector<4x512xf32>
    %cst_30 = arith.constant 0.000000e+00 : f32
    %32 = vector.broadcast %cst_30 : f32 to vector<4x512xf32>
    %33 = arith.maximumf %31, %32 : vector<4x512xf32>
    %c1_31 = arith.constant 1 : index
    %c0_32 = arith.constant 0 : index
    %c0_33 = arith.constant 0 : index
    %34 = vector.load %arg11[%c1_31, %c0_32, %c0_33] : memref<4x5x512xf32, #tpu.memory_space<vmem>>, vector<1x4x512xf32>
    %35 = vector.shape_cast %34 : vector<1x4x512xf32> to vector<4x512xf32>
    %36 = vector.shape_cast %12 : vector<4x512xf32> to vector<1x4x512xf32>
    tpu.vector_store %arg11[%c1_31, %c0_32, %c0_33], %36 {strides = array<i32>} : memref<4x5x512xf32, #tpu.memory_space<vmem>>, vector<1x4x512xf32>,
    %c2_34 = arith.constant 2 : index
    %c0_35 = arith.constant 0 : index
    %c0_36 = arith.constant 0 : index
    %37 = vector.load %arg11[%c2_34, %c0_35, %c0_36] : memref<4x5x512xf32, #tpu.memory_space<vmem>>, vector<1x4x512xf32>
    %38 = vector.shape_cast %37 : vector<1x4x512xf32> to vector<4x512xf32>
    %39 = vector.shape_cast %19 : vector<4x512xf32> to vector<1x4x512xf32>
    tpu.vector_store %arg11[%c2_34, %c0_35, %c0_36], %39 {strides = array<i32>} : memref<4x5x512xf32, #tpu.memory_space<vmem>>, vector<1x4x512xf32>,
    %c3_37 = arith.constant 3 : index
    %c0_38 = arith.constant 0 : index
    %c0_39 = arith.constant 0 : index
    %40 = vector.load %arg11[%c3_37, %c0_38, %c0_39] : memref<4x5x512xf32, #tpu.memory_space<vmem>>, vector<1x4x512xf32>
    %41 = vector.shape_cast %40 : vector<1x4x512xf32> to vector<4x512xf32>
    %42 = vector.shape_cast %26 : vector<4x512xf32> to vector<1x4x512xf32>
    tpu.vector_store %arg11[%c3_37, %c0_38, %c0_39], %42 {strides = array<i32>} : memref<4x5x512xf32, #tpu.memory_space<vmem>>, vector<1x4x512xf32>,
    %c0_40 = arith.constant 0 : index
    %c1_41 = arith.constant 1 : index
    %c0_42 = arith.constant 0 : index
    %43 = vector.load %arg11[%c0_40, %c1_41, %c0_42] : memref<4x5x512xf32, #tpu.memory_space<vmem>>, vector<1x4x512xf32>
    %44 = vector.shape_cast %43 : vector<1x4x512xf32> to vector<4x512xf32>
    %45 = vector.shape_cast %33 : vector<4x512xf32> to vector<1x4x512xf32>
    tpu.vector_store %arg11[%c0_40, %c1_41, %c0_42], %45 {strides = array<i32>} : memref<4x5x512xf32, #tpu.memory_space<vmem>>, vector<1x4x512xf32>,
    %c0_43 = arith.constant 0 : index
    %c0_44 = arith.constant 0 : index
    %46 = vector.load %arg5[%c0_43, %c0_44] : memref<1x256xf32, #tpu.memory_space<vmem>>, vector<1x256xf32>
    %c0_45 = arith.constant 0 : index
    %c0_46 = arith.constant 0 : index
    %c0_47 = arith.constant 0 : index
    %47 = vector.load %arg11[%c0_45, %c0_46, %c0_47] : memref<4x5x512xf32, #tpu.memory_space<vmem>>, vector<1x4x512xf32>
    %48 = vector.shape_cast %47 : vector<1x4x512xf32> to vector<4x512xf32>
    %c0_48 = arith.constant 0 : index
    %c0_49 = arith.constant 0 : index
    %c0_50 = arith.constant 0 : index
    %49 = vector.load %arg4[%c0_48, %c0_49, %c0_50] : memref<3x512x256xf32, #tpu.memory_space<vmem>>, vector<1x512x256xf32>
    %50 = vector.shape_cast %49 : vector<1x512x256xf32> to vector<512x256xf32>
    %cst_51 = arith.constant dense<0.000000e+00> : vector<4x256xf32>
    %51 = tpu.matmul %48, %50, %cst_51 {dimension_numbers = #tpu.dot_dimension_numbers<[1], [0], [0], [1], [0, 0, 1, 1], [], []>} : vector<4x512xf32>, vector<512x256xf32>, vector<4x256xf32> -> vector<4x256xf32>
    %c1_52 = arith.constant 1 : index
    %c0_53 = arith.constant 0 : index
    %c0_54 = arith.constant 0 : index
    %52 = vector.load %arg11[%c1_52, %c0_53, %c0_54] : memref<4x5x512xf32, #tpu.memory_space<vmem>>, vector<1x4x512xf32>
    %53 = vector.shape_cast %52 : vector<1x4x512xf32> to vector<4x512xf32>
    %c1_55 = arith.constant 1 : index
    %c0_56 = arith.constant 0 : index
    %c0_57 = arith.constant 0 : index
    %54 = vector.load %arg4[%c1_55, %c0_56, %c0_57] : memref<3x512x256xf32, #tpu.memory_space<vmem>>, vector<1x512x256xf32>
    %55 = vector.shape_cast %54 : vector<1x512x256xf32> to vector<512x256xf32>
    %cst_58 = arith.constant dense<0.000000e+00> : vector<4x256xf32>
    %56 = tpu.matmul %53, %55, %cst_58 {dimension_numbers = #tpu.dot_dimension_numbers<[1], [0], [0], [1], [0, 0, 1, 1], [], []>} : vector<4x512xf32>, vector<512x256xf32>, vector<4x256xf32> -> vector<4x256xf32>
    %57 = arith.addf %51, %56 : vector<4x256xf32>
    %c2_59 = arith.constant 2 : index
    %c0_60 = arith.constant 0 : index
    %c0_61 = arith.constant 0 : index
    %58 = vector.load %arg11[%c2_59, %c0_60, %c0_61] : memref<4x5x512xf32, #tpu.memory_space<vmem>>, vector<1x4x512xf32>
    %59 = vector.shape_cast %58 : vector<1x4x512xf32> to vector<4x512xf32>
    %c2_62 = arith.constant 2 : index
    %c0_63 = arith.constant 0 : index
    %c0_64 = arith.constant 0 : index
    %60 = vector.load %arg4[%c2_62, %c0_63, %c0_64] : memref<3x512x256xf32, #tpu.memory_space<vmem>>, vector<1x512x256xf32>
    %61 = vector.shape_cast %60 : vector<1x512x256xf32> to vector<512x256xf32>
    %cst_65 = arith.constant dense<0.000000e+00> : vector<4x256xf32>
    %62 = tpu.matmul %59, %61, %cst_65 {dimension_numbers = #tpu.dot_dimension_numbers<[1], [0], [0], [1], [0, 0, 1, 1], [], []>} : vector<4x512xf32>, vector<512x256xf32>, vector<4x256xf32> -> vector<4x256xf32>
    %63 = arith.addf %57, %62 : vector<4x256xf32>
    %64 = vector.broadcast %46 : vector<1x256xf32> to vector<4x256xf32>
    %65 = arith.addf %63, %64 : vector<4x256xf32>
    %cst_66 = arith.constant 0.000000e+00 : f32
    %66 = vector.broadcast %cst_66 : f32 to vector<4x256xf32>
    %67 = arith.maximumf %65, %66 : vector<4x256xf32>
    %c2_67 = arith.constant 2 : index
    %c0_68 = arith.constant 0 : index
    %c0_69 = arith.constant 0 : index
    %68 = vector.load %arg11[%c2_67, %c0_68, %c0_69] : memref<4x5x512xf32, #tpu.memory_space<vmem>>, vector<1x4x512xf32>
    %69 = vector.shape_cast %68 : vector<1x4x512xf32> to vector<4x512xf32>
    %c0_70 = arith.constant 0 : index
    %c0_71 = arith.constant 0 : index
    %c0_72 = arith.constant 0 : index
    %70 = vector.load %arg4[%c0_70, %c0_71, %c0_72] : memref<3x512x256xf32, #tpu.memory_space<vmem>>, vector<1x512x256xf32>
    %71 = vector.shape_cast %70 : vector<1x512x256xf32> to vector<512x256xf32>
    %cst_73 = arith.constant dense<0.000000e+00> : vector<4x256xf32>
    %72 = tpu.matmul %69, %71, %cst_73 {dimension_numbers = #tpu.dot_dimension_numbers<[1], [0], [0], [1], [0, 0, 1, 1], [], []>} : vector<4x512xf32>, vector<512x256xf32>, vector<4x256xf32> -> vector<4x256xf32>
    %c3_74 = arith.constant 3 : index
    %c0_75 = arith.constant 0 : index
    %c0_76 = arith.constant 0 : index
    %73 = vector.load %arg11[%c3_74, %c0_75, %c0_76] : memref<4x5x512xf32, #tpu.memory_space<vmem>>, vector<1x4x512xf32>
    %74 = vector.shape_cast %73 : vector<1x4x512xf32> to vector<4x512xf32>
    %c1_77 = arith.constant 1 : index
    %c0_78 = arith.constant 0 : index
    %c0_79 = arith.constant 0 : index
    %75 = vector.load %arg4[%c1_77, %c0_78, %c0_79] : memref<3x512x256xf32, #tpu.memory_space<vmem>>, vector<1x512x256xf32>
    %76 = vector.shape_cast %75 : vector<1x512x256xf32> to vector<512x256xf32>
    %cst_80 = arith.constant dense<0.000000e+00> : vector<4x256xf32>
    %77 = tpu.matmul %74, %76, %cst_80 {dimension_numbers = #tpu.dot_dimension_numbers<[1], [0], [0], [1], [0, 0, 1, 1], [], []>} : vector<4x512xf32>, vector<512x256xf32>, vector<4x256xf32> -> vector<4x256xf32>
    %78 = arith.addf %72, %77 : vector<4x256xf32>
    %c0_81 = arith.constant 0 : index
    %c1_82 = arith.constant 1 : index
    %c0_83 = arith.constant 0 : index
    %79 = vector.load %arg11[%c0_81, %c1_82, %c0_83] : memref<4x5x512xf32, #tpu.memory_space<vmem>>, vector<1x4x512xf32>
    %80 = vector.shape_cast %79 : vector<1x4x512xf32> to vector<4x512xf32>
    %c2_84 = arith.constant 2 : index
    %c0_85 = arith.constant 0 : index
    %c0_86 = arith.constant 0 : index
    %81 = vector.load %arg4[%c2_84, %c0_85, %c0_86] : memref<3x512x256xf32, #tpu.memory_space<vmem>>, vector<1x512x256xf32>
    %82 = vector.shape_cast %81 : vector<1x512x256xf32> to vector<512x256xf32>
    %cst_87 = arith.constant dense<0.000000e+00> : vector<4x256xf32>
    %83 = tpu.matmul %80, %82, %cst_87 {dimension_numbers = #tpu.dot_dimension_numbers<[1], [0], [0], [1], [0, 0, 1, 1], [], []>} : vector<4x512xf32>, vector<512x256xf32>, vector<4x256xf32> -> vector<4x256xf32>
    %84 = arith.addf %78, %83 : vector<4x256xf32>
    %85 = vector.broadcast %46 : vector<1x256xf32> to vector<4x256xf32>
    %86 = arith.addf %84, %85 : vector<4x256xf32>
    %cst_88 = arith.constant 0.000000e+00 : f32
    %87 = vector.broadcast %cst_88 : f32 to vector<4x256xf32>
    %88 = arith.maximumf %86, %87 : vector<4x256xf32>
    %c1_89 = arith.constant 1 : index
    %c0_90 = arith.constant 0 : index
    %c0_91 = arith.constant 0 : index
    %89 = vector.load %arg12[%c1_89, %c0_90, %c0_91] : memref<2x5x256xf32, #tpu.memory_space<vmem>>, vector<1x4x256xf32>
    %90 = vector.shape_cast %89 : vector<1x4x256xf32> to vector<4x256xf32>
    %91 = vector.shape_cast %67 : vector<4x256xf32> to vector<1x4x256xf32>
    tpu.vector_store %arg12[%c1_89, %c0_90, %c0_91], %91 {strides = array<i32>} : memref<2x5x256xf32, #tpu.memory_space<vmem>>, vector<1x4x256xf32>,
    %c0_92 = arith.constant 0 : index
    %c1_93 = arith.constant 1 : index
    %c0_94 = arith.constant 0 : index
    %92 = vector.load %arg12[%c0_92, %c1_93, %c0_94] : memref<2x5x256xf32, #tpu.memory_space<vmem>>, vector<1x4x256xf32>
    %93 = vector.shape_cast %92 : vector<1x4x256xf32> to vector<4x256xf32>
    %94 = vector.shape_cast %88 : vector<4x256xf32> to vector<1x4x256xf32>
    tpu.vector_store %arg12[%c0_92, %c1_93, %c0_94], %94 {strides = array<i32>} : memref<2x5x256xf32, #tpu.memory_space<vmem>>, vector<1x4x256xf32>,
    %c0_95 = arith.constant 0 : index
    %c0_96 = arith.constant 0 : index
    %c0_97 = arith.constant 0 : index
    %95 = vector.load %arg12[%c0_95, %c0_96, %c0_97] : memref<2x5x256xf32, #tpu.memory_space<vmem>>, vector<1x4x256xf32>
    %96 = vector.shape_cast %95 : vector<1x4x256xf32> to vector<4x256xf32>
    %c0_98 = arith.constant 0 : index
    %c0_99 = arith.constant 0 : index
    %c0_100 = arith.constant 0 : index
    %97 = vector.load %arg6[%c0_98, %c0_99, %c0_100] : memref<3x256x128xf32, #tpu.memory_space<vmem>>, vector<1x256x128xf32>
    %98 = vector.shape_cast %97 : vector<1x256x128xf32> to vector<256x128xf32>
    %cst_101 = arith.constant dense<0.000000e+00> : vector<4x128xf32>
    %99 = tpu.matmul %96, %98, %cst_101 {dimension_numbers = #tpu.dot_dimension_numbers<[1], [0], [0], [1], [0, 0, 1, 1], [], []>} : vector<4x256xf32>, vector<256x128xf32>, vector<4x128xf32> -> vector<4x128xf32>
    %c1_102 = arith.constant 1 : index
    %c0_103 = arith.constant 0 : index
    %c0_104 = arith.constant 0 : index
    %100 = vector.load %arg12[%c1_102, %c0_103, %c0_104] : memref<2x5x256xf32, #tpu.memory_space<vmem>>, vector<1x4x256xf32>
    %101 = vector.shape_cast %100 : vector<1x4x256xf32> to vector<4x256xf32>
    %c1_105 = arith.constant 1 : index
    %c0_106 = arith.constant 0 : index
    %c0_107 = arith.constant 0 : index
    %102 = vector.load %arg6[%c1_105, %c0_106, %c0_107] : memref<3x256x128xf32, #tpu.memory_space<vmem>>, vector<1x256x128xf32>
    %103 = vector.shape_cast %102 : vector<1x256x128xf32> to vector<256x128xf32>
    %cst_108 = arith.constant dense<0.000000e+00> : vector<4x128xf32>
    %104 = tpu.matmul %101, %103, %cst_108 {dimension_numbers = #tpu.dot_dimension_numbers<[1], [0], [0], [1], [0, 0, 1, 1], [], []>} : vector<4x256xf32>, vector<256x128xf32>, vector<4x128xf32> -> vector<4x128xf32>
    %105 = arith.addf %99, %104 : vector<4x128xf32>
    %c0_109 = arith.constant 0 : index
    %c1_110 = arith.constant 1 : index
    %c0_111 = arith.constant 0 : index
    %106 = vector.load %arg12[%c0_109, %c1_110, %c0_111] : memref<2x5x256xf32, #tpu.memory_space<vmem>>, vector<1x4x256xf32>
    %107 = vector.shape_cast %106 : vector<1x4x256xf32> to vector<4x256xf32>
    %c2_112 = arith.constant 2 : index
    %c0_113 = arith.constant 0 : index
    %c0_114 = arith.constant 0 : index
    %108 = vector.load %arg6[%c2_112, %c0_113, %c0_114] : memref<3x256x128xf32, #tpu.memory_space<vmem>>, vector<1x256x128xf32>
    %109 = vector.shape_cast %108 : vector<1x256x128xf32> to vector<256x128xf32>
    %cst_115 = arith.constant dense<0.000000e+00> : vector<4x128xf32>
    %110 = tpu.matmul %107, %109, %cst_115 {dimension_numbers = #tpu.dot_dimension_numbers<[1], [0], [0], [1], [0, 0, 1, 1], [], []>} : vector<4x256xf32>, vector<256x128xf32>, vector<4x128xf32> -> vector<4x128xf32>
    %111 = arith.addf %105, %110 : vector<4x128xf32>
    %c0_116 = arith.constant 0 : index
    %c0_117 = arith.constant 0 : index
    %112 = vector.load %arg7[%c0_116, %c0_117] : memref<1x128xf32, #tpu.memory_space<vmem>>, vector<1x128xf32>
    %113 = vector.broadcast %112 : vector<1x128xf32> to vector<4x128xf32>
    %114 = arith.addf %111, %113 : vector<4x128xf32>
    %cst_118 = arith.constant 0.000000e+00 : f32
    %115 = vector.broadcast %cst_118 : f32 to vector<4x128xf32>
    %116 = arith.maximumf %114, %115 : vector<4x128xf32>
    %c0_119 = arith.constant 0 : index
    %c0_120 = arith.constant 0 : index
    %117 = vector.load %arg9[%c0_119, %c0_120] : memref<1x32xf32, #tpu.memory_space<vmem>>, vector<1x32xf32>
    %118 = vector.extract_strided_slice %116 {offsets = [0, 0], sizes = [1, 128], strides = [1, 1]} : vector<4x128xf32> to vector<1x128xf32>
    %c0_121 = arith.constant 0 : index
    %c0_122 = arith.constant 0 : index
    %119 = vector.load %arg8[%c0_121, %c0_122] : memref<512x32xf32, #tpu.memory_space<vmem>>, vector<128x32xf32>
    %cst_123 = arith.constant dense<0.000000e+00> : vector<1x32xf32>
    %120 = tpu.matmul %118, %119, %cst_123 {dimension_numbers = #tpu.dot_dimension_numbers<[1], [0], [0], [1], [0, 0, 1, 1], [], []>} : vector<1x128xf32>, vector<128x32xf32>, vector<1x32xf32> -> vector<1x32xf32>
    %121 = arith.addf %117, %120 : vector<1x32xf32>
    %122 = vector.extract_strided_slice %116 {offsets = [1, 0], sizes = [1, 128], strides = [1, 1]} : vector<4x128xf32> to vector<1x128xf32>
    %c128 = arith.constant 128 : index
    %c0_124 = arith.constant 0 : index
    %123 = vector.load %arg8[%c128, %c0_124] : memref<512x32xf32, #tpu.memory_space<vmem>>, vector<128x32xf32>
    %cst_125 = arith.constant dense<0.000000e+00> : vector<1x32xf32>
    %124 = tpu.matmul %122, %123, %cst_125 {dimension_numbers = #tpu.dot_dimension_numbers<[1], [0], [0], [1], [0, 0, 1, 1], [], []>} : vector<1x128xf32>, vector<128x32xf32>, vector<1x32xf32> -> vector<1x32xf32>
    %125 = arith.addf %121, %124 : vector<1x32xf32>
    %126 = vector.extract_strided_slice %116 {offsets = [2, 0], sizes = [1, 128], strides = [1, 1]} : vector<4x128xf32> to vector<1x128xf32>
    %c256 = arith.constant 256 : index
    %c0_126 = arith.constant 0 : index
    %127 = vector.load %arg8[%c256, %c0_126] : memref<512x32xf32, #tpu.memory_space<vmem>>, vector<128x32xf32>
    %cst_127 = arith.constant dense<0.000000e+00> : vector<1x32xf32>
    %128 = tpu.matmul %126, %127, %cst_127 {dimension_numbers = #tpu.dot_dimension_numbers<[1], [0], [0], [1], [0, 0, 1, 1], [], []>} : vector<1x128xf32>, vector<128x32xf32>, vector<1x32xf32> -> vector<1x32xf32>
    %129 = arith.addf %125, %128 : vector<1x32xf32>
    %130 = vector.extract_strided_slice %116 {offsets = [3, 0], sizes = [1, 128], strides = [1, 1]} : vector<4x128xf32> to vector<1x128xf32>
    %c384 = arith.constant 384 : index
    %c0_128 = arith.constant 0 : index
    %131 = vector.load %arg8[%c384, %c0_128] : memref<512x32xf32, #tpu.memory_space<vmem>>, vector<128x32xf32>
    %cst_129 = arith.constant dense<0.000000e+00> : vector<1x32xf32>
    %132 = tpu.matmul %130, %131, %cst_129 {dimension_numbers = #tpu.dot_dimension_numbers<[1], [0], [0], [1], [0, 0, 1, 1], [], []>} : vector<1x128xf32>, vector<128x32xf32>, vector<1x32xf32> -> vector<1x32xf32>
    %133 = arith.addf %129, %132 : vector<1x32xf32>
    %c0_130 = arith.constant 0 : index
    %c0_131 = arith.constant 0 : index
    %c0_132 = arith.constant 0 : index
    %134 = vector.load %arg10[%c0_130, %c0_131, %c0_132] : memref<1x1x32xf32, #tpu.memory_space<vmem>>, vector<1x1x32xf32>
    %135 = vector.shape_cast %134 : vector<1x1x32xf32> to vector<1x32xf32>
    %136 = vector.shape_cast %133 : vector<1x32xf32> to vector<1x1x32xf32>
    tpu.vector_store %arg10[%c0_130, %c0_131, %c0_132], %136 {strides = array<i32>} : memref<1x1x32xf32, #tpu.memory_space<vmem>>, vector<1x1x32xf32>,
    return
  }
  func.func @transform_0(%arg0: i32) -> (i32, i32, i32, i32) {
    %c0_i32 = arith.constant 0 : i32
    %c0_i32_0 = arith.constant 0 : i32
    %c0_i32_1 = arith.constant 0 : i32
    %c0_i32_2 = arith.constant 0 : i32
    return %arg0, %c0_i32, %c0_i32_0, %c0_i32_1 : i32, i32, i32, i32
  }
  func.func @transform_1(%arg0: i32) -> (i32, i32) {
    %c0_i32 = arith.constant 0 : i32
    %c0_i32_0 = arith.constant 0 : i32
    %c0_i32_1 = arith.constant 0 : i32
    return %c0_i32, %c0_i32_0 : i32, i32
  }
  func.func @transform_2(%arg0: i32) -> (i32, i32) {
    %c0_i32 = arith.constant 0 : i32
    %c0_i32_0 = arith.constant 0 : i32
    %c0_i32_1 = arith.constant 0 : i32
    return %c0_i32, %c0_i32_0 : i32, i32
  }
  func.func @transform_3(%arg0: i32) -> (i32, i32, i32) {
    %c0_i32 = arith.constant 0 : i32
    %c0_i32_0 = arith.constant 0 : i32
    %c0_i32_1 = arith.constant 0 : i32
    %c0_i32_2 = arith.constant 0 : i32
    return %c0_i32, %c0_i32_0, %c0_i32_1 : i32, i32, i32
  }
  func.func @transform_4(%arg0: i32) -> (i32, i32) {
    %c0_i32 = arith.constant 0 : i32
    %c0_i32_0 = arith.constant 0 : i32
    %c0_i32_1 = arith.constant 0 : i32
    return %c0_i32, %c0_i32_0 : i32, i32
  }
  func.func @transform_5(%arg0: i32) -> (i32, i32, i32) {
    %c0_i32 = arith.constant 0 : i32
    %c0_i32_0 = arith.constant 0 : i32
    %c0_i32_1 = arith.constant 0 : i32
    %c0_i32_2 = arith.constant 0 : i32
    return %c0_i32, %c0_i32_0, %c0_i32_1 : i32, i32, i32
  }
  func.func @transform_6(%arg0: i32) -> (i32, i32) {
    %c0_i32 = arith.constant 0 : i32
    %c0_i32_0 = arith.constant 0 : i32
    %c0_i32_1 = arith.constant 0 : i32
    return %c0_i32, %c0_i32_0 : i32, i32
  }
  func.func @transform_7(%arg0: i32) -> (i32, i32) {
    %c0_i32 = arith.constant 0 : i32
    %c0_i32_0 = arith.constant 0 : i32
    %c0_i32_1 = arith.constant 0 : i32
    return %c0_i32, %c0_i32_0 : i32, i32
  }
  func.func @transform_8(%arg0: i32) -> (i32, i32) {
    %c0_i32 = arith.constant 0 : i32
    %c0_i32_0 = arith.constant 0 : i32
    %c0_i32_1 = arith.constant 0 : i32
    return %c0_i32, %c0_i32_0 : i32, i32
  }
  func.func @transform_9(%arg0: i32) -> (i32, i32, i32) {
    %c0_i32 = arith.constant 0 : i32
    %c0_i32_0 = arith.constant 0 : i32
    %c0_i32_1 = arith.constant 0 : i32
    return %arg0, %c0_i32, %c0_i32_0 : i32, i32, i32
  }
}

</mosaic_0001>

<bundles_post_ra>
// kernel: cnn_fast_encoder_forward.1
= control target key start
LH: loop header
LB: loop body
LE: loop exit
PB: predicated region body
PF: predicated region fallthrough
CT: control target
= control target key end

     0   :  { %s4832_s30 = smov 0   ;;  %s11042_s0 = inlined_call_operand.vmem [shape: f32[2,4,4,432], index: 0, kind: input, shape index: {}]   ;;  %s11043_s1 = inlined_call_operand.vmem [shape: f32[432,512], index: 1, kind: input, shape index: {}]   ;;  %s11044_s2 = inlined_call_operand.vmem [shape: f32[1,512], index: 2, kind: input, shape index: {}]   ;;  %s11045_s3 = inlined_call_operand.vmem [shape: f32[3,512,256], index: 3, kind: input, shape index: {}]   ;;  %s11046_s4 = inlined_call_operand.vmem [shape: f32[1,256], index: 4, kind: input, shape index: {}]   ;;  %s11047_s5 = inlined_call_operand.vmem [shape: f32[3,256,128], index: 5, kind: input, shape index: {}]   ;;  %s11048_s6 = inlined_call_operand.vmem [shape: f32[1,128], index: 6, kind: input, shape index: {}]   ;;  %s11049_s7 = inlined_call_operand.vmem [shape: f32[512,32], index: 7, kind: input, shape index: {}]   ;;  %s11050_s8 = inlined_call_operand.vmem [shape: f32[1,32], index: 8, kind: input, shape index: {}]   ;;  %s11051_s9 = inlined_call_operand.vmem [shape: f32[2,1,32], index: 9, kind: output, shape index: {}]  }
   0x1 LB: > { %s3819_s10 = sadd.s32 4294967295, %s4779_s30   ;;  %p3823_p0 = scmp.ge.s32.totalorder %s4779_s30, 1  ;;  %s4779_s30 = sphi %s4832_s30, %s19_s30  }
   0x2   : > { %p287_p1 = scmp.lt.s32.totalorder %s4779_s30, 3 }
   0x4   : > { %p288_p2 = pnand %p3823_p0, %p287_p1 }
   0x6   : > { %291 = sbr.rel (%p288_p2) target bundleno = 1468 (0x5bc), region = 56 }
   0xb   : > { %v4843_v0 = vld [vmem:[%s11043_s1 + $0x1e0] sm:$0xff]  ;;  %v4983_v24 = vld [vmem:[%s11043_s1 + $0x1e8] sm:$0xff]  ;;  %p5052_p3 = scmp.lt.s32.totalorder %s3819_s10, 1  ;;  %vm589_vm0 = vcmask 392192   ;;  %vm3770_vm1 = vcmask 253952  }
   0xc   : > { %v4848_v1 = vld [vmem:[%s11043_s1 + $0x3e0] sm:$0xff]  ;;  %592 = vmatpush.msra.mxu0 %v4843_v0  ;;  %v5007_v28 = vld [vmem:[%s11043_s1 + $0x1c8] sm:$0xff] }
   0xd   : > { %v4853_v2 = vld [vmem:[%s11043_s1 + $0x5e0] sm:$0xff]  ;;  %612 = vmatpush.msra.mxu1 %v4848_v1  ;;  %11338 = vst [vmem:[#allocation5_spill] sm:$0xff] %v5007_v28  ;;  %v5031_v32 = vld [vmem:[%s11043_s1 + $0x1a8] sm:$0xff]  ;;  %s11905_s10 = smov (!%p5052_p3, %s3819_s10), 1 }
   0xe   : > { %v4860_v3 = vld [vmem:[%s11043_s1 + $0x6a0] sm:$0xff]  ;;  %632 = vmatpush.msra.mxu2 %v4853_v2  ;;  %11340 = vst [vmem:[#allocation7_spill] sm:$0xff] %v5031_v32  ;;  %v5061_v36 = vld [vmem:[%s11043_s1 + $0x188] sm:$0xff]  ;;  %s4170_s21 = sshll.u32 %s11905_s10, 6  ;;  %s328_s16 = scalar_lea.vmem %s11051_s9, %s11905_s10 }
   0xf   : > { %v4865_v4 = vld [vmem:[%s11043_s1 + $0x1c0] sm:$0xff]  ;;  %662 = vmatpush.msra.mxu3 %v4860_v3  ;;  %11343 = vst [vmem:[#allocation9_spill] sm:$0xff] %v5061_v36  ;;  %v5085_v40 = vld [vmem:[%s11043_s1 + $0x168] sm:$0xff]  ;;  %s5198_s17 = scalar_lea.vmem %s11042_s0, %s4170_s21 }
  0x10   : > { %v4870_v5 = vld [vmem:[%s11043_s1 + $0x3c0] sm:$0xff]  ;;  %593 = vmatpush.msra.mxu0 %v4865_v4  ;;  %11345 = vst [vmem:[#allocation11_spill] sm:$0xff] %v5085_v40  ;;  %v5115_v44 = vld [vmem:[%s11043_s1 + $0x148] sm:$0xff] }
  0x11   : > { %v4877_v6 = vld [vmem:[%s11043_s1 + $0x5c0] sm:$0xff]  ;;  %613 = vmatpush.msra.mxu1 %v4870_v5  ;;  %11347 = vst [vmem:[#allocation13_spill] sm:$0xff] %v5115_v44  ;;  %v5139_v48 = vld [vmem:[%s11043_s1 + $0x128] sm:$0xff] }
  0x12   : > { %v4882_v7 = vld [vmem:[%s11043_s1 + $0x680] sm:$0xff]  ;;  %633 = vmatpush.msra.mxu2 %v4877_v6  ;;  %11349 = vst [vmem:[#allocation15_spill] sm:$0xff] %v5139_v48  ;;  %v5164_v52 = vld [vmem:[%s11043_s1 + $0x108] sm:$0xff] }
  0x13   : > { %v4887_v8 = vld [vmem:[%s11043_s1 + $0x1a0] sm:$0xff]  ;;  %663 = vmatpush.msra.mxu3 %v4882_v7  ;;  %11351 = vst [vmem:[#allocation17_spill] sm:$0xff] %v5164_v52  ;;  %v5188_v56 = vld [vmem:[%s11043_s1 + $0xe8] sm:$0xff] }
  0x14   : > { %v4894_v9 = vld [vmem:[%s11043_s1 + $0x3a0] sm:$0xff]  ;;  %594 = vmatpush.msra.mxu0 %v4887_v8  ;;  %11353 = vst [vmem:[#allocation19_spill] sm:$0xff] %v5188_v56  ;;  %v5217_v60 = vld [vmem:[%s11043_s1 + $0xc8] sm:$0xff] }
  0x15   : > { %v4899_v10 = vld [vmem:[%s11043_s1 + $0x5a0] sm:$0xff]  ;;  %614 = vmatpush.msra.mxu1 %v4894_v9  ;;  %11355 = vst [vmem:[#allocation21_spill] sm:$0xff] %v5217_v60 }
  0x16   : > { %v4904_v11 = vld [vmem:[%s11043_s1 + $0x660] sm:$0xff]  ;;  %634 = vmatpush.msra.mxu2 %v4899_v10 }
  0x17   : > { %v4911_v12 = vld [vmem:[%s11043_s1 + $0x180] sm:$0xff]  ;;  %664 = vmatpush.msra.mxu3 %v4904_v11 }
  0x18   : > { %v4916_v13 = vld [vmem:[%s11043_s1 + $0x380] sm:$0xff]  ;;  %595 = vmatpush.msra.mxu0 %v4911_v12 }
  0x19   : > { %v4923_v14 = vld [vmem:[%s11043_s1 + $0x580] sm:$0xff]  ;;  %615 = vmatpush.msra.mxu1 %v4916_v13 }
  0x1a   : > { %v4928_v15 = vld [vmem:[%s11043_s1 + $0x640] sm:$0xff]  ;;  %635 = vmatpush.msra.mxu2 %v4923_v14 }
  0x1b   : > { %v4935_v16 = vld [vmem:[%s11043_s1 + $0x160] sm:$0xff]  ;;  %665 = vmatpush.msra.mxu3 %v4928_v15 }
  0x1c   : > { %v4940_v17 = vld [vmem:[%s11043_s1 + $0x360] sm:$0xff]  ;;  %596 = vmatpush.msra.mxu0 %v4935_v16 }
  0x1d   : > { %v4947_v18 = vld [vmem:[%s11043_s1 + $0x560] sm:$0xff]  ;;  %616 = vmatpush.msra.mxu1 %v4940_v17 }
  0x1e   : > { %v4952_v19 = vld [vmem:[%s11043_s1 + $0x620] sm:$0xff]  ;;  %636 = vmatpush.msra.mxu2 %v4947_v18 }
  0x1f   : > { %v4959_v20 = vld [vmem:[%s11043_s1 + $0x140] sm:$0xff]  ;;  %666 = vmatpush.msra.mxu3 %v4952_v19 }
  0x20   : > { %v4964_v21 = vld [vmem:[%s11043_s1 + $0x340] sm:$0xff]  ;;  %597 = vmatpush.msra.mxu0 %v4959_v20 }
  0x21   : > { %v4971_v22 = vld [vmem:[%s11043_s1 + $0x540] sm:$0xff]  ;;  %617 = vmatpush.msra.mxu1 %v4964_v21 }
  0x22   : > { %v4976_v23 = vld [vmem:[%s11043_s1 + $0x600] sm:$0xff]  ;;  %637 = vmatpush.msra.mxu2 %v4971_v22 }
  0x23   : > { %v4988_v25 = vld [vmem:[%s11043_s1 + $0x120] sm:$0xff]  ;;  %667 = vmatpush.msra.mxu3 %v4976_v23 }
  0x24   : > { %v4995_v26 = vld [vmem:[%s11043_s1 + $0x320] sm:$0xff]  ;;  %598 = vmatpush.msra.mxu0 %v4988_v25 }
  0x25   : > { %v5000_v27 = vld [vmem:[%s11043_s1 + $0x520] sm:$0xff]  ;;  %672 = vmatpush.msrb.mxu3 %v4983_v24  ;;  %618 = vmatpush.msra.mxu1 %v4995_v26 }
  0x26   : > { %11337 = vst [vmem:[#allocation4_spill] sm:$0xff] %v5000_v27  ;;  %v5012_v29 = vld [vmem:[%s11043_s1 + $0x100] sm:$0xff]  ;;  %638 = vmatpush.msra.mxu2 %v5000_v27  ;;  %v5355_v27 = vld [vmem:[%s11043_s1 + $0x568] sm:$0xff] }
  0x27   : > { %v5019_v30 = vld [vmem:[%s11043_s1 + $0x300] sm:$0xff]  ;;  %673 = vmatpush.msrb.mxu3 %v5007_v28  ;;  %599 = vmatpush.msra.mxu0 %v5012_v29  ;;  %11368 = vst [vmem:[#allocation34_spill] sm:$0xff] %v5355_v27 }
  0x28   : > { %v5024_v31 = vld [vmem:[%s11043_s1 + $0x500] sm:$0xff]  ;;  %619 = vmatpush.msra.mxu1 %v5019_v30 }
  0x29   : > { %11339 = vst [vmem:[#allocation6_spill] sm:$0xff] %v5024_v31  ;;  %v5036_v33 = vld [vmem:[%s11043_s1 + $0xe0] sm:$0xff]  ;;  %639 = vmatpush.msra.mxu2 %v5024_v31  ;;  %674 = vmatpush.msrb.mxu3 %v5031_v32  ;;  %v3830_v32 = vld [vmem:[%s5198_s17 + $0x10] sm:$0xff] }
  0x2a   : > { %v5043_v34 = vld [vmem:[%s11043_s1 + $0x2e0] sm:$0xff]  ;;  %600 = vmatpush.msra.mxu0 %v5036_v33 }
  0x2b   : > { %v5048_v35 = vld [vmem:[%s11043_s1 + $0x4e0] sm:$0xff]  ;;  %620 = vmatpush.msra.mxu1 %v5043_v34  ;;  %675 = vmatpush.msrb.mxu3 %v5061_v36  ;;  %v3831_v36 = vld [vmem:[%s5198_s17 + $0x18] sm:$0xff] }
  0x2c   : > { %11341 = vst [vmem:[#allocation8_spill] sm:$0xff] %v5048_v35  ;;  %v5066_v37 = vld [vmem:[%s11043_s1 + $0xc0] sm:$0xff]  ;;  %640 = vmatpush.msra.mxu2 %v5048_v35  ;;  %v5336_v35 = vld [vmem:[%s11043_s1 + $0x28] sm:$0xff] }
  0x2d   : > { %v5073_v38 = vld [vmem:[%s11043_s1 + $0x2c0] sm:$0xff]  ;;  %601 = vmatpush.msra.mxu0 %v5066_v37  ;;  %676 = vmatpush.msrb.mxu3 %v5085_v40  ;;  %v5311_v40 = vld [vmem:[%s11043_s1 + $0x48] sm:$0xff]  ;;  %11367 = vst [vmem:[#allocation33_spill] sm:$0xff] %v5336_v35 }
  0x2e   : > { %v5078_v39 = vld [vmem:[%s11043_s1 + $0x4c0] sm:$0xff]  ;;  %621 = vmatpush.msra.mxu1 %v5073_v38  ;;  %11365 = vst [vmem:[#allocation31_spill] sm:$0xff] %v5311_v40 }
  0x2f   : > { %11344 = vst [vmem:[#allocation10_spill] sm:$0xff] %v5078_v39  ;;  %v5090_v41 = vld [vmem:[%s11043_s1 + $0xa0] sm:$0xff]  ;;  %641 = vmatpush.msra.mxu2 %v5078_v39  ;;  %677 = vmatpush.msrb.mxu3 %v5115_v44  ;;  %v5289_v44 = vld [vmem:[%s11043_s1 + $0x68] sm:$0xff] }
  0x30   : > { %v5097_v42 = vld [vmem:[%s11043_s1 + $0x2a0] sm:$0xff]  ;;  %602 = vmatpush.msra.mxu0 %v5090_v41  ;;  %11361 = vst [vmem:[#allocation27_spill] sm:$0xff] %v5289_v44  ;;  %v5323_v39 = vld [vmem:[%s11043_s1 + $0x588] sm:$0xff] }
  0x31   : > { %v5102_v43 = vld [vmem:[%s11043_s1 + $0x4a0] sm:$0xff]  ;;  %622 = vmatpush.msra.mxu1 %v5097_v42  ;;  %678 = vmatpush.msrb.mxu3 %v5139_v48 }
  0x32   : > { %11346 = vst [vmem:[#allocation12_spill] sm:$0xff] %v5102_v43  ;;  %v5120_v45 = vld [vmem:[%s11043_s1 + $0x80] sm:$0xff]  ;;  %642 = vmatpush.msra.mxu2 %v5102_v43  ;;  %v5294_v43 = vld [vmem:[%s11043_s1 + $0x3a8] sm:$0xff] }
  0x33   : > { %v5127_v46 = vld [vmem:[%s11043_s1 + $0x280] sm:$0xff]  ;;  %603 = vmatpush.msra.mxu0 %v5120_v45  ;;  %679 = vmatpush.msrb.mxu3 %v5164_v52  ;;  %v5247_v52 = vld [vmem:[%s11043_s1 + $0x3e8] sm:$0xff]  ;;  %11362 = vst [vmem:[#allocation28_spill] sm:$0xff] %v5294_v43 }
  0x34   : > { %v5132_v47 = vld [vmem:[%s11043_s1 + $0x480] sm:$0xff]  ;;  %623 = vmatpush.msra.mxu1 %v5127_v46 }
  0x35   : > { %11348 = vst [vmem:[#allocation14_spill] sm:$0xff] %v5132_v47  ;;  %v5144_v49 = vld [vmem:[%s11043_s1 + $0x60] sm:$0xff]  ;;  %643 = vmatpush.msra.mxu2 %v5132_v47  ;;  %680 = vmatpush.msrb.mxu3 %v5188_v56  ;;  %v5242_v56 = vld [vmem:[%s11043_s1 + $0xa8] sm:$0xff] }
  0x36   : > { %v5151_v50 = vld [vmem:[%s11043_s1 + $0x260] sm:$0xff]  ;;  %604 = vmatpush.msra.mxu0 %v5144_v49  ;;  %11357 = vst [vmem:[#allocation23_spill] sm:$0xff] %v5242_v56  ;;  %v5277_v47 = vld [vmem:[%s11043_s1 + $0x5c8] sm:$0xff] }
  0x37   : > { %v5156_v51 = vld [vmem:[%s11043_s1 + $0x460] sm:$0xff]  ;;  %624 = vmatpush.msra.mxu1 %v5151_v50  ;;  %681 = vmatpush.msrb.mxu3 %v5217_v60  ;;  %v5272_v60 = vld [vmem:[%s11043_s1 + $0x3c8] sm:$0xff] }
  0x38   : > { %11350 = vst [vmem:[#allocation16_spill] sm:$0xff] %v5156_v51  ;;  %v5169_v53 = vld [vmem:[%s11043_s1 + $0x40] sm:$0xff]  ;;  %644 = vmatpush.msra.mxu2 %v5156_v51  ;;  %v5254_v51 = vld [vmem:[%s11043_s1 + $0x5e8] sm:$0xff] }
  0x39   : > { %v5176_v54 = vld [vmem:[%s11043_s1 + $0x240] sm:$0xff]  ;;  %605 = vmatpush.msra.mxu0 %v5169_v53  ;;  %682 = vmatpush.msrb.mxu3 %v5242_v56  ;;  %v5306_v56 = vld [vmem:[%s11043_s1 + $0x668] sm:$0xff] }
  0x3a   : > { %v5181_v55 = vld [vmem:[%s11043_s1 + $0x440] sm:$0xff]  ;;  %625 = vmatpush.msra.mxu1 %v5176_v54  ;;  %11364 = vst [vmem:[#allocation30_spill] sm:$0xff] %v5306_v56 }
  0x3b   : > { %11352 = vst [vmem:[#allocation18_spill] sm:$0xff] %v5181_v55  ;;  %v5193_v57 = vld [vmem:[%s11043_s1 + $0x20] sm:$0xff]  ;;  %645 = vmatpush.msra.mxu2 %v5181_v55  ;;  %v567_v55 = vld [vmem:[%s5198_s17 + $0x8] sm:$0xff] }
  0x3c   : > { %v5205_v58 = vld [vmem:[%s11043_s1 + $0x220] sm:$0xff]  ;;  %606 = vmatpush.msra.mxu0 %v5193_v57  ;;  %581 = vst [vmem:[#allocation1 + $0x10] ss:$2 sm:$0xff] %v567_v55  ;;  %v5267_v55 = vld [vmem:[%s11043_s1 + $0x88] sm:$0xff] }
  0x3d   : > { %v5210_v59 = vld [vmem:[%s11043_s1 + $0x420] sm:$0xff]  ;;  %626 = vmatpush.msra.mxu1 %v5205_v58  ;;  %11359 = vst [vmem:[#allocation25_spill] sm:$0xff] %v5267_v55  ;;  %683 = vmatpush.msrb.mxu3 %v5267_v55  ;;  %v5331_v55 = vld [vmem:[%s11043_s1 + $0x648] sm:$0xff] }
  0x3e   : > { %11354 = vst [vmem:[#allocation20_spill] sm:$0xff] %v5210_v59  ;;  %v5222_v61 = vld [vmem:[%s11043_s1] sm:$0xff]  ;;  %646 = vmatpush.msra.mxu2 %v5210_v59  ;;  %v5259_v59 = vld [vmem:[%s11043_s1 + $0x6a8] sm:$0xff] }
  0x3f   : > { %v5229_v62 = vld [vmem:[%s11043_s1 + $0x200] sm:$0xff]  ;;  %607 = vmatpush.msra.mxu0 %v5222_v61  ;;  %11358 = vst [vmem:[#allocation24_spill] sm:$0xff] %v5259_v59  ;;  %684 = vmatpush.msrb.mxu3 %v5289_v44  ;;  %v5360_v44 = vld [vmem:[%s11043_s1 + $0x628] sm:$0xff] }
  0x40   : > { %v5234_v63 = vld [vmem:[%s11043_s1 + $0x400] sm:$0xff]  ;;  %627 = vmatpush.msra.mxu1 %v5229_v62  ;;  %11366 = vst [vmem:[#allocation32_spill] sm:$0xff] %v5331_v55 }
  0x41   : > { %11356 = vst [vmem:[#allocation22_spill] sm:$0xff] %v5234_v63  ;;  %v566_v48 = vld [vmem:[%s5198_s17] sm:$0xff]  ;;  %647 = vmatpush.msra.mxu2 %v5234_v63  ;;  %692 = vmatpush.msrb.mxu0 %v5247_v52  ;;  %v5284_v63 = vld [vmem:[%s11043_s1 + $0x688] sm:$0xff] }
  0x42   : > { %579 = vst [vmem:[#allocation1] ss:$2 sm:$0xff] %v566_v48  ;;  %712 = vmatpush.msrb.mxu1 %v5254_v51  ;;  %v5301_v48 = vld [vmem:[%s11043_s1 + $0x5a8] sm:$0xff]  ;;  %685 = vmatpush.msrb.mxu3 %v5311_v40 }
  0x43   : > { %11360 = vst [vmem:[#allocation26_spill] sm:$0xff] %v5284_v63  ;;  %742 = vmatpush.msrb.mxu2 %v5259_v59  ;;  %693 = vmatpush.msrb.mxu0 %v5272_v60  ;;  %v5318_v59 = vld [vmem:[%s11043_s1 + $0x388] sm:$0xff]  ;;  %v5341_v31 = vld.sshfl [vmem:[#allocation1 + $0x10] sm:$0xff pattern:$0x75316420] }
  0x44   : > { %11363 = vst [vmem:[#allocation29_spill] sm:$0xff] %v5301_v48  ;;  %713 = vmatpush.msrb.mxu1 %v5277_v47  ;;  %v5343_v28 = vld.sshfl [vmem:[#allocation1 + $0x18] sm:$0xff pattern:$0x75316420]  ;;  %686 = vmatpush.msrb.mxu3 %v5336_v35  ;;  %v5385_v40 = vld [vmem:[%s11043_s1 + $0x548] sm:$0xff]  ;;  %v5404_v35 = vld [vmem:[%s11043_s1 + $0x3f0] sm:$0xff] }
  0x45   : > { %743 = vmatpush.msrb.mxu2 %v5284_v63  ;;  %694 = vmatpush.msrb.mxu0 %v5294_v43  ;;  %v5350_v63 = vld [vmem:[%s11043_s1 + $0x368] sm:$0xff]  ;;  %11369 = vst [vmem:[#allocation35_spill] sm:$0xff] %v5360_v44 }
  0x46   : > { %714 = vmatpush.msrb.mxu1 %v5301_v48  ;;  %923 = vst [vmem:[#allocation1 + $0x10] ss:$2 sm:$0xff] %v3831_v36  ;;  %v5373_v43 = vld [vmem:[%s11043_s1 + $0x8] sm:$0xff]  ;;  %648 = vmatmul.f32.vlgmr.msra.gmra.mxu2 %v5341_v31 }
  0x47   : > { %744 = vmatpush.msrb.mxu2 %v5306_v56  ;;  %695 = vmatpush.msrb.mxu0 %v5318_v59  ;;  %11370 = vst [vmem:[#allocation36_spill] sm:$0xff] %v5373_v43  ;;  %v5378_v36 = vld [vmem:[%s11043_s1 + $0x348] sm:$0xff] }
  0x48   : > { %715 = vmatpush.msrb.mxu1 %v5323_v39  ;;  %11371 = vst [vmem:[#allocation37_spill] sm:$0xff] %v5378_v36  ;;  %687 = vmatpush.msrb.mxu3 %v5373_v43  ;;  %v5411_v43 = vld [vmem:[%s11043_s1 + $0x328] sm:$0xff] }
  0x49   : > { %v5364_v56 = vld.sshfl [vmem:[#allocation1] sm:$0xff pattern:$0x75316420]  ;;  %v5366_v48 = vld.sshfl [vmem:[#allocation1 + $0x8] sm:$0xff pattern:$0x75316420]  ;;  %745 = vmatpush.msrb.mxu2 %v5331_v55  ;;  %696 = vmatpush.msrb.mxu0 %v5350_v63 }
  0x4a   : > { %921 = vst [vmem:[#allocation1] ss:$2 sm:$0xff] %v3830_v32  ;;  %v5390_v55 = vld [vmem:[%s11043_s1 + $0x608] sm:$0xff]  ;;  %716 = vmatpush.msrb.mxu1 %v5355_v27  ;;  %v5399_v32 = vld [vmem:[%s11043_s1 + $0x1f0] sm:$0xff]  ;;  %3826 = vmatmul.msk.f32.vlgmr.msra.gmra.mxu3 %vm589_vm0, %v5343_v28 }
  0x4b   : > { %11372 = vst [vmem:[#allocation38_spill] sm:$0xff] %v5385_v40  ;;  %746 = vmatpush.msrb.mxu2 %v5360_v44  ;;  %697 = vmatpush.msrb.mxu0 %v5378_v36  ;;  %v5416_v44 = vld [vmem:[%s11043_s1 + $0x528] sm:$0xff] }
  0x4c   : > { %11373 = vst [vmem:[#allocation39_spill] sm:$0xff] %v5390_v55  ;;  %717 = vmatpush.msrb.mxu1 %v5385_v40  ;;  %v5424_v40 = vld [vmem:[%s11043_s1 + $0x1d0] sm:$0xff]  ;;  %772 = vmatpush.msra.mxu3 %v5404_v35  ;;  %v5436_v36 = vld [vmem:[%s11043_s1 + $0x308] sm:$0xff] }
  0x4d   : > { %11374 = vst [vmem:[#allocation40_spill] sm:$0xff] %v5399_v32  ;;  %747 = vmatpush.msrb.mxu2 %v5390_v55  ;;  %v5431_v55 = vld [vmem:[%s11043_s1 + $0x3d0] sm:$0xff]  ;;  %698 = vmatpush.msrb.mxu0 %v5411_v43  ;;  %v5467_v27 = vld [vmem:[%s11043_s1 + $0x4e8] sm:$0xff] }
  0x4e   : > { %11375 = vst [vmem:[#allocation41_spill] sm:$0xff] %v5404_v35  ;;  %718 = vmatpush.msrb.mxu1 %v5416_v44  ;;  %v5448_v35 = vld [vmem:[%s11043_s1 + $0x1b0] sm:$0xff]  ;;  %608 = vmatmul.f32.vlgmr.msra.gmra.mxu0 %v5364_v56 }
  0x4f   : > { %11376 = vst [vmem:[#allocation42_spill] sm:$0xff] %v5411_v43  ;;  %752 = vmatpush.msra.mxu2 %v5399_v32  ;;  %v5443_v32 = vld [vmem:[%s11043_s1 + $0x508] sm:$0xff]  ;;  %v5455_v43 = vld [vmem:[%s11043_s1 + $0x3b0] sm:$0xff]  ;;  %773 = vmatpush.msra.mxu3 %v5431_v55 }
  0x50   : > { %11377 = vst [vmem:[#allocation43_spill] sm:$0xff] %v5416_v44  ;;  %699 = vmatpush.msrb.mxu0 %v5436_v36  ;;  %v5462_v44 = vld [vmem:[%s11043_s1 + $0x2e8] sm:$0xff]  ;;  %719 = vmatpush.msrb.mxu1 %v5443_v32 }
  0x51   : > { %11378 = vst [vmem:[#allocation44_spill] sm:$0xff] %v5424_v40  ;;  %753 = vmatpush.msra.mxu2 %v5424_v40  ;;  %v5479_v40 = vld [vmem:[%s11043_s1 + $0x390] sm:$0xff]  ;;  %628 = vmatmul.f32.vlgmr.msra.gmra.mxu1 %v5366_v48 }
  0x52   : > { %11379 = vst [vmem:[#allocation45_spill] sm:$0xff] %v5431_v55  ;;  %v5474_v55 = vld [vmem:[%s11043_s1 + $0x190] sm:$0xff]  ;;  %774 = vmatpush.msra.mxu3 %v5455_v43  ;;  %700 = vmatpush.msrb.mxu0 %v5462_v44 }
  0x53   : > { %11380 = vst [vmem:[#allocation46_spill] sm:$0xff] %v5436_v36  ;;  %754 = vmatpush.msra.mxu2 %v5448_v35  ;;  %720 = vmatpush.msrb.mxu1 %v5467_v27  ;;  %v5498_v36 = vld [vmem:[%s11043_s1 + $0x170] sm:$0xff] }
  0x54   : > { %11381 = vst [vmem:[#allocation47_spill] sm:$0xff] %v5443_v32  ;;  %v5486_v32 = vld [vmem:[%s11043_s1 + $0x2c8] sm:$0xff]  ;;  %775 = vmatpush.msra.mxu3 %v5479_v40  ;;  %3827 = vmatmul.msk.f32.vlgmr.msrb.gmra.mxu2 %vm589_vm0, %v5343_v28 }
  0x55   : > { %11382 = vst [vmem:[#allocation48_spill] sm:$0xff] %v5448_v35  ;;  %v5491_v35 = vld [vmem:[%s11043_s1 + $0x4c8] sm:$0xff]  ;;  %755 = vmatpush.msra.mxu2 %v5474_v55  ;;  %701 = vmatpush.msrb.mxu0 %v5486_v32 }
  0x56   : > { %11383 = vst [vmem:[#allocation49_spill] sm:$0xff] %v5455_v43  ;;  %v5503_v43 = vld [vmem:[%s11043_s1 + $0x370] sm:$0xff]  ;;  %721 = vmatpush.msrb.mxu1 %v5491_v35  ;;  %688 = vmatmul.f32.vlgmr.msrb.gmra.mxu3 %v5364_v56 }
  0x57   : > { %11384 = vst [vmem:[#allocation50_spill] sm:$0xff] %v5462_v44  ;;  %v5510_v44 = vld [vmem:[%s11043_s1 + $0x2a8] sm:$0xff]  ;;  %756 = vmatpush.msra.mxu2 %v5498_v36  ;;  %776 = vmatpush.msra.mxu3 %v5503_v43 }
  0x58   : > { %11385 = vst [vmem:[#allocation51_spill] sm:$0xff] %v5467_v27  ;;  %v5515_v27 = vld [vmem:[%s11043_s1 + $0x4a8] sm:$0xff]  ;;  %702 = vmatpush.msrb.mxu0 %v5510_v44 }
  0x59   : > { %11386 = vst [vmem:[#allocation52_spill] sm:$0xff] %v5474_v55  ;;  %v5522_v55 = vld [vmem:[%s11043_s1 + $0x150] sm:$0xff]  ;;  %722 = vmatpush.msrb.mxu1 %v5515_v27 }
  0x5a   : > { %11387 = vst [vmem:[#allocation53_spill] sm:$0xff] %v5479_v40  ;;  %v5527_v40 = vld [vmem:[%s11043_s1 + $0x350] sm:$0xff]  ;;  %757 = vmatpush.msra.mxu2 %v5522_v55 }
  0x5b   : > { %11388 = vst [vmem:[#allocation54_spill] sm:$0xff] %v5486_v32  ;;  %v5534_v32 = vld [vmem:[%s11043_s1 + $0x288] sm:$0xff]  ;;  %777 = vmatpush.msra.mxu3 %v5527_v40 }
  0x5c   : > { %11389 = vst [vmem:[#allocation55_spill] sm:$0xff] %v5491_v35  ;;  %v5539_v35 = vld [vmem:[%s11043_s1 + $0x488] sm:$0xff]  ;;  %703 = vmatpush.msrb.mxu0 %v5534_v32 }
  0x5d   : > { %11390 = vst [vmem:[#allocation56_spill] sm:$0xff] %v5498_v36  ;;  %v5546_v36 = vld [vmem:[%s11043_s1 + $0x130] sm:$0xff]  ;;  %723 = vmatpush.msrb.mxu1 %v5539_v35 }
  0x5e   : > { %11391 = vst [vmem:[#allocation57_spill] sm:$0xff] %v5503_v43  ;;  %v5551_v43 = vld [vmem:[%s11043_s1 + $0x330] sm:$0xff]  ;;  %758 = vmatpush.msra.mxu2 %v5546_v36 }
  0x5f   : > { %11392 = vst [vmem:[#allocation58_spill] sm:$0xff] %v5510_v44  ;;  %v5558_v44 = vld [vmem:[%s11043_s1 + $0x268] sm:$0xff]  ;;  %778 = vmatpush.msra.mxu3 %v5551_v43 }
  0x60   : > { %11393 = vst [vmem:[#allocation59_spill] sm:$0xff] %v5515_v27  ;;  %v5563_v27 = vld [vmem:[%s11043_s1 + $0x468] sm:$0xff]  ;;  %704 = vmatpush.msrb.mxu0 %v5558_v44 }
  0x61   : > { %11394 = vst [vmem:[#allocation60_spill] sm:$0xff] %v5522_v55  ;;  %v5570_v55 = vld [vmem:[%s11043_s1 + $0x110] sm:$0xff]  ;;  %724 = vmatpush.msrb.mxu1 %v5563_v27 }
  0x62   : > { %11395 = vst [vmem:[#allocation61_spill] sm:$0xff] %v5527_v40  ;;  %v5575_v40 = vld [vmem:[%s11043_s1 + $0x310] sm:$0xff]  ;;  %759 = vmatpush.msra.mxu2 %v5570_v55 }
  0x63   : > { %11396 = vst [vmem:[#allocation62_spill] sm:$0xff] %v5534_v32  ;;  %v5582_v32 = vld [vmem:[%s11043_s1 + $0x248] sm:$0xff]  ;;  %779 = vmatpush.msra.mxu3 %v5575_v40 }
  0x64   : > { %11397 = vst [vmem:[#allocation63_spill] sm:$0xff] %v5539_v35  ;;  %v5587_v35 = vld [vmem:[%s11043_s1 + $0x448] sm:$0xff]  ;;  %705 = vmatpush.msrb.mxu0 %v5582_v32 }
  0x65   : > { %11398 = vst [vmem:[#allocation64_spill] sm:$0xff] %v5546_v36  ;;  %v5594_v36 = vld [vmem:[%s11043_s1 + $0xf0] sm:$0xff]  ;;  %725 = vmatpush.msrb.mxu1 %v5587_v35 }
  0x66   : > { %11399 = vst [vmem:[#allocation65_spill] sm:$0xff] %v5551_v43  ;;  %v5599_v43 = vld [vmem:[%s11043_s1 + $0x2f0] sm:$0xff]  ;;  %760 = vmatpush.msra.mxu2 %v5594_v36 }
  0x67   : > { %11400 = vst [vmem:[#allocation66_spill] sm:$0xff] %v5558_v44  ;;  %v5606_v44 = vld [vmem:[%s11043_s1 + $0x228] sm:$0xff]  ;;  %780 = vmatpush.msra.mxu3 %v5599_v43 }
  0x68   : > { %11401 = vst [vmem:[#allocation67_spill] sm:$0xff] %v5563_v27  ;;  %v5611_v27 = vld [vmem:[%s11043_s1 + $0x428] sm:$0xff]  ;;  %706 = vmatpush.msrb.mxu0 %v5606_v44 }
  0x69   : > { %11402 = vst [vmem:[#allocation68_spill] sm:$0xff] %v5570_v55  ;;  %v5618_v55 = vld [vmem:[%s11043_s1 + $0xd0] sm:$0xff]  ;;  %726 = vmatpush.msrb.mxu1 %v5611_v27 }
  0x6a   : > { %11403 = vst [vmem:[#allocation69_spill] sm:$0xff] %v5575_v40  ;;  %v5623_v40 = vld [vmem:[%s11043_s1 + $0x2d0] sm:$0xff]  ;;  %761 = vmatpush.msra.mxu2 %v5618_v55 }
  0x6b   : > { %11404 = vst [vmem:[#allocation70_spill] sm:$0xff] %v5582_v32  ;;  %v5630_v32 = vld [vmem:[%s11043_s1 + $0x208] sm:$0xff]  ;;  %781 = vmatpush.msra.mxu3 %v5623_v40 }
  0x6c   : > { %11405 = vst [vmem:[#allocation71_spill] sm:$0xff] %v5587_v35  ;;  %v5635_v35 = vld [vmem:[%s11043_s1 + $0x408] sm:$0xff]  ;;  %707 = vmatpush.msrb.mxu0 %v5630_v32 }
  0x6d   : > { %11406 = vst [vmem:[#allocation72_spill] sm:$0xff] %v5594_v36  ;;  %v5642_v36 = vld [vmem:[%s11043_s1 + $0xb0] sm:$0xff]  ;;  %727 = vmatpush.msrb.mxu1 %v5635_v35  ;;  %708 = vmatmul.f32.vlgmr.msrb.gmra.mxu0 %v5366_v48 }
  0x6e   : > { %11407 = vst [vmem:[#allocation73_spill] sm:$0xff] %v5599_v43  ;;  %v5647_v43 = vld [vmem:[%s11043_s1 + $0x2b0] sm:$0xff]  ;;  %762 = vmatpush.msra.mxu2 %v5642_v36  ;;  %728 = vmatmul.f32.vlgmr.msrb.gmra.mxu1 %v5341_v31 }
  0x6f   : > { %11408 = vst [vmem:[#allocation74_spill] sm:$0xff] %v5606_v44  ;;  %v5654_v44 = vld [vmem:[%s11043_s1 + $0x5f0] sm:$0xff]  ;;  %782 = vmatpush.msra.mxu3 %v5647_v43 }
  0x70   : > { %11409 = vst [vmem:[#allocation75_spill] sm:$0xff] %v5611_v27  ;;  %v5659_v27 = vld [vmem:[%s11043_s1 + $0x1f8] sm:$0xff]  ;;  %792 = vmatpush.msra.mxu0 %v5654_v44 }
  0x71   : > { %11410 = vst [vmem:[#allocation76_spill] sm:$0xff] %v5618_v55  ;;  %v5666_v55 = vld [vmem:[%s11043_s1 + $0x90] sm:$0xff]  ;;  %832 = vmatpush.msra.mxu1 %v5659_v27 }
  0x72   : > { %11411 = vst [vmem:[#allocation77_spill] sm:$0xff] %v5623_v40  ;;  %v5671_v40 = vld [vmem:[%s11043_s1 + $0x290] sm:$0xff]  ;;  %763 = vmatpush.msra.mxu2 %v5666_v55 }
  0x73   : > { %11412 = vst [vmem:[#allocation78_spill] sm:$0xff] %v5630_v32  ;;  %v5678_v32 = vld [vmem:[%s11043_s1 + $0x5d0] sm:$0xff]  ;;  %783 = vmatpush.msra.mxu3 %v5671_v40 }
  0x74   : > { %11413 = vst [vmem:[#allocation79_spill] sm:$0xff] %v5635_v35  ;;  %v5683_v35 = vld [vmem:[%s11043_s1 + $0x1d8] sm:$0xff]  ;;  %793 = vmatpush.msra.mxu0 %v5678_v32 }
  0x75   : > { %11414 = vst [vmem:[#allocation80_spill] sm:$0xff] %v5642_v36  ;;  %v5690_v36 = vld [vmem:[%s11043_s1 + $0x70] sm:$0xff]  ;;  %833 = vmatpush.msra.mxu1 %v5683_v35 }
  0x76   : > { %11415 = vst [vmem:[#allocation81_spill] sm:$0xff] %v5647_v43  ;;  %v5695_v43 = vld [vmem:[%s11043_s1 + $0x270] sm:$0xff]  ;;  %764 = vmatpush.msra.mxu2 %v5690_v36 }
  0x77   : > { %11416 = vst [vmem:[#allocation82_spill] sm:$0xff] %v5654_v44  ;;  %v5702_v44 = vld [vmem:[%s11043_s1 + $0x5b0] sm:$0xff]  ;;  %784 = vmatpush.msra.mxu3 %v5695_v43 }
  0x78   : > { %11417 = vst [vmem:[#allocation83_spill] sm:$0xff] %v5659_v27  ;;  %v5707_v27 = vld [vmem:[%s11043_s1 + $0x1b8] sm:$0xff]  ;;  %794 = vmatpush.msra.mxu0 %v5702_v44 }
  0x79   : > { %11418 = vst [vmem:[#allocation84_spill] sm:$0xff] %v5666_v55  ;;  %v5714_v55 = vld [vmem:[%s11043_s1 + $0x50] sm:$0xff]  ;;  %834 = vmatpush.msra.mxu1 %v5707_v27 }
  0x7a   : > { %11419 = vst [vmem:[#allocation85_spill] sm:$0xff] %v5671_v40  ;;  %v5721_v40 = vld [vmem:[%s11043_s1 + $0x250] sm:$0xff]  ;;  %765 = vmatpush.msra.mxu2 %v5714_v55 }
  0x7b   : > { %11420 = vst [vmem:[#allocation86_spill] sm:$0xff] %v5678_v32  ;;  %v5726_v32 = vld [vmem:[%s11043_s1 + $0x590] sm:$0xff]  ;;  %785 = vmatpush.msra.mxu3 %v5721_v40 }
  0x7c   : > { %11421 = vst [vmem:[#allocation87_spill] sm:$0xff] %v5683_v35  ;;  %v5745_v35 = vld [vmem:[%s11043_s1 + $0x230] sm:$0xff]  ;;  %795 = vmatpush.msra.mxu0 %v5726_v32 }
  0x7d   : > { %11422 = vst [vmem:[#allocation88_spill] sm:$0xff] %v5690_v36  ;;  %v5733_v36 = vld [vmem:[%s11043_s1 + $0x198] sm:$0xff]  ;;  %786 = vmatpush.msra.mxu3 %v5745_v35 }
  0x7e   : > { %11423 = vst [vmem:[#allocation89_spill] sm:$0xff] %v5695_v43  ;;  %v5738_v43 = vld [vmem:[%s11043_s1 + $0x30] sm:$0xff]  ;;  %835 = vmatpush.msra.mxu1 %v5733_v36 }
  0x7f   : > { %11424 = vst [vmem:[#allocation90_spill] sm:$0xff] %v5702_v44  ;;  %v5757_v44 = vld [vmem:[%s11043_s1 + $0x178] sm:$0xff]  ;;  %766 = vmatpush.msra.mxu2 %v5738_v43 }
  0x80   : > { %11425 = vst [vmem:[#allocation91_spill] sm:$0xff] %v5707_v27  ;;  %v5750_v27 = vld [vmem:[%s11043_s1 + $0x570] sm:$0xff]  ;;  %836 = vmatpush.msra.mxu1 %v5757_v44 }
  0x81   : > { %11426 = vst [vmem:[#allocation92_spill] sm:$0xff] %v5714_v55  ;;  %v5762_v55 = vld [vmem:[%s11043_s1 + $0x10] sm:$0xff]  ;;  %796 = vmatpush.msra.mxu0 %v5750_v27 }
  0x82   : > { %11427 = vst [vmem:[#allocation93_spill] sm:$0xff] %v5721_v40  ;;  %v5769_v40 = vld [vmem:[%s11043_s1 + $0x210] sm:$0xff]  ;;  %767 = vmatpush.msra.mxu2 %v5762_v55 }
  0x83   : > { %11428 = vst [vmem:[#allocation94_spill] sm:$0xff] %v5726_v32  ;;  %v5774_v32 = vld [vmem:[%s11043_s1 + $0x550] sm:$0xff]  ;;  %787 = vmatpush.msra.mxu3 %v5769_v40  ;;  %768 = vmatmul.f32.vlgmr.msra.gmra.mxu2 %v5364_v56 }
  0x84   : > { %11429 = vst [vmem:[#allocation95_spill] sm:$0xff] %v5733_v36  ;;  %v5781_v36 = vld [vmem:[%s11043_s1 + $0x158] sm:$0xff]  ;;  %797 = vmatpush.msra.mxu0 %v5774_v32  ;;  %788 = vmatmul.f32.vlgmr.msra.gmra.mxu3 %v5366_v48 }
  0x85   : > { %11430 = vst [vmem:[#allocation96_spill] sm:$0xff] %v5738_v43  ;;  %v5788_v43 = vld [vmem:[%s11043_s1 + $0x6b0] sm:$0xff]  ;;  %837 = vmatpush.msra.mxu1 %v5781_v36 }
  0x86   : > { %11431 = vst [vmem:[#allocation97_spill] sm:$0xff] %v5745_v35  ;;  %v5793_v35 = vld [vmem:[%s11043_s1 + $0x3f8] sm:$0xff]  ;;  %822 = vmatpush.msrb.mxu3 %v5788_v43 }
  0x87   : > { %11432 = vst [vmem:[#allocation98_spill] sm:$0xff] %v5750_v27  ;;  %852 = vmatpush.msrb.mxu2 %v5793_v35  ;;  %v5832_v27 = vld [vmem:[%s11043_s1 + $0x118] sm:$0xff] }
  0x88   : > { %11433 = vst [vmem:[#allocation99_spill] sm:$0xff] %v5757_v44  ;;  %v5800_v44 = vld [vmem:[%s11043_s1 + $0x530] sm:$0xff] }
  0x89   : > { %11434 = vst [vmem:[#allocation100_spill] sm:$0xff] %v5762_v55  ;;  %v5805_v55 = vld [vmem:[%s11043_s1 + $0x138] sm:$0xff]  ;;  %798 = vmatpush.msra.mxu0 %v5800_v44 }
  0x8a   : > { %11435 = vst [vmem:[#allocation101_spill] sm:$0xff] %v5769_v40  ;;  %v5813_v40 = vld [vmem:[%s11043_s1 + $0x690] sm:$0xff]  ;;  %838 = vmatpush.msra.mxu1 %v5805_v55 }
  0x8b   : > { %11436 = vst [vmem:[#allocation102_spill] sm:$0xff] %v5774_v32  ;;  %v5820_v32 = vld [vmem:[%s11043_s1 + $0x3d8] sm:$0xff]  ;;  %823 = vmatpush.msrb.mxu3 %v5813_v40 }
  0x8c   : > { %11437 = vst [vmem:[#allocation103_spill] sm:$0xff] %v5781_v36  ;;  %v5825_v36 = vld [vmem:[%s11043_s1 + $0x510] sm:$0xff]  ;;  %853 = vmatpush.msrb.mxu2 %v5820_v32  ;;  %839 = vmatpush.msra.mxu1 %v5832_v27 }
  0x8d   : > { %11438 = vst [vmem:[#allocation104_spill] sm:$0xff] %v5788_v43  ;;  %799 = vmatpush.msra.mxu0 %v5825_v36  ;;  %v5856_v43 = vld [vmem:[%s11043_s1 + $0xf8] sm:$0xff] }
  0x8e   : > { %11439 = vst [vmem:[#allocation105_spill] sm:$0xff] %v5793_v35  ;;  %v5837_v35 = vld [vmem:[%s11043_s1 + $0x670] sm:$0xff]  ;;  %840 = vmatpush.msra.mxu1 %v5856_v43 }
  0x8f   : > { %11440 = vst [vmem:[#allocation106_spill] sm:$0xff] %v5800_v44  ;;  %v5844_v44 = vld [vmem:[%s11043_s1 + $0x3b8] sm:$0xff]  ;;  %824 = vmatpush.msrb.mxu3 %v5837_v35 }
  0x90   : > { %11441 = vst [vmem:[#allocation107_spill] sm:$0xff] %v5805_v55  ;;  %v5851_v55 = vld [vmem:[%s11043_s1 + $0x4f0] sm:$0xff]  ;;  %854 = vmatpush.msrb.mxu2 %v5844_v44 }
  0x91   : > { %11442 = vst [vmem:[#allocation108_spill] sm:$0xff] %v5813_v40  ;;  %800 = vmatpush.msra.mxu0 %v5851_v55  ;;  %v5887_v40 = vld [vmem:[%s11043_s1 + $0x630] sm:$0xff] }
  0x92   : > { %11443 = vst [vmem:[#allocation109_spill] sm:$0xff] %v5820_v32  ;;  %v5863_v32 = vld [vmem:[%s11043_s1 + $0x650] sm:$0xff] }
  0x93   : > { %11444 = vst [vmem:[#allocation110_spill] sm:$0xff] %v5825_v36  ;;  %v5868_v36 = vld [vmem:[%s11043_s1 + $0x398] sm:$0xff]  ;;  %825 = vmatpush.msrb.mxu3 %v5863_v32 }
  0x94   : > { %11445 = vst [vmem:[#allocation111_spill] sm:$0xff] %v5832_v27  ;;  %v5875_v27 = vld [vmem:[%s11043_s1 + $0x4d0] sm:$0xff]  ;;  %855 = vmatpush.msrb.mxu2 %v5868_v36 }
  0x95   : > { %11446 = vst [vmem:[#allocation112_spill] sm:$0xff] %v5837_v35  ;;  %v5880_v35 = vld [vmem:[%s11043_s1 + $0xd8] sm:$0xff]  ;;  %801 = vmatpush.msra.mxu0 %v5875_v27  ;;  %826 = vmatpush.msrb.mxu3 %v5887_v40 }
  0x96   : > { %11447 = vst [vmem:[#allocation113_spill] sm:$0xff] %v5844_v44  ;;  %v5892_v44 = vld [vmem:[%s11043_s1 + $0x378] sm:$0xff]  ;;  %841 = vmatpush.msra.mxu1 %v5880_v35 }
  0x97   : > { %11448 = vst [vmem:[#allocation114_spill] sm:$0xff] %v5851_v55  ;;  %v5899_v55 = vld [vmem:[%s11043_s1 + $0x4b0] sm:$0xff]  ;;  %856 = vmatpush.msrb.mxu2 %v5892_v44 }
  0x98   : > { %11449 = vst [vmem:[#allocation115_spill] sm:$0xff] %v5856_v43  ;;  %v5906_v43 = vld [vmem:[%s11043_s1 + $0xb8] sm:$0xff]  ;;  %802 = vmatpush.msra.mxu0 %v5899_v55 }
  0x99   : > { %11450 = vst [vmem:[#allocation116_spill] sm:$0xff] %v5863_v32  ;;  %v5911_v32 = vld [vmem:[%s11043_s1 + $0x610] sm:$0xff]  ;;  %842 = vmatpush.msra.mxu1 %v5906_v43 }
  0x9a   : > { %11451 = vst [vmem:[#allocation117_spill] sm:$0xff] %v5868_v36  ;;  %v5918_v36 = vld [vmem:[%s11043_s1 + $0x358] sm:$0xff]  ;;  %827 = vmatpush.msrb.mxu3 %v5911_v32 }
  0x9b   : > { %11452 = vst [vmem:[#allocation118_spill] sm:$0xff] %v5875_v27  ;;  %v5930_v27 = vld [vmem:[%s11043_s1 + $0x98] sm:$0xff]  ;;  %857 = vmatpush.msrb.mxu2 %v5918_v36  ;;  %3828 = vmatmul.msk.f32.vlgmr.msrb.gmra.mxu3 %vm589_vm0, %v5343_v28 }
  0x9c   : > { %11453 = vst [vmem:[#allocation119_spill] sm:$0xff] %v5880_v35  ;;  %v5923_v35 = vld [vmem:[%s11043_s1 + $0x490] sm:$0xff]  ;;  %843 = vmatpush.msra.mxu1 %v5930_v27 }
  0x9d   : > { %11454 = vst [vmem:[#allocation120_spill] sm:$0xff] %v5887_v40  ;;  %v5942_v40 = vld [vmem:[%s11043_s1 + $0x338] sm:$0xff]  ;;  %803 = vmatpush.msra.mxu0 %v5923_v35 }
  0x9e   : > { %11455 = vst [vmem:[#allocation121_spill] sm:$0xff] %v5892_v44  ;;  %v5937_v44 = vld [vmem:[%s11043_s1 + $0x5f8] sm:$0xff]  ;;  %858 = vmatpush.msrb.mxu2 %v5942_v40 }
  0x9f   : > { %11456 = vst [vmem:[#allocation122_spill] sm:$0xff] %v5899_v55  ;;  %v5954_v55 = vld [vmem:[%s11043_s1 + $0x78] sm:$0xff]  ;;  %872 = vmatpush.msra.mxu3 %v5937_v44 }
  0xa0   : > { %11457 = vst [vmem:[#allocation123_spill] sm:$0xff] %v5906_v43  ;;  %v5949_v43 = vld [vmem:[%s11043_s1 + $0x470] sm:$0xff]  ;;  %844 = vmatpush.msra.mxu1 %v5954_v55 }
  0xa1   : > { %11458 = vst [vmem:[#allocation124_spill] sm:$0xff] %v5911_v32  ;;  %v5973_v32 = vld [vmem:[%s11043_s1 + $0x450] sm:$0xff]  ;;  %804 = vmatpush.msra.mxu0 %v5949_v43 }
  0xa2   : > { %11459 = vst [vmem:[#allocation125_spill] sm:$0xff] %v5918_v36  ;;  %v5961_v36 = vld [vmem:[%s11043_s1 + $0x5d8] sm:$0xff] }
  0xa3   : > { %11460 = vst [vmem:[#allocation126_spill] sm:$0xff] %v5923_v35  ;;  %v5966_v35 = vld [vmem:[%s11043_s1 + $0x318] sm:$0xff]  ;;  %873 = vmatpush.msra.mxu3 %v5961_v36  ;;  %805 = vmatpush.msra.mxu0 %v5973_v32 }
  0xa4   : > { %11461 = vst [vmem:[#allocation127_spill] sm:$0xff] %v5930_v27  ;;  %v5978_v27 = vld [vmem:[%s11043_s1 + $0x58] sm:$0xff]  ;;  %859 = vmatpush.msrb.mxu2 %v5966_v35 }
  0xa5   : > { %11462 = vst [vmem:[#allocation128_spill] sm:$0xff] %v5937_v44  ;;  %v5985_v44 = vld [vmem:[%s11043_s1 + $0x5b8] sm:$0xff]  ;;  %845 = vmatpush.msra.mxu1 %v5978_v27 }
  0xa6   : > { %11463 = vst [vmem:[#allocation129_spill] sm:$0xff] %v5942_v40  ;;  %v5990_v40 = vld [vmem:[%s11043_s1 + $0x2f8] sm:$0xff]  ;;  %874 = vmatpush.msra.mxu3 %v5985_v44 }
  0xa7   : > { %11464 = vst [vmem:[#allocation130_spill] sm:$0xff] %v5949_v43  ;;  %v5997_v43 = vld [vmem:[%s11043_s1 + $0x430] sm:$0xff]  ;;  %860 = vmatpush.msrb.mxu2 %v5990_v40 }
  0xa8   : > { %11465 = vst [vmem:[#allocation131_spill] sm:$0xff] %v5954_v55  ;;  %v6004_v55 = vld [vmem:[%s11043_s1 + $0x38] sm:$0xff]  ;;  %806 = vmatpush.msra.mxu0 %v5997_v43 }
  0xa9   : > { %11466 = vst [vmem:[#allocation132_spill] sm:$0xff] %v5961_v36  ;;  %v6009_v36 = vld [vmem:[%s11043_s1 + $0x598] sm:$0xff]  ;;  %846 = vmatpush.msra.mxu1 %v6004_v55 }
  0xaa   : > { %11467 = vst [vmem:[#allocation133_spill] sm:$0xff] %v5966_v35  ;;  %v6016_v35 = vld [vmem:[%s11043_s1 + $0x2d8] sm:$0xff]  ;;  %875 = vmatpush.msra.mxu3 %v6009_v36 }
  0xab   : > { %11468 = vst [vmem:[#allocation134_spill] sm:$0xff] %v5973_v32  ;;  %861 = vmatpush.msrb.mxu2 %v6016_v35  ;;  %v6050_v32 = vld [vmem:[%s11043_s1 + $0x558] sm:$0xff] }
  0xac   : > { %11469 = vst [vmem:[#allocation135_spill] sm:$0xff] %v5978_v27  ;;  %v6021_v27 = vld [vmem:[%s11043_s1 + $0x410] sm:$0xff] }
  0xad   : > { %11470 = vst [vmem:[#allocation136_spill] sm:$0xff] %v5985_v44  ;;  %v6029_v44 = vld [vmem:[%s11043_s1 + $0x18] sm:$0xff]  ;;  %807 = vmatpush.msra.mxu0 %v6021_v27 }
  0xae   : > { %11471 = vst [vmem:[#allocation137_spill] sm:$0xff] %v5990_v40  ;;  %v6034_v40 = vld [vmem:[%s11043_s1 + $0x578] sm:$0xff]  ;;  %847 = vmatpush.msra.mxu1 %v6029_v44  ;;  %808 = vmatmul.f32.vlgmr.msra.gmra.mxu0 %v5341_v31 }
  0xaf   : > { %11472 = vst [vmem:[#allocation138_spill] sm:$0xff] %v5997_v43  ;;  %v6041_v43 = vld [vmem:[%s11043_s1 + $0x2b8] sm:$0xff]  ;;  %876 = vmatpush.msra.mxu3 %v6034_v40  ;;  %933 = vmatpush.msrb.mxu0 %v4843_v0 }
  0xb0   : > { %11473 = vst [vmem:[#allocation139_spill] sm:$0xff] %v6009_v36  ;;  %v6055_v36 = vld [vmem:[%s11043_s1 + $0x298] sm:$0xff]  ;;  %862 = vmatpush.msrb.mxu2 %v6041_v43  ;;  %953 = vmatpush.msrb.mxu1 %v4848_v1 }
  0xb1   : > { %11474 = vst [vmem:[#allocation140_spill] sm:$0xff] %v6016_v35  ;;  %v6064_v35 = vld [vmem:[%s11043_s1 + $0x538] sm:$0xff]  ;;  %877 = vmatpush.msra.mxu3 %v6050_v32  ;;  %934 = vmatpush.msrb.mxu0 %v4865_v4 }
  0xb2   : > { %11475 = vst [vmem:[#allocation141_spill] sm:$0xff] %v6034_v40  ;;  %v6069_v40 = vld [vmem:[%s11043_s1 + $0x278] sm:$0xff]  ;;  %863 = vmatpush.msrb.mxu2 %v6055_v36  ;;  %954 = vmatpush.msrb.mxu1 %v4870_v5 }
  0xb3   : > { %v6078_v0 = vld [vmem:[%s11043_s1 + $0x518] sm:$0xff]  ;;  %878 = vmatpush.msra.mxu3 %v6064_v35  ;;  %935 = vmatpush.msrb.mxu0 %v4887_v8 }
  0xb4   : > { %v6083_v1 = vld [vmem:[%s11043_s1 + $0x258] sm:$0xff]  ;;  %864 = vmatpush.msrb.mxu2 %v6069_v40  ;;  %955 = vmatpush.msrb.mxu1 %v4894_v9 }
  0xb5   : > { %v6092_v4 = vld [vmem:[%s11043_s1 + $0x4f8] sm:$0xff]  ;;  %879 = vmatpush.msra.mxu3 %v6078_v0  ;;  %936 = vmatpush.msrb.mxu0 %v4911_v12 }
  0xb6   : > { %v6097_v5 = vld [vmem:[%s11043_s1 + $0x238] sm:$0xff]  ;;  %865 = vmatpush.msrb.mxu2 %v6083_v1  ;;  %956 = vmatpush.msrb.mxu1 %v4916_v13 }
  0xb7   : > { %v6106_v8 = vld [vmem:[%s11043_s1 + $0x4d8] sm:$0xff]  ;;  %880 = vmatpush.msra.mxu3 %v6092_v4  ;;  %937 = vmatpush.msrb.mxu0 %v4935_v16 }
  0xb8   : > { %v6111_v9 = vld [vmem:[%s11043_s1 + $0x218] sm:$0xff]  ;;  %866 = vmatpush.msrb.mxu2 %v6097_v5  ;;  %957 = vmatpush.msrb.mxu1 %v4940_v17 }
  0xb9   : > { %v6120_v12 = vld [vmem:[%s11043_s1 + $0x4b8] sm:$0xff]  ;;  %881 = vmatpush.msra.mxu3 %v6106_v8  ;;  %938 = vmatpush.msrb.mxu0 %v4959_v20 }
  0xba   : > { %v6125_v13 = vld [vmem:[%s11043_s1 + $0x6b8] sm:$0xff]  ;;  %867 = vmatpush.msrb.mxu2 %v6111_v9  ;;  %958 = vmatpush.msrb.mxu1 %v4964_v21 }
  0xbb   : > { %v6134_v16 = vld [vmem:[%s11043_s1 + $0x498] sm:$0xff]  ;;  %882 = vmatpush.msra.mxu3 %v6120_v12  ;;  %939 = vmatpush.msrb.mxu0 %v4988_v25 }
  0xbc   : > { %v6139_v17 = vld [vmem:[%s11043_s1 + $0x698] sm:$0xff]  ;;  %902 = vmatpush.msra.mxu2 %v6125_v13  ;;  %959 = vmatpush.msrb.mxu1 %v4995_v26 }
  0xbd   : > { %v6148_v20 = vld [vmem:[%s11043_s1 + $0x478] sm:$0xff]  ;;  %883 = vmatpush.msra.mxu3 %v6134_v16  ;;  %940 = vmatpush.msrb.mxu0 %v5012_v29 }
  0xbe   : > { %v6153_v21 = vld [vmem:[%s11043_s1 + $0x678] sm:$0xff]  ;;  %903 = vmatpush.msra.mxu2 %v6139_v17  ;;  %960 = vmatpush.msrb.mxu1 %v5019_v30 }
  0xbf   : > { %v6162_v25 = vld [vmem:[%s11043_s1 + $0x458] sm:$0xff]  ;;  %884 = vmatpush.msra.mxu3 %v6148_v20  ;;  %941 = vmatpush.msrb.mxu0 %v5036_v33 }
  0xc0   : > { %v6167_v26 = vld [vmem:[%s11043_s1 + $0x658] sm:$0xff]  ;;  %904 = vmatpush.msra.mxu2 %v6153_v21  ;;  %961 = vmatpush.msrb.mxu1 %v5043_v34 }
  0xc1   : > { %v6176_v29 = vld [vmem:[%s11043_s1 + $0x438] sm:$0xff]  ;;  %885 = vmatpush.msra.mxu3 %v6162_v25  ;;  %868 = vmatmul.f32.vlgmr.msrb.gmra.mxu2 %v5366_v48 }
  0xc2   : > { %905 = vmatpush.msra.mxu2 %v6167_v26  ;;  %v6183_v30 = vld [vmem:[%s11043_s1 + $0x638] sm:$0xff]  ;;  %942 = vmatpush.msrb.mxu0 %v5066_v37 }
  0xc3   : > { %v6190_v33 = vld [vmem:[%s11043_s1 + $0x418] sm:$0xff]  ;;  %962 = vmatpush.msrb.mxu1 %v5073_v38  ;;  %886 = vmatpush.msra.mxu3 %v6176_v29  ;;  %v11486_v38 = vld [vmem:[#allocation11_spill] sm:$0xff] }
  0xc4   : > { %v6197_v34 = vld [vmem:[%s11043_s1 + $0x618] sm:$0xff]  ;;  %906 = vmatpush.msra.mxu2 %v6183_v30  ;;  %943 = vmatpush.msrb.mxu0 %v5090_v41  ;;  %v11487_v41 = vld [vmem:[#allocation37_spill] sm:$0xff] }
  0xc5   : > { %963 = vmatpush.msrb.mxu1 %v5097_v42  ;;  %887 = vmatpush.msra.mxu3 %v6190_v33  ;;  %v11485_v37 = vld [vmem:[#allocation10_spill] sm:$0xff] }
  0xc6   : > { %907 = vmatpush.msra.mxu2 %v6197_v34  ;;  %944 = vmatpush.msrb.mxu0 %v5120_v45  ;;  %v11488_v42 = vld [vmem:[#allocation38_spill] sm:$0xff]  ;;  %v11489_v45 = vld [vmem:[#allocation12_spill] sm:$0xff] }
  0xc7   : > { %964 = vmatpush.msrb.mxu1 %v5127_v46  ;;  %1003 = vmatpush.msrb.mxu3 %v4860_v3  ;;  %v6232_v3 = vld.sshfl [vmem:[#allocation1 + $0x8] sm:$0xff pattern:$0x75316420]  ;;  %v11490_v46 = vld [vmem:[#allocation13_spill] sm:$0xff]  ;;  %v11507_v48 = vld [vmem:[#allocation58_spill] sm:$0xff] }
  0xc8   : > { %973 = vmatpush.msrb.mxu2 %v4853_v2  ;;  %945 = vmatpush.msrb.mxu0 %v5144_v49  ;;  %v6228_v2 = vld.sshfl [vmem:[#allocation1] sm:$0xff pattern:$0x75316420]  ;;  %v11493_v49 = vld [vmem:[#allocation14_spill] sm:$0xff] }
  0xc9   : > { %888 = vmatmul.f32.vlgmr.msra.gmra.mxu3 %v5341_v31  ;;  %965 = vmatpush.msrb.mxu1 %v5151_v50  ;;  %v11484_v31 = vld [vmem:[#allocation34_spill] sm:$0xff]  ;;  %v11494_v50 = vld [vmem:[#allocation15_spill] sm:$0xff] }
  0xca   : > { %974 = vmatpush.msrb.mxu2 %v4877_v6  ;;  %1004 = vmatpush.msrb.mxu3 %v4882_v7  ;;  %v3836_v6 = vld [vmem:[%s5198_s17 + $0x20] sm:$0xff]  ;;  %v6239_v7 = vld.sshfl [vmem:[#allocation1 + $0x10] sm:$0xff pattern:$0x75316420] }
  0xcb   : > { %848 = vmatmul.f32.vlgmr.msra.gmra.mxu1 %v5364_v56  ;;  %3829 = vmatmul.msk.f32.vlgmr.msra.gmra.mxu2 %vm589_vm0, %v5343_v28  ;;  %1262 = vst [vmem:[#allocation1] ss:$2 sm:$0xff] %v3836_v6  ;;  %v11483_v28 = vld [vmem:[#allocation9_spill] sm:$0xff]  ;;  %v11499_v56 = vld [vmem:[#allocation50_spill] sm:$0xff]  ;;  %v11508_v6 = vld [vmem:[#allocation59_spill] sm:$0xff] }
  0xcc   : > { %946 = vmatpush.msrb.mxu0 %v5169_v53  ;;  %966 = vmatpush.msrb.mxu1 %v5176_v54  ;;  %v11497_v53 = vld [vmem:[#allocation16_spill] sm:$0xff]  ;;  %v11498_v54 = vld [vmem:[#allocation17_spill] sm:$0xff] }
  0xcd   : > { %975 = vmatpush.msrb.mxu2 %v4899_v10  ;;  %1005 = vmatpush.msrb.mxu3 %v4904_v11  ;;  %v11476_v10 = vld [vmem:[#allocation4_spill] sm:$0xff]  ;;  %v6243_v11 = vld.sshfl [vmem:[#allocation1 + $0x18] sm:$0xff pattern:$0x75316420] }
  0xce   : > { %947 = vmatpush.msrb.mxu0 %v5193_v57  ;;  %967 = vmatpush.msrb.mxu1 %v5205_v58  ;;  %v11500_v57 = vld [vmem:[#allocation51_spill] sm:$0xff]  ;;  %v11501_v58 = vld [vmem:[#allocation18_spill] sm:$0xff] }
  0xcf   : > { %976 = vmatpush.msrb.mxu2 %v4923_v14  ;;  %1006 = vmatpush.msrb.mxu3 %v4928_v15  ;;  %v3837_v14 = vld [vmem:[%s5198_s17 + $0x28] sm:$0xff]  ;;  %v11477_v15 = vld [vmem:[#allocation5_spill] sm:$0xff] }
  0xd0   : > { %948 = vmatpush.msrb.mxu0 %v5222_v61  ;;  %968 = vmatpush.msrb.mxu1 %v5229_v62  ;;  %1264 = vst [vmem:[#allocation1 + $0x10] ss:$2 sm:$0xff] %v3837_v14  ;;  %v11504_v61 = vld [vmem:[#allocation55_spill] sm:$0xff]  ;;  %v11505_v62 = vld [vmem:[#allocation20_spill] sm:$0xff] }
  0xd1   : > { %977 = vmatpush.msrb.mxu2 %v4947_v18  ;;  %1007 = vmatpush.msrb.mxu3 %v4952_v19  ;;  %v11478_v18 = vld [vmem:[#allocation28_spill] sm:$0xff]  ;;  %v11479_v19 = vld [vmem:[#allocation29_spill] sm:$0xff]  ;;  %v11510_v14 = vld [vmem:[#allocation23_spill] sm:$0xff] }
  0xd2   : > { %1033 = vmatpush.msra.mxu0 %v5247_v52  ;;  %1053 = vmatpush.msra.mxu1 %v5254_v51  ;;  %v11495_v51 = vld [vmem:[#allocation46_spill] sm:$0xff]  ;;  %v11496_v52 = vld [vmem:[#allocation47_spill] sm:$0xff] }
  0xd3   : > { %978 = vmatpush.msrb.mxu2 %v4971_v22  ;;  %1008 = vmatpush.msrb.mxu3 %v4976_v23  ;;  %v11480_v22 = vld [vmem:[#allocation6_spill] sm:$0xff]  ;;  %v11481_v23 = vld [vmem:[#allocation7_spill] sm:$0xff] }
  0xd4   : > { %1034 = vmatpush.msra.mxu0 %v5272_v60  ;;  %1054 = vmatpush.msra.mxu1 %v5277_v47  ;;  %v11492_v47 = vld [vmem:[#allocation43_spill] sm:$0xff]  ;;  %v11503_v60 = vld [vmem:[#allocation54_spill] sm:$0xff] }
  0xd5   : > { %1013 = vmatpush.msra.mxu3 %v4983_v24  ;;  %979 = vmatpush.msrb.mxu2 %v11476_v10  ;;  %v11482_v24 = vld [vmem:[#allocation8_spill] sm:$0xff]  ;;  %v11509_v10 = vld [vmem:[#allocation22_spill] sm:$0xff] }
  0xd6   : > { %1035 = vmatpush.msra.mxu0 %v11478_v18  ;;  %1055 = vmatpush.msra.mxu1 %v11479_v19  ;;  %v11512_v18 = vld [vmem:[#allocation63_spill] sm:$0xff]  ;;  %v11513_v19 = vld [vmem:[#allocation24_spill] sm:$0xff] }
  0xd7   : > { %1014 = vmatpush.msra.mxu3 %v11477_v15  ;;  %980 = vmatpush.msrb.mxu2 %v11480_v22  ;;  %v11511_v15 = vld [vmem:[#allocation62_spill] sm:$0xff]  ;;  %v11514_v22 = vld [vmem:[#allocation25_spill] sm:$0xff] }
  0xd8   : > { %1036 = vmatpush.msra.mxu0 %v5318_v59  ;;  %1056 = vmatpush.msra.mxu1 %v5323_v39  ;;  %v11491_v39 = vld [vmem:[#allocation42_spill] sm:$0xff]  ;;  %v11502_v59 = vld [vmem:[#allocation19_spill] sm:$0xff] }
  0xd9   : > { %1015 = vmatpush.msra.mxu3 %v11481_v23  ;;  %981 = vmatpush.msrb.mxu2 %v11482_v24  ;;  %v11515_v23 = vld [vmem:[#allocation66_spill] sm:$0xff]  ;;  %v4781_v24 = vmov 0.0  }
  0xda   : > { %1037 = vmatpush.msra.mxu0 %v5350_v63  ;;  %1057 = vmatpush.msra.mxu1 %v11484_v31  ;;  %v11506_v63 = vld [vmem:[#allocation21_spill] sm:$0xff]  ;;  %333 = vst [vmem:[#allocation2 + $0x50] sm:$0x1f] %v4781_v24  ;;  %v11517_v31 = vld [vmem:[#allocation26_spill] sm:$0xff] }
  0xdb   : > { %1016 = vmatpush.msra.mxu3 %v11483_v28  ;;  %982 = vmatpush.msrb.mxu2 %v11485_v37  ;;  %v11516_v28 = vld [vmem:[#allocation67_spill] sm:$0xff]  ;;  %329 = vst [vmem:[#allocation2 + $0x30] sm:$0x1f] %v4781_v24 }
  0xdc   : > { %1038 = vmatpush.msra.mxu0 %v11487_v41  ;;  %1058 = vmatpush.msra.mxu1 %v11488_v42  ;;  %v11518_v37 = vld [vmem:[#allocation27_spill] sm:$0xff]  ;;  %330 = vst [vmem:[#allocation2] sm:$0x1f] %v4781_v24  ;;  %v11521_v42 = vld [vmem:[#allocation30_spill] sm:$0xff] }
  0xdd   : > { %1017 = vmatpush.msra.mxu3 %v11486_v38  ;;  %983 = vmatpush.msrb.mxu2 %v11489_v45  ;;  %v11519_v38 = vld [vmem:[#allocation70_spill] sm:$0xff]  ;;  %v11520_v41 = vld [vmem:[#allocation71_spill] sm:$0xff]  ;;  %331 = vst [vmem:[#allocation2 + $0x58] sm:$0x1f] %v4781_v24 }
  0xde   : > { %1039 = vmatpush.msra.mxu0 %v11491_v39  ;;  %1059 = vmatpush.msra.mxu1 %v11492_v47  ;;  %v11522_v45 = vld [vmem:[#allocation31_spill] sm:$0xff]  ;;  %332 = vst [vmem:[#allocation2 + $0x18] sm:$0x1f] %v4781_v24  ;;  %v11525_v47 = vld [vmem:[#allocation32_spill] sm:$0xff] }
  0xdf   : > { %1018 = vmatpush.msra.mxu3 %v11490_v46  ;;  %984 = vmatpush.msrb.mxu2 %v11493_v49  ;;  %v11523_v46 = vld [vmem:[#allocation74_spill] sm:$0xff]  ;;  %v11524_v39 = vld [vmem:[#allocation75_spill] sm:$0xff]  ;;  %334 = vst [vmem:[#allocation2 + $0x68] sm:$0x1f] %v4781_v24 }
  0xe0   : > { %1040 = vmatpush.msra.mxu0 %v11495_v51  ;;  %1060 = vmatpush.msra.mxu1 %v11496_v52  ;;  %v6306_v49 = vld [vmem:[%s11044_s2] sm:$0xf]  ;;  %v11527_v51 = vld [vmem:[#allocation78_spill] sm:$0xff]  ;;  %335 = vst [vmem:[#allocation2 + $0x8] sm:$0x1f] %v4781_v24 }
  0xe1   : > { %1019 = vmatpush.msra.mxu3 %v11494_v50  ;;  %985 = vmatpush.msrb.mxu2 %v11497_v53  ;;  %v11526_v50 = vld [vmem:[#allocation33_spill] sm:$0xff]  ;;  %v11528_v52 = vld [vmem:[#allocation79_spill] sm:$0xff]  ;;  %336 = vst [vmem:[#allocation2 + $0x48] sm:$0x1f] %v4781_v24 }
  0xe2   : > { %1041 = vmatpush.msra.mxu0 %v11499_v56  ;;  %1061 = vmatpush.msra.mxu1 %v11500_v57  ;;  %v11529_v53 = vld [vmem:[#allocation35_spill] sm:$0xff]  ;;  %337 = vst [vmem:[#allocation2 + $0x40] sm:$0x1f] %v4781_v24  ;;  %v11531_v56 = vld [vmem:[#allocation82_spill] sm:$0xff]  ;;  %v11532_v57 = vld [vmem:[#allocation104_spill] sm:$0xff] }
  0xe3   : > { %1020 = vmatpush.msra.mxu3 %v11498_v54  ;;  %986 = vmatpush.msrb.mxu2 %v11501_v58  ;;  %v6318_v54 = vperm.slane %v6306_v49, 0  ;;  %338 = vst [vmem:[#allocation2 + $0x20] sm:$0x1f] %v4781_v24  ;;  %v11533_v58 = vld [vmem:[#allocation36_spill] sm:$0xff] }
  0xe4   : > { %1042 = vmatpush.msra.mxu0 %v11503_v60  ;;  %1062 = vmatpush.msra.mxu1 %v11504_v61  ;;  %339 = vst [vmem:[#allocation2 + $0x10] sm:$0x1f] %v4781_v24  ;;  %v609_v60 = vpop.f32.mrf.mxu0  ;;  %v11535_v61 = vld [vmem:[#allocation40_spill] sm:$0xff] }
  0xe5   : > { %1021 = vmatpush.msra.mxu3 %v11502_v59  ;;  %987 = vmatpush.msrb.mxu2 %v11505_v62  ;;  %11530 = vst [vmem:[#allocation4_spill] sm:$0xff] %v6318_v54  ;;  %v11534_v59 = vld [vmem:[#allocation39_spill] sm:$0xff]  ;;  %v11536_v62 = vld [vmem:[#allocation41_spill] sm:$0xff] }
  0xe6   : > { %1043 = vmatpush.msra.mxu0 %v11507_v48  ;;  %1063 = vmatpush.msra.mxu1 %v11508_v6  ;;  %340 = vst [vmem:[#allocation2 + $0x38] sm:$0x1f] %v4781_v24  ;;  %v11537_v48 = vld [vmem:[#allocation86_spill] sm:$0xff]  ;;  %v11538_v6 = vld [vmem:[#allocation108_spill] sm:$0xff] }
  0xe7   : > { %1022 = vmatpush.msra.mxu3 %v11506_v63  ;;  %988 = vmatpush.msrb.mxu2 %v11509_v10  ;;  %v610_v63 = vadd.f32 %v609_v60, %v6318_v54  ;;  %341 = vst [vmem:[#allocation2 + $0x60] sm:$0x1f] %v4781_v24  ;;  %v11539_v10 = vld [vmem:[#allocation44_spill] sm:$0xff]  ;;  %v11557_v60 = vld [vmem:[#allocation61_spill] sm:$0xff] }
  0xe8   : > { %1044 = vmatpush.msra.mxu0 %v11511_v15  ;;  %1064 = vmatpush.msra.mxu1 %v11512_v18  ;;  %342 = vst [vmem:[#allocation2 + $0x70] sm:$0x1f] %v4781_v24  ;;  %v629_v15 = vpop.f32.mrf.mxu1  ;;  %v649_v18 = vpop.f32.mrf.mxu2 }
  0xe9   : > { %1023 = vmatpush.msra.mxu3 %v11510_v14  ;;  %1083 = vmatpush.msra.mxu2 %v11513_v19  ;;  %v11540_v14 = vld [vmem:[#allocation45_spill] sm:$0xff]  ;;  %343 = vst [vmem:[#allocation2 + $0x78] sm:$0x1f] %v4781_v24  ;;  %v11541_v19 = vld [vmem:[#allocation90_spill] sm:$0xff] }
  0xea   : > { %1045 = vmatpush.msra.mxu0 %v11515_v23  ;;  %1065 = vmatpush.msra.mxu1 %v11516_v28  ;;  %v630_v23 = vadd.f32 %v629_v15, %v610_v63  ;;  %344 = vst [vmem:[#allocation2 + $0x28] sm:$0x1f] %v4781_v24  ;;  %v11543_v28 = vld [vmem:[#allocation48_spill] sm:$0xff]  ;;  %v11561_v63 = vld [vmem:[#allocation65_spill] sm:$0xff]  ;;  %v11566_v15 = vld [vmem:[#allocation114_spill] sm:$0xff] }
  0xeb   : > { %1024 = vmatpush.msra.mxu3 %v11514_v22  ;;  %1084 = vmatpush.msra.mxu2 %v11517_v31  ;;  %v11542_v22 = vld [vmem:[#allocation112_spill] sm:$0xff]  ;;  %v11544_v31 = vld [vmem:[#allocation49_spill] sm:$0xff]  ;;  %345 = vst [vmem:[#allocation3 + $0x8] sm:$0x1f] %v4781_v24 }
  0xec   : > { %1046 = vmatpush.msra.mxu0 %v11519_v38  ;;  %1066 = vmatpush.msra.mxu1 %v11520_v41  ;;  %v11545_v38 = vld [vmem:[#allocation94_spill] sm:$0xff]  ;;  %v11546_v41 = vld [vmem:[#allocation116_spill] sm:$0xff]  ;;  %346 = vst [vmem:[#allocation3] sm:$0x1f] %v4781_v24 }
  0xed   : > { %1025 = vmatpush.msra.mxu3 %v11518_v37  ;;  %1085 = vmatpush.msra.mxu2 %v11521_v42  ;;  %v669_v37 = vpop.f32.mrf.mxu3  ;;  %v650_v42 = vadd.f32 %v649_v18, %v630_v23  ;;  %347 = vst [vmem:[#allocation3 + $0x10] sm:$0x1f] %v4781_v24  ;;  %v11567_v18 = vld [vmem:[#allocation72_spill] sm:$0xff]  ;;  %v11570_v23 = vld [vmem:[#allocation118_spill] sm:$0xff] }
  0xee   : > { %1047 = vmatpush.msra.mxu0 %v11523_v46  ;;  %1067 = vmatpush.msra.mxu1 %v11524_v39  ;;  %v11548_v46 = vld [vmem:[#allocation53_spill] sm:$0xff]  ;;  %v11549_v39 = vld [vmem:[#allocation98_spill] sm:$0xff]  ;;  %348 = vst [vmem:[#allocation3 + $0x18] sm:$0x1f] %v4781_v24  ;;  %v11559_v24 = vld [vmem:[#allocation64_spill] sm:$0xff] }
  0xef   : > { %1026 = vmatpush.msra.mxu3 %v11522_v45  ;;  %1086 = vmatpush.msra.mxu2 %v11525_v47  ;;  %v11547_v45 = vld [vmem:[#allocation52_spill] sm:$0xff] }
  0xf0   : > { %1048 = vmatpush.msra.mxu0 %v11527_v51  ;;  %1068 = vmatpush.msra.mxu1 %v11528_v52  ;;  %v11550_v47 = vld [vmem:[#allocation120_spill] sm:$0xff]  ;;  %v11552_v52 = vld [vmem:[#allocation57_spill] sm:$0xff] }
  0xf1   : > { %1027 = vmatpush.msra.mxu3 %v11526_v50  ;;  %1087 = vmatpush.msra.mxu2 %v11529_v53  ;;  %v670_v50 = vadd.f32 %v669_v37, %v650_v42  ;;  %v11551_v51 = vld [vmem:[#allocation56_spill] sm:$0xff]  ;;  %v11553_v53 = vld [vmem:[#allocation102_spill] sm:$0xff]  ;;  %v11573_v37 = vld [vmem:[#allocation77_spill] sm:$0xff] }
  0xf2   : > { %949 = vmatmul.f32.vlgmr.msrb.gmra.mxu0 %v6228_v2  ;;  %969 = vmatmul.f32.vlgmr.msrb.gmra.mxu1 %v6232_v3  ;;  %v11576_v42 = vld [vmem:[#allocation103_spill] sm:$0xff] }
  0xf3   : > { %1133 = vmatpush.msrb.mxu0 %v11531_v56  ;;  %1163 = vmatpush.msrb.mxu1 %v11532_v57  ;;  %v11554_v56 = vld [vmem:[#allocation124_spill] sm:$0xff]  ;;  %v912_v57 = vmax.f32 %v670_v50, 0.0  ;;  %v11581_v50 = vld [vmem:[#allocation85_spill] sm:$0xff] }
  0xf4   : > { %1028 = vmatpush.msra.mxu3 %v11533_v58  ;;  %1088 = vmatpush.msra.mxu2 %v11534_v59  ;;  %v11555_v58 = vld [vmem:[#allocation60_spill] sm:$0xff]  ;;  %v11556_v59 = vld [vmem:[#allocation83_spill] sm:$0xff] }
  0xf5   : > { %989 = vmatmul.f32.vlgmr.msrb.gmra.mxu2 %v6239_v7  ;;  %3832 = vmatmul.msk.f32.vlgmr.msrb.gmra.mxu3 %vm589_vm0, %v6243_v11  ;;  %1940 = vst [vmem:[#allocation2 + $0x50] sm:$0xf] %v912_v57  ;;  %v11586_v57 = vld [vmem:[#allocation134_spill] sm:$0xff] }
  0xf6   : > { %1093 = vmatpush.msrb.mxu2 %v11535_v61  ;;  %1113 = vmatpush.msrb.mxu3 %v11536_v62  ;;  %v11558_v61 = vld [vmem:[#allocation106_spill] sm:$0xff]  ;;  %v11560_v62 = vld [vmem:[#allocation87_spill] sm:$0xff] }
  0xf7   : > { %1134 = vmatpush.msrb.mxu0 %v11537_v48  ;;  %1164 = vmatpush.msrb.mxu1 %v11538_v6  ;;  %v11562_v48 = vld [vmem:[#allocation110_spill] sm:$0xff]  ;;  %v11563_v6 = vld [vmem:[#allocation68_spill] sm:$0xff] }
  0xf8   : > { %1094 = vmatpush.msrb.mxu2 %v11539_v10  ;;  %1114 = vmatpush.msrb.mxu3 %v11540_v14  ;;  %v11564_v10 = vld [vmem:[#allocation91_spill] sm:$0xff]  ;;  %v11565_v14 = vld [vmem:[#allocation69_spill] sm:$0xff] }
  0xf9   : > { %1135 = vmatpush.msrb.mxu0 %v11541_v19  ;;  %1165 = vmatpush.msrb.mxu1 %v11542_v22  ;;  %v11568_v19 = vld [vmem:[#allocation95_spill] sm:$0xff]  ;;  %v11569_v22 = vld [vmem:[#allocation73_spill] sm:$0xff] }
  0xfa   : > { %1095 = vmatpush.msrb.mxu2 %v11543_v28  ;;  %1115 = vmatpush.msrb.mxu3 %v11544_v31  ;;  %v11571_v28 = vld [vmem:[#allocation76_spill] sm:$0xff]  ;;  %v11572_v31 = vld [vmem:[#allocation99_spill] sm:$0xff] }
  0xfb   : > { %1136 = vmatpush.msrb.mxu0 %v11545_v38  ;;  %1166 = vmatpush.msrb.mxu1 %v11546_v41  ;;  %v11574_v38 = vld [vmem:[#allocation122_spill] sm:$0xff]  ;;  %v11575_v41 = vld [vmem:[#allocation80_spill] sm:$0xff] }
  0xfc   : > { %1096 = vmatpush.msrb.mxu2 %v11547_v45  ;;  %1116 = vmatpush.msrb.mxu3 %v11548_v46  ;;  %v11577_v45 = vld [vmem:[#allocation81_spill] sm:$0xff]  ;;  %v11578_v46 = vld [vmem:[#allocation126_spill] sm:$0xff] }
  0xfd   : > { %1137 = vmatpush.msrb.mxu0 %v11549_v39  ;;  %1167 = vmatpush.msrb.mxu1 %v11550_v47  ;;  %v11579_v39 = vld [vmem:[#allocation84_spill] sm:$0xff]  ;;  %v11580_v47 = vld [vmem:[#allocation107_spill] sm:$0xff] }
  0xfe   : > { %1097 = vmatpush.msrb.mxu2 %v11551_v51  ;;  %1117 = vmatpush.msrb.mxu3 %v11552_v52  ;;  %v11582_v51 = vld [vmem:[#allocation130_spill] sm:$0xff]  ;;  %v11583_v52 = vld [vmem:[#allocation88_spill] sm:$0xff] }
  0xff   : > { %1138 = vmatpush.msrb.mxu0 %v11553_v53  ;;  %1168 = vmatpush.msrb.mxu1 %v11554_v56  ;;  %v11584_v53 = vld [vmem:[#allocation111_spill] sm:$0xff]  ;;  %v11585_v56 = vld [vmem:[#allocation89_spill] sm:$0xff] }
 0x100   : > { %1069 = vmatmul.f32.vlgmr.msra.gmra.mxu1 %v6239_v7  ;;  %1098 = vmatpush.msrb.mxu2 %v11555_v58  ;;  %v11587_v58 = vld [vmem:[#allocation115_spill] sm:$0xff] }
 0x101   : > { %1173 = vmatpush.msra.mxu1 %v11556_v59  ;;  %1118 = vmatpush.msrb.mxu3 %v11557_v60  ;;  %v11588_v59 = vld [vmem:[#allocation92_spill] sm:$0xff]  ;;  %v6397_v60 = vperm.slane %v6306_v49, 1 }
 0x102   : > { %1139 = vmatpush.msrb.mxu0 %v11558_v61  ;;  %1099 = vmatpush.msrb.mxu2 %v11559_v24  ;;  %v11589_v61 = vld [vmem:[#allocation93_spill] sm:$0xff]  ;;  %v11590_v24 = vld [vmem:[#allocation138_spill] sm:$0xff] }
 0x103   : > { %1174 = vmatpush.msra.mxu1 %v11560_v62  ;;  %1119 = vmatpush.msrb.mxu3 %v11561_v63  ;;  %v11591_v62 = vld [vmem:[#allocation119_spill] sm:$0xff]  ;;  %v11592_v63 = vld [vmem:[#allocation96_spill] sm:$0xff] }
 0x104   : > { %1140 = vmatpush.msrb.mxu0 %v11562_v48  ;;  %1100 = vmatpush.msrb.mxu2 %v11563_v6  ;;  %v11593_v48 = vld [vmem:[#allocation97_spill] sm:$0xff]  ;;  %v689_v6 = vpop.f32.mrf.mxu3 }
 0x105   : > { %1175 = vmatpush.msra.mxu1 %v11564_v10  ;;  %1120 = vmatpush.msrb.mxu3 %v11565_v14  ;;  %v11594_v10 = vld [vmem:[#allocation123_spill] sm:$0xff]  ;;  %v690_v14 = vadd.f32 %v689_v6, %v6397_v60 }
 0x106   : > { %1141 = vmatpush.msrb.mxu0 %v11566_v15  ;;  %1101 = vmatpush.msrb.mxu2 %v11567_v18  ;;  %v11595_v15 = vld [vmem:[#allocation100_spill] sm:$0xff]  ;;  %v11596_v18 = vld [vmem:[#allocation101_spill] sm:$0xff] }
 0x107   : > { %1176 = vmatpush.msra.mxu1 %v11568_v19  ;;  %1121 = vmatpush.msrb.mxu3 %v11569_v22  ;;  %v709_v19 = vpop.f32.mrf.mxu0  ;;  %v11597_v22 = vld [vmem:[#allocation127_spill] sm:$0xff] }
 0x108   : > { %1142 = vmatpush.msrb.mxu0 %v11570_v23  ;;  %1102 = vmatpush.msrb.mxu2 %v11571_v28  ;;  %v710_v23 = vadd.f32 %v709_v19, %v690_v14  ;;  %v11599_v28 = vld [vmem:[#allocation128_spill] sm:$0xff]  ;;  %v6519_v14 = vld [vmem:[%s11043_s1 + $0x340] sm:$0xff] }
 0x109   : > { %1177 = vmatpush.msra.mxu1 %v11572_v31  ;;  %1122 = vmatpush.msrb.mxu3 %v11573_v37  ;;  %v11600_v31 = vld [vmem:[#allocation131_spill] sm:$0xff]  ;;  %v729_v37 = vpop.f32.mrf.mxu1 }
 0x10a   : > { %1143 = vmatpush.msrb.mxu0 %v11574_v38  ;;  %1103 = vmatpush.msrb.mxu2 %v11575_v41  ;;  %v749_v38 = vpop.f32.mrf.mxu2  ;;  %v11602_v41 = vld [vmem:[#allocation132_spill] sm:$0xff]  ;;  %v6527_v19 = vld [vmem:[%s11043_s1 + $0x120] sm:$0xff] }
 0x10b   : > { %1178 = vmatpush.msra.mxu1 %v11576_v42  ;;  %1123 = vmatpush.msrb.mxu3 %v11577_v45  ;;  %v730_v42 = vadd.f32 %v729_v37, %v710_v23  ;;  %v11603_v45 = vld [vmem:[#allocation135_spill] sm:$0xff] }
 0x10c   : > { %1144 = vmatpush.msrb.mxu0 %v11578_v46  ;;  %1104 = vmatpush.msrb.mxu2 %v11579_v39  ;;  %v11604_v46 = vld [vmem:[#allocation113_spill] sm:$0xff]  ;;  %v11605_v39 = vld [vmem:[#allocation136_spill] sm:$0xff]  ;;  %v6563_v23 = vld [vmem:[%s11043_s1 + $0x2e0] sm:$0xff] }
 0x10d   : > { %1179 = vmatpush.msra.mxu1 %v11580_v47  ;;  %1124 = vmatpush.msrb.mxu3 %v11581_v50  ;;  %v11606_v47 = vld [vmem:[#allocation117_spill] sm:$0xff]  ;;  %v11607_v50 = vld [vmem:[#allocation139_spill] sm:$0xff] }
 0x10e   : > { %1145 = vmatpush.msrb.mxu0 %v11582_v51  ;;  %1105 = vmatpush.msrb.mxu2 %v11583_v52  ;;  %v11609_v52 = vld [vmem:[#allocation141_spill] sm:$0xff]  ;;  %v6641_v37 = vld [vmem:[%s11043_s1 + $0x680] sm:$0xff] }
 0x10f   : > { %1180 = vmatpush.msra.mxu1 %v11584_v53  ;;  %1125 = vmatpush.msrb.mxu3 %v11585_v56  ;;  %v789_v53 = vpop.f32.mrf.mxu3  ;;  %v6463_v56 = vperm.slane %v6306_v49, 2 }
 0x110   : > { %1146 = vmatpush.msrb.mxu0 %v11586_v57  ;;  %1029 = vmatmul.f32.vlgmr.msra.gmra.mxu3 %v6228_v2  ;;  %v11611_v57 = vld [vmem:[#allocation129_spill] sm:$0xff] }
 0x111   : > { %1181 = vmatpush.msra.mxu1 %v11587_v58  ;;  %1106 = vmatpush.msrb.mxu2 %v11588_v59  ;;  %v6476_v58 = vld [vmem:[%s11043_s1 + $0x3a0] sm:$0xff]  ;;  %v11612_v59 = vld [vmem:[#allocation133_spill] sm:$0xff] }
 0x112   : > { %1126 = vmatpush.msrb.mxu3 %v11589_v61  ;;  %1147 = vmatpush.msrb.mxu0 %v11590_v24  ;;  %v769_v61 = vpop.f32.mrf.mxu2  ;;  %v6490_v24 = vld [vmem:[%s11043_s1 + $0x380] sm:$0xff] }
 0x113   : > { %1182 = vmatpush.msra.mxu1 %v11591_v62  ;;  %1107 = vmatpush.msrb.mxu2 %v11592_v63  ;;  %v770_v62 = vadd.f32 %v769_v61, %v6463_v56  ;;  %v11613_v63 = vld [vmem:[#allocation137_spill] sm:$0xff]  ;;  %v6745_v61 = vld [vmem:[%s11043_s1 + $0x600] sm:$0xff] }
 0x114   : > { %1127 = vmatpush.msrb.mxu3 %v11593_v48  ;;  %1148 = vmatpush.msrb.mxu0 %v6021_v27  ;;  %v11598_v27 = vld [vmem:[#allocation105_spill] sm:$0xff]  ;;  %v6505_v48 = vld [vmem:[%s11043_s1 + $0x360] sm:$0xff] }
 0x115   : > { %1049 = vmatmul.f32.vlgmr.msra.gmra.mxu0 %v6232_v3  ;;  %1183 = vmatpush.msra.mxu1 %v11594_v10  ;;  %v790_v6 = vadd.f32 %v789_v53, %v770_v62  ;;  %v11614_v10 = vld [vmem:[#allocation140_spill] sm:$0xff] }
 0x116   : > { %1243 = vmatpush.msra.mxu0 %v6125_v13  ;;  %1108 = vmatpush.msrb.mxu2 %v11595_v15  ;;  %v11601_v13 = vld [vmem:[#allocation109_spill] sm:$0xff]  ;;  %v6728_v53 = vld [vmem:[%s11043_s1 + $0x5e8] sm:$0xff] }
 0x117   : > { %1128 = vmatpush.msrb.mxu3 %v11596_v18  ;;  %3833 = vmatmul.msk.f32.vlgmr.msra.gmra.mxu2 %vm589_vm0, %v6243_v11  ;;  %v6748_v62 = vld.sshfl [vmem:[#allocation1 + $0x8] sm:$0xff pattern:$0x75316420] }
 0x118   : > { %1184 = vmatpush.msra.mxu1 %v11597_v22  ;;  %1193 = vmatpush.msra.mxu2 %v11598_v27  ;;  %v6533_v22 = vld [vmem:[%s11043_s1 + $0x320] sm:$0xff] }
 0x119   : > { %1213 = vmatpush.msra.mxu3 %v11599_v28  ;;  %1244 = vmatpush.msra.mxu0 %v6139_v17  ;;  %v750_v17 = vadd.f32 %v749_v38, %v730_v42  ;;  %v6548_v27 = vld [vmem:[%s11043_s1 + $0x300] sm:$0xff] }
 0x11a   : > { %1185 = vmatpush.msra.mxu1 %v11600_v31  ;;  %1194 = vmatpush.msra.mxu2 %v11601_v13  ;;  %v6623_v28 = vld [vmem:[%s11043_s1 + $0x60] sm:$0xff] }
 0x11b   : > { %1214 = vmatpush.msra.mxu3 %v11602_v41  ;;  %1245 = vmatpush.msra.mxu0 %v6153_v21  ;;  %v913_v51 = vmax.f32 %v750_v17, 0.0  ;;  %v11608_v21 = vld [vmem:[#allocation121_spill] sm:$0xff]  ;;  %v6629_v31 = vld [vmem:[%s11043_s1 + $0x260] sm:$0xff] }
 0x11c   : > { %1186 = vmatpush.msra.mxu1 %v11603_v45  ;;  %1195 = vmatpush.msra.mxu2 %v11604_v46  ;;  %v6635_v13 = vld [vmem:[%s11043_s1 + $0x5c0] sm:$0xff] }
 0x11d   : > { %1215 = vmatpush.msra.mxu3 %v11605_v39  ;;  %1246 = vmatpush.msra.mxu0 %v6167_v26  ;;  %1941 = vst [vmem:[#allocation2 + $0x68] sm:$0xf] %v913_v51  ;;  %v11610_v26 = vld [vmem:[#allocation125_spill] sm:$0xff]  ;;  %v6647_v38 = vld [vmem:[%s11043_s1 + $0x40] sm:$0xff] }
 0x11e   : > { %1187 = vmatpush.msra.mxu1 %v6004_v55  ;;  %1196 = vmatpush.msra.mxu2 %v11606_v47  ;;  %v6439_v55 = vld [vmem:[%s11043_s1 + $0x1e0] sm:$0xff]  ;;  %v829_v18 = vpop.f32.mrf.mxu3 }
 0x11f   : > { %1216 = vmatpush.msra.mxu3 %v11607_v50  ;;  %1247 = vmatpush.msra.mxu0 %v6183_v30  ;;  %v6453_v30 = vld [vmem:[%s11043_s1 + $0x1c0] sm:$0xff] }
 0x120   : > { %1188 = vmatpush.msra.mxu1 %v6029_v44  ;;  %1197 = vmatpush.msra.mxu2 %v11608_v21  ;;  %v6445_v44 = vld [vmem:[%s11043_s1 + $0x3e0] sm:$0xff] }
 0x121   : > { %1217 = vmatpush.msra.mxu3 %v11609_v52  ;;  %1248 = vmatpush.msra.mxu0 %v6197_v34  ;;  %v6459_v34 = vld [vmem:[%s11043_s1 + $0x3c0] sm:$0xff] }
 0x122   : > { %1149 = vmatmul.f32.vlgmr.msrb.gmra.mxu0 %v6239_v7  ;;  %3834 = vmatmul.msk.f32.vlgmr.msrb.gmra.mxu1 %vm589_vm0, %v6243_v11  ;;  %v6653_v41 = vld [vmem:[%s11043_s1 + $0x240] sm:$0xff] }
 0x123   : > { %1274 = vmatpush.msrb.mxu0 %v6439_v55  ;;  %1294 = vmatpush.msrb.mxu1 %v6445_v44  ;;  %v6659_v42 = vld [vmem:[%s11043_s1 + $0x5a0] sm:$0xff] }
 0x124   : > { %1198 = vmatpush.msra.mxu2 %v11610_v26  ;;  %1218 = vmatpush.msra.mxu3 %v6050_v32  ;;  %v6470_v32 = vld [vmem:[%s11043_s1 + $0x1a0] sm:$0xff]  ;;  %v6722_v26 = vld [vmem:[%s11043_s1 + $0x3e8] sm:$0xff] }
 0x125   : > { %1275 = vmatpush.msrb.mxu0 %v6453_v30  ;;  %1295 = vmatpush.msrb.mxu1 %v6459_v34  ;;  %v6665_v45 = vld [vmem:[%s11043_s1 + $0x660] sm:$0xff] }
 0x126   : > { %1199 = vmatpush.msra.mxu2 %v11611_v57  ;;  %1219 = vmatpush.msra.mxu3 %v6064_v35  ;;  %v6484_v35 = vld [vmem:[%s11043_s1 + $0x180] sm:$0xff] }
 0x127   : > { %1276 = vmatpush.msrb.mxu0 %v6470_v32  ;;  %1296 = vmatpush.msrb.mxu1 %v6476_v58  ;;  %v6671_v46 = vld [vmem:[%s11043_s1 + $0x20] sm:$0xff] }
 0x128   : > { %1200 = vmatpush.msra.mxu2 %v11612_v59  ;;  %1220 = vmatpush.msra.mxu3 %v6078_v0  ;;  %v6499_v0 = vld [vmem:[%s11043_s1 + $0x160] sm:$0xff] }
 0x129   : > { %1277 = vmatpush.msrb.mxu0 %v6484_v35  ;;  %1297 = vmatpush.msrb.mxu1 %v6490_v24  ;;  %v6677_v39 = vld [vmem:[%s11043_s1 + $0x220] sm:$0xff] }
 0x12a   : > { %1201 = vmatpush.msra.mxu2 %v11613_v63  ;;  %1221 = vmatpush.msra.mxu3 %v6092_v4  ;;  %v6513_v4 = vld [vmem:[%s11043_s1 + $0x140] sm:$0xff]  ;;  %v6756_v63 = vld [vmem:[%s11043_s1 + $0x1e8] sm:$0xff] }
 0x12b   : > { %1278 = vmatpush.msrb.mxu0 %v6499_v0  ;;  %1298 = vmatpush.msrb.mxu1 %v6505_v48  ;;  %v809_v15 = vpop.f32.mrf.mxu0  ;;  %v6683_v17 = vld [vmem:[%s11043_s1 + $0x580] sm:$0xff] }
 0x12c   : > { %1202 = vmatpush.msra.mxu2 %v11614_v10  ;;  %1222 = vmatpush.msra.mxu3 %v6106_v8  ;;  %v810_v8 = vadd.f32 %v809_v15, %v790_v6  ;;  %v6689_v47 = vld [vmem:[%s11043_s1 + $0x640] sm:$0xff]  ;;  %v6762_v6 = vld [vmem:[%s11043_s1 + $0x3c8] sm:$0xff]  ;;  %v6765_v15 = vld.sshfl [vmem:[#allocation1 + $0x10] sm:$0xff pattern:$0x75316420] }
 0x12d   : > { %1279 = vmatpush.msrb.mxu0 %v6513_v4  ;;  %1299 = vmatpush.msrb.mxu1 %v6519_v14  ;;  %v6695_v50 = vld [vmem:[%s11043_s1] sm:$0xff] }
 0x12e   : > { %1203 = vmatpush.msra.mxu2 %v6041_v43  ;;  %1223 = vmatpush.msra.mxu3 %v6120_v12  ;;  %v830_v43 = vadd.f32 %v829_v18, %v810_v8  ;;  %v6542_v12 = vld [vmem:[%s11043_s1 + $0x100] sm:$0xff]  ;;  %v6780_v18 = vld.sshfl [vmem:[#allocation1 + $0x18] sm:$0xff pattern:$0x75316420] }
 0x12f   : > { %1280 = vmatpush.msrb.mxu0 %v6527_v19  ;;  %1300 = vmatpush.msrb.mxu1 %v6533_v22  ;;  %v6701_v51 = vld [vmem:[%s11043_s1 + $0x200] sm:$0xff] }
 0x130   : > { %1204 = vmatpush.msra.mxu2 %v6055_v36  ;;  %1224 = vmatpush.msra.mxu3 %v6134_v16  ;;  %v914_v36 = vmax.f32 %v830_v43, 0.0  ;;  %v6556_v16 = vld [vmem:[%s11043_s1 + $0xe0] sm:$0xff]  ;;  %v3843_v43 = vld [vmem:[%s5198_s17 + $0x38] sm:$0xff] }
 0x131   : > { %1109 = vmatmul.f32.vlgmr.msrb.gmra.mxu2 %v6228_v2  ;;  %1281 = vmatpush.msrb.mxu0 %v6542_v12  ;;  %v6707_v21 = vld [vmem:[%s11043_s1 + $0x560] sm:$0xff]  ;;  %1605 = vst [vmem:[#allocation1 + $0x10] ss:$2 sm:$0xff] %v3843_v43  ;;  %v6816_v43 = vld [vmem:[%s11043_s1 + $0x388] sm:$0xff] }
 0x132   : > { %1301 = vmatpush.msrb.mxu1 %v6548_v27  ;;  %1205 = vmatpush.msra.mxu2 %v6069_v40  ;;  %1942 = vst [vmem:[#allocation2 + $0x8] sm:$0xf] %v914_v36  ;;  %v6571_v40 = vld [vmem:[%s11043_s1 + $0xc0] sm:$0xff]  ;;  %v6786_v36 = vld [vmem:[%s11043_s1 + $0x1c8] sm:$0xff] }
 0x133   : > { %1225 = vmatpush.msra.mxu3 %v6148_v20  ;;  %1282 = vmatpush.msrb.mxu0 %v6556_v16  ;;  %v6577_v20 = vld [vmem:[%s11043_s1 + $0x2c0] sm:$0xff]  ;;  %11616 = vst [vmem:[#allocation28_spill] sm:$0xff] %v6786_v36 }
 0x134   : > { %1129 = vmatmul.f32.vlgmr.msrb.gmra.mxu3 %v6232_v3  ;;  %1302 = vmatpush.msrb.mxu1 %v6563_v23  ;;  %v6713_v52 = vld [vmem:[%s11043_s1 + $0x620] sm:$0xff]  ;;  %11621 = vst [vmem:[#allocation9_spill] sm:$0xff] %v6816_v43 }
 0x135   : > { %1206 = vmatpush.msra.mxu2 %v6083_v1  ;;  %1226 = vmatpush.msra.mxu3 %v6162_v25  ;;  %v6585_v1 = vld [vmem:[%s11043_s1 + $0xa0] sm:$0xff] }
 0x136   : > { %1283 = vmatpush.msrb.mxu0 %v6571_v40  ;;  %1303 = vmatpush.msrb.mxu1 %v6577_v20  ;;  %v6591_v25 = vld [vmem:[%s11043_s1 + $0x2a0] sm:$0xff] }
 0x137   : > { %1207 = vmatpush.msra.mxu2 %v6097_v5  ;;  %1227 = vmatpush.msra.mxu3 %v6176_v29  ;;  %v6599_v5 = vld [vmem:[%s11043_s1 + $0x80] sm:$0xff] }
 0x138   : > { %1284 = vmatpush.msrb.mxu0 %v6585_v1  ;;  %1304 = vmatpush.msrb.mxu1 %v6591_v25  ;;  %v6605_v29 = vld [vmem:[%s11043_s1 + $0x280] sm:$0xff] }
 0x139   : > { %1208 = vmatpush.msra.mxu2 %v6111_v9  ;;  %1228 = vmatpush.msra.mxu3 %v6190_v33  ;;  %v6611_v9 = vld [vmem:[%s11043_s1 + $0x5e0] sm:$0xff] }
 0x13a   : > { %1285 = vmatpush.msrb.mxu0 %v6599_v5  ;;  %1305 = vmatpush.msrb.mxu1 %v6605_v29  ;;  %v6617_v33 = vld [vmem:[%s11043_s1 + $0x6a0] sm:$0xff] }
 0x13b   : > { %1314 = vmatpush.msrb.mxu2 %v6611_v9  ;;  %1344 = vmatpush.msrb.mxu3 %v6617_v33  ;;  %v6734_v59 = vld.sshfl [vmem:[#allocation1] sm:$0xff pattern:$0x75316420] }
 0x13c   : > { %1286 = vmatpush.msrb.mxu0 %v6623_v28  ;;  %1306 = vmatpush.msrb.mxu1 %v6629_v31 }
 0x13d   : > { %1315 = vmatpush.msrb.mxu2 %v6635_v13  ;;  %1345 = vmatpush.msrb.mxu3 %v6641_v37 }
 0x13e   : > { %1287 = vmatpush.msrb.mxu0 %v6647_v38  ;;  %1307 = vmatpush.msrb.mxu1 %v6653_v41 }
 0x13f   : > { %1316 = vmatpush.msrb.mxu2 %v6659_v42  ;;  %1346 = vmatpush.msrb.mxu3 %v6665_v45 }
 0x140   : > { %1288 = vmatpush.msrb.mxu0 %v6671_v46  ;;  %1308 = vmatpush.msrb.mxu1 %v6677_v39 }
 0x141   : > { %1317 = vmatpush.msrb.mxu2 %v6683_v17  ;;  %1347 = vmatpush.msrb.mxu3 %v6689_v47 }
 0x142   : > { %1289 = vmatpush.msrb.mxu0 %v6695_v50  ;;  %1309 = vmatpush.msrb.mxu1 %v6701_v51 }
 0x143   : > { %1318 = vmatpush.msrb.mxu2 %v6707_v21  ;;  %1348 = vmatpush.msrb.mxu3 %v6713_v52 }
 0x144   : > { %1189 = vmatmul.f32.vlgmr.msra.gmra.mxu1 %v6228_v2  ;;  %3835 = vmatmul.msk.f32.vlgmr.msra.gmra.mxu0 %vm589_vm0, %v6243_v11  ;;  %v869_v57 = vpop.f32.mrf.mxu2  ;;  %v6732_v2 = vperm.slane %v6306_v49, 3  ;;  %v6739_v11 = vld [vmem:[%s11043_s1 + $0x540] sm:$0xff]  ;;  %v3842_v49 = vld [vmem:[%s5198_s17 + $0x30] sm:$0xff] }
 0x145   : > { %1374 = vmatpush.msra.mxu0 %v6722_v26  ;;  %1394 = vmatpush.msra.mxu1 %v6728_v53  ;;  %1603 = vst [vmem:[#allocation1] ss:$2 sm:$0xff] %v3842_v49  ;;  %v6792_v49 = vld [vmem:[%s11043_s1 + $0x3a8] sm:$0xff] }
 0x146   : > { %11615 = vst [vmem:[#allocation5_spill] sm:$0xff] %v6732_v2  ;;  %1319 = vmatpush.msrb.mxu2 %v6739_v11  ;;  %1349 = vmatpush.msrb.mxu3 %v6745_v61 }
 0x147   : > { %1209 = vmatmul.f32.vlgmr.msra.gmra.mxu2 %v6232_v3  ;;  %1229 = vmatmul.f32.vlgmr.msra.gmra.mxu3 %v6239_v7  ;;  %v6770_v3 = vld [vmem:[%s11043_s1 + $0x5c8] sm:$0xff]  ;;  %v6776_v7 = vld [vmem:[%s11043_s1 + $0x520] sm:$0xff]  ;;  %11617 = vst [vmem:[#allocation29_spill] sm:$0xff] %v6792_v49 }
 0x148   : > { %1354 = vmatpush.msra.mxu3 %v6756_v63  ;;  %1375 = vmatpush.msra.mxu0 %v6762_v6  ;;  %v849_v10 = vpop.f32.mrf.mxu1 }
 0x149   : > { %1395 = vmatpush.msra.mxu1 %v6770_v3  ;;  %1320 = vmatpush.msrb.mxu2 %v6776_v7  ;;  %v850_v8 = vadd.f32 %v849_v10, %v6732_v2  ;;  %v6798_v10 = vld [vmem:[%s11043_s1 + $0x5a8] sm:$0xff]  ;;  %v6804_v2 = vld [vmem:[%s11043_s1 + $0x500] sm:$0xff] }
 0x14a   : > { %1355 = vmatpush.msra.mxu3 %v6786_v36  ;;  %1376 = vmatpush.msra.mxu0 %v6792_v49  ;;  %11618 = vst [vmem:[#allocation6_spill] sm:$0xff] %v6798_v10  ;;  %v6810_v49 = vld [vmem:[%s11043_s1 + $0x1a8] sm:$0xff] }
 0x14b   : > { %1396 = vmatpush.msra.mxu1 %v6798_v10  ;;  %11619 = vst [vmem:[#allocation7_spill] sm:$0xff] %v6804_v2  ;;  %1321 = vmatpush.msrb.mxu2 %v6804_v2  ;;  %v870_v36 = vadd.f32 %v869_v57, %v850_v8  ;;  %v6822_v2 = vld [vmem:[%s11043_s1 + $0x588] sm:$0xff]  ;;  %v6828_v57 = vld [vmem:[%s11043_s1 + $0x4e0] sm:$0xff] }
 0x14c   : > { %11620 = vst [vmem:[#allocation8_spill] sm:$0xff] %v6810_v49  ;;  %1356 = vmatpush.msra.mxu3 %v6810_v49  ;;  %1377 = vmatpush.msra.mxu0 %v6816_v43  ;;  %v889_v10 = vpop.f32.mrf.mxu3  ;;  %v6834_v43 = vld [vmem:[%s11043_s1 + $0x188] sm:$0xff] }
 0x14d   : > { %11622 = vst [vmem:[#allocation34_spill] sm:$0xff] %v6822_v2  ;;  %1397 = vmatpush.msra.mxu1 %v6822_v2  ;;  %1322 = vmatpush.msrb.mxu2 %v6828_v57  ;;  %v890_v8 = vadd.f32 %v889_v10, %v870_v36  ;;  %v6840_v49 = vld [vmem:[%s11043_s1 + $0x368] sm:$0xff]  ;;  %v6852_v36 = vld [vmem:[%s11043_s1 + $0x4c0] sm:$0xff] }
 0x14e   : > { %11623 = vst [vmem:[#allocation10_spill] sm:$0xff] %v6828_v57  ;;  %1357 = vmatpush.msra.mxu3 %v6834_v43  ;;  %1378 = vmatpush.msra.mxu0 %v6840_v49  ;;  %v909_v2 = vpop.f32.mrf.mxu2  ;;  %v6846_v57 = vld [vmem:[%s11043_s1 + $0x568] sm:$0xff] }
 0x14f   : > { %11624 = vst [vmem:[#allocation11_spill] sm:$0xff] %v6834_v43  ;;  %1398 = vmatpush.msra.mxu1 %v6846_v57  ;;  %1323 = vmatpush.msrb.mxu2 %v6852_v36  ;;  %v910_v10 = vadd.f32 %v909_v2, %v890_v8  ;;  %v6864_v43 = vld [vmem:[%s11043_s1 + $0x348] sm:$0xff]  ;;  %v6876_v2 = vld [vmem:[%s11043_s1 + $0x4a0] sm:$0xff] }
 0x150   : > { %11625 = vst [vmem:[#allocation37_spill] sm:$0xff] %v6840_v49  ;;  %v6858_v49 = vld [vmem:[%s11043_s1 + $0x168] sm:$0xff]  ;;  %1379 = vmatpush.msra.mxu0 %v6864_v43  ;;  %1310 = vmatmul.f32.vlgmr.msrb.gmra.mxu1 %v6748_v62 }
 0x151   : > { %11626 = vst [vmem:[#allocation38_spill] sm:$0xff] %v6846_v57  ;;  %1358 = vmatpush.msra.mxu3 %v6858_v49  ;;  %v6870_v57 = vld [vmem:[%s11043_s1 + $0x548] sm:$0xff]  ;;  %1324 = vmatpush.msrb.mxu2 %v6876_v2  ;;  %v915_v8 = vmax.f32 %v910_v10, 0.0  ;;  %v6900_v10 = vld [vmem:[%s11043_s1 + $0x480] sm:$0xff] }
 0x152   : > { %11627 = vst [vmem:[#allocation12_spill] sm:$0xff] %v6852_v36  ;;  %1399 = vmatpush.msra.mxu1 %v6870_v57  ;;  %1290 = vmatmul.f32.vlgmr.msrb.gmra.mxu0 %v6734_v59  ;;  %v7345_v36 = vld [vmem:[%s11043_s1 + $0xf0] sm:$0xff] }
 0x153   : > { %11628 = vst [vmem:[#allocation13_spill] sm:$0xff] %v6858_v49  ;;  %v6882_v49 = vld [vmem:[%s11043_s1 + $0x148] sm:$0xff]  ;;  %1325 = vmatpush.msrb.mxu2 %v6900_v10  ;;  %3838 = vmatmul.msk.f32.vlgmr.msrb.gmra.mxu3 %vm589_vm0, %v6780_v18 }
 0x154   : > { %11629 = vst [vmem:[#allocation42_spill] sm:$0xff] %v6864_v43  ;;  %1359 = vmatpush.msra.mxu3 %v6882_v49  ;;  %v6888_v43 = vld [vmem:[%s11043_s1 + $0x328] sm:$0xff] }
 0x155   : > { %11630 = vst [vmem:[#allocation43_spill] sm:$0xff] %v6870_v57  ;;  %1380 = vmatpush.msra.mxu0 %v6888_v43  ;;  %v6894_v57 = vld [vmem:[%s11043_s1 + $0x528] sm:$0xff] }
 0x156   : > { %11631 = vst [vmem:[#allocation14_spill] sm:$0xff] %v6876_v2  ;;  %1400 = vmatpush.msra.mxu1 %v6894_v57 }
 0x157   : > { %11632 = vst [vmem:[#allocation15_spill] sm:$0xff] %v6882_v49  ;;  %v6906_v49 = vld [vmem:[%s11043_s1 + $0x128] sm:$0xff] }
 0x158   : > { %11633 = vst [vmem:[#allocation46_spill] sm:$0xff] %v6888_v43  ;;  %1360 = vmatpush.msra.mxu3 %v6906_v49  ;;  %v6912_v43 = vld [vmem:[%s11043_s1 + $0x308] sm:$0xff] }
 0x159   : > { %11634 = vst [vmem:[#allocation47_spill] sm:$0xff] %v6894_v57  ;;  %1381 = vmatpush.msra.mxu0 %v6912_v43  ;;  %v6918_v57 = vld [vmem:[%s11043_s1 + $0x508] sm:$0xff] }
 0x15a   : > { %11635 = vst [vmem:[#allocation16_spill] sm:$0xff] %v6900_v10  ;;  %1401 = vmatpush.msra.mxu1 %v6918_v57  ;;  %v7223_v10 = vld [vmem:[%s11043_s1 + $0x190] sm:$0xff] }
 0x15b   : > { %1943 = vst [vmem:[#allocation2 + $0x48] sm:$0xf] %v915_v8  ;;  %v6924_v8 = vld [vmem:[%s11043_s1 + $0x460] sm:$0xff] }
 0x15c   : > { %11636 = vst [vmem:[#allocation17_spill] sm:$0xff] %v6906_v49  ;;  %1326 = vmatpush.msrb.mxu2 %v6924_v8  ;;  %v6930_v49 = vld [vmem:[%s11043_s1 + $0x108] sm:$0xff] }
 0x15d   : > { %11637 = vst [vmem:[#allocation50_spill] sm:$0xff] %v6912_v43  ;;  %1361 = vmatpush.msra.mxu3 %v6930_v49  ;;  %v6936_v43 = vld [vmem:[%s11043_s1 + $0x2e8] sm:$0xff] }
 0x15e   : > { %11638 = vst [vmem:[#allocation51_spill] sm:$0xff] %v6918_v57  ;;  %1382 = vmatpush.msra.mxu0 %v6936_v43  ;;  %v6942_v57 = vld [vmem:[%s11043_s1 + $0x4e8] sm:$0xff] }
 0x15f   : > { %11639 = vst [vmem:[#allocation18_spill] sm:$0xff] %v6924_v8  ;;  %1402 = vmatpush.msra.mxu1 %v6942_v57  ;;  %v6948_v8 = vld [vmem:[%s11043_s1 + $0x440] sm:$0xff] }
 0x160   : > { %11640 = vst [vmem:[#allocation19_spill] sm:$0xff] %v6930_v49  ;;  %1327 = vmatpush.msrb.mxu2 %v6948_v8  ;;  %v6954_v49 = vld [vmem:[%s11043_s1 + $0xe8] sm:$0xff] }
 0x161   : > { %11641 = vst [vmem:[#allocation54_spill] sm:$0xff] %v6936_v43  ;;  %1362 = vmatpush.msra.mxu3 %v6954_v49  ;;  %v6960_v43 = vld [vmem:[%s11043_s1 + $0x2c8] sm:$0xff] }
 0x162   : > { %11642 = vst [vmem:[#allocation55_spill] sm:$0xff] %v6942_v57  ;;  %1383 = vmatpush.msra.mxu0 %v6960_v43  ;;  %v6966_v57 = vld [vmem:[%s11043_s1 + $0x4c8] sm:$0xff] }
 0x163   : > { %11643 = vst [vmem:[#allocation20_spill] sm:$0xff] %v6948_v8  ;;  %1403 = vmatpush.msra.mxu1 %v6966_v57  ;;  %v6972_v8 = vld [vmem:[%s11043_s1 + $0x420] sm:$0xff] }
 0x164   : > { %11644 = vst [vmem:[#allocation21_spill] sm:$0xff] %v6954_v49  ;;  %1328 = vmatpush.msrb.mxu2 %v6972_v8  ;;  %v6978_v49 = vld [vmem:[%s11043_s1 + $0xc8] sm:$0xff] }
 0x165   : > { %11645 = vst [vmem:[#allocation58_spill] sm:$0xff] %v6960_v43  ;;  %1363 = vmatpush.msra.mxu3 %v6978_v49  ;;  %v6984_v43 = vld [vmem:[%s11043_s1 + $0x2a8] sm:$0xff] }
 0x166   : > { %11646 = vst [vmem:[#allocation59_spill] sm:$0xff] %v6966_v57  ;;  %1384 = vmatpush.msra.mxu0 %v6984_v43  ;;  %v6990_v57 = vld [vmem:[%s11043_s1 + $0x4a8] sm:$0xff] }
 0x167   : > { %11647 = vst [vmem:[#allocation22_spill] sm:$0xff] %v6972_v8  ;;  %1404 = vmatpush.msra.mxu1 %v6990_v57  ;;  %v6996_v8 = vld [vmem:[%s11043_s1 + $0x400] sm:$0xff] }
 0x168   : > { %11648 = vst [vmem:[#allocation23_spill] sm:$0xff] %v6978_v49  ;;  %1329 = vmatpush.msrb.mxu2 %v6996_v8  ;;  %v7002_v49 = vld [vmem:[%s11043_s1 + $0xa8] sm:$0xff] }
 0x169   : > { %11649 = vst [vmem:[#allocation62_spill] sm:$0xff] %v6984_v43  ;;  %1364 = vmatpush.msra.mxu3 %v7002_v49  ;;  %v7008_v43 = vld [vmem:[%s11043_s1 + $0x288] sm:$0xff]  ;;  %1330 = vmatmul.f32.vlgmr.msrb.gmra.mxu2 %v6765_v15 }
 0x16a   : > { %11650 = vst [vmem:[#allocation63_spill] sm:$0xff] %v6990_v57  ;;  %1385 = vmatpush.msra.mxu0 %v7008_v43  ;;  %v7014_v57 = vld [vmem:[%s11043_s1 + $0x488] sm:$0xff] }
 0x16b   : > { %11651 = vst [vmem:[#allocation24_spill] sm:$0xff] %v6996_v8  ;;  %1405 = vmatpush.msra.mxu1 %v7014_v57  ;;  %v7020_v8 = vld [vmem:[%s11043_s1 + $0x6a8] sm:$0xff] }
 0x16c   : > { %11652 = vst [vmem:[#allocation25_spill] sm:$0xff] %v7002_v49  ;;  %1424 = vmatpush.msra.mxu2 %v7020_v8  ;;  %v7026_v49 = vld [vmem:[%s11043_s1 + $0x88] sm:$0xff] }
 0x16d   : > { %11653 = vst [vmem:[#allocation66_spill] sm:$0xff] %v7008_v43  ;;  %1365 = vmatpush.msra.mxu3 %v7026_v49  ;;  %v7032_v43 = vld [vmem:[%s11043_s1 + $0x268] sm:$0xff] }
 0x16e   : > { %11654 = vst [vmem:[#allocation67_spill] sm:$0xff] %v7014_v57  ;;  %1386 = vmatpush.msra.mxu0 %v7032_v43  ;;  %v7038_v57 = vld [vmem:[%s11043_s1 + $0x468] sm:$0xff] }
 0x16f   : > { %11655 = vst [vmem:[#allocation26_spill] sm:$0xff] %v7020_v8  ;;  %1406 = vmatpush.msra.mxu1 %v7038_v57  ;;  %v7044_v8 = vld [vmem:[%s11043_s1 + $0x688] sm:$0xff]  ;;  %v970_v2 = vpop.f32.mrf.mxu1 }
 0x170   : > { %11656 = vst [vmem:[#allocation27_spill] sm:$0xff] %v7026_v49  ;;  %1425 = vmatpush.msra.mxu2 %v7044_v8  ;;  %v7050_v49 = vld [vmem:[%s11043_s1 + $0x68] sm:$0xff] }
 0x171   : > { %11657 = vst [vmem:[#allocation70_spill] sm:$0xff] %v7032_v43  ;;  %1366 = vmatpush.msra.mxu3 %v7050_v49  ;;  %v7056_v43 = vld [vmem:[%s11043_s1 + $0x248] sm:$0xff] }
 0x172   : > { %11658 = vst [vmem:[#allocation71_spill] sm:$0xff] %v7038_v57  ;;  %1387 = vmatpush.msra.mxu0 %v7056_v43  ;;  %v7062_v57 = vld [vmem:[%s11043_s1 + $0x448] sm:$0xff] }
 0x173   : > { %11659 = vst [vmem:[#allocation30_spill] sm:$0xff] %v7044_v8  ;;  %1407 = vmatpush.msra.mxu1 %v7062_v57  ;;  %v7068_v8 = vld [vmem:[%s11043_s1 + $0x668] sm:$0xff] }
 0x174   : > { %11660 = vst [vmem:[#allocation31_spill] sm:$0xff] %v7050_v49  ;;  %1426 = vmatpush.msra.mxu2 %v7068_v8  ;;  %v7074_v49 = vld [vmem:[%s11043_s1 + $0x48] sm:$0xff] }
 0x175   : > { %11661 = vst [vmem:[#allocation74_spill] sm:$0xff] %v7056_v43  ;;  %1367 = vmatpush.msra.mxu3 %v7074_v49  ;;  %v7080_v43 = vld [vmem:[%s11043_s1 + $0x228] sm:$0xff] }
 0x176   : > { %11662 = vst [vmem:[#allocation75_spill] sm:$0xff] %v7062_v57  ;;  %1388 = vmatpush.msra.mxu0 %v7080_v43  ;;  %v7086_v57 = vld [vmem:[%s11043_s1 + $0x428] sm:$0xff] }
 0x177   : > { %11663 = vst [vmem:[#allocation32_spill] sm:$0xff] %v7068_v8  ;;  %1408 = vmatpush.msra.mxu1 %v7086_v57  ;;  %v7092_v8 = vld [vmem:[%s11043_s1 + $0x648] sm:$0xff] }
 0x178   : > { %11664 = vst [vmem:[#allocation33_spill] sm:$0xff] %v7074_v49  ;;  %1427 = vmatpush.msra.mxu2 %v7092_v8  ;;  %v7098_v49 = vld [vmem:[%s11043_s1 + $0x28] sm:$0xff] }
 0x179   : > { %11665 = vst [vmem:[#allocation78_spill] sm:$0xff] %v7080_v43  ;;  %1368 = vmatpush.msra.mxu3 %v7098_v49  ;;  %v7104_v43 = vld [vmem:[%s11043_s1 + $0x208] sm:$0xff] }
 0x17a   : > { %11666 = vst [vmem:[#allocation79_spill] sm:$0xff] %v7086_v57  ;;  %1389 = vmatpush.msra.mxu0 %v7104_v43  ;;  %v7110_v57 = vld [vmem:[%s11043_s1 + $0x408] sm:$0xff] }
 0x17b   : > { %11667 = vst [vmem:[#allocation35_spill] sm:$0xff] %v7092_v8  ;;  %1409 = vmatpush.msra.mxu1 %v7110_v57  ;;  %v7116_v8 = vld [vmem:[%s11043_s1 + $0x628] sm:$0xff]  ;;  %1390 = vmatmul.f32.vlgmr.msra.gmra.mxu0 %v6748_v62 }
 0x17c   : > { %11668 = vst [vmem:[#allocation82_spill] sm:$0xff] %v7098_v49  ;;  %1428 = vmatpush.msra.mxu2 %v7116_v8  ;;  %v7142_v49 = vld [vmem:[%s11043_s1 + $0x608] sm:$0xff]  ;;  %1410 = vmatmul.f32.vlgmr.msra.gmra.mxu1 %v6765_v15 }
 0x17d   : > { %11669 = vst [vmem:[#allocation104_spill] sm:$0xff] %v7104_v43  ;;  %v7124_v43 = vld [vmem:[%s11043_s1 + $0x5f0] sm:$0xff] }
 0x17e   : > { %11670 = vst [vmem:[#allocation36_spill] sm:$0xff] %v7110_v57  ;;  %1474 = vmatpush.msrb.mxu0 %v7124_v43  ;;  %v7130_v57 = vld [vmem:[%s11043_s1 + $0x6b0] sm:$0xff]  ;;  %1429 = vmatpush.msra.mxu2 %v7142_v49 }
 0x17f   : > { %11671 = vst [vmem:[#allocation39_spill] sm:$0xff] %v7116_v8  ;;  %1504 = vmatpush.msrb.mxu1 %v7130_v57  ;;  %v7136_v8 = vld [vmem:[%s11043_s1 + $0x8] sm:$0xff]  ;;  %3839 = vmatmul.msk.f32.vlgmr.msra.gmra.mxu2 %vm589_vm0, %v6780_v18 }
 0x180   : > { %11672 = vst [vmem:[#allocation40_spill] sm:$0xff] %v7124_v43  ;;  %1369 = vmatpush.msra.mxu3 %v7136_v8  ;;  %v7169_v43 = vld [vmem:[%s11043_s1 + $0x690] sm:$0xff] }
 0x181   : > { %11673 = vst [vmem:[#allocation41_spill] sm:$0xff] %v7130_v57  ;;  %v7151_v57 = vld [vmem:[%s11043_s1 + $0x1f0] sm:$0xff]  ;;  %1505 = vmatpush.msrb.mxu1 %v7169_v43  ;;  %1370 = vmatmul.f32.vlgmr.msra.gmra.mxu3 %v6734_v59 }
 0x182   : > { %11674 = vst [vmem:[#allocation86_spill] sm:$0xff] %v7136_v8  ;;  %1434 = vmatpush.msrb.mxu2 %v7151_v57  ;;  %v7157_v8 = vld [vmem:[%s11043_s1 + $0x3f0] sm:$0xff] }
 0x183   : > { %11675 = vst [vmem:[#allocation108_spill] sm:$0xff] %v7142_v49  ;;  %1454 = vmatpush.msrb.mxu3 %v7157_v8  ;;  %v7163_v49 = vld [vmem:[%s11043_s1 + $0x5d0] sm:$0xff] }
 0x184   : > { %11676 = vst [vmem:[#allocation44_spill] sm:$0xff] %v7151_v57  ;;  %1475 = vmatpush.msrb.mxu0 %v7163_v49  ;;  %v7175_v57 = vld [vmem:[%s11043_s1 + $0x1d0] sm:$0xff] }
 0x185   : > { %11677 = vst [vmem:[#allocation45_spill] sm:$0xff] %v7157_v8  ;;  %1435 = vmatpush.msrb.mxu2 %v7175_v57  ;;  %v7181_v8 = vld [vmem:[%s11043_s1 + $0x3d0] sm:$0xff] }
 0x186   : > { %11678 = vst [vmem:[#allocation90_spill] sm:$0xff] %v7163_v49  ;;  %1455 = vmatpush.msrb.mxu3 %v7181_v8  ;;  %v7187_v49 = vld [vmem:[%s11043_s1 + $0x5b0] sm:$0xff] }
 0x187   : > { %11679 = vst [vmem:[#allocation112_spill] sm:$0xff] %v7169_v43  ;;  %1476 = vmatpush.msrb.mxu0 %v7187_v49  ;;  %v7193_v43 = vld [vmem:[%s11043_s1 + $0x670] sm:$0xff] }
 0x188   : > { %11680 = vst [vmem:[#allocation48_spill] sm:$0xff] %v7175_v57  ;;  %1506 = vmatpush.msrb.mxu1 %v7193_v43  ;;  %v7199_v57 = vld [vmem:[%s11043_s1 + $0x1b0] sm:$0xff] }
 0x189   : > { %11681 = vst [vmem:[#allocation49_spill] sm:$0xff] %v7181_v8  ;;  %1436 = vmatpush.msrb.mxu2 %v7199_v57  ;;  %v7205_v8 = vld [vmem:[%s11043_s1 + $0x3b0] sm:$0xff] }
 0x18a   : > { %11682 = vst [vmem:[#allocation94_spill] sm:$0xff] %v7187_v49  ;;  %1456 = vmatpush.msrb.mxu3 %v7205_v8  ;;  %v7211_v49 = vld [vmem:[%s11043_s1 + $0x590] sm:$0xff] }
 0x18b   : > { %11683 = vst [vmem:[#allocation116_spill] sm:$0xff] %v7193_v43  ;;  %1477 = vmatpush.msrb.mxu0 %v7211_v49  ;;  %v7217_v43 = vld [vmem:[%s11043_s1 + $0x650] sm:$0xff]  ;;  %1437 = vmatpush.msrb.mxu2 %v7223_v10 }
 0x18c   : > { %11684 = vst [vmem:[#allocation52_spill] sm:$0xff] %v7199_v57  ;;  %1507 = vmatpush.msrb.mxu1 %v7217_v43  ;;  %v950_v57 = vpop.f32.mrf.mxu0 }
 0x18d   : > { %11685 = vst [vmem:[#allocation53_spill] sm:$0xff] %v7205_v8  ;;  %v7229_v8 = vld [vmem:[%s11043_s1 + $0x390] sm:$0xff] }
 0x18e   : > { %11686 = vst [vmem:[#allocation98_spill] sm:$0xff] %v7211_v49  ;;  %1457 = vmatpush.msrb.mxu3 %v7229_v8  ;;  %v7235_v49 = vld [vmem:[%s11043_s1 + $0x570] sm:$0xff] }
 0x18f   : > { %11687 = vst [vmem:[#allocation120_spill] sm:$0xff] %v7217_v43  ;;  %1478 = vmatpush.msrb.mxu0 %v7235_v49  ;;  %v7241_v43 = vld [vmem:[%s11043_s1 + $0x630] sm:$0xff] }
 0x190   : > { %11688 = vst [vmem:[#allocation56_spill] sm:$0xff] %v7223_v10  ;;  %1508 = vmatpush.msrb.mxu1 %v7241_v43  ;;  %v951_v10 = vadd.f32 %v950_v57, %v6318_v54  ;;  %v7266_v57 = vld [vmem:[%s11043_s1 + $0x610] sm:$0xff] }
 0x191   : > { %11689 = vst [vmem:[#allocation57_spill] sm:$0xff] %v7229_v8  ;;  %v7248_v8 = vld [vmem:[%s11043_s1 + $0x170] sm:$0xff] }
 0x192   : > { %11690 = vst [vmem:[#allocation102_spill] sm:$0xff] %v7235_v49  ;;  %1438 = vmatpush.msrb.mxu2 %v7248_v8  ;;  %v7254_v49 = vld [vmem:[%s11043_s1 + $0x370] sm:$0xff]  ;;  %1509 = vmatpush.msrb.mxu1 %v7266_v57 }
 0x193   : > { %11691 = vst [vmem:[#allocation124_spill] sm:$0xff] %v7241_v43  ;;  %1458 = vmatpush.msrb.mxu3 %v7254_v49  ;;  %v7260_v43 = vld [vmem:[%s11043_s1 + $0x550] sm:$0xff]  ;;  %3840 = vmatmul.msk.f32.vlgmr.msrb.gmra.mxu1 %vm589_vm0, %v6780_v18 }
 0x194   : > { %11692 = vst [vmem:[#allocation60_spill] sm:$0xff] %v7248_v8  ;;  %1479 = vmatpush.msrb.mxu0 %v7260_v43  ;;  %v971_v8 = vadd.f32 %v970_v2, %v951_v10  ;;  %v7291_v54 = vld [vmem:[%s11043_s1 + $0x530] sm:$0xff] }
 0x195   : > { %11693 = vst [vmem:[#allocation83_spill] sm:$0xff] %v7254_v49  ;;  %v7273_v49 = vld [vmem:[%s11043_s1 + $0x150] sm:$0xff] }
 0x196   : > { %11694 = vst [vmem:[#allocation61_spill] sm:$0xff] %v7260_v43  ;;  %1439 = vmatpush.msrb.mxu2 %v7273_v49  ;;  %v7279_v43 = vld [vmem:[%s11043_s1 + $0x1f8] sm:$0xff]  ;;  %1480 = vmatpush.msrb.mxu0 %v7291_v54  ;;  %v7309_v2 = vld [vmem:[%s11043_s1 + $0x330] sm:$0xff] }
 0x197   : > { %11695 = vst [vmem:[#allocation106_spill] sm:$0xff] %v7266_v57  ;;  %1514 = vmatpush.msra.mxu1 %v7279_v43  ;;  %v7285_v57 = vld [vmem:[%s11043_s1 + $0x350] sm:$0xff] }
 0x198   : > { %11696 = vst [vmem:[#allocation64_spill] sm:$0xff] %v7273_v49  ;;  %1459 = vmatpush.msrb.mxu3 %v7285_v57  ;;  %v7297_v49 = vld [vmem:[%s11043_s1 + $0x130] sm:$0xff] }
 0x199   : > { %11697 = vst [vmem:[#allocation87_spill] sm:$0xff] %v7279_v43  ;;  %1440 = vmatpush.msrb.mxu2 %v7297_v49  ;;  %v7303_v43 = vld [vmem:[%s11043_s1 + $0x1d8] sm:$0xff]  ;;  %v7315_v10 = vld [vmem:[%s11043_s1 + $0x510] sm:$0xff] }
 0x19a   : > { %11698 = vst [vmem:[#allocation65_spill] sm:$0xff] %v7285_v57  ;;  %1515 = vmatpush.msra.mxu1 %v7303_v43  ;;  %1460 = vmatpush.msrb.mxu3 %v7309_v2 }
 0x19b   : > { %11699 = vst [vmem:[#allocation110_spill] sm:$0xff] %v7291_v54  ;;  %1481 = vmatpush.msrb.mxu0 %v7315_v10  ;;  %v1010_v54 = vpop.f32.mrf.mxu3 }
 0x19c   : > { %11700 = vst [vmem:[#allocation68_spill] sm:$0xff] %v7297_v49  ;;  %v7321_v49 = vld [vmem:[%s11043_s1 + $0x110] sm:$0xff] }
 0x19d   : > { %11701 = vst [vmem:[#allocation91_spill] sm:$0xff] %v7303_v43  ;;  %1441 = vmatpush.msrb.mxu2 %v7321_v49  ;;  %v990_v43 = vpop.f32.mrf.mxu2 }
 0x19e   : > { %11702 = vst [vmem:[#allocation69_spill] sm:$0xff] %v7309_v2  ;;  %v7327_v2 = vld [vmem:[%s11043_s1 + $0x1b8] sm:$0xff]  ;;  %v991_v57 = vadd.f32 %v990_v43, %v971_v8  ;;  %v7357_v43 = vld [vmem:[%s11043_s1 + $0x2f0] sm:$0xff] }
 0x19f   : > { %11703 = vst [vmem:[#allocation114_spill] sm:$0xff] %v7315_v10  ;;  %1516 = vmatpush.msra.mxu1 %v7327_v2  ;;  %v7333_v10 = vld [vmem:[%s11043_s1 + $0x310] sm:$0xff]  ;;  %1442 = vmatpush.msrb.mxu2 %v7345_v36 }
 0x1a0   : > { %11704 = vst [vmem:[#allocation72_spill] sm:$0xff] %v7321_v49  ;;  %1461 = vmatpush.msrb.mxu3 %v7333_v10  ;;  %v7339_v49 = vld [vmem:[%s11043_s1 + $0x4f0] sm:$0xff]  ;;  %v1011_v8 = vadd.f32 %v1010_v54, %v991_v57 }
 0x1a1   : > { %11705 = vst [vmem:[#allocation95_spill] sm:$0xff] %v7327_v2  ;;  %1482 = vmatpush.msrb.mxu0 %v7339_v49  ;;  %v7351_v2 = vld [vmem:[%s11043_s1 + $0x198] sm:$0xff]  ;;  %v7381_v54 = vld [vmem:[%s11043_s1 + $0x2d0] sm:$0xff] }
 0x1a2   : > { %11706 = vst [vmem:[#allocation73_spill] sm:$0xff] %v7339_v49  ;;  %1517 = vmatpush.msra.mxu1 %v7351_v2  ;;  %1462 = vmatpush.msrb.mxu3 %v7357_v43  ;;  %v7363_v49 = vld [vmem:[%s11043_s1 + $0x4d0] sm:$0xff]  ;;  %v1253_v57 = vmax.f32 %v1011_v8, 0.0 }
 0x1a3   : > { %11707 = vst [vmem:[#allocation118_spill] sm:$0xff] %v7345_v36  ;;  %1483 = vmatpush.msrb.mxu0 %v7363_v49  ;;  %v7369_v36 = vld [vmem:[%s11043_s1 + $0xd0] sm:$0xff] }
 0x1a4   : > { %11708 = vst [vmem:[#allocation76_spill] sm:$0xff] %v7351_v2  ;;  %1443 = vmatpush.msrb.mxu2 %v7369_v36  ;;  %v7375_v2 = vld [vmem:[%s11043_s1 + $0x178] sm:$0xff]  ;;  %1463 = vmatpush.msrb.mxu3 %v7381_v54  ;;  %v7405_v8 = vld [vmem:[%s11043_s1 + $0x2b0] sm:$0xff] }
 0x1a5   : > { %11709 = vst [vmem:[#allocation99_spill] sm:$0xff] %v7357_v43  ;;  %1518 = vmatpush.msra.mxu1 %v7375_v2  ;;  %v1070_v43 = vpop.f32.mrf.mxu1 }
 0x1a6   : > { %11710 = vst [vmem:[#allocation77_spill] sm:$0xff] %v7363_v49  ;;  %v7387_v49 = vld [vmem:[%s11043_s1 + $0x4b0] sm:$0xff]  ;;  %1464 = vmatpush.msrb.mxu3 %v7405_v8 }
 0x1a7   : > { %11711 = vst [vmem:[#allocation122_spill] sm:$0xff] %v7369_v36  ;;  %1484 = vmatpush.msrb.mxu0 %v7387_v49  ;;  %v7393_v36 = vld [vmem:[%s11043_s1 + $0xb0] sm:$0xff] }
 0x1a8   : > { %11712 = vst [vmem:[#allocation80_spill] sm:$0xff] %v7375_v2  ;;  %1444 = vmatpush.msrb.mxu2 %v7393_v36  ;;  %v7399_v2 = vld [vmem:[%s11043_s1 + $0x158] sm:$0xff] }
 0x1a9   : > { %11713 = vst [vmem:[#allocation103_spill] sm:$0xff] %v7381_v54  ;;  %1519 = vmatpush.msra.mxu1 %v7399_v2 }
 0x1aa   : > { %11714 = vst [vmem:[#allocation81_spill] sm:$0xff] %v7387_v49  ;;  %v7411_v49 = vld [vmem:[%s11043_s1 + $0x490] sm:$0xff] }
 0x1ab   : > { %11715 = vst [vmem:[#allocation126_spill] sm:$0xff] %v7393_v36  ;;  %1485 = vmatpush.msrb.mxu0 %v7411_v49  ;;  %v7417_v36 = vld [vmem:[%s11043_s1 + $0x90] sm:$0xff] }
 0x1ac   : > { %11716 = vst [vmem:[#allocation84_spill] sm:$0xff] %v7399_v2  ;;  %1445 = vmatpush.msrb.mxu2 %v7417_v36  ;;  %v7423_v2 = vld [vmem:[%s11043_s1 + $0x138] sm:$0xff] }
 0x1ad   : > { %11717 = vst [vmem:[#allocation107_spill] sm:$0xff] %v7405_v8  ;;  %1520 = vmatpush.msra.mxu1 %v7423_v2  ;;  %v1050_v8 = vpop.f32.mrf.mxu0 }
 0x1ae   : > { %1945 = vst [vmem:[#allocation2 + $0x40] sm:$0xf] %v1253_v57  ;;  %v7429_v57 = vld [vmem:[%s11043_s1 + $0x290] sm:$0xff] }
 0x1af   : > { %11718 = vst [vmem:[#allocation85_spill] sm:$0xff] %v7411_v49  ;;  %1465 = vmatpush.msrb.mxu3 %v7429_v57  ;;  %v7435_v49 = vld [vmem:[%s11043_s1 + $0x470] sm:$0xff] }
 0x1b0   : > { %11719 = vst [vmem:[#allocation130_spill] sm:$0xff] %v7417_v36  ;;  %1486 = vmatpush.msrb.mxu0 %v7435_v49  ;;  %v7441_v36 = vld [vmem:[%s11043_s1 + $0x70] sm:$0xff] }
 0x1b1   : > { %11720 = vst [vmem:[#allocation88_spill] sm:$0xff] %v7423_v2  ;;  %1446 = vmatpush.msrb.mxu2 %v7441_v36  ;;  %v7447_v2 = vld [vmem:[%s11043_s1 + $0x118] sm:$0xff] }
 0x1b2   : > { %11721 = vst [vmem:[#allocation111_spill] sm:$0xff] %v7429_v57  ;;  %1521 = vmatpush.msra.mxu1 %v7447_v2  ;;  %v7453_v57 = vld [vmem:[%s11043_s1 + $0x270] sm:$0xff] }
 0x1b3   : > { %11722 = vst [vmem:[#allocation89_spill] sm:$0xff] %v7435_v49  ;;  %1466 = vmatpush.msrb.mxu3 %v7453_v57  ;;  %v7459_v49 = vld [vmem:[%s11043_s1 + $0x450] sm:$0xff] }
 0x1b4   : > { %11723 = vst [vmem:[#allocation134_spill] sm:$0xff] %v7441_v36  ;;  %1487 = vmatpush.msrb.mxu0 %v7459_v49  ;;  %v7484_v36 = vld [vmem:[%s11043_s1 + $0x430] sm:$0xff] }
 0x1b5   : > { %11724 = vst [vmem:[#allocation115_spill] sm:$0xff] %v7447_v2  ;;  %v7466_v2 = vld [vmem:[%s11043_s1 + $0xf8] sm:$0xff] }
 0x1b6   : > { %11725 = vst [vmem:[#allocation92_spill] sm:$0xff] %v7453_v57  ;;  %1522 = vmatpush.msra.mxu1 %v7466_v2  ;;  %v7472_v57 = vld [vmem:[%s11043_s1 + $0x50] sm:$0xff]  ;;  %1488 = vmatpush.msrb.mxu0 %v7484_v36 }
 0x1b7   : > { %11726 = vst [vmem:[#allocation93_spill] sm:$0xff] %v7459_v49  ;;  %1447 = vmatpush.msrb.mxu2 %v7472_v57  ;;  %v7478_v49 = vld [vmem:[%s11043_s1 + $0x250] sm:$0xff] }
 0x1b8   : > { %11727 = vst [vmem:[#allocation138_spill] sm:$0xff] %v7466_v2  ;;  %1467 = vmatpush.msrb.mxu3 %v7478_v49  ;;  %v7490_v2 = vld [vmem:[%s11043_s1 + $0xd8] sm:$0xff] }
 0x1b9   : > { %11728 = vst [vmem:[#allocation119_spill] sm:$0xff] %v7472_v57  ;;  %1523 = vmatpush.msra.mxu1 %v7490_v2  ;;  %v7496_v57 = vld [vmem:[%s11043_s1 + $0x30] sm:$0xff] }
 0x1ba   : > { %11729 = vst [vmem:[#allocation96_spill] sm:$0xff] %v7478_v49  ;;  %1448 = vmatpush.msrb.mxu2 %v7496_v57  ;;  %v7502_v49 = vld [vmem:[%s11043_s1 + $0x230] sm:$0xff] }
 0x1bb   : > { %11730 = vst [vmem:[#allocation97_spill] sm:$0xff] %v7484_v36  ;;  %1468 = vmatpush.msrb.mxu3 %v7502_v49  ;;  %v7508_v36 = vld [vmem:[%s11043_s1 + $0x410] sm:$0xff] }
 0x1bc   : > { %11731 = vst [vmem:[#allocation123_spill] sm:$0xff] %v7490_v2  ;;  %1489 = vmatpush.msrb.mxu0 %v7508_v36  ;;  %v7515_v2 = vld [vmem:[%s11043_s1 + $0xb8] sm:$0xff] }
 0x1bd   : > { %11732 = vst [vmem:[#allocation100_spill] sm:$0xff] %v7496_v57  ;;  %1524 = vmatpush.msra.mxu1 %v7515_v2  ;;  %v7533_v57 = vld [vmem:[%s11043_s1 + $0x210] sm:$0xff]  ;;  %1490 = vmatmul.f32.vlgmr.msrb.gmra.mxu0 %v6765_v15 }
 0x1be   : > { %11733 = vst [vmem:[#allocation101_spill] sm:$0xff] %v7502_v49  ;;  %v7521_v49 = vld [vmem:[%s11043_s1 + $0x6b8] sm:$0xff]  ;;  %1469 = vmatpush.msrb.mxu3 %v7533_v57 }
 0x1bf   : > { %11734 = vst [vmem:[#allocation127_spill] sm:$0xff] %v7508_v36  ;;  %1584 = vmatpush.msra.mxu0 %v7521_v49  ;;  %v7527_v36 = vld [vmem:[%s11043_s1 + $0x10] sm:$0xff]  ;;  %1470 = vmatmul.f32.vlgmr.msrb.gmra.mxu3 %v6748_v62 }
 0x1c0   : > { %11735 = vst [vmem:[#allocation105_spill] sm:$0xff] %v7515_v2  ;;  %1449 = vmatpush.msrb.mxu2 %v7527_v36  ;;  %v7541_v2 = vld [vmem:[%s11043_s1 + $0x98] sm:$0xff] }
 0x1c1   : > { %11736 = vst [vmem:[#allocation128_spill] sm:$0xff] %v7521_v49  ;;  %1525 = vmatpush.msra.mxu1 %v7541_v2  ;;  %v7559_v49 = vld [vmem:[%s11043_s1 + $0x698] sm:$0xff]  ;;  %1450 = vmatmul.f32.vlgmr.msrb.gmra.mxu2 %v6734_v59 }
 0x1c2   : > { %11737 = vst [vmem:[#allocation131_spill] sm:$0xff] %v7527_v36  ;;  %v7547_v36 = vld [vmem:[%s11043_s1 + $0x3f8] sm:$0xff]  ;;  %1585 = vmatpush.msra.mxu0 %v7559_v49 }
 0x1c3   : > { %11738 = vst [vmem:[#allocation109_spill] sm:$0xff] %v7533_v57  ;;  %1534 = vmatpush.msra.mxu2 %v7547_v36  ;;  %v7553_v57 = vld [vmem:[%s11043_s1 + $0x5f8] sm:$0xff] }
 0x1c4   : > { %11739 = vst [vmem:[#allocation132_spill] sm:$0xff] %v7541_v2  ;;  %1554 = vmatpush.msra.mxu3 %v7553_v57  ;;  %v7565_v2 = vld [vmem:[%s11043_s1 + $0x78] sm:$0xff] }
 0x1c5   : > { %11740 = vst [vmem:[#allocation135_spill] sm:$0xff] %v7547_v36  ;;  %1526 = vmatpush.msra.mxu1 %v7565_v2  ;;  %v7571_v36 = vld [vmem:[%s11043_s1 + $0x3d8] sm:$0xff] }
 0x1c6   : > { %11741 = vst [vmem:[#allocation113_spill] sm:$0xff] %v7553_v57  ;;  %1535 = vmatpush.msra.mxu2 %v7571_v36  ;;  %v7577_v57 = vld [vmem:[%s11043_s1 + $0x5d8] sm:$0xff] }
 0x1c7   : > { %11742 = vst [vmem:[#allocation136_spill] sm:$0xff] %v7559_v49  ;;  %1555 = vmatpush.msra.mxu3 %v7577_v57  ;;  %v7583_v49 = vld [vmem:[%s11043_s1 + $0x678] sm:$0xff] }
 0x1c8   : > { %11743 = vst [vmem:[#allocation117_spill] sm:$0xff] %v7565_v2  ;;  %1586 = vmatpush.msra.mxu0 %v7583_v49  ;;  %v7589_v2 = vld [vmem:[%s11043_s1 + $0x58] sm:$0xff] }
 0x1c9   : > { %11744 = vst [vmem:[#allocation139_spill] sm:$0xff] %v7571_v36  ;;  %1527 = vmatpush.msra.mxu1 %v7589_v2  ;;  %v7595_v36 = vld [vmem:[%s11043_s1 + $0x3b8] sm:$0xff] }
 0x1ca   : > { %11745 = vst [vmem:[#allocation121_spill] sm:$0xff] %v7577_v57  ;;  %1536 = vmatpush.msra.mxu2 %v7595_v36  ;;  %v7601_v57 = vld [vmem:[%s11043_s1 + $0x5b8] sm:$0xff] }
 0x1cb   : > { %11746 = vst [vmem:[#allocation141_spill] sm:$0xff] %v7583_v49  ;;  %1556 = vmatpush.msra.mxu3 %v7601_v57  ;;  %v7607_v49 = vld [vmem:[%s11043_s1 + $0x658] sm:$0xff] }
 0x1cc   : > { %11747 = vst [vmem:[#allocation125_spill] sm:$0xff] %v7589_v2  ;;  %1587 = vmatpush.msra.mxu0 %v7607_v49  ;;  %v7613_v2 = vld [vmem:[%s11043_s1 + $0x38] sm:$0xff] }
 0x1cd   : > { %11748 = vst [vmem:[#allocation129_spill] sm:$0xff] %v7595_v36  ;;  %1528 = vmatpush.msra.mxu1 %v7613_v2  ;;  %v7619_v36 = vld [vmem:[%s11043_s1 + $0x398] sm:$0xff] }
 0x1ce   : > { %11749 = vst [vmem:[#allocation133_spill] sm:$0xff] %v7601_v57  ;;  %1537 = vmatpush.msra.mxu2 %v7619_v36  ;;  %v7625_v57 = vld [vmem:[%s11043_s1 + $0x598] sm:$0xff] }
 0x1cf   : > { %11750 = vst [vmem:[#allocation137_spill] sm:$0xff] %v7607_v49  ;;  %1557 = vmatpush.msra.mxu3 %v7625_v57  ;;  %v7631_v49 = vld [vmem:[%s11043_s1 + $0x638] sm:$0xff] }
 0x1d0   : > { %11751 = vst [vmem:[#allocation140_spill] sm:$0xff] %v7613_v2  ;;  %1588 = vmatpush.msra.mxu0 %v7631_v49  ;;  %v1030_v2 = vpop.f32.mrf.mxu3 }
 0x1d1   : > { %11752 = vst [vmem:[#allocation142_spill] sm:$0xff] %v7619_v36  ;;  %v7637_v36 = vld [vmem:[%s11043_s1 + $0x18] sm:$0xff]  ;;  %v1031_v54 = vadd.f32 %v1030_v2, %v6397_v60 }
 0x1d2   : > { %11753 = vst [vmem:[#allocation143_spill] sm:$0xff] %v7625_v57  ;;  %1529 = vmatpush.msra.mxu1 %v7637_v36  ;;  %v7643_v57 = vld [vmem:[%s11043_s1 + $0x378] sm:$0xff] }
 0x1d3   : > { %11754 = vst [vmem:[#allocation144_spill] sm:$0xff] %v7631_v49  ;;  %1538 = vmatpush.msra.mxu2 %v7643_v57  ;;  %v7650_v49 = vld [vmem:[%s11043_s1 + $0x578] sm:$0xff]  ;;  %v1051_v2 = vadd.f32 %v1050_v8, %v1031_v54  ;;  %v1090_v54 = vpop.f32.mrf.mxu2  ;;  %1530 = vmatmul.f32.vlgmr.msra.gmra.mxu1 %v6734_v59  ;;  %v11773_v59 = vld [vmem:[#allocation43_spill] sm:$0xff] }
 0x1d4   : > { %11755 = vst [vmem:[#allocation145_spill] sm:$0xff] %v7637_v36  ;;  %1558 = vmatpush.msra.mxu3 %v7650_v49  ;;  %v7656_v36 = vld [vmem:[%s11043_s1 + $0x618] sm:$0xff]  ;;  %1635 = vmatpush.msrb.mxu1 %v6445_v44 }
 0x1d5   : > { %11756 = vst [vmem:[#allocation146_spill] sm:$0xff] %v7643_v57  ;;  %1589 = vmatpush.msra.mxu0 %v7656_v36  ;;  %v1071_v57 = vadd.f32 %v1070_v43, %v1051_v2  ;;  %v7687_v44 = vld [vmem:[%s11043_s1 + $0x538] sm:$0xff] }
 0x1d6   : > { %11757 = vst [vmem:[#allocation147_spill] sm:$0xff] %v7650_v49  ;;  %v7667_v49 = vld [vmem:[%s11043_s1 + $0x358] sm:$0xff]  ;;  %1636 = vmatpush.msrb.mxu1 %v6459_v34  ;;  %3841 = vmatmul.msk.f32.vlgmr.msra.gmra.mxu0 %vm589_vm0, %v6780_v18 }
 0x1d7   : > { %11758 = vst [vmem:[#allocation148_spill] sm:$0xff] %v7656_v36  ;;  %1615 = vmatpush.msrb.mxu0 %v6439_v55  ;;  %1539 = vmatpush.msra.mxu2 %v7667_v49  ;;  %v7673_v36 = vld [vmem:[%s11043_s1 + $0x558] sm:$0xff] }
 0x1d8   : > { %1559 = vmatpush.msra.mxu3 %v7673_v36  ;;  %v7681_v55 = vld [vmem:[%s11043_s1 + $0x338] sm:$0xff]  ;;  %1637 = vmatpush.msrb.mxu1 %v6476_v58 }
 0x1d9   : > { %1616 = vmatpush.msrb.mxu0 %v6453_v30  ;;  %1540 = vmatpush.msra.mxu2 %v7681_v55  ;;  %v1091_v30 = vadd.f32 %v1090_v54, %v1071_v57  ;;  %v7695_v34 = vld [vmem:[%s11043_s1 + $0x318] sm:$0xff]  ;;  %v11782_v57 = vld [vmem:[#allocation51_spill] sm:$0xff] }
 0x1da   : > { %1560 = vmatpush.msra.mxu3 %v7687_v44  ;;  %v7701_v43 = vld [vmem:[%s11043_s1 + $0x518] sm:$0xff]  ;;  %1638 = vmatpush.msrb.mxu1 %v6490_v24  ;;  %v11784_v54 = vld [vmem:[#allocation19_spill] sm:$0xff] }
 0x1db   : > { %1617 = vmatpush.msrb.mxu0 %v6470_v32  ;;  %1541 = vmatpush.msra.mxu2 %v7695_v34  ;;  %v1254_v32 = vmax.f32 %v1091_v30, 0.0  ;;  %v7709_v58 = vld [vmem:[%s11043_s1 + $0x2f8] sm:$0xff] }
 0x1dc   : > { %1561 = vmatpush.msra.mxu3 %v7701_v43  ;;  %v7715_v8 = vld [vmem:[%s11043_s1 + $0x4f8] sm:$0xff]  ;;  %1639 = vmatpush.msrb.mxu1 %v6505_v48 }
 0x1dd   : > { %1618 = vmatpush.msrb.mxu0 %v6484_v35  ;;  %1542 = vmatpush.msra.mxu2 %v7709_v58  ;;  %1946 = vst [vmem:[#allocation2 + $0x20] sm:$0xf] %v1254_v32  ;;  %v7723_v35 = vld [vmem:[%s11043_s1 + $0x2d8] sm:$0xff] }
 0x1de   : > { %1562 = vmatpush.msra.mxu3 %v7715_v8  ;;  %v7729_v24 = vld [vmem:[%s11043_s1 + $0x4d8] sm:$0xff]  ;;  %1640 = vmatpush.msrb.mxu1 %v6519_v14 }
 0x1df   : > { %1619 = vmatpush.msrb.mxu0 %v6499_v0  ;;  %1543 = vmatpush.msra.mxu2 %v7723_v35  ;;  %v7737_v0 = vld [vmem:[%s11043_s1 + $0x2b8] sm:$0xff] }
 0x1e0   : > { %1563 = vmatpush.msra.mxu3 %v7729_v24  ;;  %v7743_v48 = vld [vmem:[%s11043_s1 + $0x4b8] sm:$0xff]  ;;  %1641 = vmatpush.msrb.mxu1 %v6533_v22 }
 0x1e1   : > { %1620 = vmatpush.msrb.mxu0 %v6513_v4  ;;  %1544 = vmatpush.msra.mxu2 %v7737_v0  ;;  %v7751_v4 = vld [vmem:[%s11043_s1 + $0x298] sm:$0xff] }
 0x1e2   : > { %1564 = vmatpush.msra.mxu3 %v7743_v48  ;;  %v7757_v14 = vld [vmem:[%s11043_s1 + $0x498] sm:$0xff]  ;;  %1642 = vmatpush.msrb.mxu1 %v6548_v27 }
 0x1e3   : > { %1621 = vmatpush.msrb.mxu0 %v6527_v19  ;;  %1545 = vmatpush.msra.mxu2 %v7751_v4  ;;  %v7766_v19 = vld [vmem:[%s11043_s1 + $0x278] sm:$0xff] }
 0x1e4   : > { %1565 = vmatpush.msra.mxu3 %v7757_v14  ;;  %v7772_v22 = vld [vmem:[%s11043_s1 + $0x478] sm:$0xff]  ;;  %1643 = vmatpush.msrb.mxu1 %v6563_v23 }
 0x1e5   : > { %1622 = vmatpush.msrb.mxu0 %v6542_v12  ;;  %1546 = vmatpush.msra.mxu2 %v7766_v19  ;;  %v7781_v12 = vld [vmem:[%s11043_s1 + $0x258] sm:$0xff] }
 0x1e6   : > { %1566 = vmatpush.msra.mxu3 %v7772_v22  ;;  %v7787_v27 = vld [vmem:[%s11043_s1 + $0x458] sm:$0xff]  ;;  %1644 = vmatpush.msrb.mxu1 %v6577_v20 }
 0x1e7   : > { %1623 = vmatpush.msrb.mxu0 %v6556_v16  ;;  %1547 = vmatpush.msra.mxu2 %v7781_v12  ;;  %v7795_v16 = vld [vmem:[%s11043_s1 + $0x238] sm:$0xff] }
 0x1e8   : > { %1567 = vmatpush.msra.mxu3 %v7787_v27  ;;  %v7801_v23 = vld [vmem:[%s11043_s1 + $0x438] sm:$0xff]  ;;  %1645 = vmatpush.msrb.mxu1 %v6591_v25 }
 0x1e9   : > { %1624 = vmatpush.msrb.mxu0 %v6571_v40  ;;  %1548 = vmatpush.msra.mxu2 %v7795_v16  ;;  %v7809_v40 = vld [vmem:[%s11043_s1 + $0x218] sm:$0xff] }
 0x1ea   : > { %1568 = vmatpush.msra.mxu3 %v7801_v23  ;;  %v7815_v20 = vld [vmem:[%s11043_s1 + $0x418] sm:$0xff]  ;;  %1646 = vmatpush.msrb.mxu1 %v6605_v29  ;;  %v1150_v29 = vpop.f32.mrf.mxu0 }
 0x1eb   : > { %1625 = vmatpush.msrb.mxu0 %v6585_v1  ;;  %1549 = vmatpush.msra.mxu2 %v7809_v40  ;;  %v1110_v1 = vpop.f32.mrf.mxu2  ;;  %v11781_v18 = vld [vmem:[#allocation50_spill] sm:$0xff] }
 0x1ec   : > { %1569 = vmatpush.msra.mxu3 %v7815_v20  ;;  %1647 = vmatpush.msrb.mxu1 %v6629_v31  ;;  %v1111_v25 = vadd.f32 %v1110_v1, %v6463_v56  ;;  %v11783_v2 = vld [vmem:[#allocation18_spill] sm:$0xff] }
 0x1ed   : > { %1626 = vmatpush.msrb.mxu0 %v6599_v5  ;;  %1655 = vmatpush.msrb.mxu2 %v6611_v9  ;;  %v1130_v5 = vpop.f32.mrf.mxu3  ;;  %v11785_v30 = vld [vmem:[#allocation54_spill] sm:$0xff] }
 0x1ee   : > { %1685 = vmatpush.msrb.mxu3 %v6617_v33  ;;  %1648 = vmatpush.msrb.mxu1 %v6653_v41  ;;  %v1131_v9 = vadd.f32 %v1130_v5, %v1111_v25  ;;  %v1170_v33 = vpop.f32.mrf.mxu1  ;;  %v11761_v41 = vld [vmem:[#allocation6_spill] sm:$0xff]  ;;  %v11786_v25 = vld [vmem:[#allocation55_spill] sm:$0xff]  ;;  %v11787_v5 = vld [vmem:[#allocation20_spill] sm:$0xff] }
 0x1ef   : > { %1627 = vmatpush.msrb.mxu0 %v6623_v28  ;;  %1656 = vmatpush.msrb.mxu2 %v6635_v13  ;;  %v11759_v13 = vld [vmem:[#allocation28_spill] sm:$0xff] }
 0x1f0   : > { %1686 = vmatpush.msrb.mxu3 %v6641_v37  ;;  %1649 = vmatpush.msrb.mxu1 %v6677_v39  ;;  %v1151_v28 = vadd.f32 %v1150_v29, %v1131_v9  ;;  %v11760_v37 = vld [vmem:[#allocation29_spill] sm:$0xff]  ;;  %v11765_v39 = vld [vmem:[#allocation34_spill] sm:$0xff] }
 0x1f1   : > { %1628 = vmatpush.msrb.mxu0 %v6647_v38  ;;  %1657 = vmatpush.msrb.mxu2 %v6659_v42  ;;  %v11762_v42 = vld [vmem:[#allocation7_spill] sm:$0xff]  ;;  %v11788_v9 = vld [vmem:[#allocation21_spill] sm:$0xff] }
 0x1f2   : > { %1687 = vmatpush.msrb.mxu3 %v6665_v45  ;;  %1650 = vmatpush.msrb.mxu1 %v6701_v51  ;;  %v1171_v31 = vadd.f32 %v1170_v33, %v1151_v28  ;;  %v11763_v45 = vld [vmem:[#allocation8_spill] sm:$0xff]  ;;  %v11769_v51 = vld [vmem:[#allocation38_spill] sm:$0xff]  ;;  %v1250_v28 = vpop.f32.mrf.mxu0 }
 0x1f3   : > { %1629 = vmatpush.msrb.mxu0 %v6671_v46  ;;  %1658 = vmatpush.msrb.mxu2 %v6683_v17  ;;  %v11764_v46 = vld [vmem:[#allocation9_spill] sm:$0xff]  ;;  %v11766_v17 = vld [vmem:[#allocation10_spill] sm:$0xff]  ;;  %v1210_v32 = vpop.f32.mrf.mxu2 }
 0x1f4   : > { %1688 = vmatpush.msrb.mxu3 %v6689_v47  ;;  %1735 = vmatpush.msra.mxu1 %v6728_v53  ;;  %v1255_v38 = vmax.f32 %v1171_v31, 0.0  ;;  %v11767_v47 = vld [vmem:[#allocation11_spill] sm:$0xff]  ;;  %v11789_v33 = vld [vmem:[#allocation58_spill] sm:$0xff] }
 0x1f5   : > { %1630 = vmatpush.msrb.mxu0 %v6695_v50  ;;  %1659 = vmatpush.msrb.mxu2 %v6707_v21  ;;  %v11768_v50 = vld [vmem:[#allocation37_spill] sm:$0xff]  ;;  %v11770_v21 = vld [vmem:[#allocation12_spill] sm:$0xff]  ;;  %v1230_v1 = vpop.f32.mrf.mxu3  ;;  %v11790_v31 = vld [vmem:[#allocation59_spill] sm:$0xff] }
 0x1f6   : > { %1689 = vmatpush.msrb.mxu3 %v6713_v52  ;;  %1550 = vmatmul.f32.vlgmr.msra.gmra.mxu2 %v6748_v62  ;;  %1947 = vst [vmem:[#allocation2 + $0x10] sm:$0xf] %v1255_v38  ;;  %v11771_v52 = vld [vmem:[#allocation13_spill] sm:$0xff]  ;;  %v1190_v53 = vpop.f32.mrf.mxu1  ;;  %v11776_v62 = vld [vmem:[#allocation46_spill] sm:$0xff] }
 0x1f7   : > { %1715 = vmatpush.msra.mxu0 %v6722_v26  ;;  %1660 = vmatpush.msrb.mxu2 %v6739_v11  ;;  %v11772_v26 = vld [vmem:[#allocation42_spill] sm:$0xff] }
 0x1f8   : > { %1690 = vmatpush.msrb.mxu3 %v6745_v61  ;;  %1736 = vmatpush.msra.mxu1 %v6770_v3  ;;  %v11774_v11 = vld [vmem:[#allocation14_spill] sm:$0xff]  ;;  %v11775_v61 = vld [vmem:[#allocation15_spill] sm:$0xff] }
 0x1f9   : > { %1570 = vmatmul.f32.vlgmr.msra.gmra.mxu3 %v6765_v15  ;;  %1716 = vmatpush.msra.mxu0 %v6762_v6  ;;  %v11778_v6 = vld [vmem:[#allocation16_spill] sm:$0xff]  ;;  %v11779_v15 = vld [vmem:[#allocation5_spill] sm:$0xff] }
 0x1fa   : > { %1695 = vmatpush.msra.mxu3 %v6756_v63  ;;  %1661 = vmatpush.msrb.mxu2 %v6776_v7  ;;  %v11777_v63 = vld [vmem:[#allocation47_spill] sm:$0xff]  ;;  %v1191_v3 = vadd.f32 %v1190_v53, %v11779_v15  ;;  %v11780_v7 = vld [vmem:[#allocation17_spill] sm:$0xff]  ;;  %v7901_v53 = vld.sshfl [vmem:[#allocation1 + $0x8] sm:$0xff pattern:$0x75316420] }
 0x1fb   : > { %1717 = vmatpush.msra.mxu0 %v11760_v37  ;;  %1737 = vmatpush.msra.mxu1 %v11761_v41  ;;  %v7885_v37 = vld.sshfl [vmem:[#allocation1 + $0x10] sm:$0xff pattern:$0x75316420]  ;;  %v11792_v41 = vld [vmem:[#allocation23_spill] sm:$0xff] }
 0x1fc   : > { %1696 = vmatpush.msra.mxu3 %v11759_v13  ;;  %1662 = vmatpush.msrb.mxu2 %v11762_v42  ;;  %v1211_v29 = vadd.f32 %v1210_v32, %v1191_v3  ;;  %v11791_v13 = vld [vmem:[#allocation22_spill] sm:$0xff]  ;;  %v11806_v3 = vld [vmem:[#allocation75_spill] sm:$0xff]  ;;  %v11813_v32 = vld [vmem:[#allocation104_spill] sm:$0xff] }
 0x1fd   : > { %1718 = vmatpush.msra.mxu0 %v11764_v46  ;;  %1738 = vmatpush.msra.mxu1 %v11765_v39  ;;  %v11793_v42 = vld [vmem:[#allocation62_spill] sm:$0xff]  ;;  %v11795_v46 = vld [vmem:[#allocation24_spill] sm:$0xff]  ;;  %v7891_v39 = vld.sshfl [vmem:[#allocation1] sm:$0xff pattern:$0x75316420] }
 0x1fe   : > { %1697 = vmatpush.msra.mxu3 %v11763_v45  ;;  %1663 = vmatpush.msrb.mxu2 %v11766_v17  ;;  %v1231_v38 = vadd.f32 %v1230_v1, %v1211_v29  ;;  %v11794_v45 = vld [vmem:[#allocation63_spill] sm:$0xff]  ;;  %v11814_v1 = vld [vmem:[#allocation36_spill] sm:$0xff]  ;;  %v11817_v29 = vld [vmem:[#allocation41_spill] sm:$0xff] }
 0x1ff   : > { %1719 = vmatpush.msra.mxu0 %v11768_v50  ;;  %1739 = vmatpush.msra.mxu1 %v11769_v51  ;;  %v7895_v50 = vld.sshfl [vmem:[#allocation1 + $0x18] sm:$0xff pattern:$0x75316420] }
 0x200   : > { %1698 = vmatpush.msra.mxu3 %v11767_v47  ;;  %1664 = vmatpush.msrb.mxu2 %v11770_v21  ;;  %v1251_v17 = vadd.f32 %v1250_v28, %v1231_v38  ;;  %v11796_v47 = vld [vmem:[#allocation25_spill] sm:$0xff]  ;;  %v11797_v51 = vld [vmem:[#allocation66_spill] sm:$0xff]  ;;  %v11798_v21 = vld [vmem:[#allocation67_spill] sm:$0xff] }
 0x201   : > { %1720 = vmatpush.msra.mxu0 %v11772_v26  ;;  %1740 = vmatpush.msra.mxu1 %v11773_v59  ;;  %v11799_v26 = vld [vmem:[#allocation26_spill] sm:$0xff]  ;;  %v11820_v28 = vld [vmem:[#allocation44_spill] sm:$0xff] }
 0x202   : > { %1699 = vmatpush.msra.mxu3 %v11771_v52  ;;  %1665 = vmatpush.msrb.mxu2 %v11774_v11  ;;  %v1256_v52 = vmax.f32 %v1251_v17, 0.0  ;;  %v11800_v59 = vld [vmem:[#allocation70_spill] sm:$0xff]  ;;  %v11801_v11 = vld [vmem:[#allocation27_spill] sm:$0xff]  ;;  %v11823_v38 = vld [vmem:[#allocation112_spill] sm:$0xff] }
 0x203   : > { %1721 = vmatpush.msra.mxu0 %v11776_v62  ;;  %1741 = vmatpush.msra.mxu1 %v11777_v63  ;;  %v11803_v62 = vld [vmem:[#allocation30_spill] sm:$0xff]  ;;  %v11804_v63 = vld [vmem:[#allocation31_spill] sm:$0xff]  ;;  %v11828_v17 = vld [vmem:[#allocation52_spill] sm:$0xff] }
 0x204   : > { %1700 = vmatpush.msra.mxu3 %v11775_v61  ;;  %1666 = vmatpush.msrb.mxu2 %v11778_v6  ;;  %1948 = vst [vmem:[#allocation2 + $0x38] sm:$0xf] %v1256_v52  ;;  %v11802_v61 = vld [vmem:[#allocation71_spill] sm:$0xff]  ;;  %v11805_v6 = vld [vmem:[#allocation74_spill] sm:$0xff]  ;;  %v11831_v52 = vld [vmem:[#allocation120_spill] sm:$0xff] }
 0x205   : > { %1722 = vmatpush.msra.mxu0 %v11781_v18  ;;  %1742 = vmatpush.msra.mxu1 %v11782_v57  ;;  %v11808_v18 = vld [vmem:[#allocation33_spill] sm:$0xff]  ;;  %v11809_v57 = vld [vmem:[#allocation78_spill] sm:$0xff] }
 0x206   : > { %1701 = vmatpush.msra.mxu3 %v11780_v7  ;;  %1667 = vmatpush.msrb.mxu2 %v11783_v2  ;;  %v11807_v7 = vld [vmem:[#allocation32_spill] sm:$0xff]  ;;  %v11810_v2 = vld [vmem:[#allocation79_spill] sm:$0xff] }
 0x207   : > { %1723 = vmatpush.msra.mxu0 %v11785_v30  ;;  %1743 = vmatpush.msra.mxu1 %v11786_v25  ;;  %v11812_v30 = vld [vmem:[#allocation82_spill] sm:$0xff]  ;;  %v11815_v25 = vld [vmem:[#allocation39_spill] sm:$0xff] }
 0x208   : > { %1702 = vmatpush.msra.mxu3 %v11784_v54  ;;  %1668 = vmatpush.msrb.mxu2 %v11787_v5  ;;  %v11811_v54 = vld [vmem:[#allocation35_spill] sm:$0xff]  ;;  %v11816_v5 = vld [vmem:[#allocation40_spill] sm:$0xff] }
 0x209   : > { %1724 = vmatpush.msra.mxu0 %v11789_v33  ;;  %1744 = vmatpush.msra.mxu1 %v11790_v31  ;;  %v11819_v33 = vld [vmem:[#allocation108_spill] sm:$0xff]  ;;  %v11821_v31 = vld [vmem:[#allocation45_spill] sm:$0xff] }
 0x20a   : > { %1703 = vmatpush.msra.mxu3 %v11788_v9  ;;  %1669 = vmatpush.msrb.mxu2 %v11791_v13  ;;  %v11818_v9 = vld [vmem:[#allocation86_spill] sm:$0xff] }
 0x20b   : > { %1725 = vmatpush.msra.mxu0 %v11793_v42  ;;  %1745 = vmatpush.msra.mxu1 %v11794_v45  ;;  %v11822_v13 = vld [vmem:[#allocation90_spill] sm:$0xff]  ;;  %v11825_v42 = vld [vmem:[#allocation49_spill] sm:$0xff] }
 0x20c   : > { %1704 = vmatpush.msra.mxu3 %v11792_v41  ;;  %1670 = vmatpush.msrb.mxu2 %v11795_v46  ;;  %v11824_v41 = vld [vmem:[#allocation48_spill] sm:$0xff]  ;;  %v11826_v45 = vld [vmem:[#allocation94_spill] sm:$0xff] }
 0x20d   : > { %1671 = vmatmul.f32.vlgmr.msrb.gmra.mxu2 %v7885_v37  ;;  %1726 = vmatpush.msra.mxu0 %v11797_v51  ;;  %v11827_v46 = vld [vmem:[#allocation116_spill] sm:$0xff]  ;;  %v11830_v51 = vld [vmem:[#allocation98_spill] sm:$0xff] }
 0x20e   : > { %1705 = vmatpush.msra.mxu3 %v11796_v47  ;;  %1746 = vmatpush.msra.mxu1 %v11798_v21  ;;  %v11829_v47 = vld [vmem:[#allocation53_spill] sm:$0xff]  ;;  %v1291_v21 = vpop.f32.mrf.mxu0 }
 0x20f   : > { %1765 = vmatpush.msra.mxu2 %v11799_v26  ;;  %1631 = vmatmul.f32.vlgmr.msrb.gmra.mxu0 %v7891_v39  ;;  %v11832_v26 = vld [vmem:[#allocation56_spill] sm:$0xff] }
 0x210   : > { %3844 = vmatmul.msk.f32.vlgmr.msrb.gmra.mxu3 %vm589_vm0, %v7895_v50  ;;  %1727 = vmatpush.msra.mxu0 %v11800_v59  ;;  %v11833_v59 = vld [vmem:[#allocation57_spill] sm:$0xff] }
 0x211   : > { %1706 = vmatpush.msra.mxu3 %v11801_v11  ;;  %1747 = vmatpush.msra.mxu1 %v11802_v61  ;;  %v11834_v11 = vld [vmem:[#allocation4_spill] sm:$0xff] }
 0x212   : > { %1766 = vmatpush.msra.mxu2 %v11803_v62  ;;  %1651 = vmatmul.f32.vlgmr.msrb.gmra.mxu1 %v7901_v53  ;;  %v1292_v61 = vadd.f32 %v1291_v21, %v11834_v11  ;;  %v11835_v62 = vld [vmem:[#allocation102_spill] sm:$0xff] }
 0x213   : > { %1707 = vmatpush.msra.mxu3 %v11804_v63  ;;  %1728 = vmatpush.msra.mxu0 %v11805_v6  ;;  %v11836_v63 = vld [vmem:[#allocation124_spill] sm:$0xff]  ;;  %v1311_v6 = vpop.f32.mrf.mxu1  ;;  %v11856_v21 = vld [vmem:[#allocation122_spill] sm:$0xff] }
 0x214   : > { %1748 = vmatpush.msra.mxu1 %v11806_v3  ;;  %1767 = vmatpush.msra.mxu2 %v11807_v7  ;;  %v11837_v3 = vld [vmem:[#allocation60_spill] sm:$0xff]  ;;  %v11838_v7 = vld [vmem:[#allocation83_spill] sm:$0xff] }
 0x215   : > { %1708 = vmatpush.msra.mxu3 %v11808_v18  ;;  %1729 = vmatpush.msra.mxu0 %v11809_v57  ;;  %v11839_v18 = vld [vmem:[#allocation61_spill] sm:$0xff]  ;;  %v11840_v57 = vld [vmem:[#allocation106_spill] sm:$0xff] }
 0x216   : > { %1749 = vmatpush.msra.mxu1 %v11810_v2  ;;  %1768 = vmatpush.msra.mxu2 %v11811_v54  ;;  %v11841_v2 = vld [vmem:[#allocation64_spill] sm:$0xff]  ;;  %v1312_v54 = vadd.f32 %v1311_v6, %v1292_v61  ;;  %v11861_v61 = vld [vmem:[#allocation107_spill] sm:$0xff]  ;;  %v11864_v6 = vld [vmem:[#allocation130_spill] sm:$0xff] }
 0x217   : > { %1709 = vmatpush.msra.mxu3 %v11812_v30  ;;  %1730 = vmatpush.msra.mxu0 %v11813_v32  ;;  %v11842_v30 = vld [vmem:[#allocation65_spill] sm:$0xff]  ;;  %v11843_v32 = vld [vmem:[#allocation87_spill] sm:$0xff] }
 0x218   : > { %1750 = vmatpush.msra.mxu1 %v11814_v1  ;;  %1769 = vmatpush.msra.mxu2 %v11815_v25  ;;  %v11844_v1 = vld [vmem:[#allocation110_spill] sm:$0xff]  ;;  %v11845_v25 = vld [vmem:[#allocation68_spill] sm:$0xff] }
 0x219   : > { %1815 = vmatpush.msrb.mxu0 %v11816_v5  ;;  %1710 = vmatpush.msra.mxu3 %v11818_v9  ;;  %v11846_v5 = vld [vmem:[#allocation69_spill] sm:$0xff]  ;;  %v1351_v9 = vpop.f32.mrf.mxu3 }
 0x21a   : > { %1845 = vmatpush.msrb.mxu1 %v11817_v29  ;;  %1770 = vmatpush.msra.mxu2 %v11819_v33  ;;  %v1331_v29 = vpop.f32.mrf.mxu2  ;;  %v11847_v33 = vld [vmem:[#allocation91_spill] sm:$0xff] }
 0x21b   : > { %1711 = vmatmul.f32.vlgmr.msra.gmra.mxu3 %v7891_v39  ;;  %1816 = vmatpush.msrb.mxu0 %v11822_v13  ;;  %v11849_v13 = vld [vmem:[#allocation72_spill] sm:$0xff] }
 0x21c   : > { %1775 = vmatpush.msrb.mxu2 %v11820_v28  ;;  %1795 = vmatpush.msrb.mxu3 %v11821_v31  ;;  %v11848_v28 = vld [vmem:[#allocation114_spill] sm:$0xff]  ;;  %v1332_v31 = vadd.f32 %v1331_v29, %v1312_v54  ;;  %v11870_v54 = vld [vmem:[#allocation115_spill] sm:$0xff]  ;;  %v11876_v29 = vld [vmem:[#allocation100_spill] sm:$0xff] }
 0x21d   : > { %1846 = vmatpush.msrb.mxu1 %v11823_v38  ;;  %1817 = vmatpush.msrb.mxu0 %v11826_v45  ;;  %v11850_v38 = vld [vmem:[#allocation95_spill] sm:$0xff]  ;;  %v11852_v45 = vld [vmem:[#allocation118_spill] sm:$0xff] }
 0x21e   : > { %1776 = vmatpush.msrb.mxu2 %v11824_v41  ;;  %1796 = vmatpush.msrb.mxu3 %v11825_v42  ;;  %v11851_v41 = vld [vmem:[#allocation73_spill] sm:$0xff]  ;;  %v1352_v42 = vadd.f32 %v1351_v9, %v1332_v31  ;;  %v11880_v31 = vld [vmem:[#allocation128_spill] sm:$0xff] }
 0x21f   : > { %1847 = vmatpush.msrb.mxu1 %v11827_v46  ;;  %1818 = vmatpush.msrb.mxu0 %v11830_v51  ;;  %v11853_v46 = vld [vmem:[#allocation99_spill] sm:$0xff]  ;;  %v11877_v9 = vld [vmem:[#allocation101_spill] sm:$0xff] }
 0x220   : > { %1777 = vmatpush.msrb.mxu2 %v11828_v17  ;;  %1797 = vmatpush.msrb.mxu3 %v11829_v47  ;;  %v11854_v17 = vld [vmem:[#allocation76_spill] sm:$0xff]  ;;  %v11855_v47 = vld [vmem:[#allocation77_spill] sm:$0xff]  ;;  %v1594_v51 = vmax.f32 %v1352_v42, 0.0 }
 0x221   : > { %1848 = vmatpush.msrb.mxu1 %v11831_v52  ;;  %3845 = vmatmul.msk.f32.vlgmr.msra.gmra.mxu2 %vm589_vm0, %v7895_v50  ;;  %v11857_v52 = vld [vmem:[#allocation103_spill] sm:$0xff]  ;;  %v11884_v42 = vld [vmem:[#allocation113_spill] sm:$0xff] }
 0x222   : > { %1778 = vmatpush.msrb.mxu2 %v11832_v26  ;;  %1798 = vmatpush.msrb.mxu3 %v11833_v59  ;;  %v11858_v26 = vld [vmem:[#allocation80_spill] sm:$0xff]  ;;  %1950 = vst [vmem:[#allocation2 + $0x60] sm:$0xf] %v1594_v51  ;;  %v11860_v59 = vld [vmem:[#allocation126_spill] sm:$0xff]  ;;  %v11889_v51 = vld [vmem:[#allocation139_spill] sm:$0xff] }
 0x223   : > { %1819 = vmatpush.msrb.mxu0 %v11835_v62  ;;  %1849 = vmatpush.msrb.mxu1 %v11836_v63  ;;  %v11862_v62 = vld [vmem:[#allocation84_spill] sm:$0xff]  ;;  %v11863_v63 = vld [vmem:[#allocation85_spill] sm:$0xff] }
 0x224   : > { %1731 = vmatmul.f32.vlgmr.msra.gmra.mxu0 %v7901_v53  ;;  %1779 = vmatpush.msrb.mxu2 %v11837_v3  ;;  %v11865_v3 = vld [vmem:[#allocation111_spill] sm:$0xff] }
 0x225   : > { %1799 = vmatpush.msrb.mxu3 %v11838_v7  ;;  %1820 = vmatpush.msrb.mxu0 %v11839_v18  ;;  %v11866_v7 = vld [vmem:[#allocation88_spill] sm:$0xff]  ;;  %v11867_v18 = vld [vmem:[#allocation89_spill] sm:$0xff] }
 0x226   : > { %1850 = vmatpush.msrb.mxu1 %v11840_v57  ;;  %1780 = vmatpush.msrb.mxu2 %v11841_v2  ;;  %v11868_v57 = vld [vmem:[#allocation134_spill] sm:$0xff]  ;;  %v11869_v2 = vld [vmem:[#allocation92_spill] sm:$0xff] }
 0x227   : > { %1751 = vmatmul.f32.vlgmr.msra.gmra.mxu1 %v7885_v37  ;;  %1800 = vmatpush.msrb.mxu3 %v11842_v30  ;;  %v11871_v30 = vld [vmem:[#allocation93_spill] sm:$0xff] }
 0x228   : > { %1855 = vmatpush.msra.mxu1 %v11843_v32  ;;  %1821 = vmatpush.msrb.mxu0 %v11844_v1  ;;  %v11872_v32 = vld [vmem:[#allocation119_spill] sm:$0xff]  ;;  %v11873_v1 = vld [vmem:[#allocation96_spill] sm:$0xff] }
 0x229   : > { %1781 = vmatpush.msrb.mxu2 %v11845_v25  ;;  %1801 = vmatpush.msrb.mxu3 %v11846_v5  ;;  %v11874_v25 = vld [vmem:[#allocation138_spill] sm:$0xff]  ;;  %v11875_v5 = vld [vmem:[#allocation97_spill] sm:$0xff] }
 0x22a   : > { %1856 = vmatpush.msra.mxu1 %v11847_v33  ;;  %1822 = vmatpush.msrb.mxu0 %v11848_v28  ;;  %v11878_v33 = vld [vmem:[#allocation123_spill] sm:$0xff] }
 0x22b   : > { %1782 = vmatpush.msrb.mxu2 %v11849_v13  ;;  %1802 = vmatpush.msrb.mxu3 %v7333_v10  ;;  %v11859_v10 = vld [vmem:[#allocation81_spill] sm:$0xff]  ;;  %v11879_v28 = vld [vmem:[#allocation127_spill] sm:$0xff] }
 0x22c   : > { %1857 = vmatpush.msra.mxu1 %v11850_v38  ;;  %1823 = vmatpush.msrb.mxu0 %v11851_v41  ;;  %v11881_v13 = vld [vmem:[#allocation131_spill] sm:$0xff]  ;;  %v11882_v38 = vld [vmem:[#allocation105_spill] sm:$0xff] }
 0x22d   : > { %1783 = vmatpush.msrb.mxu2 %v11852_v45  ;;  %1803 = vmatpush.msrb.mxu3 %v11853_v46  ;;  %v11883_v41 = vld [vmem:[#allocation109_spill] sm:$0xff]  ;;  %v11885_v45 = vld [vmem:[#allocation132_spill] sm:$0xff]  ;;  %v11886_v46 = vld [vmem:[#allocation135_spill] sm:$0xff] }
 0x22e   : > { %1858 = vmatpush.msra.mxu1 %v11854_v17  ;;  %1824 = vmatpush.msrb.mxu0 %v11855_v47  ;;  %v11887_v17 = vld [vmem:[#allocation136_spill] sm:$0xff]  ;;  %v11888_v47 = vld [vmem:[#allocation117_spill] sm:$0xff] }
 0x22f   : > { %1784 = vmatpush.msrb.mxu2 %v11856_v21  ;;  %1804 = vmatpush.msrb.mxu3 %v11857_v52  ;;  %v11890_v21 = vld [vmem:[#allocation121_spill] sm:$0xff] }
 0x230   : > { %1859 = vmatpush.msra.mxu1 %v11858_v26  ;;  %1825 = vmatpush.msrb.mxu0 %v11859_v10  ;;  %v11891_v52 = vld [vmem:[#allocation141_spill] sm:$0xff] }
 0x231   : > { %1785 = vmatpush.msrb.mxu2 %v11860_v59  ;;  %1805 = vmatpush.msrb.mxu3 %v11861_v61  ;;  %v11892_v26 = vld [vmem:[#allocation125_spill] sm:$0xff] }
 0x232   : > { %1860 = vmatpush.msra.mxu1 %v11862_v62  ;;  %1826 = vmatpush.msrb.mxu0 %v11863_v63  ;;  %v11893_v10 = vld [vmem:[#allocation129_spill] sm:$0xff]  ;;  %v11896_v62 = vld [vmem:[#allocation140_spill] sm:$0xff]  ;;  %v11897_v63 = vld [vmem:[#allocation142_spill] sm:$0xff] }
 0x233   : > { %1786 = vmatpush.msrb.mxu2 %v11864_v6  ;;  %1806 = vmatpush.msrb.mxu3 %v11865_v3  ;;  %v11894_v59 = vld [vmem:[#allocation133_spill] sm:$0xff]  ;;  %v1371_v6 = vpop.f32.mrf.mxu3  ;;  %v1391_v3 = vpop.f32.mrf.mxu0 }
 0x234   : > { %1861 = vmatpush.msra.mxu1 %v11866_v7  ;;  %1827 = vmatpush.msrb.mxu0 %v11867_v18  ;;  %v11895_v61 = vld [vmem:[#allocation137_spill] sm:$0xff]  ;;  %v11898_v7 = vld [vmem:[#allocation143_spill] sm:$0xff]  ;;  %v11899_v18 = vld [vmem:[#allocation144_spill] sm:$0xff] }
 0x235   : > { %1787 = vmatpush.msrb.mxu2 %v11868_v57  ;;  %1807 = vmatpush.msrb.mxu3 %v11869_v2  ;;  %v1372_v57 = vadd.f32 %v1371_v6, %v6397_v60  ;;  %v11900_v2 = vld [vmem:[#allocation145_spill] sm:$0xff] }
 0x236   : > { %1862 = vmatpush.msra.mxu1 %v11870_v54  ;;  %1828 = vmatpush.msrb.mxu0 %v11871_v30  ;;  %v11901_v54 = vld [vmem:[#allocation146_spill] sm:$0xff]  ;;  %v3878_v30 = vld [vmem:[%s11045_s3 + $0x4f0] sm:$0xff] }
 0x237   : > { %1788 = vmatpush.msrb.mxu2 %v11872_v32  ;;  %1808 = vmatpush.msrb.mxu3 %v11873_v1  ;;  %v3910_v32 = vld [vmem:[%s11045_s3 + $0x5f0] sm:$0xff]  ;;  %v1411_v1 = vpop.f32.mrf.mxu1 }
 0x238   : > { %1863 = vmatpush.msra.mxu1 %v11874_v25  ;;  %1829 = vmatpush.msrb.mxu0 %v11875_v5  ;;  %v11902_v25 = vld [vmem:[#allocation147_spill] sm:$0xff]  ;;  %v11903_v5 = vld [vmem:[#allocation148_spill] sm:$0xff] }
 0x239   : > { %1789 = vmatpush.msrb.mxu2 %v11876_v29  ;;  %1809 = vmatpush.msrb.mxu3 %v11877_v9  ;;  %v1392_v29 = vadd.f32 %v1391_v3, %v1372_v57  ;;  %v3876_v9 = vld [vmem:[%s11045_s3 + $0x4e0] sm:$0xff]  ;;  %v8176_v3 = vld [vmem:[#allocation2 + $0x50] sm:$0xf] }
 0x23a   : > { %1864 = vmatpush.msra.mxu1 %v11878_v33  ;;  %1830 = vmatpush.msrb.mxu0 %v11879_v28  ;;  %v3908_v33 = vld [vmem:[%s11045_s3 + $0x5e0] sm:$0xff] }
 0x23b   : > { %1790 = vmatpush.msrb.mxu2 %v11881_v13  ;;  %1810 = vmatpush.msrb.mxu3 %v11883_v41  ;;  %v1412_v28 = vadd.f32 %v1411_v1, %v1392_v29  ;;  %v3906_v13 = vld [vmem:[%s11045_s3 + $0x5d0] sm:$0xff]  ;;  %v1491_v6 = vpop.f32.mrf.mxu0  ;;  %v3877_v1 = vld [vmem:[%s11045_s3 + $0x4e8] sm:$0xff] }
 0x23c   : > { %1925 = vmatpush.msra.mxu0 %v11880_v31  ;;  %1865 = vmatpush.msra.mxu1 %v11882_v38  ;;  %v3874_v31 = vld [vmem:[%s11045_s3 + $0x4d0] sm:$0xff]  ;;  %v1431_v38 = vpop.f32.mrf.mxu2 }
 0x23d   : > { %1791 = vmatmul.f32.vlgmr.msrb.gmra.mxu2 %v7891_v39  ;;  %1895 = vmatpush.msra.mxu3 %v11884_v42  ;;  %v1432_v41 = vadd.f32 %v1431_v38, %v1412_v28  ;;  %v3930_v29 = vld [vmem:[%s11045_s3 + $0x690] sm:$0xff]  ;;  %v3907_v28 = vld [vmem:[%s11045_s3 + $0x5d8] sm:$0xff]  ;;  %v3960_v38 = vld [vmem:[%s11045_s3 + $0x780] sm:$0xff] }
 0x23e   : > { %1866 = vmatpush.msra.mxu1 %v11885_v45  ;;  %1875 = vmatpush.msra.mxu2 %v11886_v46  ;;  %v3942_v45 = vld [vmem:[%s11045_s3 + $0x6f0] sm:$0xff] }
 0x23f   : > { %1926 = vmatpush.msra.mxu0 %v11887_v17  ;;  %1811 = vmatmul.f32.vlgmr.msrb.gmra.mxu3 %v7901_v53  ;;  %v1595_v42 = vmax.f32 %v1432_v41, 0.0  ;;  %v3886_v46 = vld [vmem:[%s11045_s3 + $0x530] sm:$0xff] }
 0x240   : > { %1867 = vmatpush.msra.mxu1 %v11888_v47  ;;  %1876 = vmatpush.msra.mxu2 %v11889_v51  ;;  %v3938_v17 = vld [vmem:[%s11045_s3 + $0x6d0] sm:$0xff]  ;;  %v3936_v51 = vld [vmem:[%s11045_s3 + $0x6c0] sm:$0xff] }
 0x241   : > { %1896 = vmatpush.msra.mxu3 %v11890_v21  ;;  %1927 = vmatpush.msra.mxu0 %v11891_v52  ;;  %1951 = vst [vmem:[#allocation2 + $0x70] sm:$0xf] %v1595_v42  ;;  %v3882_v47 = vld [vmem:[%s11045_s3 + $0x510] sm:$0xff]  ;;  %v3968_v21 = vld [vmem:[%s11045_s3 + $0x7c0] sm:$0xff]  ;;  %v3871_v42 = vld [vmem:[%s11045_s3 + $0x4b8] sm:$0xff] }
 0x242   : > { %1868 = vmatpush.msra.mxu1 %v11892_v26  ;;  %1877 = vmatpush.msra.mxu2 %v11893_v10  ;;  %v3848_v26 = vld [vmem:[%s11045_s3 + $0x400] sm:$0xff] }
 0x243   : > { %1897 = vmatpush.msra.mxu3 %v11894_v59  ;;  %1928 = vmatpush.msra.mxu0 %v11895_v61  ;;  %v3880_v10 = vld [vmem:[%s11045_s3 + $0x500] sm:$0xff]  ;;  %v3934_v61 = vld [vmem:[%s11045_s3 + $0x6b0] sm:$0xff] }
 0x244   : > { %1869 = vmatpush.msra.mxu1 %v11896_v62  ;;  %1878 = vmatpush.msra.mxu2 %v11897_v63  ;;  %v1451_v52 = vpop.f32.mrf.mxu2  ;;  %v3966_v62 = vld [vmem:[%s11045_s3 + $0x7b0] sm:$0xff]  ;;  %v1471_v63 = vpop.f32.mrf.mxu3 }
 0x245   : > { %1898 = vmatpush.msra.mxu3 %v11898_v7  ;;  %1929 = vmatpush.msra.mxu0 %v11899_v18  ;;  %v1452_v59 = vadd.f32 %v1451_v52, %v6463_v56  ;;  %v3879_v7 = vld [vmem:[%s11045_s3 + $0x4f8] sm:$0xff] }
 0x246   : > { %1870 = vmatpush.msra.mxu1 %v11900_v2  ;;  %1879 = vmatpush.msra.mxu2 %v11901_v54  ;;  %v3911_v18 = vld [vmem:[%s11045_s3 + $0x5f8] sm:$0xff]  ;;  %v8184_v2 = vld [vmem:[#allocation2 + $0x68] sm:$0xf]  ;;  %v3932_v54 = vld [vmem:[%s11045_s3 + $0x6a0] sm:$0xff] }
 0x247   : > { %1899 = vmatpush.msra.mxu3 %v11902_v25  ;;  %1930 = vmatpush.msra.mxu0 %v11903_v5  ;;  %v1472_v57 = vadd.f32 %v1471_v63, %v1452_v59  ;;  %v3909_v25 = vld [vmem:[%s11045_s3 + $0x5e8] sm:$0xff]  ;;  %v3859_v52 = vld [vmem:[%s11045_s3 + $0x458] sm:$0xff]  ;;  %v3912_v59 = vld [vmem:[%s11045_s3 + $0x600] sm:$0xff] }
 0x248   : > { %1831 = vmatmul.f32.vlgmr.msrb.gmra.mxu0 %v7885_v37  ;;  %3846 = vmatmul.msk.f32.vlgmr.msrb.gmra.mxu1 %vm589_vm0, %v7895_v50  ;;  %v8315_v63 = vld [vmem:[#allocation2 + $0x8] sm:$0xf] }
 0x249   : > { %2236 = vmatpush.msrb.mxu0 %v3878_v30  ;;  %2256 = vmatpush.msrb.mxu1 %v3910_v32  ;;  %v3964_v30 = vld [vmem:[%s11045_s3 + $0x7a0] sm:$0xff]  ;;  %v1511_v32 = vpop.f32.mrf.mxu1  ;;  %v1492_v5 = vadd.f32 %v1491_v6, %v1472_v57  ;;  %v3857_v6 = vld [vmem:[%s11045_s3 + $0x448] sm:$0xff]  ;;  %v8323_v57 = vld [vmem:[#allocation2 + $0x48] sm:$0xf] }
 0x24a   : > { %1880 = vmatpush.msra.mxu2 %v7667_v49  ;;  %1900 = vmatpush.msra.mxu3 %v7673_v36  ;;  %v3872_v49 = vld [vmem:[%s11045_s3 + $0x4c0] sm:$0xff] }
 0x24b   : > { %2237 = vmatpush.msrb.mxu0 %v3876_v9  ;;  %2257 = vmatpush.msrb.mxu1 %v3908_v33  ;;  %v3904_v36 = vld [vmem:[%s11045_s3 + $0x5c0] sm:$0xff]  ;;  %v3962_v9 = vld [vmem:[%s11045_s3 + $0x790] sm:$0xff]  ;;  %v3875_v33 = vld [vmem:[%s11045_s3 + $0x4d8] sm:$0xff] }
 0x24c   : > { %1881 = vmatpush.msra.mxu2 %v7681_v55  ;;  %1901 = vmatpush.msra.mxu3 %v7687_v44  ;;  %v3870_v55 = vld [vmem:[%s11045_s3 + $0x4b0] sm:$0xff] }
 0x24d   : > { %2238 = vmatpush.msrb.mxu0 %v3874_v31  ;;  %2258 = vmatpush.msrb.mxu1 %v3906_v13  ;;  %v3902_v44 = vld [vmem:[%s11045_s3 + $0x5b0] sm:$0xff]  ;;  %v1512_v31 = vadd.f32 %v1511_v32, %v1492_v5  ;;  %v3928_v13 = vld [vmem:[%s11045_s3 + $0x680] sm:$0xff]  ;;  %v3855_v32 = vld [vmem:[%s11045_s3 + $0x438] sm:$0xff] }
 0x24e   : > { %1882 = vmatpush.msra.mxu2 %v7695_v34  ;;  %1902 = vmatpush.msra.mxu3 %v7701_v43  ;;  %v3868_v34 = vld [vmem:[%s11045_s3 + $0x4a0] sm:$0xff]  ;;  %v3941_v5 = vld [vmem:[%s11045_s3 + $0x6e8] sm:$0xff] }
 0x24f   : > { %2239 = vmatpush.msrb.mxu0 %v3872_v49  ;;  %2259 = vmatpush.msrb.mxu1 %v3904_v36  ;;  %v3900_v43 = vld [vmem:[%s11045_s3 + $0x5a0] sm:$0xff]  ;;  %v3873_v49 = vld [vmem:[%s11045_s3 + $0x4c8] sm:$0xff]  ;;  %v1596_v41 = vmax.f32 %v1512_v31, 0.0  ;;  %v3971_v31 = vld [vmem:[%s11045_s3 + $0x7d8] sm:$0xff] }
 0x250   : > { %1883 = vmatpush.msra.mxu2 %v7709_v58  ;;  %1903 = vmatpush.msra.mxu3 %v7715_v8  ;;  %v3866_v58 = vld [vmem:[%s11045_s3 + $0x490] sm:$0xff]  ;;  %v3905_v36 = vld [vmem:[%s11045_s3 + $0x5c8] sm:$0xff] }
 0x251   : > { %2240 = vmatpush.msrb.mxu0 %v3870_v55  ;;  %2260 = vmatpush.msrb.mxu1 %v3902_v44  ;;  %v3898_v8 = vld [vmem:[%s11045_s3 + $0x590] sm:$0xff]  ;;  %1952 = vst [vmem:[#allocation2 + $0x78] sm:$0xf] %v1596_v41  ;;  %v3849_v41 = vld [vmem:[%s11045_s3 + $0x408] sm:$0xff] }
 0x252   : > { %1884 = vmatpush.msra.mxu2 %v7723_v35  ;;  %1904 = vmatpush.msra.mxu3 %v7729_v24  ;;  %v3864_v35 = vld [vmem:[%s11045_s3 + $0x480] sm:$0xff]  ;;  %v3926_v55 = vld [vmem:[%s11045_s3 + $0x670] sm:$0xff] }
 0x253   : > { %2241 = vmatpush.msrb.mxu0 %v3868_v34  ;;  %2261 = vmatpush.msrb.mxu1 %v3900_v43  ;;  %v3896_v24 = vld [vmem:[%s11045_s3 + $0x580] sm:$0xff]  ;;  %v3958_v44 = vld [vmem:[%s11045_s3 + $0x770] sm:$0xff]  ;;  %v3903_v34 = vld [vmem:[%s11045_s3 + $0x5b8] sm:$0xff] }
 0x254   : > { %1885 = vmatpush.msra.mxu2 %v7737_v0  ;;  %1905 = vmatpush.msra.mxu3 %v7743_v48  ;;  %v3862_v0 = vld [vmem:[%s11045_s3 + $0x470] sm:$0xff]  ;;  %v3924_v43 = vld [vmem:[%s11045_s3 + $0x660] sm:$0xff] }
 0x255   : > { %2242 = vmatpush.msrb.mxu0 %v3866_v58  ;;  %2262 = vmatpush.msrb.mxu1 %v3898_v8  ;;  %v3894_v48 = vld [vmem:[%s11045_s3 + $0x570] sm:$0xff]  ;;  %v3956_v58 = vld [vmem:[%s11045_s3 + $0x760] sm:$0xff]  ;;  %v3869_v8 = vld [vmem:[%s11045_s3 + $0x4a8] sm:$0xff] }
 0x256   : > { %1886 = vmatpush.msra.mxu2 %v7751_v4  ;;  %1906 = vmatpush.msra.mxu3 %v7757_v14  ;;  %v3860_v4 = vld [vmem:[%s11045_s3 + $0x460] sm:$0xff] }
 0x257   : > { %2243 = vmatpush.msrb.mxu0 %v3864_v35  ;;  %2263 = vmatpush.msrb.mxu1 %v3896_v24  ;;  %v3892_v14 = vld [vmem:[%s11045_s3 + $0x560] sm:$0xff]  ;;  %v3901_v35 = vld [vmem:[%s11045_s3 + $0x5a8] sm:$0xff]  ;;  %v3922_v24 = vld [vmem:[%s11045_s3 + $0x650] sm:$0xff] }
 0x258   : > { %1887 = vmatpush.msra.mxu2 %v7766_v19  ;;  %1907 = vmatpush.msra.mxu3 %v7772_v22  ;;  %v3858_v19 = vld [vmem:[%s11045_s3 + $0x450] sm:$0xff] }
 0x259   : > { %2244 = vmatpush.msrb.mxu0 %v3862_v0  ;;  %2264 = vmatpush.msrb.mxu1 %v3894_v48  ;;  %v3890_v22 = vld [vmem:[%s11045_s3 + $0x550] sm:$0xff]  ;;  %v3867_v48 = vld [vmem:[%s11045_s3 + $0x498] sm:$0xff] }
 0x25a   : > { %1888 = vmatpush.msra.mxu2 %v7781_v12  ;;  %1908 = vmatpush.msra.mxu3 %v7787_v27  ;;  %v3856_v12 = vld [vmem:[%s11045_s3 + $0x440] sm:$0xff]  ;;  %v3954_v0 = vld [vmem:[%s11045_s3 + $0x750] sm:$0xff] }
 0x25b   : > { %2245 = vmatpush.msrb.mxu0 %v3860_v4  ;;  %2265 = vmatpush.msrb.mxu1 %v3892_v14  ;;  %v3888_v27 = vld [vmem:[%s11045_s3 + $0x540] sm:$0xff]  ;;  %v3899_v4 = vld [vmem:[%s11045_s3 + $0x598] sm:$0xff]  ;;  %v1531_v14 = vpop.f32.mrf.mxu1 }
 0x25c   : > { %1889 = vmatpush.msra.mxu2 %v7795_v16  ;;  %1909 = vmatpush.msra.mxu3 %v7801_v23  ;;  %v3974_v16 = vld [vmem:[%s11045_s3 + $0x7f0] sm:$0xff] }
 0x25d   : > { %2246 = vmatpush.msrb.mxu0 %v3858_v19  ;;  %2266 = vmatpush.msrb.mxu1 %v3890_v22  ;;  %v3854_v23 = vld [vmem:[%s11045_s3 + $0x430] sm:$0xff]  ;;  %v3920_v19 = vld [vmem:[%s11045_s3 + $0x640] sm:$0xff] }
 0x25e   : > { %1890 = vmatpush.msra.mxu2 %v7809_v40  ;;  %1910 = vmatpush.msra.mxu3 %v7815_v20  ;;  %v3940_v40 = vld [vmem:[%s11045_s3 + $0x6e0] sm:$0xff] }
 0x25f   : > { %1891 = vmatmul.f32.vlgmr.msra.gmra.mxu2 %v7901_v53  ;;  %2247 = vmatpush.msrb.mxu0 %v3856_v12  ;;  %v3972_v20 = vld [vmem:[%s11045_s3 + $0x7e0] sm:$0xff]  ;;  %v3865_v12 = vld [vmem:[%s11045_s3 + $0x488] sm:$0xff] }
 0x260   : > { %2267 = vmatpush.msrb.mxu1 %v3888_v27  ;;  %2276 = vmatpush.msrb.mxu2 %v3942_v45  ;;  %v3852_v53 = vld [vmem:[%s11045_s3 + $0x420] sm:$0xff]  ;;  %v3897_v27 = vld [vmem:[%s11045_s3 + $0x588] sm:$0xff]  ;;  %v3918_v45 = vld [vmem:[%s11045_s3 + $0x630] sm:$0xff] }
 0x261   : > { %2296 = vmatpush.msrb.mxu3 %v3974_v16  ;;  %1871 = vmatmul.f32.vlgmr.msra.gmra.mxu1 %v7891_v39  ;;  %v3884_v39 = vld [vmem:[%s11045_s3 + $0x520] sm:$0xff]  ;;  %v3950_v16 = vld [vmem:[%s11045_s3 + $0x730] sm:$0xff] }
 0x262   : > { %3847 = vmatmul.msk.f32.vlgmr.msra.gmra.mxu0 %vm589_vm0, %v7895_v50  ;;  %1911 = vmatmul.f32.vlgmr.msra.gmra.mxu3 %v7885_v37  ;;  %v3970_v50 = vld [vmem:[%s11045_s3 + $0x7d0] sm:$0xff]  ;;  %v3952_v22 = vld [vmem:[%s11045_s3 + $0x740] sm:$0xff] }
 0x263   : > { %2248 = vmatpush.msrb.mxu0 %v3854_v23  ;;  %2268 = vmatpush.msrb.mxu1 %v3886_v46  ;;  %v3850_v37 = vld [vmem:[%s11045_s3 + $0x410] sm:$0xff]  ;;  %v1532_v23 = vadd.f32 %v1531_v14, %v11779_v15  ;;  %v3863_v46 = vld [vmem:[%s11045_s3 + $0x478] sm:$0xff] }
 0x264   : > { %2277 = vmatpush.msrb.mxu2 %v3940_v40  ;;  %2297 = vmatpush.msrb.mxu3 %v3972_v20  ;;  %v3895_v40 = vld [vmem:[%s11045_s3 + $0x578] sm:$0xff]  ;;  %v3916_v20 = vld [vmem:[%s11045_s3 + $0x620] sm:$0xff] }
 0x265   : > { %2249 = vmatpush.msrb.mxu0 %v3852_v53  ;;  %2269 = vmatpush.msrb.mxu1 %v3884_v39  ;;  %v3948_v53 = vld [vmem:[%s11045_s3 + $0x720] sm:$0xff]  ;;  %v3861_v39 = vld [vmem:[%s11045_s3 + $0x468] sm:$0xff] }
 0x266   : > { %2278 = vmatpush.msrb.mxu2 %v3938_v17  ;;  %2298 = vmatpush.msrb.mxu3 %v3970_v50  ;;  %v3893_v17 = vld [vmem:[%s11045_s3 + $0x568] sm:$0xff] }
 0x267   : > { %2250 = vmatpush.msrb.mxu0 %v3850_v37  ;;  %2270 = vmatpush.msrb.mxu1 %v3882_v47  ;;  %v3914_v47 = vld [vmem:[%s11045_s3 + $0x610] sm:$0xff] }
 0x268   : > { %2279 = vmatpush.msrb.mxu2 %v3936_v51  ;;  %2299 = vmatpush.msrb.mxu3 %v3968_v21  ;;  %v3946_v51 = vld [vmem:[%s11045_s3 + $0x710] sm:$0xff] }
 0x269   : > { %2251 = vmatpush.msrb.mxu0 %v3848_v26  ;;  %2271 = vmatpush.msrb.mxu1 %v3880_v10  ;;  %v3891_v26 = vld [vmem:[%s11045_s3 + $0x558] sm:$0xff]  ;;  %v1591_v10 = vpop.f32.mrf.mxu0 }
 0x26a   : > { %2280 = vmatpush.msrb.mxu2 %v3934_v61  ;;  %2300 = vmatpush.msrb.mxu3 %v3966_v62  ;;  %v3944_v61 = vld [vmem:[%s11045_s3 + $0x700] sm:$0xff] }
 0x26b   : > { %2252 = vmatmul.f32.vlgmr.msrb.gmra.mxu0 %v8176_v3  ;;  %2272 = vmatmul.f32.vlgmr.msrb.gmra.mxu1 %v8184_v2 }
 0x26c   : > { %2316 = vmatpush.msra.mxu0 %v3879_v7  ;;  %2336 = vmatpush.msra.mxu1 %v3911_v18  ;;  %v3889_v7 = vld [vmem:[%s11045_s3 + $0x548] sm:$0xff] }
 0x26d   : > { %2281 = vmatpush.msrb.mxu2 %v3932_v54  ;;  %2301 = vmatpush.msrb.mxu3 %v3964_v30  ;;  %v3943_v54 = vld [vmem:[%s11045_s3 + $0x6f8] sm:$0xff] }
 0x26e   : > { %2317 = vmatpush.msra.mxu0 %v3877_v1  ;;  %2337 = vmatpush.msra.mxu1 %v3909_v25  ;;  %v3975_v30 = vld [vmem:[%s11045_s3 + $0x7f8] sm:$0xff] }
 0x26f   : > { %2282 = vmatpush.msrb.mxu2 %v3930_v29  ;;  %2302 = vmatpush.msrb.mxu3 %v3962_v9  ;;  %v3887_v1 = vld [vmem:[%s11045_s3 + $0x538] sm:$0xff]  ;;  %v3973_v29 = vld [vmem:[%s11045_s3 + $0x7e8] sm:$0xff] }
 0x270   : > { %2318 = vmatpush.msra.mxu0 %v3875_v33  ;;  %2338 = vmatpush.msra.mxu1 %v3907_v28  ;;  %v3853_v9 = vld [vmem:[%s11045_s3 + $0x428] sm:$0xff]  ;;  %v3939_v28 = vld [vmem:[%s11045_s3 + $0x6d8] sm:$0xff] }
 0x271   : > { %2283 = vmatpush.msrb.mxu2 %v3928_v13  ;;  %2303 = vmatpush.msrb.mxu3 %v3960_v38  ;;  %v3885_v33 = vld [vmem:[%s11045_s3 + $0x528] sm:$0xff]  ;;  %v3851_v13 = vld [vmem:[%s11045_s3 + $0x418] sm:$0xff] }
 0x272   : > { %2319 = vmatpush.msra.mxu0 %v3873_v49  ;;  %2339 = vmatpush.msra.mxu1 %v3905_v36  ;;  %v3883_v38 = vld [vmem:[%s11045_s3 + $0x518] sm:$0xff]  ;;  %v3937_v49 = vld [vmem:[%s11045_s3 + $0x6c8] sm:$0xff] }
 0x273   : > { %2284 = vmatpush.msrb.mxu2 %v3926_v55  ;;  %2304 = vmatpush.msrb.mxu3 %v3958_v44  ;;  %v3969_v36 = vld [vmem:[%s11045_s3 + $0x7c8] sm:$0xff]  ;;  %v3935_v44 = vld [vmem:[%s11045_s3 + $0x6b8] sm:$0xff] }
 0x274   : > { %2320 = vmatpush.msra.mxu0 %v3871_v42  ;;  %2340 = vmatpush.msra.mxu1 %v3903_v34  ;;  %v3881_v55 = vld [vmem:[%s11045_s3 + $0x508] sm:$0xff]  ;;  %v3967_v42 = vld [vmem:[%s11045_s3 + $0x7b8] sm:$0xff]  ;;  %v2005_v34 = vld [vmem:[%s11045_s3 + $0xf0] sm:$0xff] }
 0x275   : > { %2285 = vmatpush.msrb.mxu2 %v3924_v43  ;;  %2305 = vmatpush.msrb.mxu3 %v3956_v58  ;;  %v2037_v43 = vld [vmem:[%s11045_s3 + $0x1f0] sm:$0xff]  ;;  %v3933_v58 = vld [vmem:[%s11045_s3 + $0x6a8] sm:$0xff] }
 0x276   : > { %2321 = vmatpush.msra.mxu0 %v3869_v8  ;;  %2341 = vmatpush.msra.mxu1 %v3901_v35  ;;  %v3965_v8 = vld [vmem:[%s11045_s3 + $0x7a8] sm:$0xff] }
 0x277   : > { %2286 = vmatpush.msrb.mxu2 %v3922_v24  ;;  %2306 = vmatpush.msrb.mxu3 %v3954_v0  ;;  %v2003_v24 = vld [vmem:[%s11045_s3 + $0xe0] sm:$0xff] }
 0x278   : > { %2322 = vmatpush.msra.mxu0 %v3867_v48  ;;  %2342 = vmatpush.msra.mxu1 %v3899_v4  ;;  %v2035_v0 = vld [vmem:[%s11045_s3 + $0x1e0] sm:$0xff]  ;;  %v3931_v4 = vld [vmem:[%s11045_s3 + $0x698] sm:$0xff] }
 0x279   : > { %2287 = vmatpush.msrb.mxu2 %v3920_v19  ;;  %2307 = vmatpush.msrb.mxu3 %v3952_v22  ;;  %v1551_v50 = vpop.f32.mrf.mxu2  ;;  %v3929_v19 = vld [vmem:[%s11045_s3 + $0x688] sm:$0xff] }
 0x27a   : > { %2323 = vmatpush.msra.mxu0 %v3865_v12  ;;  %2343 = vmatpush.msra.mxu1 %v3897_v27  ;;  %v1552_v21 = vadd.f32 %v1551_v50, %v1532_v23  ;;  %v3961_v22 = vld [vmem:[%s11045_s3 + $0x788] sm:$0xff]  ;;  %v3927_v23 = vld [vmem:[%s11045_s3 + $0x678] sm:$0xff] }
 0x27b   : > { %2288 = vmatpush.msrb.mxu2 %v3918_v45  ;;  %2308 = vmatpush.msrb.mxu3 %v3950_v16  ;;  %v1999_v45 = vld [vmem:[%s11045_s3 + $0xc0] sm:$0xff]  ;;  %v3957_v50 = vld [vmem:[%s11045_s3 + $0x768] sm:$0xff] }
 0x27c   : > { %v1571_v37 = vpop.f32.mrf.mxu3  ;;  %2324 = vmatpush.msra.mxu0 %v3863_v46  ;;  %2344 = vmatpush.msra.mxu1 %v3895_v40  ;;  %v2031_v16 = vld [vmem:[%s11045_s3 + $0x1c0] sm:$0xff]  ;;  %v3959_v46 = vld [vmem:[%s11045_s3 + $0x778] sm:$0xff] }
 0x27d   : > { %2289 = vmatpush.msrb.mxu2 %v3916_v20  ;;  %2309 = vmatpush.msrb.mxu3 %v3948_v53  ;;  %v1572_v62 = vadd.f32 %v1571_v37, %v1552_v21  ;;  %v1997_v20 = vld [vmem:[%s11045_s3 + $0xb0] sm:$0xff]  ;;  %v3923_v21 = vld [vmem:[%s11045_s3 + $0x658] sm:$0xff] }
 0x27e   : > { %2325 = vmatpush.msra.mxu0 %v3861_v39  ;;  %2345 = vmatpush.msra.mxu1 %v3893_v17  ;;  %v2029_v53 = vld [vmem:[%s11045_s3 + $0x1b0] sm:$0xff]  ;;  %v3925_v17 = vld [vmem:[%s11045_s3 + $0x668] sm:$0xff] }
 0x27f   : > { %2290 = vmatpush.msrb.mxu2 %v3914_v47  ;;  %2310 = vmatpush.msrb.mxu3 %v3946_v51  ;;  %v1592_v18 = vadd.f32 %v1591_v10, %v1572_v62  ;;  %v1995_v47 = vld [vmem:[%s11045_s3 + $0xa0] sm:$0xff]  ;;  %v1993_v10 = vld [vmem:[%s11045_s3 + $0x90] sm:$0xff]  ;;  %v3953_v62 = vld [vmem:[%s11045_s3 + $0x748] sm:$0xff] }
 0x280   : > { %2326 = vmatpush.msra.mxu0 %v3859_v52  ;;  %2346 = vmatpush.msra.mxu1 %v3891_v26  ;;  %v2027_v51 = vld [vmem:[%s11045_s3 + $0x1a0] sm:$0xff]  ;;  %v3955_v52 = vld [vmem:[%s11045_s3 + $0x758] sm:$0xff] }
 0x281   : > { %2291 = vmatpush.msrb.mxu2 %v3912_v59  ;;  %2311 = vmatpush.msrb.mxu3 %v3944_v61  ;;  %v1597_v25 = vmax.f32 %v1592_v18, 0.0  ;;  %v2025_v59 = vld [vmem:[%s11045_s3 + $0x190] sm:$0xff]  ;;  %v3921_v61 = vld [vmem:[%s11045_s3 + $0x648] sm:$0xff]  ;;  %v2023_v18 = vld [vmem:[%s11045_s3 + $0x180] sm:$0xff] }
 0x282   : > { %2292 = vmatmul.f32.vlgmr.msrb.gmra.mxu2 %v8315_v63  ;;  %2312 = vmatmul.f32.vlgmr.msrb.gmra.mxu3 %v8323_v57 }
 0x283   : > { %2327 = vmatpush.msra.mxu0 %v3857_v6  ;;  %2347 = vmatpush.msra.mxu1 %v3889_v7  ;;  %1953 = vst [vmem:[#allocation2 + $0x28] sm:$0xf] %v1597_v25  ;;  %v1991_v7 = vld [vmem:[%s11045_s3 + $0x80] sm:$0xff]  ;;  %v3917_v25 = vld [vmem:[%s11045_s3 + $0x628] sm:$0xff] }
 0x284   : > { %2356 = vmatpush.msra.mxu2 %v3943_v54  ;;  %2376 = vmatpush.msra.mxu3 %v3975_v30  ;;  %v3919_v54 = vld [vmem:[%s11045_s3 + $0x638] sm:$0xff] }
 0x285   : > { %2328 = vmatpush.msra.mxu0 %v3855_v32  ;;  %2348 = vmatpush.msra.mxu1 %v3887_v1  ;;  %v3951_v30 = vld [vmem:[%s11045_s3 + $0x738] sm:$0xff]  ;;  %v1989_v32 = vld [vmem:[%s11045_s3 + $0x70] sm:$0xff] }
 0x286   : > { %2357 = vmatpush.msra.mxu2 %v3941_v5  ;;  %2377 = vmatpush.msra.mxu3 %v3973_v29  ;;  %v2021_v1 = vld [vmem:[%s11045_s3 + $0x170] sm:$0xff]  ;;  %v3949_v5 = vld [vmem:[%s11045_s3 + $0x728] sm:$0xff]  ;;  %v1987_v29 = vld [vmem:[%s11045_s3 + $0x60] sm:$0xff] }
 0x287   : > { %2329 = vmatpush.msra.mxu0 %v3853_v9  ;;  %2349 = vmatpush.msra.mxu1 %v3885_v33  ;;  %v2019_v9 = vld [vmem:[%s11045_s3 + $0x160] sm:$0xff]  ;;  %v3915_v33 = vld [vmem:[%s11045_s3 + $0x618] sm:$0xff] }
 0x288   : > { %2358 = vmatpush.msra.mxu2 %v3939_v28  ;;  %2378 = vmatpush.msra.mxu3 %v3971_v31  ;;  %v3947_v28 = vld [vmem:[%s11045_s3 + $0x718] sm:$0xff] }
 0x289   : > { %2330 = vmatpush.msra.mxu0 %v3851_v13  ;;  %2350 = vmatpush.msra.mxu1 %v3883_v38  ;;  %v1985_v13 = vld [vmem:[%s11045_s3 + $0x50] sm:$0xff] }
 0x28a   : > { %2359 = vmatpush.msra.mxu2 %v3937_v49  ;;  %2379 = vmatpush.msra.mxu3 %v3969_v36  ;;  %v2017_v38 = vld [vmem:[%s11045_s3 + $0x150] sm:$0xff]  ;;  %v3913_v36 = vld [vmem:[%s11045_s3 + $0x608] sm:$0xff] }
 0x28b   : > { %2331 = vmatpush.msra.mxu0 %v3849_v41  ;;  %2351 = vmatpush.msra.mxu1 %v3881_v55  ;;  %v3945_v41 = vld [vmem:[%s11045_s3 + $0x708] sm:$0xff] }
 0x28c   : > { %2360 = vmatpush.msra.mxu2 %v3935_v44  ;;  %2380 = vmatpush.msra.mxu3 %v3967_v42  ;;  %v1632_v35 = vpop.f32.mrf.mxu0  ;;  %v1983_v44 = vld [vmem:[%s11045_s3 + $0x40] sm:$0xff] }
 0x28d   : > { %2332 = vmatmul.f32.vlgmr.msra.gmra.mxu0 %v8176_v3  ;;  %2352 = vmatmul.f32.vlgmr.msra.gmra.mxu1 %v8184_v2  ;;  %v1633_v48 = vadd.f32 %v1632_v35, %v11834_v11  ;;  %v3963_v3 = vld [vmem:[%s11045_s3 + $0x798] sm:$0xff]  ;;  %v2001_v2 = vld [vmem:[%s11045_s3 + $0xd0] sm:$0xff] }
 0x28e   : > { %2396 = vmatpush.msrb.mxu0 %v2005_v34  ;;  %2416 = vmatpush.msrb.mxu1 %v2037_v43  ;;  %v2033_v11 = vld [vmem:[%s11045_s3 + $0x1d0] sm:$0xff] }
 0x28f   : > { %2361 = vmatpush.msra.mxu2 %v3933_v58  ;;  %2381 = vmatpush.msra.mxu3 %v3965_v8  ;;  %v1652_v14 = vpop.f32.mrf.mxu1  ;;  %v2069_v34 = vld [vmem:[%s11045_s3 + $0x2f0] sm:$0xff] }
 0x290   : > { %2397 = vmatpush.msrb.mxu0 %v2003_v24  ;;  %2417 = vmatpush.msrb.mxu1 %v2035_v0  ;;  %v1653_v12 = vadd.f32 %v1652_v14, %v1633_v48  ;;  %v1672_v27 = vpop.f32.mrf.mxu2  ;;  %v2101_v43 = vld [vmem:[%s11045_s3 + $0x3f0] sm:$0xff]  ;;  %v2067_v0 = vld [vmem:[%s11045_s3 + $0x2e0] sm:$0xff] }
 0x291   : > { %2362 = vmatpush.msra.mxu2 %v3931_v4  ;;  %2382 = vmatpush.msra.mxu3 %v3963_v3  ;;  %v1981_v58 = vld [vmem:[%s11045_s3 + $0x30] sm:$0xff]  ;;  %v2011_v4 = vld [vmem:[%s11045_s3 + $0x120] sm:$0xff] }
 0x292   : > { %2398 = vmatpush.msrb.mxu0 %v2001_v2  ;;  %2418 = vmatpush.msrb.mxu1 %v2033_v11  ;;  %v1673_v40 = vadd.f32 %v1672_v27, %v1653_v12  ;;  %v2013_v8 = vld [vmem:[%s11045_s3 + $0x130] sm:$0xff]  ;;  %v2095_v27 = vld [vmem:[%s11045_s3 + $0x3c0] sm:$0xff] }
 0x293   : > { %2363 = vmatpush.msra.mxu2 %v3929_v19  ;;  %2383 = vmatpush.msra.mxu3 %v3961_v22  ;;  %v1692_v39 = vpop.f32.mrf.mxu3  ;;  %v2065_v3 = vld [vmem:[%s11045_s3 + $0x2d0] sm:$0xff]  ;;  %v2063_v22 = vld [vmem:[%s11045_s3 + $0x2c0] sm:$0xff] }
 0x294   : > { %2399 = vmatpush.msrb.mxu0 %v1999_v45  ;;  %2419 = vmatpush.msrb.mxu1 %v2031_v16  ;;  %v1693_v37 = vadd.f32 %v1692_v39, %v1673_v40  ;;  %v2097_v11 = vld [vmem:[%s11045_s3 + $0x3d0] sm:$0xff]  ;;  %v1975_v45 = vld [vmem:[%s11045_s3] sm:$0xff] }
 0x295   : > { %2364 = vmatpush.msra.mxu2 %v3927_v23  ;;  %2384 = vmatpush.msra.mxu3 %v3959_v46  ;;  %v1977_v14 = vld [vmem:[%s11045_s3 + $0x10] sm:$0xff]  ;;  %v2007_v16 = vld [vmem:[%s11045_s3 + $0x100] sm:$0xff]  ;;  %v2006_v46 = vld [vmem:[%s11045_s3 + $0xf8] sm:$0xff] }
 0x296   : > { %2400 = vmatpush.msrb.mxu0 %v1997_v20  ;;  %2420 = vmatpush.msrb.mxu1 %v2029_v53  ;;  %v1935_v26 = vmax.f32 %v1693_v37, 0.0  ;;  %v2009_v19 = vld [vmem:[%s11045_s3 + $0x110] sm:$0xff]  ;;  %v2038_v20 = vld [vmem:[%s11045_s3 + $0x1f8] sm:$0xff]  ;;  %v2059_v39 = vld [vmem:[%s11045_s3 + $0x2a0] sm:$0xff] }
 0x297   : > { %2365 = vmatpush.msra.mxu2 %v3925_v17  ;;  %2385 = vmatpush.msra.mxu3 %v3957_v50  ;;  %v2061_v23 = vld [vmem:[%s11045_s3 + $0x2b0] sm:$0xff]  ;;  %v2004_v17 = vld [vmem:[%s11045_s3 + $0xe8] sm:$0xff] }
 0x298   : > { %2401 = vmatpush.msrb.mxu0 %v1995_v47  ;;  %2421 = vmatpush.msrb.mxu1 %v2027_v51  ;;  %v1958_v6 = vrot.slane %v1935_v26, 7  ;;  %v2036_v50 = vld [vmem:[%s11045_s3 + $0x1e8] sm:$0xff]  ;;  %v2093_v37 = vld [vmem:[%s11045_s3 + $0x3b0] sm:$0xff]  ;;  %v2002_v51 = vld [vmem:[%s11045_s3 + $0xd8] sm:$0xff] }
 0x299   : > { %2366 = vmatpush.msra.mxu2 %v3923_v21  ;;  %2386 = vmatpush.msra.mxu3 %v3955_v52  ;;  %v2057_v47 = vld [vmem:[%s11045_s3 + $0x290] sm:$0xff]  ;;  %v2034_v21 = vld [vmem:[%s11045_s3 + $0x1d8] sm:$0xff]  ;;  %v2091_v52 = vld [vmem:[%s11045_s3 + $0x3a0] sm:$0xff] }
 0x29a   : > { %2402 = vmatpush.msrb.mxu0 %v1993_v10  ;;  %2422 = vmatpush.msrb.mxu1 %v2025_v59  ;;  %1966 = vst [vmem:[#allocation2 + $0x30] sm:$0x1e] %v1958_v6  ;;  %v2055_v26 = vld [vmem:[%s11045_s3 + $0x280] sm:$0xff]  ;;  %v2000_v10 = vld [vmem:[%s11045_s3 + $0xc8] sm:$0xff]  ;;  %v1998_v6 = vld [vmem:[%s11045_s3 + $0xb8] sm:$0xff] }
 0x29b   : > { %2367 = vmatpush.msra.mxu2 %v3921_v61  ;;  %2387 = vmatpush.msra.mxu3 %v3953_v62  ;;  %v2032_v59 = vld [vmem:[%s11045_s3 + $0x1c8] sm:$0xff]  ;;  %v2089_v61 = vld [vmem:[%s11045_s3 + $0x390] sm:$0xff] }
 0x29c   : > { %2403 = vmatpush.msrb.mxu0 %v1991_v7  ;;  %2423 = vmatpush.msrb.mxu1 %v2023_v18  ;;  %v2053_v62 = vld [vmem:[%s11045_s3 + $0x270] sm:$0xff]  ;;  %v2030_v7 = vld [vmem:[%s11045_s3 + $0x1b8] sm:$0xff]  ;;  %v2087_v18 = vld [vmem:[%s11045_s3 + $0x380] sm:$0xff] }
 0x29d   : > { %2368 = vmatpush.msra.mxu2 %v3919_v54  ;;  %2388 = vmatpush.msra.mxu3 %v3951_v30  ;;  %v2051_v54 = vld [vmem:[%s11045_s3 + $0x260] sm:$0xff]  ;;  %v1996_v30 = vld [vmem:[%s11045_s3 + $0xa8] sm:$0xff] }
 0x29e   : > { %2404 = vmatpush.msrb.mxu0 %v1989_v32  ;;  %2424 = vmatpush.msrb.mxu1 %v2021_v1  ;;  %v1712_v31 = vpop.f32.mrf.mxu3  ;;  %v2028_v32 = vld [vmem:[%s11045_s3 + $0x1a8] sm:$0xff]  ;;  %v2085_v1 = vld [vmem:[%s11045_s3 + $0x370] sm:$0xff] }
 0x29f   : > { %2369 = vmatpush.msra.mxu2 %v3917_v25  ;;  %2389 = vmatpush.msra.mxu3 %v3949_v5  ;;  %v1713_v49 = vadd.f32 %v1712_v31, %v6397_v60  ;;  %v2015_v60 = vld [vmem:[%s11045_s3 + $0x140] sm:$0xff]  ;;  %v2049_v25 = vld [vmem:[%s11045_s3 + $0x250] sm:$0xff]  ;;  %v1994_v5 = vld [vmem:[%s11045_s3 + $0x98] sm:$0xff] }
 0x2a0   : > { %2405 = vmatpush.msrb.mxu0 %v1987_v29  ;;  %2425 = vmatpush.msrb.mxu1 %v2019_v9  ;;  %v2026_v29 = vld [vmem:[%s11045_s3 + $0x198] sm:$0xff]  ;;  %v2083_v9 = vld [vmem:[%s11045_s3 + $0x360] sm:$0xff]  ;;  %v2024_v31 = vld [vmem:[%s11045_s3 + $0x188] sm:$0xff] }
 0x2a1   : > { %2370 = vmatpush.msra.mxu2 %v3915_v33  ;;  %2390 = vmatpush.msra.mxu3 %v3947_v28  ;;  %v1732_v55 = vpop.f32.mrf.mxu0  ;;  %v8582_v53 = vld [vmem:[#allocation2 + $0x30] sm:$0xf]  ;;  %v2047_v33 = vld [vmem:[%s11045_s3 + $0x240] sm:$0xff]  ;;  %v1992_v28 = vld [vmem:[%s11045_s3 + $0x88] sm:$0xff] }
 0x2a2   : > { %2406 = vmatpush.msrb.mxu0 %v1985_v13  ;;  %2426 = vmatpush.msrb.mxu1 %v2017_v38  ;;  %v1733_v42 = vadd.f32 %v1732_v55, %v1713_v49  ;;  %v2081_v13 = vld [vmem:[%s11045_s3 + $0x350] sm:$0xff]  ;;  %v1990_v49 = vld [vmem:[%s11045_s3 + $0x78] sm:$0xff]  ;;  %v2043_v55 = vld [vmem:[%s11045_s3 + $0x220] sm:$0xff] }
 0x2a3   : > { %2371 = vmatpush.msra.mxu2 %v3913_v36  ;;  %2391 = vmatpush.msra.mxu3 %v3945_v41  ;;  %v2045_v38 = vld [vmem:[%s11045_s3 + $0x230] sm:$0xff]  ;;  %v2022_v36 = vld [vmem:[%s11045_s3 + $0x178] sm:$0xff]  ;;  %v2079_v41 = vld [vmem:[%s11045_s3 + $0x340] sm:$0xff] }
 0x2a4   : > { %2372 = vmatmul.f32.vlgmr.msra.gmra.mxu2 %v8315_v63  ;;  %2392 = vmatmul.f32.vlgmr.msra.gmra.mxu3 %v8323_v57  ;;  %v1752_v35 = vpop.f32.mrf.mxu1  ;;  %v1772_v24 = vpop.f32.mrf.mxu2  ;;  %v2099_v63 = vld [vmem:[%s11045_s3 + $0x3e0] sm:$0xff] }
 0x2a5   : > { %2407 = vmatpush.msrb.mxu0 %v1983_v44  ;;  %2427 = vmatpush.msrb.mxu1 %v2015_v60  ;;  %v1753_v48 = vadd.f32 %v1752_v35, %v1733_v42  ;;  %v1979_v57 = vld [vmem:[%s11045_s3 + $0x20] sm:$0xff]  ;;  %v1988_v44 = vld [vmem:[%s11045_s3 + $0x68] sm:$0xff]  ;;  %v2077_v42 = vld [vmem:[%s11045_s3 + $0x330] sm:$0xff] }
 0x2a6   : > { %2436 = vmatpush.msrb.mxu2 %v2069_v34  ;;  %2456 = vmatpush.msrb.mxu3 %v2101_v43  ;;  %v2020_v60 = vld [vmem:[%s11045_s3 + $0x168] sm:$0xff]  ;;  %v2041_v43 = vld [vmem:[%s11045_s3 + $0x210] sm:$0xff] }
 0x2a7   : > { %2408 = vmatpush.msrb.mxu0 %v1981_v58  ;;  %2428 = vmatpush.msrb.mxu1 %v2013_v8  ;;  %v1773_v2 = vadd.f32 %v1772_v24, %v1753_v48  ;;  %v1986_v58 = vld [vmem:[%s11045_s3 + $0x58] sm:$0xff]  ;;  %v2039_v24 = vld [vmem:[%s11045_s3 + $0x200] sm:$0xff] }
 0x2a8   : > { %2437 = vmatpush.msrb.mxu2 %v2067_v0  ;;  %2457 = vmatpush.msrb.mxu3 %v2099_v63  ;;  %v2018_v8 = vld [vmem:[%s11045_s3 + $0x158] sm:$0xff]  ;;  %v2075_v48 = vld [vmem:[%s11045_s3 + $0x320] sm:$0xff]  ;;  %v1984_v63 = vld [vmem:[%s11045_s3 + $0x48] sm:$0xff] }
 0x2a9   : > { %2409 = vmatpush.msrb.mxu0 %v1979_v57  ;;  %2429 = vmatpush.msrb.mxu1 %v2011_v4  ;;  %v1936_v12 = vmax.f32 %v1773_v2, 0.0  ;;  %v2016_v57 = vld [vmem:[%s11045_s3 + $0x148] sm:$0xff]  ;;  %v2073_v2 = vld [vmem:[%s11045_s3 + $0x310] sm:$0xff] }
 0x2aa   : > { %2438 = vmatpush.msrb.mxu2 %v2065_v3  ;;  %2458 = vmatpush.msrb.mxu3 %v2097_v11  ;;  %v1982_v11 = vld [vmem:[%s11045_s3 + $0x38] sm:$0xff] }
 0x2ab   : > { %2410 = vmatpush.msrb.mxu0 %v1977_v14  ;;  %2430 = vmatpush.msrb.mxu1 %v2009_v19  ;;  %v1959_v40 = vrot.slane %v1936_v12, 7  ;;  %v2014_v14 = vld [vmem:[%s11045_s3 + $0x138] sm:$0xff]  ;;  %v2068_v19 = vld [vmem:[%s11045_s3 + $0x2e8] sm:$0xff] }
 0x2ac   : > { %2439 = vmatpush.msrb.mxu2 %v2063_v22  ;;  %2459 = vmatpush.msrb.mxu3 %v2095_v27  ;;  %v2071_v27 = vld [vmem:[%s11045_s3 + $0x300] sm:$0xff] }
 0x2ad   : > { %2411 = vmatpush.msrb.mxu0 %v1975_v45  ;;  %2431 = vmatpush.msrb.mxu1 %v2007_v16  ;;  %1967 = vst [vmem:[#allocation2] sm:$0x1e] %v1959_v40  ;;  %v1980_v45 = vld [vmem:[%s11045_s3 + $0x28] sm:$0xff]  ;;  %v2102_v40 = vld [vmem:[%s11045_s3 + $0x3f8] sm:$0xff] }
 0x2ae   : > { %2440 = vmatpush.msrb.mxu2 %v2061_v23  ;;  %2412 = vmatmul.f32.vlgmr.msrb.gmra.mxu0 %v8582_v53  ;;  %v2012_v16 = vld [vmem:[%s11045_s3 + $0x128] sm:$0xff] }
 0x2af   : > { %2476 = vmatpush.msra.mxu0 %v2006_v46  ;;  %2496 = vmatpush.msra.mxu1 %v2038_v20  ;;  %v2066_v46 = vld [vmem:[%s11045_s3 + $0x2d8] sm:$0xff] }
 0x2b0   : > { %2441 = vmatpush.msrb.mxu2 %v2059_v39  ;;  %2460 = vmatpush.msrb.mxu3 %v2093_v37  ;;  %v1978_v20 = vld [vmem:[%s11045_s3 + $0x18] sm:$0xff]  ;;  %v2100_v37 = vld [vmem:[%s11045_s3 + $0x3e8] sm:$0xff] }
 0x2b1   : > { %2477 = vmatpush.msra.mxu0 %v2004_v17  ;;  %2497 = vmatpush.msra.mxu1 %v2036_v50  ;;  %v2010_v39 = vld [vmem:[%s11045_s3 + $0x118] sm:$0xff]  ;;  %v2064_v50 = vld [vmem:[%s11045_s3 + $0x2c8] sm:$0xff] }
 0x2b2   : > { %2442 = vmatpush.msrb.mxu2 %v2057_v47  ;;  %2461 = vmatpush.msrb.mxu3 %v2091_v52  ;;  %v1976_v47 = vld [vmem:[%s11045_s3 + $0x8] sm:$0xff]  ;;  %v2062_v52 = vld [vmem:[%s11045_s3 + $0x2b8] sm:$0xff] }
 0x2b3   : > { %2478 = vmatpush.msra.mxu0 %v2002_v51  ;;  %2498 = vmatpush.msra.mxu1 %v2034_v21  ;;  %v2008_v51 = vld [vmem:[%s11045_s3 + $0x108] sm:$0xff] }
 0x2b4   : > { %2443 = vmatpush.msrb.mxu2 %v2055_v26  ;;  %2462 = vmatpush.msrb.mxu3 %v2089_v61  ;;  %v8693_v34 = vld [vmem:[#allocation2] sm:$0xf]  ;;  %v4006_v26 = vld [vmem:[%s11045_s3 + $0x8f0] sm:$0xff] }
 0x2b5   : > { %2479 = vmatpush.msra.mxu0 %v2000_v10  ;;  %2499 = vmatpush.msra.mxu1 %v2032_v59  ;;  %v4038_v10 = vld [vmem:[%s11045_s3 + $0x9f0] sm:$0xff]  ;;  %v2060_v61 = vld [vmem:[%s11045_s3 + $0x2a8] sm:$0xff] }
 0x2b6   : > { %2444 = vmatpush.msrb.mxu2 %v2053_v62  ;;  %2463 = vmatpush.msrb.mxu3 %v2087_v18  ;;  %v4004_v62 = vld [vmem:[%s11045_s3 + $0x8e0] sm:$0xff]  ;;  %v2098_v18 = vld [vmem:[%s11045_s3 + $0x3d8] sm:$0xff] }
 0x2b7   : > { %2480 = vmatpush.msra.mxu0 %v1998_v6  ;;  %2500 = vmatpush.msra.mxu1 %v2030_v7  ;;  %v4036_v6 = vld [vmem:[%s11045_s3 + $0x9e0] sm:$0xff]  ;;  %v2058_v7 = vld [vmem:[%s11045_s3 + $0x298] sm:$0xff] }
 0x2b8   : > { %2445 = vmatpush.msrb.mxu2 %v2051_v54  ;;  %2464 = vmatpush.msrb.mxu3 %v2085_v1  ;;  %v4034_v54 = vld [vmem:[%s11045_s3 + $0x9d0] sm:$0xff]  ;;  %v4000_v1 = vld [vmem:[%s11045_s3 + $0x8c0] sm:$0xff] }
 0x2b9   : > { %2481 = vmatpush.msra.mxu0 %v1996_v30  ;;  %2501 = vmatpush.msra.mxu1 %v2028_v32  ;;  %v2056_v30 = vld [vmem:[%s11045_s3 + $0x288] sm:$0xff] }
 0x2ba   : > { %2446 = vmatpush.msrb.mxu2 %v2049_v25  ;;  %2465 = vmatpush.msrb.mxu3 %v2083_v9  ;;  %v2096_v32 = vld [vmem:[%s11045_s3 + $0x3c8] sm:$0xff]  ;;  %v4032_v25 = vld [vmem:[%s11045_s3 + $0x9c0] sm:$0xff]  ;;  %v3998_v9 = vld [vmem:[%s11045_s3 + $0x8b0] sm:$0xff] }
 0x2bb   : > { %2482 = vmatpush.msra.mxu0 %v1994_v5  ;;  %2502 = vmatpush.msra.mxu1 %v2026_v29  ;;  %v2054_v5 = vld [vmem:[%s11045_s3 + $0x278] sm:$0xff] }
 0x2bc   : > { %2447 = vmatpush.msrb.mxu2 %v2047_v33  ;;  %2466 = vmatpush.msrb.mxu3 %v2081_v13  ;;  %v2094_v29 = vld [vmem:[%s11045_s3 + $0x3b8] sm:$0xff]  ;;  %v4030_v33 = vld [vmem:[%s11045_s3 + $0x9b0] sm:$0xff]  ;;  %v3996_v13 = vld [vmem:[%s11045_s3 + $0x8a0] sm:$0xff] }
 0x2bd   : > { %2483 = vmatpush.msra.mxu0 %v1992_v28  ;;  %2503 = vmatpush.msra.mxu1 %v2024_v31  ;;  %v2052_v28 = vld [vmem:[%s11045_s3 + $0x268] sm:$0xff] }
 0x2be   : > { %2448 = vmatpush.msrb.mxu2 %v2045_v38  ;;  %2467 = vmatpush.msrb.mxu3 %v2079_v41  ;;  %v2092_v31 = vld [vmem:[%s11045_s3 + $0x3a8] sm:$0xff]  ;;  %v4028_v38 = vld [vmem:[%s11045_s3 + $0x9a0] sm:$0xff]  ;;  %v3994_v41 = vld [vmem:[%s11045_s3 + $0x890] sm:$0xff] }
 0x2bf   : > { %2484 = vmatpush.msra.mxu0 %v1990_v49  ;;  %2504 = vmatpush.msra.mxu1 %v2022_v36  ;;  %v2050_v49 = vld [vmem:[%s11045_s3 + $0x258] sm:$0xff] }
 0x2c0   : > { %2449 = vmatpush.msrb.mxu2 %v2043_v55  ;;  %v1792_v35 = vpop.f32.mrf.mxu2  ;;  %2468 = vmatpush.msrb.mxu3 %v2077_v42  ;;  %v2090_v36 = vld [vmem:[%s11045_s3 + $0x398] sm:$0xff]  ;;  %v4026_v55 = vld [vmem:[%s11045_s3 + $0x990] sm:$0xff]  ;;  %v3992_v42 = vld [vmem:[%s11045_s3 + $0x880] sm:$0xff] }
 0x2c1   : > { %2485 = vmatpush.msra.mxu0 %v1988_v44  ;;  %2505 = vmatpush.msra.mxu1 %v2020_v60  ;;  %v1793_v0 = vadd.f32 %v1792_v35, %v6463_v56  ;;  %v2070_v56 = vld [vmem:[%s11045_s3 + $0x2f8] sm:$0xff]  ;;  %v2048_v44 = vld [vmem:[%s11045_s3 + $0x248] sm:$0xff]  ;;  %v4022_v35 = vld [vmem:[%s11045_s3 + $0x970] sm:$0xff] }
 0x2c2   : > { %2432 = vmatmul.f32.vlgmr.msrb.gmra.mxu1 %v8693_v34  ;;  %2450 = vmatpush.msrb.mxu2 %v2041_v43  ;;  %v1812_v4 = vpop.f32.mrf.mxu3  ;;  %v2088_v60 = vld [vmem:[%s11045_s3 + $0x388] sm:$0xff]  ;;  %v2046_v43 = vld [vmem:[%s11045_s3 + $0x238] sm:$0xff] }
 0x2c3   : > { %2486 = vmatpush.msra.mxu0 %v1986_v58  ;;  %2506 = vmatpush.msra.mxu1 %v2018_v8  ;;  %v1813_v3 = vadd.f32 %v1812_v4, %v1793_v0  ;;  %v2086_v58 = vld [vmem:[%s11045_s3 + $0x378] sm:$0xff]  ;;  %v3990_v8 = vld [vmem:[%s11045_s3 + $0x870] sm:$0xff]  ;;  %v2084_v0 = vld [vmem:[%s11045_s3 + $0x368] sm:$0xff] }
 0x2c4   : > { %2451 = vmatpush.msrb.mxu2 %v2039_v24  ;;  %2469 = vmatpush.msrb.mxu3 %v2075_v48  ;;  %v2044_v24 = vld [vmem:[%s11045_s3 + $0x228] sm:$0xff]  ;;  %v3988_v48 = vld [vmem:[%s11045_s3 + $0x860] sm:$0xff] }
 0x2c5   : > { %2487 = vmatpush.msra.mxu0 %v1984_v63  ;;  %2507 = vmatpush.msra.mxu1 %v2016_v57  ;;  %v1832_v22 = vpop.f32.mrf.mxu0  ;;  %v1852_v12 = vpop.f32.mrf.mxu1  ;;  %v4020_v63 = vld [vmem:[%s11045_s3 + $0x960] sm:$0xff] }
 0x2c6   : > { %2516 = vmatpush.msra.mxu2 %v2070_v56  ;;  %v1833_v23 = vadd.f32 %v1832_v22, %v1813_v3  ;;  %2470 = vmatpush.msrb.mxu3 %v2073_v2  ;;  %v2082_v3 = vld [vmem:[%s11045_s3 + $0x358] sm:$0xff]  ;;  %v3984_v22 = vld [vmem:[%s11045_s3 + $0x840] sm:$0xff] }
 0x2c7   : > { %2488 = vmatpush.msra.mxu0 %v1982_v11  ;;  %2508 = vmatpush.msra.mxu1 %v2014_v14  ;;  %v2042_v2 = vld [vmem:[%s11045_s3 + $0x218] sm:$0xff]  ;;  %v3986_v11 = vld [vmem:[%s11045_s3 + $0x850] sm:$0xff]  ;;  %v2080_v14 = vld [vmem:[%s11045_s3 + $0x348] sm:$0xff] }
 0x2c8   : > { %2517 = vmatpush.msra.mxu2 %v2068_v19  ;;  %v1853_v17 = vadd.f32 %v1852_v12, %v1833_v23  ;;  %2471 = vmatpush.msrb.mxu3 %v2071_v27  ;;  %v2040_v19 = vld [vmem:[%s11045_s3 + $0x208] sm:$0xff]  ;;  %v4016_v27 = vld [vmem:[%s11045_s3 + $0x940] sm:$0xff]  ;;  %v3982_v23 = vld [vmem:[%s11045_s3 + $0x830] sm:$0xff] }
 0x2c9   : > { %2489 = vmatpush.msra.mxu0 %v1980_v45  ;;  %2509 = vmatpush.msra.mxu1 %v2012_v16  ;;  %v4070_v45 = vld [vmem:[%s11045_s3 + $0xaf0] sm:$0xff] }
 0x2ca   : > { %2518 = vmatpush.msra.mxu2 %v2066_v46  ;;  %v1937_v21 = vmax.f32 %v1853_v17, 0.0  ;;  %2536 = vmatpush.msra.mxu3 %v2102_v40  ;;  %v2078_v46 = vld [vmem:[%s11045_s3 + $0x338] sm:$0xff]  ;;  %v4014_v40 = vld [vmem:[%s11045_s3 + $0x930] sm:$0xff]  ;;  %v3980_v17 = vld [vmem:[%s11045_s3 + $0x820] sm:$0xff] }
 0x2cb   : > { %2490 = vmatpush.msra.mxu0 %v1978_v20  ;;  %2510 = vmatpush.msra.mxu1 %v2010_v39  ;;  %v4068_v20 = vld [vmem:[%s11045_s3 + $0xae0] sm:$0xff] }
 0x2cc   : > { %2519 = vmatpush.msra.mxu2 %v2064_v50  ;;  %v1960_v59 = vrot.slane %v1937_v21, 7  ;;  %2537 = vmatpush.msra.mxu3 %v2100_v37  ;;  %v2076_v37 = vld [vmem:[%s11045_s3 + $0x328] sm:$0xff]  ;;  %v4066_v21 = vld [vmem:[%s11045_s3 + $0xad0] sm:$0xff] }
 0x2cd   : > { %2491 = vmatpush.msra.mxu0 %v1976_v47  ;;  %2511 = vmatpush.msra.mxu1 %v2008_v51  ;;  %v4012_v51 = vld [vmem:[%s11045_s3 + $0x920] sm:$0xff] }
 0x2ce   : > { %2520 = vmatpush.msra.mxu2 %v2062_v52  ;;  %2492 = vmatmul.f32.vlgmr.msra.gmra.mxu0 %v8582_v53  ;;  %1968 = vst [vmem:[#allocation2 + $0x58] sm:$0x1e] %v1960_v59  ;;  %v4002_v53 = vld [vmem:[%s11045_s3 + $0x8d0] sm:$0xff]  ;;  %v4064_v59 = vld [vmem:[%s11045_s3 + $0xac0] sm:$0xff] }
 0x2cf   : > { %2689 = vmatpush.msrb.mxu0 %v4006_v26  ;;  %2709 = vmatpush.msrb.mxu1 %v4038_v10  ;;  %v3978_v52 = vld [vmem:[%s11045_s3 + $0x810] sm:$0xff] }
 0x2d0   : > { %2521 = vmatpush.msra.mxu2 %v2060_v61  ;;  %2512 = vmatmul.f32.vlgmr.msra.gmra.mxu1 %v8693_v34  ;;  %v4024_v34 = vld [vmem:[%s11045_s3 + $0x980] sm:$0xff]  ;;  %v4010_v10 = vld [vmem:[%s11045_s3 + $0x910] sm:$0xff] }
 0x2d1   : > { %2690 = vmatpush.msrb.mxu0 %v4004_v62  ;;  %2710 = vmatpush.msrb.mxu1 %v4036_v6  ;;  %v3976_v61 = vld [vmem:[%s11045_s3 + $0x800] sm:$0xff]  ;;  %v2074_v6 = vld [vmem:[%s11045_s3 + $0x318] sm:$0xff] }
 0x2d2   : > { %2522 = vmatpush.msra.mxu2 %v2058_v7  ;;  %2538 = vmatpush.msra.mxu3 %v2098_v18  ;;  %v4008_v7 = vld [vmem:[%s11045_s3 + $0x900] sm:$0xff]  ;;  %v4062_v18 = vld [vmem:[%s11045_s3 + $0xab0] sm:$0xff] }
 0x2d3   : > { %2691 = vmatpush.msrb.mxu0 %v4002_v53  ;;  %2711 = vmatpush.msrb.mxu1 %v4034_v54  ;;  %v8955_v54 = vld [vmem:[#allocation2 + $0x40] sm:$0xf] }
 0x2d4   : > { %2523 = vmatpush.msra.mxu2 %v2056_v30  ;;  %2539 = vmatpush.msra.mxu3 %v2096_v32  ;;  %v4007_v30 = vld [vmem:[%s11045_s3 + $0x8f8] sm:$0xff] }
 0x2d5   : > { %2692 = vmatpush.msrb.mxu0 %v4000_v1  ;;  %2712 = vmatpush.msrb.mxu1 %v4032_v25  ;;  %v1973_v4 = vld [vmem:[#allocation2 + $0x58] sm:$0xf]  ;;  %v4039_v32 = vld [vmem:[%s11045_s3 + $0x9f8] sm:$0xff]  ;;  %v8963_v1 = vld [vmem:[#allocation2 + $0x20] sm:$0xf] }
 0x2d6   : > { %2524 = vmatpush.msra.mxu2 %v2054_v5  ;;  %2540 = vmatpush.msra.mxu3 %v2094_v29  ;;  %v4060_v25 = vld [vmem:[%s11045_s3 + $0xaa0] sm:$0xff]  ;;  %v2072_v5 = vld [vmem:[%s11045_s3 + $0x308] sm:$0xff] }
 0x2d7   : > { %2693 = vmatpush.msrb.mxu0 %v3998_v9  ;;  %2713 = vmatpush.msrb.mxu1 %v4030_v33  ;;  %v4005_v29 = vld [vmem:[%s11045_s3 + $0x8e8] sm:$0xff]  ;;  %v4058_v33 = vld [vmem:[%s11045_s3 + $0xa90] sm:$0xff] }
 0x2d8   : > { %2525 = vmatpush.msra.mxu2 %v2052_v28  ;;  %2541 = vmatpush.msra.mxu3 %v2092_v31  ;;  %v4037_v9 = vld [vmem:[%s11045_s3 + $0x9e8] sm:$0xff]  ;;  %v4003_v28 = vld [vmem:[%s11045_s3 + $0x8d8] sm:$0xff] }
 0x2d9   : > { %2694 = vmatpush.msrb.mxu0 %v3996_v13  ;;  %2714 = vmatpush.msrb.mxu1 %v4028_v38  ;;  %v4035_v31 = vld [vmem:[%s11045_s3 + $0x9d8] sm:$0xff]  ;;  %v4056_v13 = vld [vmem:[%s11045_s3 + $0xa80] sm:$0xff]  ;;  %v4001_v38 = vld [vmem:[%s11045_s3 + $0x8c8] sm:$0xff] }
 0x2da   : > { %2526 = vmatpush.msra.mxu2 %v2050_v49  ;;  %2542 = vmatpush.msra.mxu3 %v2090_v36  ;;  %v4033_v49 = vld [vmem:[%s11045_s3 + $0x9c8] sm:$0xff]  ;;  %v4054_v36 = vld [vmem:[%s11045_s3 + $0xa70] sm:$0xff] }
 0x2db   : > { %2695 = vmatpush.msrb.mxu0 %v3994_v41  ;;  %2715 = vmatpush.msrb.mxu1 %v4026_v55  ;;  %v3999_v41 = vld [vmem:[%s11045_s3 + $0x8b8] sm:$0xff] }
 0x2dc   : > { %2527 = vmatpush.msra.mxu2 %v2048_v44  ;;  %2543 = vmatpush.msra.mxu3 %v2088_v60  ;;  %v4031_v55 = vld [vmem:[%s11045_s3 + $0x9b8] sm:$0xff]  ;;  %v4052_v60 = vld [vmem:[%s11045_s3 + $0xa60] sm:$0xff] }
 0x2dd   : > { %2696 = vmatpush.msrb.mxu0 %v3992_v42  ;;  %2716 = vmatpush.msrb.mxu1 %v4024_v34  ;;  %v4102_v42 = vld [vmem:[%s11045_s3 + $0xbf0] sm:$0xff]  ;;  %v3997_v34 = vld [vmem:[%s11045_s3 + $0x8a8] sm:$0xff] }
 0x2de   : > { %2528 = vmatpush.msra.mxu2 %v2046_v43  ;;  %v1872_v57 = vpop.f32.mrf.mxu1  ;;  %2544 = vmatpush.msra.mxu3 %v2086_v58  ;;  %v4029_v43 = vld [vmem:[%s11045_s3 + $0x9a8] sm:$0xff]  ;;  %v4050_v58 = vld [vmem:[%s11045_s3 + $0xa50] sm:$0xff] }
 0x2df   : > { %2697 = vmatpush.msrb.mxu0 %v3990_v8  ;;  %2717 = vmatpush.msrb.mxu1 %v4022_v35  ;;  %v1873_v56 = vadd.f32 %v1872_v57, %v11779_v15  ;;  %v4018_v15 = vld [vmem:[%s11045_s3 + $0x950] sm:$0xff]  ;;  %v1932_v47 = vpop.f32.mrf.mxu0  ;;  %v4100_v8 = vld [vmem:[%s11045_s3 + $0xbe0] sm:$0xff]  ;;  %v3995_v35 = vld [vmem:[%s11045_s3 + $0x898] sm:$0xff] }
 0x2e0   : > { %2529 = vmatpush.msra.mxu2 %v2044_v24  ;;  %2545 = vmatpush.msra.mxu3 %v2084_v0  ;;  %v4027_v24 = vld [vmem:[%s11045_s3 + $0x998] sm:$0xff]  ;;  %v4048_v0 = vld [vmem:[%s11045_s3 + $0xa40] sm:$0xff]  ;;  %v4025_v57 = vld [vmem:[%s11045_s3 + $0x988] sm:$0xff] }
 0x2e1   : > { %2698 = vmatpush.msrb.mxu0 %v3988_v48  ;;  %2718 = vmatpush.msrb.mxu1 %v4020_v63  ;;  %v4098_v48 = vld [vmem:[%s11045_s3 + $0xbd0] sm:$0xff]  ;;  %v3993_v63 = vld [vmem:[%s11045_s3 + $0x888] sm:$0xff] }
 0x2e2   : > { %2452 = vmatmul.f32.vlgmr.msrb.gmra.mxu2 %v1973_v4  ;;  %v1892_v12 = vpop.f32.mrf.mxu2  ;;  %2546 = vmatpush.msra.mxu3 %v2082_v3  ;;  %v3991_v3 = vld [vmem:[%s11045_s3 + $0x878] sm:$0xff] }
 0x2e3   : > { %2530 = vmatpush.msra.mxu2 %v2042_v2  ;;  %2699 = vmatpush.msrb.mxu0 %v3986_v11  ;;  %v1893_v16 = vadd.f32 %v1892_v12, %v1873_v56  ;;  %v4096_v56 = vld [vmem:[%s11045_s3 + $0xbc0] sm:$0xff]  ;;  %v4023_v2 = vld [vmem:[%s11045_s3 + $0x978] sm:$0xff] }
 0x2e4   : > { %2719 = vmatpush.msrb.mxu1 %v4018_v15  ;;  %2547 = vmatpush.msra.mxu3 %v2080_v14  ;;  %v4044_v11 = vld [vmem:[%s11045_s3 + $0xa20] sm:$0xff]  ;;  %v3989_v15 = vld [vmem:[%s11045_s3 + $0x868] sm:$0xff]  ;;  %v3987_v12 = vld [vmem:[%s11045_s3 + $0x858] sm:$0xff] }
 0x2e5   : > { %2531 = vmatpush.msra.mxu2 %v2040_v19  ;;  %2700 = vmatpush.msrb.mxu0 %v3984_v22  ;;  %v1912_v39 = vpop.f32.mrf.mxu3  ;;  %v4021_v14 = vld [vmem:[%s11045_s3 + $0x968] sm:$0xff]  ;;  %v4042_v19 = vld [vmem:[%s11045_s3 + $0xa10] sm:$0xff] }
 0x2e6   : > { %2720 = vmatpush.msrb.mxu1 %v4016_v27  ;;  %v1913_v50 = vadd.f32 %v1912_v39, %v1893_v16  ;;  %2548 = vmatpush.msra.mxu3 %v2078_v46  ;;  %v4094_v22 = vld [vmem:[%s11045_s3 + $0xbb0] sm:$0xff]  ;;  %v4019_v27 = vld [vmem:[%s11045_s3 + $0x958] sm:$0xff]  ;;  %v4092_v16 = vld [vmem:[%s11045_s3 + $0xba0] sm:$0xff] }
 0x2e7   : > { %2729 = vmatpush.msrb.mxu2 %v4070_v45  ;;  %2701 = vmatpush.msrb.mxu0 %v3982_v23  ;;  %v4040_v45 = vld [vmem:[%s11045_s3 + $0xa00] sm:$0xff]  ;;  %v3985_v23 = vld [vmem:[%s11045_s3 + $0x848] sm:$0xff]  ;;  %v3983_v39 = vld [vmem:[%s11045_s3 + $0x838] sm:$0xff] }
 0x2e8   : > { %2721 = vmatpush.msrb.mxu1 %v4014_v40  ;;  %v1933_v26 = vadd.f32 %v1932_v47, %v1913_v50  ;;  %2549 = vmatpush.msra.mxu3 %v2076_v37  ;;  %v4017_v46 = vld [vmem:[%s11045_s3 + $0x948] sm:$0xff]  ;;  %v4071_v40 = vld [vmem:[%s11045_s3 + $0xaf8] sm:$0xff] }
 0x2e9   : > { %2730 = vmatpush.msrb.mxu2 %v4068_v20  ;;  %2702 = vmatpush.msrb.mxu0 %v3980_v17  ;;  %v9090_v20 = vld [vmem:[#allocation2 + $0x10] sm:$0xf]  ;;  %v4090_v17 = vld [vmem:[%s11045_s3 + $0xb90] sm:$0xff]  ;;  %v4069_v37 = vld [vmem:[%s11045_s3 + $0xae8] sm:$0xff] }
 0x2ea   : > { %2722 = vmatpush.msrb.mxu1 %v4012_v51  ;;  %v1938_v62 = vmax.f32 %v1933_v26, 0.0  ;;  %2532 = vmatmul.f32.vlgmr.msra.gmra.mxu2 %v1973_v4  ;;  %v4046_v4 = vld [vmem:[%s11045_s3 + $0xa30] sm:$0xff]  ;;  %v4015_v50 = vld [vmem:[%s11045_s3 + $0x938] sm:$0xff]  ;;  %v3981_v47 = vld [vmem:[%s11045_s3 + $0x828] sm:$0xff] }
 0x2eb   : > { %2731 = vmatpush.msrb.mxu2 %v4066_v21  ;;  %2703 = vmatpush.msrb.mxu0 %v3978_v52  ;;  %v4088_v51 = vld [vmem:[%s11045_s3 + $0xb80] sm:$0xff]  ;;  %v4013_v21 = vld [vmem:[%s11045_s3 + $0x928] sm:$0xff]  ;;  %v4067_v52 = vld [vmem:[%s11045_s3 + $0xad8] sm:$0xff] }
 0x2ec   : > { %2723 = vmatpush.msrb.mxu1 %v4010_v10  ;;  %v1961_v53 = vrot.slane %v1938_v62, 7  ;;  %2550 = vmatpush.msra.mxu3 %v2074_v6  ;;  %v3979_v26 = vld [vmem:[%s11045_s3 + $0x818] sm:$0xff]  ;;  %v4086_v10 = vld [vmem:[%s11045_s3 + $0xb70] sm:$0xff]  ;;  %v3977_v62 = vld [vmem:[%s11045_s3 + $0x808] sm:$0xff] }
 0x2ed   : > { %2732 = vmatpush.msrb.mxu2 %v4064_v59  ;;  %2704 = vmatpush.msrb.mxu0 %v3976_v61  ;;  %v4011_v59 = vld [vmem:[%s11045_s3 + $0x918] sm:$0xff]  ;;  %v4065_v61 = vld [vmem:[%s11045_s3 + $0xac8] sm:$0xff]  ;;  %v4084_v6 = vld [vmem:[%s11045_s3 + $0xb60] sm:$0xff] }
 0x2ee   : > { %2724 = vmatpush.msrb.mxu1 %v4008_v7  ;;  %1969 = vst [vmem:[#allocation2 + $0x18] sm:$0x1e] %v1961_v53  ;;  %2705 = vmatmul.f32.vlgmr.msrb.gmra.mxu0 %v8955_v54  ;;  %v9138_v7 = vld [vmem:[%s11045_s3 + $0x908] sm:$0xff] }
 0x2ef   : > { %2733 = vmatpush.msrb.mxu2 %v4062_v18  ;;  %2725 = vmatmul.f32.vlgmr.msrb.gmra.mxu1 %v8963_v1  ;;  %v4063_v18 = vld [vmem:[%s11045_s3 + $0xab8] sm:$0xff]  ;;  %v4061_v53 = vld [vmem:[%s11045_s3 + $0xaa8] sm:$0xff] }
 0x2f0   : > { %2769 = vmatpush.msra.mxu0 %v4007_v30  ;;  %2789 = vmatpush.msra.mxu1 %v4039_v32  ;;  %v4082_v30 = vld [vmem:[%s11045_s3 + $0xb50] sm:$0xff] }
 0x2f1   : > { %2734 = vmatpush.msrb.mxu2 %v4060_v25  ;;  %2551 = vmatpush.msra.mxu3 %v2072_v5  ;;  %v4397_v32 = vld [vmem:[%s11045_s3 + $0x4f0] sm:$0xff]  ;;  %v4059_v5 = vld [vmem:[%s11045_s3 + $0xa98] sm:$0xff] }
 0x2f2   : > { %2770 = vmatpush.msra.mxu0 %v4005_v29  ;;  %2790 = vmatpush.msra.mxu1 %v4037_v9  ;;  %v4398_v25 = vld [vmem:[%s11045_s3 + $0x5f0] sm:$0xff]  ;;  %v4080_v29 = vld [vmem:[%s11045_s3 + $0xb40] sm:$0xff] }
 0x2f3   : > { %2735 = vmatpush.msrb.mxu2 %v4058_v33  ;;  %v4399_v9 = vld [vmem:[%s11045_s3 + $0x4e0] sm:$0xff] }
 0x2f4   : > { %2771 = vmatpush.msra.mxu0 %v4003_v28  ;;  %2791 = vmatpush.msra.mxu1 %v4035_v31  ;;  %v4400_v33 = vld [vmem:[%s11045_s3 + $0x5e0] sm:$0xff]  ;;  %v4057_v28 = vld [vmem:[%s11045_s3 + $0xa88] sm:$0xff]  ;;  %v4078_v31 = vld [vmem:[%s11045_s3 + $0xb30] sm:$0xff] }
 0x2f5   : > { %2736 = vmatpush.msrb.mxu2 %v4056_v13  ;;  %v1974_v44 = vld [vmem:[#allocation2 + $0x18] sm:$0xf]  ;;  %v4401_v13 = vld [vmem:[%s11045_s3 + $0x4d0] sm:$0xff] }
 0x2f6   : > { %2772 = vmatpush.msra.mxu0 %v4001_v38  ;;  %2792 = vmatpush.msra.mxu1 %v4033_v49  ;;  %v4402_v38 = vld [vmem:[%s11045_s3 + $0x5d0] sm:$0xff]  ;;  %v4055_v49 = vld [vmem:[%s11045_s3 + $0xa78] sm:$0xff] }
 0x2f7   : > { %2737 = vmatpush.msrb.mxu2 %v4054_v36  ;;  %2472 = vmatmul.f32.vlgmr.msrb.gmra.mxu3 %v1974_v44  ;;  %v4076_v36 = vld [vmem:[%s11045_s3 + $0xb20] sm:$0xff] }
 0x2f8   : > { %2773 = vmatpush.msra.mxu0 %v3999_v41  ;;  %2793 = vmatpush.msra.mxu1 %v4031_v55  ;;  %v4403_v41 = vld [vmem:[%s11045_s3 + $0x4c0] sm:$0xff] }
 0x2f9   : > { %2738 = vmatpush.msrb.mxu2 %v4052_v60  ;;  %2749 = vmatpush.msrb.mxu3 %v4102_v42  ;;  %v4404_v55 = vld [vmem:[%s11045_s3 + $0x5c0] sm:$0xff]  ;;  %v4074_v60 = vld [vmem:[%s11045_s3 + $0xb10] sm:$0xff] }
 0x2fa   : > { %2774 = vmatpush.msra.mxu0 %v3997_v34  ;;  %2794 = vmatpush.msra.mxu1 %v4029_v43  ;;  %v4405_v42 = vld [vmem:[%s11045_s3 + $0x4b0] sm:$0xff]  ;;  %v4051_v43 = vld [vmem:[%s11045_s3 + $0xa58] sm:$0xff] }
 0x2fb   : > { %2739 = vmatpush.msrb.mxu2 %v4050_v58  ;;  %2750 = vmatpush.msrb.mxu3 %v4100_v8  ;;  %v4406_v34 = vld [vmem:[%s11045_s3 + $0x5b0] sm:$0xff]  ;;  %v4072_v58 = vld [vmem:[%s11045_s3 + $0xb00] sm:$0xff] }
 0x2fc   : > { %2775 = vmatpush.msra.mxu0 %v3995_v35  ;;  %2795 = vmatpush.msra.mxu1 %v4027_v24  ;;  %v4407_v8 = vld [vmem:[%s11045_s3 + $0x4a0] sm:$0xff]  ;;  %v4049_v24 = vld [vmem:[%s11045_s3 + $0xa48] sm:$0xff] }
 0x2fd   : > { %2740 = vmatpush.msrb.mxu2 %v4048_v0  ;;  %2751 = vmatpush.msrb.mxu3 %v4098_v48  ;;  %v4408_v35 = vld [vmem:[%s11045_s3 + $0x5a0] sm:$0xff]  ;;  %v4409_v0 = vld [vmem:[%s11045_s3 + $0x490] sm:$0xff] }
 0x2fe   : > { %2776 = vmatpush.msra.mxu0 %v3993_v63  ;;  %2796 = vmatpush.msra.mxu1 %v4025_v57  ;;  %v4410_v48 = vld [vmem:[%s11045_s3 + $0x590] sm:$0xff]  ;;  %v4047_v63 = vld [vmem:[%s11045_s3 + $0xa38] sm:$0xff]  ;;  %v9230_v57 = vld [vmem:[#allocation2 + $0x38] sm:$0xf] }
 0x2ff   : > { %2741 = vmatpush.msrb.mxu2 %v4046_v4  ;;  %2752 = vmatpush.msrb.mxu3 %v4096_v56  ;;  %v4103_v4 = vld [vmem:[%s11045_s3 + $0xbf8] sm:$0xff]  ;;  %v4411_v56 = vld [vmem:[%s11045_s3 + $0x480] sm:$0xff] }
 0x300   : > { %2777 = vmatpush.msra.mxu0 %v3991_v3  ;;  %2797 = vmatpush.msra.mxu1 %v4023_v2  ;;  %v4412_v3 = vld [vmem:[%s11045_s3 + $0x580] sm:$0xff]  ;;  %v4045_v2 = vld [vmem:[%s11045_s3 + $0xa28] sm:$0xff] }
 0x301   : > { %2742 = vmatpush.msrb.mxu2 %v4044_v11  ;;  %2552 = vmatmul.f32.vlgmr.msra.gmra.mxu3 %v1974_v44  ;;  %v4053_v44 = vld [vmem:[%s11045_s3 + $0xa68] sm:$0xff] }
 0x302   : > { %2778 = vmatpush.msra.mxu0 %v3989_v15  ;;  %2798 = vmatpush.msra.mxu1 %v4021_v14  ;;  %v4101_v11 = vld [vmem:[%s11045_s3 + $0xbe8] sm:$0xff]  ;;  %v4413_v15 = vld [vmem:[%s11045_s3 + $0x470] sm:$0xff] }
 0x303   : > { %2743 = vmatpush.msrb.mxu2 %v4042_v19  ;;  %2753 = vmatpush.msrb.mxu3 %v4094_v22  ;;  %v4414_v14 = vld [vmem:[%s11045_s3 + $0x570] sm:$0xff]  ;;  %v4043_v19 = vld [vmem:[%s11045_s3 + $0xa18] sm:$0xff] }
 0x304   : > { %2779 = vmatpush.msra.mxu0 %v3987_v12  ;;  %2799 = vmatpush.msra.mxu1 %v4019_v27  ;;  %v4099_v22 = vld [vmem:[%s11045_s3 + $0xbd8] sm:$0xff]  ;;  %v4415_v12 = vld [vmem:[%s11045_s3 + $0x460] sm:$0xff] }
 0x305   : > { %2744 = vmatpush.msrb.mxu2 %v4040_v45  ;;  %2754 = vmatpush.msrb.mxu3 %v4092_v16  ;;  %v4416_v27 = vld [vmem:[%s11045_s3 + $0x560] sm:$0xff]  ;;  %v4041_v45 = vld [vmem:[%s11045_s3 + $0xa08] sm:$0xff] }
 0x306   : > { %2745 = vmatmul.f32.vlgmr.msrb.gmra.mxu2 %v9090_v20  ;;  %2780 = vmatpush.msra.mxu0 %v3985_v23  ;;  %v4097_v16 = vld [vmem:[%s11045_s3 + $0xbc8] sm:$0xff]  ;;  %v4417_v23 = vld [vmem:[%s11045_s3 + $0x450] sm:$0xff] }
 0x307   : > { %2800 = vmatpush.msra.mxu1 %v4017_v46  ;;  %2809 = vmatpush.msra.mxu2 %v4071_v40  ;;  %v4418_v46 = vld [vmem:[%s11045_s3 + $0x550] sm:$0xff]  ;;  %v4095_v40 = vld [vmem:[%s11045_s3 + $0xbb8] sm:$0xff] }
 0x308   : > { %2781 = vmatpush.msra.mxu0 %v3983_v39  ;;  %2755 = vmatpush.msrb.mxu3 %v4090_v17  ;;  %v4419_v39 = vld [vmem:[%s11045_s3 + $0x440] sm:$0xff] }
 0x309   : > { %2801 = vmatpush.msra.mxu1 %v4015_v50  ;;  %2810 = vmatpush.msra.mxu2 %v4069_v37  ;;  %v4420_v17 = vld [vmem:[%s11045_s3 + $0x540] sm:$0xff]  ;;  %v4421_v50 = vld [vmem:[%s11045_s3 + $0x6f0] sm:$0xff]  ;;  %v4093_v37 = vld [vmem:[%s11045_s3 + $0xba8] sm:$0xff] }
 0x30a   : > { %2782 = vmatpush.msra.mxu0 %v3981_v47  ;;  %2756 = vmatpush.msrb.mxu3 %v4088_v51  ;;  %v4422_v47 = vld [vmem:[%s11045_s3 + $0x430] sm:$0xff] }
 0x30b   : > { %2802 = vmatpush.msra.mxu1 %v4013_v21  ;;  %2811 = vmatpush.msra.mxu2 %v4067_v52  ;;  %v4423_v51 = vld [vmem:[%s11045_s3 + $0x530] sm:$0xff]  ;;  %v4424_v21 = vld [vmem:[%s11045_s3 + $0x6e0] sm:$0xff]  ;;  %v4091_v52 = vld [vmem:[%s11045_s3 + $0xb98] sm:$0xff] }
 0x30c   : > { %2783 = vmatpush.msra.mxu0 %v3979_v26  ;;  %2757 = vmatpush.msrb.mxu3 %v4086_v10  ;;  %v4425_v26 = vld [vmem:[%s11045_s3 + $0x420] sm:$0xff] }
 0x30d   : > { %2803 = vmatpush.msra.mxu1 %v4011_v59  ;;  %2812 = vmatpush.msra.mxu2 %v4065_v61  ;;  %v4426_v10 = vld [vmem:[%s11045_s3 + $0x520] sm:$0xff]  ;;  %v4427_v59 = vld [vmem:[%s11045_s3 + $0x6d0] sm:$0xff]  ;;  %v4089_v61 = vld [vmem:[%s11045_s3 + $0xb88] sm:$0xff] }
 0x30e   : > { %2784 = vmatpush.msra.mxu0 %v3977_v62  ;;  %2758 = vmatpush.msrb.mxu3 %v4084_v6  ;;  %v4428_v62 = vld [vmem:[%s11045_s3 + $0x410] sm:$0xff] }
 0x30f   : > { %2804 = vmatpush.msra.mxu1 %v9138_v7  ;;  %2813 = vmatpush.msra.mxu2 %v4063_v18  ;;  %v4429_v6 = vld [vmem:[%s11045_s3 + $0x510] sm:$0xff]  ;;  %v4430_v18 = vld [vmem:[%s11045_s3 + $0x6c0] sm:$0xff] }
 0x310   : > { %2785 = vmatmul.f32.vlgmr.msra.gmra.mxu0 %v8955_v54  ;;  %2805 = vmatmul.f32.vlgmr.msra.gmra.mxu1 %v8963_v1 }
 0x311   : > { %2864 = vmatpush.msrb.mxu0 %v4397_v32  ;;  %2884 = vmatpush.msrb.mxu1 %v4398_v25  ;;  %v4433_v32 = vld [vmem:[%s11045_s3 + $0x6b0] sm:$0xff]  ;;  %v9336_v25 = vld [vmem:[#allocation2 + $0x60] sm:$0xf] }
 0x312   : > { %2814 = vmatpush.msra.mxu2 %v4061_v53  ;;  %2759 = vmatpush.msrb.mxu3 %v4082_v30  ;;  %v4431_v53 = vld [vmem:[%s11045_s3 + $0x400] sm:$0xff] }
 0x313   : > { %2865 = vmatpush.msrb.mxu0 %v4399_v9  ;;  %2885 = vmatpush.msrb.mxu1 %v4400_v33  ;;  %v4432_v30 = vld [vmem:[%s11045_s3 + $0x500] sm:$0xff]  ;;  %v4434_v9 = vld [vmem:[%s11045_s3 + $0x4f8] sm:$0xff] }
 0x314   : > { %2815 = vmatpush.msra.mxu2 %v4059_v5  ;;  %2760 = vmatpush.msrb.mxu3 %v4080_v29  ;;  %v9338_v5 = vld [vmem:[#allocation2 + $0x70] sm:$0xf] }
 0x315   : > { %2866 = vmatpush.msrb.mxu0 %v4401_v13  ;;  %2886 = vmatpush.msrb.mxu1 %v4402_v38  ;;  %v4087_v29 = vld [vmem:[%s11045_s3 + $0xb78] sm:$0xff]  ;;  %v4437_v13 = vld [vmem:[%s11045_s3 + $0x4e8] sm:$0xff] }
 0x316   : > { %2816 = vmatpush.msra.mxu2 %v4057_v28  ;;  %2761 = vmatpush.msrb.mxu3 %v4078_v31  ;;  %v4435_v33 = vld [vmem:[%s11045_s3 + $0x5f8] sm:$0xff]  ;;  %v9354_v28 = vld [vmem:[%s11045_s3 + $0xb68] sm:$0xff]  ;;  %v4436_v31 = vld [vmem:[%s11045_s3 + $0x6a0] sm:$0xff] }
 0x317   : > { %2867 = vmatpush.msrb.mxu0 %v4403_v41  ;;  %2887 = vmatpush.msrb.mxu1 %v4404_v55  ;;  %v4438_v38 = vld [vmem:[%s11045_s3 + $0x5e8] sm:$0xff]  ;;  %v4440_v41 = vld [vmem:[%s11045_s3 + $0x4d8] sm:$0xff] }
 0x318   : > { %2817 = vmatpush.msra.mxu2 %v4055_v49  ;;  %2762 = vmatpush.msrb.mxu3 %v4076_v36  ;;  %v9368_v49 = vld [vmem:[%s11045_s3 + $0xb58] sm:$0xff]  ;;  %v4439_v36 = vld [vmem:[%s11045_s3 + $0x690] sm:$0xff] }
 0x319   : > { %2868 = vmatpush.msrb.mxu0 %v4405_v42  ;;  %2888 = vmatpush.msrb.mxu1 %v4406_v34  ;;  %v4441_v55 = vld [vmem:[%s11045_s3 + $0x5d8] sm:$0xff]  ;;  %v4443_v42 = vld [vmem:[%s11045_s3 + $0x4c8] sm:$0xff] }
 0x31a   : > { %2818 = vmatpush.msra.mxu2 %v4053_v44  ;;  %2763 = vmatpush.msrb.mxu3 %v4074_v60  ;;  %v9383_v44 = vld [vmem:[%s11045_s3 + $0xb48] sm:$0xff]  ;;  %v4442_v60 = vld [vmem:[%s11045_s3 + $0x680] sm:$0xff] }
 0x31b   : > { %2869 = vmatpush.msrb.mxu0 %v4407_v8  ;;  %2889 = vmatpush.msrb.mxu1 %v4408_v35  ;;  %v4444_v34 = vld [vmem:[%s11045_s3 + $0x5c8] sm:$0xff]  ;;  %v4446_v8 = vld [vmem:[%s11045_s3 + $0x4b8] sm:$0xff] }
 0x31c   : > { %2819 = vmatpush.msra.mxu2 %v4051_v43  ;;  %2764 = vmatpush.msrb.mxu3 %v4072_v58  ;;  %v9398_v43 = vld [vmem:[%s11045_s3 + $0xb38] sm:$0xff]  ;;  %v4445_v58 = vld [vmem:[%s11045_s3 + $0x670] sm:$0xff] }
 0x31d   : > { %2870 = vmatpush.msrb.mxu0 %v4409_v0  ;;  %2890 = vmatpush.msrb.mxu1 %v4410_v48  ;;  %v4447_v35 = vld [vmem:[%s11045_s3 + $0x5b8] sm:$0xff]  ;;  %v4448_v0 = vld [vmem:[%s11045_s3 + $0x660] sm:$0xff]  ;;  %v4449_v48 = vld [vmem:[%s11045_s3 + $0x4a8] sm:$0xff] }
 0x31e   : > { %2820 = vmatpush.msra.mxu2 %v4049_v24  ;;  %2765 = vmatmul.f32.vlgmr.msrb.gmra.mxu3 %v9230_v57  ;;  %v9413_v24 = vld [vmem:[%s11045_s3 + $0xb28] sm:$0xff] }
 0x31f   : > { %2871 = vmatpush.msrb.mxu0 %v4411_v56  ;;  %2891 = vmatpush.msrb.mxu1 %v4412_v3  ;;  %v4451_v56 = vld [vmem:[%s11045_s3 + $0x650] sm:$0xff]  ;;  %v4452_v3 = vld [vmem:[%s11045_s3 + $0x498] sm:$0xff] }
 0x320   : > { %2821 = vmatpush.msra.mxu2 %v4047_v63  ;;  %2829 = vmatpush.msra.mxu3 %v4103_v4  ;;  %v4450_v63 = vld [vmem:[%s11045_s3 + $0x5a8] sm:$0xff]  ;;  %v9428_v4 = vld [vmem:[%s11045_s3 + $0xb18] sm:$0xff] }
 0x321   : > { %2872 = vmatpush.msrb.mxu0 %v4413_v15  ;;  %2892 = vmatpush.msrb.mxu1 %v4414_v14  ;;  %v4454_v15 = vld [vmem:[%s11045_s3 + $0x640] sm:$0xff]  ;;  %v4455_v14 = vld [vmem:[%s11045_s3 + $0x488] sm:$0xff] }
 0x322   : > { %2822 = vmatpush.msra.mxu2 %v4045_v2  ;;  %2830 = vmatpush.msra.mxu3 %v4101_v11  ;;  %v4453_v2 = vld [vmem:[%s11045_s3 + $0x598] sm:$0xff]  ;;  %v9443_v11 = vld [vmem:[%s11045_s3 + $0xb08] sm:$0xff] }
 0x323   : > { %2873 = vmatpush.msrb.mxu0 %v4415_v12  ;;  %2893 = vmatpush.msrb.mxu1 %v4416_v27  ;;  %v4458_v12 = vld [vmem:[%s11045_s3 + $0x478] sm:$0xff] }
 0x324   : > { %2823 = vmatpush.msra.mxu2 %v4043_v19  ;;  %2831 = vmatpush.msra.mxu3 %v4099_v22  ;;  %v4456_v19 = vld [vmem:[%s11045_s3 + $0x588] sm:$0xff]  ;;  %v4457_v22 = vld [vmem:[%s11045_s3 + $0x630] sm:$0xff]  ;;  %v4459_v27 = vld [vmem:[%s11045_s3 + $0x578] sm:$0xff] }
 0x325   : > { %2874 = vmatpush.msrb.mxu0 %v4417_v23  ;;  %2894 = vmatpush.msrb.mxu1 %v4418_v46  ;;  %v4462_v23 = vld [vmem:[%s11045_s3 + $0x468] sm:$0xff] }
 0x326   : > { %2824 = vmatpush.msra.mxu2 %v4041_v45  ;;  %2832 = vmatpush.msra.mxu3 %v4097_v16  ;;  %v4460_v45 = vld [vmem:[%s11045_s3 + $0x620] sm:$0xff]  ;;  %v4461_v16 = vld [vmem:[%s11045_s3 + $0x7f0] sm:$0xff]  ;;  %v4463_v46 = vld [vmem:[%s11045_s3 + $0x568] sm:$0xff] }
 0x327   : > { %2825 = vmatmul.f32.vlgmr.msra.gmra.mxu2 %v9090_v20  ;;  %2875 = vmatpush.msrb.mxu0 %v4419_v39  ;;  %v4465_v39 = vld [vmem:[%s11045_s3 + $0x7e0] sm:$0xff] }
 0x328   : > { %2895 = vmatpush.msrb.mxu1 %v4420_v17  ;;  %2904 = vmatpush.msrb.mxu2 %v4421_v50  ;;  %v4466_v17 = vld [vmem:[%s11045_s3 + $0x458] sm:$0xff] }
 0x329   : > { %2876 = vmatpush.msrb.mxu0 %v4422_v47  ;;  %2833 = vmatpush.msra.mxu3 %v4095_v40  ;;  %v4464_v40 = vld [vmem:[%s11045_s3 + $0x610] sm:$0xff]  ;;  %v4467_v50 = vld [vmem:[%s11045_s3 + $0x558] sm:$0xff]  ;;  %v9493_v47 = vld [vmem:[#allocation2 + $0x78] sm:$0xf] }
 0x32a   : > { %2896 = vmatpush.msrb.mxu1 %v4423_v51  ;;  %2905 = vmatpush.msrb.mxu2 %v4424_v21  ;;  %v4469_v51 = vld [vmem:[%s11045_s3 + $0x7d0] sm:$0xff]  ;;  %v4470_v21 = vld [vmem:[%s11045_s3 + $0x448] sm:$0xff] }
 0x32b   : > { %2877 = vmatpush.msrb.mxu0 %v4425_v26  ;;  %2834 = vmatpush.msra.mxu3 %v4093_v37  ;;  %v4468_v37 = vld [vmem:[%s11045_s3 + $0x600] sm:$0xff]  ;;  %v4472_v26 = vld [vmem:[%s11045_s3 + $0x6f8] sm:$0xff] }
 0x32c   : > { %2897 = vmatpush.msrb.mxu1 %v4426_v10  ;;  %2906 = vmatpush.msrb.mxu2 %v4427_v59  ;;  %v4473_v10 = vld [vmem:[%s11045_s3 + $0x7c0] sm:$0xff]  ;;  %v4474_v59 = vld [vmem:[%s11045_s3 + $0x438] sm:$0xff] }
 0x32d   : > { %2878 = vmatpush.msrb.mxu0 %v4428_v62  ;;  %2835 = vmatpush.msra.mxu3 %v4091_v52  ;;  %v4471_v52 = vld [vmem:[%s11045_s3 + $0x548] sm:$0xff] }
 0x32e   : > { %2898 = vmatpush.msrb.mxu1 %v4429_v6  ;;  %2907 = vmatpush.msrb.mxu2 %v4430_v18  ;;  %v4476_v62 = vld [vmem:[%s11045_s3 + $0x6e8] sm:$0xff]  ;;  %v4477_v6 = vld [vmem:[%s11045_s3 + $0x7b0] sm:$0xff] }
 0x32f   : > { %2879 = vmatpush.msrb.mxu0 %v4431_v53  ;;  %2836 = vmatpush.msra.mxu3 %v4089_v61  ;;  %v4475_v61 = vld [vmem:[%s11045_s3 + $0x538] sm:$0xff]  ;;  %v4478_v18 = vld [vmem:[%s11045_s3 + $0x428] sm:$0xff] }
 0x330   : > { %2899 = vmatpush.msrb.mxu1 %v4432_v30  ;;  %2908 = vmatpush.msrb.mxu2 %v4433_v32  ;;  %v4479_v53 = vld [vmem:[%s11045_s3 + $0x528] sm:$0xff]  ;;  %v4480_v30 = vld [vmem:[%s11045_s3 + $0x6d8] sm:$0xff]  ;;  %v4481_v32 = vld [vmem:[%s11045_s3 + $0x7a0] sm:$0xff] }
 0x331   : > { %2880 = vmatmul.f32.vlgmr.msrb.gmra.mxu0 %v9336_v25  ;;  %2900 = vmatmul.f32.vlgmr.msrb.gmra.mxu1 %v9338_v5 }
 0x332   : > { %2944 = vmatpush.msra.mxu0 %v4434_v9  ;;  %2964 = vmatpush.msra.mxu1 %v4435_v33  ;;  %v4483_v9 = vld [vmem:[%s11045_s3 + $0x518] sm:$0xff]  ;;  %v4484_v33 = vld [vmem:[%s11045_s3 + $0x6c8] sm:$0xff] }
 0x333   : > { %2909 = vmatpush.msrb.mxu2 %v4436_v31  ;;  %2837 = vmatpush.msra.mxu3 %v4087_v29  ;;  %v4482_v29 = vld [vmem:[%s11045_s3 + $0x418] sm:$0xff]  ;;  %v4485_v31 = vld [vmem:[%s11045_s3 + $0x790] sm:$0xff] }
 0x334   : > { %2945 = vmatpush.msra.mxu0 %v4437_v13  ;;  %2965 = vmatpush.msra.mxu1 %v4438_v38  ;;  %v4486_v13 = vld [vmem:[%s11045_s3 + $0x408] sm:$0xff] }
 0x335   : > { %2910 = vmatpush.msrb.mxu2 %v4439_v36  ;;  %2838 = vmatpush.msra.mxu3 %v9354_v28  ;;  %v4487_v38 = vld [vmem:[%s11045_s3 + $0x508] sm:$0xff]  ;;  %v4488_v36 = vld [vmem:[%s11045_s3 + $0x6b8] sm:$0xff] }
 0x336   : > { %2946 = vmatpush.msra.mxu0 %v4440_v41  ;;  %2966 = vmatpush.msra.mxu1 %v4441_v55  ;;  %v4489_v41 = vld [vmem:[%s11045_s3 + $0x780] sm:$0xff]  ;;  %v4490_v55 = vld [vmem:[%s11045_s3 + $0xf0] sm:$0xff] }
 0x337   : > { %2911 = vmatpush.msrb.mxu2 %v4442_v60  ;;  %2839 = vmatpush.msra.mxu3 %v9368_v49  ;;  %v4491_v60 = vld [vmem:[%s11045_s3 + $0x1f0] sm:$0xff] }
 0x338   : > { %2947 = vmatpush.msra.mxu0 %v4443_v42  ;;  %2967 = vmatpush.msra.mxu1 %v4444_v34  ;;  %v4492_v42 = vld [vmem:[%s11045_s3 + $0x6a8] sm:$0xff]  ;;  %v4495_v34 = vld [vmem:[%s11045_s3 + $0x1e0] sm:$0xff] }
 0x339   : > { %2912 = vmatpush.msrb.mxu2 %v4445_v58  ;;  %2840 = vmatpush.msra.mxu3 %v9383_v44  ;;  %v4496_v58 = vld [vmem:[%s11045_s3 + $0x698] sm:$0xff] }
 0x33a   : > { %2948 = vmatpush.msra.mxu0 %v4446_v8  ;;  %2968 = vmatpush.msra.mxu1 %v4447_v35  ;;  %v4497_v8 = vld [vmem:[%s11045_s3 + $0x760] sm:$0xff]  ;;  %v4498_v35 = vld [vmem:[%s11045_s3 + $0xd0] sm:$0xff] }
 0x33b   : > { %2913 = vmatpush.msrb.mxu2 %v4448_v0  ;;  %2841 = vmatpush.msra.mxu3 %v9398_v43  ;;  %v4499_v0 = vld [vmem:[%s11045_s3 + $0x1d0] sm:$0xff] }
 0x33c   : > { %2949 = vmatpush.msra.mxu0 %v4449_v48  ;;  %2969 = vmatpush.msra.mxu1 %v4450_v63  ;;  %v4500_v48 = vld [vmem:[%s11045_s3 + $0x688] sm:$0xff]  ;;  %v4501_v63 = vld [vmem:[%s11045_s3 + $0x750] sm:$0xff] }
 0x33d   : > { %2914 = vmatpush.msrb.mxu2 %v4451_v56  ;;  %2842 = vmatpush.msra.mxu3 %v9413_v24  ;;  %v4502_v56 = vld [vmem:[%s11045_s3 + $0xc0] sm:$0xff] }
 0x33e   : > { %2950 = vmatpush.msra.mxu0 %v4452_v3  ;;  %2970 = vmatpush.msra.mxu1 %v4453_v2  ;;  %v4503_v3 = vld [vmem:[%s11045_s3 + $0x1c0] sm:$0xff]  ;;  %v4504_v2 = vld [vmem:[%s11045_s3 + $0x678] sm:$0xff] }
 0x33f   : > { %2915 = vmatpush.msrb.mxu2 %v4454_v15  ;;  %2843 = vmatpush.msra.mxu3 %v9428_v4  ;;  %v4505_v15 = vld [vmem:[%s11045_s3 + $0x740] sm:$0xff] }
 0x340   : > { %2951 = vmatpush.msra.mxu0 %v4455_v14  ;;  %2971 = vmatpush.msra.mxu1 %v4456_v19  ;;  %v4506_v14 = vld [vmem:[%s11045_s3 + $0xb0] sm:$0xff] }
 0x341   : > { %2916 = vmatpush.msrb.mxu2 %v4457_v22  ;;  %2844 = vmatpush.msra.mxu3 %v9443_v11  ;;  %v4507_v19 = vld [vmem:[%s11045_s3 + $0x1b0] sm:$0xff]  ;;  %v4508_v22 = vld [vmem:[%s11045_s3 + $0x668] sm:$0xff] }
 0x342   : > { %2952 = vmatpush.msra.mxu0 %v4458_v12  ;;  %2972 = vmatpush.msra.mxu1 %v4459_v27  ;;  %v4509_v12 = vld [vmem:[%s11045_s3 + $0x730] sm:$0xff]  ;;  %v4510_v27 = vld [vmem:[%s11045_s3 + $0xa0] sm:$0xff] }
 0x343   : > { %2845 = vmatmul.f32.vlgmr.msra.gmra.mxu3 %v9230_v57  ;;  %2917 = vmatpush.msrb.mxu2 %v4460_v45  ;;  %v4511_v45 = vld [vmem:[%s11045_s3 + $0x1a0] sm:$0xff] }
 0x344   : > { %2924 = vmatpush.msrb.mxu3 %v4461_v16  ;;  %2953 = vmatpush.msra.mxu0 %v4462_v23  ;;  %v4512_v16 = vld [vmem:[%s11045_s3 + $0x658] sm:$0xff]  ;;  %v4513_v23 = vld [vmem:[%s11045_s3 + $0x720] sm:$0xff] }
 0x345   : > { %2973 = vmatpush.msra.mxu1 %v4463_v46  ;;  %2918 = vmatpush.msrb.mxu2 %v4464_v40  ;;  %v4514_v46 = vld [vmem:[%s11045_s3 + $0x90] sm:$0xff] }
 0x346   : > { %2925 = vmatpush.msrb.mxu3 %v4465_v39  ;;  %2954 = vmatpush.msra.mxu0 %v4466_v17  ;;  %v4515_v40 = vld [vmem:[%s11045_s3 + $0x190] sm:$0xff]  ;;  %v4516_v39 = vld [vmem:[%s11045_s3 + $0x648] sm:$0xff] }
 0x347   : > { %2974 = vmatpush.msra.mxu1 %v4467_v50  ;;  %2919 = vmatpush.msrb.mxu2 %v4468_v37  ;;  %v4517_v17 = vld [vmem:[%s11045_s3 + $0x710] sm:$0xff]  ;;  %v4518_v50 = vld [vmem:[%s11045_s3 + $0x80] sm:$0xff] }
 0x348   : > { %2926 = vmatpush.msrb.mxu3 %v4469_v51  ;;  %2920 = vmatmul.f32.vlgmr.msrb.gmra.mxu2 %v9493_v47  ;;  %v4519_v37 = vld [vmem:[%s11045_s3 + $0x180] sm:$0xff]  ;;  %v4520_v51 = vld [vmem:[%s11045_s3 + $0x638] sm:$0xff] }
 0x349   : > { %2955 = vmatpush.msra.mxu0 %v4470_v21  ;;  %2975 = vmatpush.msra.mxu1 %v4471_v52  ;;  %v4521_v21 = vld [vmem:[%s11045_s3 + $0x700] sm:$0xff]  ;;  %v4522_v52 = vld [vmem:[%s11045_s3 + $0x70] sm:$0xff] }
 0x34a   : > { %2984 = vmatpush.msra.mxu2 %v4472_v26  ;;  %2927 = vmatpush.msrb.mxu3 %v4473_v10  ;;  %v4523_v26 = vld [vmem:[%s11045_s3 + $0x170] sm:$0xff] }
 0x34b   : > { %2956 = vmatpush.msra.mxu0 %v4474_v59  ;;  %2976 = vmatpush.msra.mxu1 %v4475_v61  ;;  %v9663_v10 = vld [vmem:[#allocation2 + $0x28] sm:$0xf]  ;;  %v4524_v59 = vld [vmem:[%s11045_s3 + $0x628] sm:$0xff]  ;;  %v4525_v61 = vld [vmem:[%s11045_s3 + $0x7f8] sm:$0xff] }
 0x34c   : > { %2985 = vmatpush.msra.mxu2 %v4476_v62  ;;  %2928 = vmatpush.msrb.mxu3 %v4477_v6  ;;  %v4526_v62 = vld [vmem:[%s11045_s3 + $0x60] sm:$0xff] }
 0x34d   : > { %2957 = vmatpush.msra.mxu0 %v4478_v18  ;;  %2977 = vmatpush.msra.mxu1 %v4479_v53  ;;  %v4527_v6 = vld [vmem:[%s11045_s3 + $0x160] sm:$0xff]  ;;  %v4528_v18 = vld [vmem:[%s11045_s3 + $0x618] sm:$0xff]  ;;  %v4529_v53 = vld [vmem:[%s11045_s3 + $0x7e8] sm:$0xff] }
 0x34e   : > { %2986 = vmatpush.msra.mxu2 %v4480_v30  ;;  %2929 = vmatpush.msrb.mxu3 %v4481_v32  ;;  %v4530_v30 = vld [vmem:[%s11045_s3 + $0x50] sm:$0xff] }
 0x34f   : > { %2958 = vmatpush.msra.mxu0 %v4482_v29  ;;  %2978 = vmatpush.msra.mxu1 %v4483_v9  ;;  %v4531_v32 = vld [vmem:[%s11045_s3 + $0x150] sm:$0xff]  ;;  %v4532_v29 = vld [vmem:[%s11045_s3 + $0x608] sm:$0xff]  ;;  %v4533_v9 = vld [vmem:[%s11045_s3 + $0x7d8] sm:$0xff] }
 0x350   : > { %2987 = vmatpush.msra.mxu2 %v4484_v33  ;;  %2930 = vmatpush.msrb.mxu3 %v4485_v31  ;;  %v4534_v33 = vld [vmem:[%s11045_s3 + $0x40] sm:$0xff] }
 0x351   : > { %2959 = vmatpush.msra.mxu0 %v4486_v13  ;;  %2979 = vmatpush.msra.mxu1 %v4487_v38  ;;  %v4535_v31 = vld [vmem:[%s11045_s3 + $0x140] sm:$0xff]  ;;  %v4536_v13 = vld [vmem:[%s11045_s3 + $0x2f0] sm:$0xff]  ;;  %v4537_v38 = vld [vmem:[%s11045_s3 + $0x7c8] sm:$0xff] }
 0x352   : > { %2988 = vmatpush.msra.mxu2 %v4488_v36  ;;  %2931 = vmatpush.msrb.mxu3 %v4489_v41  ;;  %v4539_v36 = vld [vmem:[%s11045_s3 + $0x130] sm:$0xff]  ;;  %v4540_v41 = vld [vmem:[%s11045_s3 + $0x2e0] sm:$0xff] }
 0x353   : > { %2960 = vmatmul.f32.vlgmr.msra.gmra.mxu0 %v9336_v25  ;;  %2980 = vmatmul.f32.vlgmr.msra.gmra.mxu1 %v9338_v5  ;;  %v4493_v25 = vld [vmem:[%s11045_s3 + $0x770] sm:$0xff]  ;;  %v4494_v5 = vld [vmem:[%s11045_s3 + $0xe0] sm:$0xff] }
 0x354   : > { %3024 = vmatpush.msrb.mxu0 %v4490_v55  ;;  %3044 = vmatpush.msrb.mxu1 %v4491_v60  ;;  %v4541_v55 = vld [vmem:[%s11045_s3 + $0x7b8] sm:$0xff]  ;;  %v4542_v60 = vld [vmem:[%s11045_s3 + $0x20] sm:$0xff] }
 0x355   : > { %2989 = vmatpush.msra.mxu2 %v4492_v42  ;;  %2932 = vmatpush.msrb.mxu3 %v4493_v25  ;;  %v4543_v42 = vld [vmem:[%s11045_s3 + $0x120] sm:$0xff]  ;;  %v4544_v25 = vld [vmem:[%s11045_s3 + $0x2d0] sm:$0xff] }
 0x356   : > { %3025 = vmatpush.msrb.mxu0 %v4494_v5  ;;  %3045 = vmatpush.msrb.mxu1 %v4495_v34  ;;  %v4545_v5 = vld [vmem:[%s11045_s3 + $0x7a8] sm:$0xff]  ;;  %v4546_v34 = vld [vmem:[%s11045_s3 + $0x10] sm:$0xff] }
 0x357   : > { %2990 = vmatpush.msra.mxu2 %v4496_v58  ;;  %2933 = vmatpush.msrb.mxu3 %v4497_v8  ;;  %v4547_v58 = vld [vmem:[%s11045_s3 + $0x110] sm:$0xff]  ;;  %v4548_v8 = vld [vmem:[%s11045_s3 + $0x2c0] sm:$0xff] }
 0x358   : > { %3026 = vmatpush.msrb.mxu0 %v4498_v35  ;;  %3046 = vmatpush.msrb.mxu1 %v4499_v0  ;;  %v4549_v35 = vld [vmem:[%s11045_s3 + $0x798] sm:$0xff]  ;;  %v4550_v0 = vld [vmem:[%s11045_s3] sm:$0xff] }
 0x359   : > { %2991 = vmatpush.msra.mxu2 %v4500_v48  ;;  %2934 = vmatpush.msrb.mxu3 %v4501_v63  ;;  %v4551_v48 = vld [vmem:[%s11045_s3 + $0x100] sm:$0xff]  ;;  %v4552_v63 = vld [vmem:[%s11045_s3 + $0x2b0] sm:$0xff] }
 0x35a   : > { %3027 = vmatpush.msrb.mxu0 %v4502_v56  ;;  %3047 = vmatpush.msrb.mxu1 %v4503_v3  ;;  %v4553_v56 = vld [vmem:[%s11045_s3 + $0x788] sm:$0xff]  ;;  %v4554_v3 = vld [vmem:[%s11045_s3 + $0xf8] sm:$0xff] }
 0x35b   : > { %2992 = vmatpush.msra.mxu2 %v4504_v2  ;;  %2935 = vmatpush.msrb.mxu3 %v4505_v15  ;;  %v4555_v2 = vld [vmem:[%s11045_s3 + $0x1f8] sm:$0xff]  ;;  %v4556_v15 = vld [vmem:[%s11045_s3 + $0x2a0] sm:$0xff] }
 0x35c   : > { %3028 = vmatpush.msrb.mxu0 %v4506_v14  ;;  %3048 = vmatpush.msrb.mxu1 %v4507_v19  ;;  %v4557_v14 = vld [vmem:[%s11045_s3 + $0x778] sm:$0xff]  ;;  %v4558_v19 = vld [vmem:[%s11045_s3 + $0xe8] sm:$0xff] }
 0x35d   : > { %2993 = vmatpush.msra.mxu2 %v4508_v22  ;;  %2936 = vmatpush.msrb.mxu3 %v4509_v12  ;;  %v4559_v22 = vld [vmem:[%s11045_s3 + $0x1e8] sm:$0xff]  ;;  %v4560_v12 = vld [vmem:[%s11045_s3 + $0x290] sm:$0xff] }
 0x35e   : > { %3029 = vmatpush.msrb.mxu0 %v4510_v27  ;;  %3049 = vmatpush.msrb.mxu1 %v4511_v45  ;;  %v4561_v27 = vld [vmem:[%s11045_s3 + $0x768] sm:$0xff]  ;;  %v9783_v45 = vpop.f32.mrf.mxu0 }
 0x35f   : > { %2994 = vmatpush.msra.mxu2 %v4512_v16  ;;  %2937 = vmatpush.msrb.mxu3 %v4513_v23  ;;  %v4562_v16 = vld [vmem:[%s11045_s3 + $0xd8] sm:$0xff] }
 0x360   : > { %3030 = vmatpush.msrb.mxu0 %v4514_v46  ;;  %3050 = vmatpush.msrb.mxu1 %v4515_v40  ;;  %v4563_v23 = vld [vmem:[%s11045_s3 + $0x1d8] sm:$0xff]  ;;  %v9791_v46 = vpop.f32.mrf.mxu1  ;;  %v9793_v40 = vpop.f32.mrf.mxu2 }
 0x361   : > { %2995 = vmatpush.msra.mxu2 %v4516_v39  ;;  %2938 = vmatpush.msrb.mxu3 %v4517_v17  ;;  %v4564_v39 = vld [vmem:[%s11045_s3 + $0x280] sm:$0xff]  ;;  %v4565_v17 = vld [vmem:[%s11045_s3 + $0x758] sm:$0xff] }
 0x362   : > { %3031 = vmatpush.msrb.mxu0 %v4518_v50  ;;  %3051 = vmatpush.msrb.mxu1 %v4519_v37  ;;  %v4566_v50 = vld [vmem:[%s11045_s3 + $0xc8] sm:$0xff] }
 0x363   : > { %2996 = vmatpush.msra.mxu2 %v4520_v51  ;;  %2939 = vmatpush.msrb.mxu3 %v4521_v21  ;;  %v4567_v37 = vld [vmem:[%s11045_s3 + $0x1c8] sm:$0xff]  ;;  %v4568_v51 = vld [vmem:[%s11045_s3 + $0x270] sm:$0xff] }
 0x364   : > { %3032 = vmatpush.msrb.mxu0 %v4522_v52  ;;  %3052 = vmatpush.msrb.mxu1 %v4523_v26  ;;  %v4569_v21 = vld [vmem:[%s11045_s3 + $0x748] sm:$0xff]  ;;  %v4570_v52 = vld [vmem:[%s11045_s3 + $0xb8] sm:$0xff] }
 0x365   : > { %2940 = vmatmul.f32.vlgmr.msrb.gmra.mxu3 %v9663_v10  ;;  %2997 = vmatpush.msra.mxu2 %v4524_v59  ;;  %v4571_v26 = vld [vmem:[%s11045_s3 + $0x1b8] sm:$0xff]  ;;  %v9819_v59 = vpop.f32.mrf.mxu3 }
 0x366   : > { %3004 = vmatpush.msra.mxu3 %v4525_v61  ;;  %3033 = vmatpush.msrb.mxu0 %v4526_v62  ;;  %v4572_v61 = vld [vmem:[%s11045_s3 + $0x260] sm:$0xff]  ;;  %v4573_v62 = vld [vmem:[%s11045_s3 + $0x738] sm:$0xff] }
 0x367   : > { %3053 = vmatpush.msrb.mxu1 %v4527_v6  ;;  %2998 = vmatpush.msra.mxu2 %v4528_v18  ;;  %v4574_v6 = vld [vmem:[%s11045_s3 + $0xa8] sm:$0xff] }
 0x368   : > { %3005 = vmatpush.msra.mxu3 %v4529_v53  ;;  %3034 = vmatpush.msrb.mxu0 %v4530_v30  ;;  %v4575_v18 = vld [vmem:[%s11045_s3 + $0x1a8] sm:$0xff]  ;;  %v4576_v53 = vld [vmem:[%s11045_s3 + $0x250] sm:$0xff] }
 0x369   : > { %3054 = vmatpush.msrb.mxu1 %v4531_v32  ;;  %2999 = vmatpush.msra.mxu2 %v4532_v29  ;;  %v4577_v30 = vld [vmem:[%s11045_s3 + $0x728] sm:$0xff]  ;;  %v9839_v32 = vpop.f32.mrf.mxu0  ;;  %v4578_v29 = vld [vmem:[%s11045_s3 + $0x98] sm:$0xff] }
 0x36a   : > { %3006 = vmatpush.msra.mxu3 %v4533_v9  ;;  %3000 = vmatmul.f32.vlgmr.msra.gmra.mxu2 %v9493_v47  ;;  %v4538_v47 = vld [vmem:[%s11045_s3 + $0x30] sm:$0xff]  ;;  %v4579_v9 = vld [vmem:[%s11045_s3 + $0x198] sm:$0xff] }
 0x36b   : > { %3035 = vmatpush.msrb.mxu0 %v4534_v33  ;;  %3055 = vmatpush.msrb.mxu1 %v4535_v31  ;;  %v9847_v33 = vpop.f32.mrf.mxu1  ;;  %v9849_v31 = vpop.f32.mrf.mxu2 }
 0x36c   : > { %3064 = vmatpush.msrb.mxu2 %v4536_v13  ;;  %3007 = vmatpush.msra.mxu3 %v4537_v38  ;;  %v4580_v13 = vld [vmem:[%s11045_s3 + $0x240] sm:$0xff]  ;;  %v4581_v38 = vld [vmem:[%s11045_s3 + $0x718] sm:$0xff] }
 0x36d   : > { %3036 = vmatpush.msrb.mxu0 %v4538_v47  ;;  %3056 = vmatpush.msrb.mxu1 %v4539_v36  ;;  %v4582_v47 = vld [vmem:[%s11045_s3 + $0x88] sm:$0xff] }
 0x36e   : > { %3065 = vmatpush.msrb.mxu2 %v4540_v41  ;;  %3008 = vmatpush.msra.mxu3 %v4541_v55  ;;  %v4583_v36 = vld [vmem:[%s11045_s3 + $0x188] sm:$0xff]  ;;  %v4584_v41 = vld [vmem:[%s11045_s3 + $0x230] sm:$0xff] }
 0x36f   : > { %3037 = vmatpush.msrb.mxu0 %v4542_v60  ;;  %3057 = vmatpush.msrb.mxu1 %v4543_v42  ;;  %v4585_v55 = vld [vmem:[%s11045_s3 + $0x708] sm:$0xff]  ;;  %v4586_v60 = vld [vmem:[%s11045_s3 + $0x78] sm:$0xff] }
 0x370   : > { %3066 = vmatpush.msrb.mxu2 %v4544_v25  ;;  %3009 = vmatpush.msra.mxu3 %v4545_v5  ;;  %v4587_v42 = vld [vmem:[%s11045_s3 + $0x178] sm:$0xff]  ;;  %v9875_v25 = vpop.f32.mrf.mxu3  ;;  %v4588_v5 = vld [vmem:[%s11045_s3 + $0x220] sm:$0xff] }
 0x371   : > { %3038 = vmatpush.msrb.mxu0 %v4546_v34  ;;  %3058 = vmatpush.msrb.mxu1 %v4547_v58  ;;  %v4589_v34 = vld [vmem:[%s11045_s3 + $0x3f0] sm:$0xff]  ;;  %v4590_v58 = vld [vmem:[%s11045_s3 + $0x68] sm:$0xff] }
 0x372   : > { %3067 = vmatpush.msrb.mxu2 %v4548_v8  ;;  %3010 = vmatpush.msra.mxu3 %v4549_v35  ;;  %v4591_v8 = vld [vmem:[%s11045_s3 + $0x168] sm:$0xff]  ;;  %v9893_v35 = vpop.f32.mrf.mxu0 }
 0x373   : > { %3039 = vmatpush.msrb.mxu0 %v4550_v0  ;;  %3059 = vmatpush.msrb.mxu1 %v4551_v48  ;;  %v4593_v0 = vld [vmem:[%s11045_s3 + $0x3e0] sm:$0xff]  ;;  %v4594_v48 = vld [vmem:[%s11045_s3 + $0x58] sm:$0xff] }
 0x374   : > { %3068 = vmatpush.msrb.mxu2 %v4552_v63  ;;  %3011 = vmatpush.msra.mxu3 %v4553_v56  ;;  %v9901_v63 = vpop.f32.mrf.mxu1  ;;  %v9903_v56 = vpop.f32.mrf.mxu2 }
 0x375   : > { %3040 = vmatmul.f32.vlgmr.msrb.gmra.mxu0 %v8955_v54  ;;  %3060 = vmatmul.f32.vlgmr.msrb.gmra.mxu1 %v8963_v1 }
 0x376   : > { %3104 = vmatpush.msra.mxu0 %v4554_v3  ;;  %3124 = vmatpush.msra.mxu1 %v4555_v2  ;;  %v4595_v3 = vld [vmem:[%s11045_s3 + $0x158] sm:$0xff]  ;;  %v4596_v2 = vld [vmem:[%s11045_s3 + $0x200] sm:$0xff] }
 0x377   : > { %3069 = vmatpush.msrb.mxu2 %v4556_v15  ;;  %3012 = vmatpush.msra.mxu3 %v4557_v14  ;;  %v4597_v15 = vld [vmem:[%s11045_s3 + $0x3d0] sm:$0xff]  ;;  %v4598_v14 = vld [vmem:[%s11045_s3 + $0x48] sm:$0xff] }
 0x378   : > { %3105 = vmatpush.msra.mxu0 %v4558_v19  ;;  %3125 = vmatpush.msra.mxu1 %v4559_v22  ;;  %v4599_v19 = vld [vmem:[%s11045_s3 + $0x148] sm:$0xff]  ;;  %v4600_v22 = vld [vmem:[%s11045_s3 + $0x2f8] sm:$0xff] }
 0x379   : > { %3070 = vmatpush.msrb.mxu2 %v4560_v12  ;;  %3013 = vmatpush.msra.mxu3 %v4561_v27  ;;  %v4601_v12 = vld [vmem:[%s11045_s3 + $0x3c0] sm:$0xff] }
 0x37a   : > { %3106 = vmatpush.msra.mxu0 %v4562_v16  ;;  %3126 = vmatpush.msra.mxu1 %v4563_v23  ;;  %v9927_v27 = vpop.f32.mrf.mxu3  ;;  %v4602_v16 = vld [vmem:[%s11045_s3 + $0x38] sm:$0xff] }
 0x37b   : > { %3071 = vmatpush.msrb.mxu2 %v4564_v39  ;;  %3014 = vmatpush.msra.mxu3 %v4565_v17  ;;  %v4603_v23 = vld [vmem:[%s11045_s3 + $0x138] sm:$0xff]  ;;  %v4604_v39 = vld [vmem:[%s11045_s3 + $0x2e8] sm:$0xff]  ;;  %v4605_v17 = vld [vmem:[%s11045_s3 + $0x3b0] sm:$0xff] }
 0x37c   : > { %3107 = vmatpush.msra.mxu0 %v4566_v50  ;;  %3127 = vmatpush.msra.mxu1 %v4567_v37  ;;  %v4606_v50 = vld [vmem:[%s11045_s3 + $0x28] sm:$0xff] }
 0x37d   : > { %3072 = vmatpush.msrb.mxu2 %v4568_v51  ;;  %3015 = vmatpush.msra.mxu3 %v4569_v21  ;;  %v4607_v37 = vld [vmem:[%s11045_s3 + $0x128] sm:$0xff]  ;;  %v4608_v51 = vld [vmem:[%s11045_s3 + $0x2d8] sm:$0xff]  ;;  %v4609_v21 = vld [vmem:[%s11045_s3 + $0x3a0] sm:$0xff] }
 0x37e   : > { %3108 = vmatpush.msra.mxu0 %v4570_v52  ;;  %3128 = vmatpush.msra.mxu1 %v4571_v26  ;;  %v9953_v52 = vpop.f32.mrf.mxu0  ;;  %v9955_v26 = vpop.f32.mrf.mxu1 }
 0x37f   : > { %3073 = vmatpush.msrb.mxu2 %v4572_v61  ;;  %3016 = vmatpush.msra.mxu3 %v4573_v62  ;;  %v4610_v61 = vld [vmem:[%s11045_s3 + $0x18] sm:$0xff] }
 0x380   : > { %3109 = vmatpush.msra.mxu0 %v4574_v6  ;;  %3129 = vmatpush.msra.mxu1 %v4575_v18  ;;  %v4611_v62 = vld [vmem:[%s11045_s3 + $0x118] sm:$0xff]  ;;  %v2274_v6 = vadd.f32 %v9791_v46, %v9783_v45  ;;  %v4612_v18 = vld [vmem:[%s11045_s3 + $0x2c8] sm:$0xff] }
 0x381   : > { %3074 = vmatpush.msrb.mxu2 %v4576_v53  ;;  %3017 = vmatpush.msra.mxu3 %v4577_v30  ;;  %v4613_v53 = vld [vmem:[%s11045_s3 + $0x390] sm:$0xff]  ;;  %v9971_v30 = vpop.f32.mrf.mxu2  ;;  %v4615_v45 = vld [vmem:[%s11045_s3 + $0x108] sm:$0xff] }
 0x382   : > { %3110 = vmatpush.msra.mxu0 %v4578_v29  ;;  %3130 = vmatpush.msra.mxu1 %v4579_v9  ;;  %v4614_v29 = vld [vmem:[%s11045_s3 + $0x8] sm:$0xff]  ;;  %v2294_v46 = vadd.f32 %v9793_v40, %v2274_v6  ;;  %v4616_v9 = vld [vmem:[%s11045_s3 + $0x2b8] sm:$0xff]  ;;  %v4619_v40 = vld [vmem:[%s11045_s3 + $0x9f0] sm:$0xff] }
 0x383   : > { %3075 = vmatpush.msrb.mxu2 %v4580_v13  ;;  %3018 = vmatpush.msra.mxu3 %v4581_v38  ;;  %v4617_v13 = vld [vmem:[%s11045_s3 + $0x380] sm:$0xff]  ;;  %v4618_v38 = vld [vmem:[%s11045_s3 + $0x8f0] sm:$0xff] }
 0x384   : > { %3111 = vmatpush.msra.mxu0 %v4582_v47  ;;  %3131 = vmatpush.msra.mxu1 %v4583_v36  ;;  %v9994_v47 = vpop.f32.mrf.mxu3  ;;  %v4620_v36 = vld [vmem:[%s11045_s3 + $0x2a8] sm:$0xff]  ;;  %v4642_v6 = vld [vmem:[%s11045_s3 + $0x890] sm:$0xff] }
 0x385   : > { %3076 = vmatpush.msrb.mxu2 %v4584_v41  ;;  %3019 = vmatpush.msra.mxu3 %v4585_v55  ;;  %v4622_v41 = vld [vmem:[%s11045_s3 + $0x8e0] sm:$0xff] }
 0x386   : > { %3112 = vmatpush.msra.mxu0 %v4586_v60  ;;  %3132 = vmatpush.msra.mxu1 %v4587_v42  ;;  %v4623_v55 = vld [vmem:[%s11045_s3 + $0x9e0] sm:$0xff]  ;;  %v2706_v60 = vpop.f32.mrf.mxu0  ;;  %v2726_v42 = vpop.f32.mrf.mxu1 }
 0x387   : > { %3020 = vmatmul.f32.vlgmr.msra.gmra.mxu3 %v9663_v10  ;;  %3077 = vmatpush.msrb.mxu2 %v4588_v5  ;;  %v4592_v10 = vld [vmem:[%s11045_s3 + $0x210] sm:$0xff]  ;;  %v4624_v5 = vld [vmem:[%s11045_s3 + $0x298] sm:$0xff] }
 0x388   : > { %3084 = vmatpush.msrb.mxu3 %v4589_v34  ;;  %3113 = vmatpush.msra.mxu0 %v4590_v58  ;;  %v4626_v58 = vld [vmem:[%s11045_s3 + $0x8d0] sm:$0xff] }
 0x389   : > { %3133 = vmatpush.msra.mxu1 %v4591_v8  ;;  %3078 = vmatpush.msrb.mxu2 %v4592_v10  ;;  %v4627_v8 = vld [vmem:[%s11045_s3 + $0x9d0] sm:$0xff]  ;;  %v2746_v10 = vpop.f32.mrf.mxu2 }
 0x38a   : > { %3085 = vmatpush.msrb.mxu3 %v4593_v0  ;;  %3114 = vmatpush.msra.mxu0 %v4594_v48  ;;  %v4628_v0 = vld [vmem:[%s11045_s3 + $0x288] sm:$0xff] }
 0x38b   : > { %3134 = vmatpush.msra.mxu1 %v4595_v3  ;;  %3079 = vmatpush.msrb.mxu2 %v4596_v2  ;;  %v2727_v3 = vadd.f32 %v2726_v42, %v2706_v60  ;;  %v4630_v2 = vld [vmem:[%s11045_s3 + $0x8c0] sm:$0xff] }
 0x38c   : > { %3086 = vmatpush.msrb.mxu3 %v4597_v15  ;;  %3080 = vmatmul.f32.vlgmr.msrb.gmra.mxu2 %v9090_v20  ;;  %v4631_v15 = vld [vmem:[%s11045_s3 + $0x9c0] sm:$0xff] }
 0x38d   : > { %3115 = vmatpush.msra.mxu0 %v4598_v14  ;;  %3135 = vmatpush.msra.mxu1 %v4599_v19  ;;  %v4632_v14 = vld [vmem:[%s11045_s3 + $0x278] sm:$0xff]  ;;  %v10044_v19 = vld [vmem:[%s11046_s4] sm:$0x3] }
 0x38e   : > { %3144 = vmatpush.msra.mxu2 %v4600_v22  ;;  %3087 = vmatpush.msrb.mxu3 %v4601_v12  ;;  %v2747_v12 = vadd.f32 %v2746_v10, %v2727_v3  ;;  %v4654_v60 = vld [vmem:[%s11045_s3 + $0x860] sm:$0xff]  ;;  %v4661_v10 = vld [vmem:[%s11045_s3 + $0x3d8] sm:$0xff]  ;;  %v4665_v3 = vld [vmem:[%s11045_s3 + $0x3c8] sm:$0xff] }
 0x38f   : > { %3116 = vmatpush.msra.mxu0 %v4602_v16  ;;  %3136 = vmatpush.msra.mxu1 %v4603_v23  ;;  %v4634_v16 = vld [vmem:[%s11045_s3 + $0x8b0] sm:$0xff]  ;;  %v4655_v42 = vld [vmem:[%s11045_s3 + $0x960] sm:$0xff] }
 0x390   : > { %3145 = vmatpush.msra.mxu2 %v4604_v39  ;;  %3088 = vmatpush.msrb.mxu3 %v4605_v17  ;;  %v4635_v23 = vld [vmem:[%s11045_s3 + $0x9b0] sm:$0xff]  ;;  %v4636_v39 = vld [vmem:[%s11045_s3 + $0x268] sm:$0xff] }
 0x391   : > { %3117 = vmatpush.msra.mxu0 %v4606_v50  ;;  %3137 = vmatpush.msra.mxu1 %v4607_v37  ;;  %v4638_v37 = vld [vmem:[%s11045_s3 + $0x8a0] sm:$0xff] }
 0x392   : > { %3146 = vmatpush.msra.mxu2 %v4608_v51  ;;  %3089 = vmatpush.msrb.mxu3 %v4609_v21  ;;  %v4639_v51 = vld [vmem:[%s11045_s3 + $0x9a0] sm:$0xff] }
 0x393   : > { %3118 = vmatpush.msra.mxu0 %v4610_v61  ;;  %3138 = vmatpush.msra.mxu1 %v4611_v62  ;;  %v2852_v61 = vperm.slane %v10044_v19, 0  ;;  %v4640_v62 = vld [vmem:[%s11045_s3 + $0x258] sm:$0xff] }
 0x394   : > { %3147 = vmatpush.msra.mxu2 %v4612_v18  ;;  %3090 = vmatpush.msrb.mxu3 %v4613_v53  ;;  %v4643_v18 = vld [vmem:[%s11045_s3 + $0x990] sm:$0xff] }
 0x395   : > { %3119 = vmatpush.msra.mxu0 %v4614_v29  ;;  %3139 = vmatpush.msra.mxu1 %v4615_v45  ;;  %v4644_v29 = vld [vmem:[%s11045_s3 + $0x248] sm:$0xff]  ;;  %v4645_v45 = vld [vmem:[%s11045_s3 + $0x310] sm:$0xff] }
 0x396   : > { %3148 = vmatpush.msra.mxu2 %v4616_v9  ;;  %3091 = vmatpush.msrb.mxu3 %v4617_v13  ;;  %v4647_v9 = vld [vmem:[%s11045_s3 + $0x980] sm:$0xff] }
 0x397   : > { %3120 = vmatmul.f32.vlgmr.msra.gmra.mxu0 %v8955_v54  ;;  %3140 = vmatmul.f32.vlgmr.msra.gmra.mxu1 %v8963_v1  ;;  %v4621_v54 = vld [vmem:[%s11045_s3 + $0x370] sm:$0xff]  ;;  %v2314_v1 = vadd.f32 %v9819_v59, %v2294_v46  ;;  %v4625_v59 = vld [vmem:[%s11045_s3 + $0x360] sm:$0xff] }
 0x398   : > { %3200 = vmatpush.msrb.mxu0 %v4618_v38  ;;  %3220 = vmatpush.msrb.mxu1 %v4619_v40  ;;  %v4646_v46 = vld [vmem:[%s11045_s3 + $0x880] sm:$0xff]  ;;  %v4648_v38 = vld [vmem:[%s11045_s3 + $0x238] sm:$0xff] }
 0x399   : > { %3149 = vmatpush.msra.mxu2 %v4620_v36  ;;  %3092 = vmatpush.msrb.mxu3 %v4621_v54  ;;  %v2414_v34 = vadd.f32 %v9893_v35, %v2314_v1  ;;  %v4629_v35 = vld [vmem:[%s11045_s3 + $0x350] sm:$0xff]  ;;  %v4649_v40 = vld [vmem:[%s11045_s3 + $0x300] sm:$0xff] }
 0x39a   : > { %3201 = vmatpush.msrb.mxu0 %v4622_v41  ;;  %3221 = vmatpush.msrb.mxu1 %v4623_v55  ;;  %v4650_v36 = vld [vmem:[%s11045_s3 + $0x870] sm:$0xff]  ;;  %v4652_v41 = vld [vmem:[%s11045_s3 + $0x228] sm:$0xff]  ;;  %v4653_v55 = vld [vmem:[%s11045_s3 + $0x3f8] sm:$0xff] }
 0x39b   : > { %3150 = vmatpush.msra.mxu2 %v4624_v5  ;;  %3093 = vmatpush.msrb.mxu3 %v4625_v59  ;;  %v2434_v48 = vadd.f32 %v9901_v63, %v2414_v34  ;;  %v4633_v63 = vld [vmem:[%s11045_s3 + $0x340] sm:$0xff]  ;;  %v4651_v54 = vld [vmem:[%s11045_s3 + $0x970] sm:$0xff]  ;;  %v4656_v5 = vld [vmem:[%s11045_s3 + $0x218] sm:$0xff] }
 0x39c   : > { %3202 = vmatpush.msrb.mxu0 %v4626_v58  ;;  %3222 = vmatpush.msrb.mxu1 %v4627_v8  ;;  %v4657_v59 = vld [vmem:[%s11045_s3 + $0x3e8] sm:$0xff]  ;;  %v4658_v34 = vld [vmem:[%s11045_s3 + $0x850] sm:$0xff] }
 0x39d   : > { %3151 = vmatpush.msra.mxu2 %v4628_v0  ;;  %3094 = vmatpush.msrb.mxu3 %v4629_v35  ;;  %v2454_v22 = vadd.f32 %v9903_v56, %v2434_v48  ;;  %v4637_v56 = vld [vmem:[%s11045_s3 + $0x330] sm:$0xff]  ;;  %v4660_v8 = vld [vmem:[%s11045_s3 + $0x208] sm:$0xff]  ;;  %v4662_v0 = vld [vmem:[%s11045_s3 + $0x840] sm:$0xff] }
 0x39e   : > { %3203 = vmatpush.msrb.mxu0 %v4630_v2  ;;  %3223 = vmatpush.msrb.mxu1 %v4631_v15  ;;  %v4659_v58 = vld [vmem:[%s11045_s3 + $0x950] sm:$0xff]  ;;  %v4663_v35 = vld [vmem:[%s11045_s3 + $0x940] sm:$0xff] }
 0x39f   : > { %3152 = vmatpush.msra.mxu2 %v4632_v14  ;;  %3095 = vmatpush.msrb.mxu3 %v4633_v63  ;;  %v2474_v50 = vadd.f32 %v9927_v27, %v2454_v22  ;;  %v4641_v27 = vld [vmem:[%s11045_s3 + $0x320] sm:$0xff]  ;;  %v4664_v48 = vld [vmem:[%s11045_s3 + $0xaf0] sm:$0xff]  ;;  %v4669_v14 = vld [vmem:[%s11045_s3 + $0x3b8] sm:$0xff] }
 0x3a0   : > { %3204 = vmatpush.msrb.mxu0 %v4634_v16  ;;  %3224 = vmatpush.msrb.mxu1 %v4635_v23  ;;  %v4667_v2 = vld [vmem:[%s11045_s3 + $0x930] sm:$0xff]  ;;  %v4668_v15 = vld [vmem:[%s11045_s3 + $0xae0] sm:$0xff]  ;;  %v4673_v16 = vld [vmem:[%s11045_s3 + $0x3a8] sm:$0xff] }
 0x3a1   : > { %3153 = vmatpush.msra.mxu2 %v4636_v39  ;;  %3096 = vmatpush.msrb.mxu3 %v4637_v56  ;;  %v2766_v17 = vpop.f32.mrf.mxu3  ;;  %v4670_v63 = vld [vmem:[%s11045_s3 + $0x820] sm:$0xff]  ;;  %v10173_v23 = vld [vmem:[#allocation2 + $0x30] sm:$0x1e]  ;;  %v10175_v39 = vld [vmem:[#allocation2] sm:$0x1e] }
 0x3a2   : > { %3205 = vmatpush.msrb.mxu0 %v4638_v37  ;;  %3225 = vmatpush.msrb.mxu1 %v4639_v51  ;;  %v2767_v21 = vadd.f32 %v2766_v17, %v2747_v12  ;;  %v4671_v22 = vld [vmem:[%s11045_s3 + $0x920] sm:$0xff]  ;;  %v4672_v12 = vld [vmem:[%s11045_s3 + $0xad0] sm:$0xff]  ;;  %v4677_v37 = vld [vmem:[%s11045_s3 + $0x398] sm:$0xff]  ;;  %v2354_v51 = vadd.f32 %v9847_v33, %v9839_v32 }
 0x3a3   : > { %3154 = vmatpush.msra.mxu2 %v4640_v62  ;;  %3097 = vmatpush.msrb.mxu3 %v4641_v27  ;;  %v4674_v56 = vld [vmem:[%s11045_s3 + $0x810] sm:$0xff]  ;;  %v4679_v62 = vld [vmem:[%s11045_s3 + $0x900] sm:$0xff]  ;;  %v3192_v27 = vrot.slane %v10173_v23, 1  ;;  %v4681_v32 = vld [vmem:[%s11045_s3 + $0x388] sm:$0xff] }
 0x3a4   : > { %3206 = vmatpush.msrb.mxu0 %v4642_v6  ;;  %3226 = vmatpush.msrb.mxu1 %v4643_v18  ;;  %v2849_v53 = vadd.f32 %v2767_v21, %v2474_v50  ;;  %v4675_v17 = vld [vmem:[%s11045_s3 + $0x910] sm:$0xff]  ;;  %v4676_v50 = vld [vmem:[%s11045_s3 + $0xac0] sm:$0xff]  ;;  %v3193_v6 = vrot.slane %v10175_v39, 1  ;;  %v2374_v33 = vadd.f32 %v9849_v31, %v2354_v51  ;;  %v4117_v39 = vld [vmem:[%s11047_s5 + $0x168] sm:$0xff] }
 0x3a5   : > { %3155 = vmatpush.msra.mxu2 %v4644_v29  ;;  %3098 = vmatpush.msrb.mxu3 %v4645_v45  ;;  %v4678_v21 = vld [vmem:[%s11045_s3 + $0x800] sm:$0xff]  ;;  %v4680_v18 = vld [vmem:[%s11045_s3 + $0xab0] sm:$0xff]  ;;  %v4683_v29 = vld [vmem:[%s11045_s3 + $0x9f8] sm:$0xff] }
 0x3a6   : > { %3207 = vmatpush.msrb.mxu0 %v4646_v46  ;;  %3227 = vmatpush.msrb.mxu1 %v4647_v9  ;;  %v2856_v13 = vadd.f32 %v2852_v61, %v2849_v53  ;;  %v4682_v53 = vld [vmem:[%s11045_s3 + $0x8f8] sm:$0xff]  ;;  %v4684_v31 = vld [vmem:[%s11045_s3 + $0xaa0] sm:$0xff]  ;;  %v4686_v46 = vld [vmem:[%s11045_s3 + $0x8e8] sm:$0xff] }
 0x3a7   : > { %3156 = vmatpush.msra.mxu2 %v4648_v38  ;;  %3099 = vmatpush.msrb.mxu3 %v4649_v40  ;;  %v4685_v45 = vld [vmem:[%s11045_s3 + $0x378] sm:$0xff]  ;;  %v4687_v9 = vld [vmem:[%s11045_s3 + $0x9e8] sm:$0xff]  ;;  %v4688_v38 = vld [vmem:[%s11045_s3 + $0xa90] sm:$0xff] }
 0x3a8   : > { %3208 = vmatpush.msrb.mxu0 %v4650_v36  ;;  %3228 = vmatpush.msrb.mxu1 %v4651_v54  ;;  %v2858_v1 = vmax.f32 %v2856_v13, 0.0  ;;  %v2394_v13 = vadd.f32 %v9875_v25, %v2374_v33  ;;  %v4689_v40 = vld [vmem:[%s11045_s3 + $0x368] sm:$0xff]  ;;  %v4690_v36 = vld [vmem:[%s11045_s3 + $0x8d8] sm:$0xff]  ;;  %v4712_v51 = vld [vmem:[%s11045_s3 + $0xa30] sm:$0xff] }
 0x3a9   : > { %3100 = vmatmul.f32.vlgmr.msrb.gmra.mxu3 %v9230_v57  ;;  %3157 = vmatpush.msra.mxu2 %v4652_v41  ;;  %v4691_v54 = vld [vmem:[%s11045_s3 + $0x9d8] sm:$0xff]  ;;  %v4716_v33 = vld [vmem:[%s11045_s3 + $0xa20] sm:$0xff]  ;;  %v4746_v23 = vld [vmem:[%s11045_s3 + $0xb70] sm:$0xff] }
 0x3aa   : > { %3164 = vmatpush.msra.mxu3 %v4653_v55  ;;  %3209 = vmatpush.msrb.mxu0 %v4654_v60  ;;  %3367 = vst [vmem:[#allocation3 + $0x10] sm:$0xf] %v2858_v1  ;;  %v2494_v25 = vadd.f32 %v9953_v52, %v2394_v13  ;;  %v4692_v1 = vld [vmem:[%s11045_s3 + $0xa80] sm:$0xff]  ;;  %v4693_v41 = vld [vmem:[%s11045_s3 + $0x358] sm:$0xff]  ;;  %v2786_v55 = vpop.f32.mrf.mxu0  ;;  %v2806_v60 = vpop.f32.mrf.mxu1  ;;  %v4695_v52 = vld [vmem:[%s11045_s3 + $0x9c8] sm:$0xff] }
 0x3ab   : > { %3229 = vmatpush.msrb.mxu1 %v4655_v42  ;;  %3158 = vmatpush.msra.mxu2 %v4656_v5  ;;  %v4694_v42 = vld [vmem:[%s11045_s3 + $0x8c8] sm:$0xff]  ;;  %v4696_v5 = vld [vmem:[%s11045_s3 + $0xa70] sm:$0xff]  ;;  %v4721_v13 = vld [vmem:[%s11045_s3 + $0xbe0] sm:$0xff] }
 0x3ac   : > { %3165 = vmatpush.msra.mxu3 %v4657_v59  ;;  %3210 = vmatpush.msrb.mxu0 %v4658_v34  ;;  %v4697_v59 = vld [vmem:[%s11045_s3 + $0x348] sm:$0xff]  ;;  %v2826_v34 = vpop.f32.mrf.mxu2 }
 0x3ad   : > { %3230 = vmatpush.msrb.mxu1 %v4659_v58  ;;  %3159 = vmatpush.msra.mxu2 %v4660_v8  ;;  %v4698_v58 = vld [vmem:[%s11045_s3 + $0x8b8] sm:$0xff] }
 0x3ae   : > { %3166 = vmatpush.msra.mxu3 %v4661_v10  ;;  %3160 = vmatmul.f32.vlgmr.msra.gmra.mxu2 %v9090_v20  ;;  %v4666_v20 = vld [vmem:[%s11045_s3 + $0x830] sm:$0xff]  ;;  %v4699_v8 = vld [vmem:[%s11045_s3 + $0x9b8] sm:$0xff]  ;;  %v2514_v10 = vadd.f32 %v9955_v26, %v2494_v25  ;;  %v4703_v26 = vld [vmem:[%s11045_s3 + $0x9a8] sm:$0xff] }
 0x3af   : > { %3211 = vmatpush.msrb.mxu0 %v4662_v0  ;;  %3231 = vmatpush.msrb.mxu1 %v4663_v35  ;;  %v2807_v0 = vadd.f32 %v2806_v60, %v2786_v55  ;;  %v4700_v35 = vld [vmem:[%s11045_s3 + $0xa60] sm:$0xff]  ;;  %v4725_v25 = vld [vmem:[%s11045_s3 + $0xbd0] sm:$0xff]  ;;  %v4728_v55 = vld [vmem:[%s11045_s3 + $0xaf8] sm:$0xff] }
 0x3b0   : > { %3240 = vmatpush.msrb.mxu2 %v4664_v48  ;;  %3167 = vmatpush.msra.mxu3 %v4665_v3  ;;  %v4701_v48 = vld [vmem:[%s11045_s3 + $0x338] sm:$0xff]  ;;  %v4702_v3 = vld [vmem:[%s11045_s3 + $0x8a8] sm:$0xff]  ;;  %v4729_v60 = vld [vmem:[%s11045_s3 + $0xbc0] sm:$0xff] }
 0x3b1   : > { %3212 = vmatpush.msrb.mxu0 %v4666_v20  ;;  %3232 = vmatpush.msrb.mxu1 %v4667_v2  ;;  %v2534_v20 = vadd.f32 %v9971_v30, %v2514_v10  ;;  %v2827_v2 = vadd.f32 %v2826_v34, %v2807_v0  ;;  %v4707_v30 = vld [vmem:[%s11045_s3 + $0x998] sm:$0xff]  ;;  %v4734_v34 = vld [vmem:[%s11045_s3 + $0x828] sm:$0xff]  ;;  %v4737_v10 = vld [vmem:[%s11045_s3 + $0xba0] sm:$0xff] }
 0x3b2   : > { %3241 = vmatpush.msrb.mxu2 %v4668_v15  ;;  %3168 = vmatpush.msra.mxu3 %v4669_v14  ;;  %v4704_v15 = vld [vmem:[%s11045_s3 + $0xa50] sm:$0xff]  ;;  %v4705_v14 = vld [vmem:[%s11045_s3 + $0x328] sm:$0xff]  ;;  %v4738_v0 = vld [vmem:[%s11045_s3 + $0x818] sm:$0xff] }
 0x3b3   : > { %3213 = vmatpush.msrb.mxu0 %v4670_v63  ;;  %3233 = vmatpush.msrb.mxu1 %v4671_v22  ;;  %v4706_v63 = vld [vmem:[%s11045_s3 + $0x898] sm:$0xff] }
 0x3b4   : > { %3242 = vmatpush.msrb.mxu2 %v4672_v12  ;;  %3169 = vmatpush.msra.mxu3 %v4673_v16  ;;  %v2554_v12 = vadd.f32 %v9994_v47, %v2534_v20  ;;  %v4708_v16 = vld [vmem:[%s11045_s3 + $0xa40] sm:$0xff]  ;;  %v4711_v47 = vld [vmem:[%s11045_s3 + $0x988] sm:$0xff]  ;;  %v4119_v20 = vld [vmem:[%s11047_s5 + $0x178] sm:$0xff] }
 0x3b5   : > { %3214 = vmatpush.msrb.mxu0 %v4674_v56  ;;  %3234 = vmatpush.msrb.mxu1 %v4675_v17  ;;  %v4709_v56 = vld [vmem:[%s11045_s3 + $0x318] sm:$0xff] }
 0x3b6   : > { %3243 = vmatpush.msrb.mxu2 %v4676_v50  ;;  %3170 = vmatpush.msra.mxu3 %v4677_v37  ;;  %v2853_v50 = vperm.slane %v10044_v19, 1  ;;  %v4710_v37 = vld [vmem:[%s11045_s3 + $0x888] sm:$0xff]  ;;  %v3667_v19 = vld [vmem:[%s11049_s7 + $0xf8] sm:$0xff] }
 0x3b7   : > { %3215 = vmatpush.msrb.mxu0 %v4678_v21  ;;  %3235 = vmatpush.msrb.mxu1 %v4679_v62  ;;  %v4713_v21 = vld [vmem:[%s11045_s3 + $0x308] sm:$0xff] }
 0x3b8   : > { %3244 = vmatpush.msrb.mxu2 %v4680_v18  ;;  %3171 = vmatpush.msra.mxu3 %v4681_v32  ;;  %v4714_v18 = vld [vmem:[%s11045_s3 + $0x878] sm:$0xff] }
 0x3b9   : > { %3216 = vmatmul.f32.vlgmr.msrb.gmra.mxu0 %v3192_v27  ;;  %3236 = vmatmul.f32.vlgmr.msrb.gmra.mxu1 %v3193_v6  ;;  %v4715_v32 = vld [vmem:[%s11045_s3 + $0x978] sm:$0xff] }
 0x3ba   : > { %3280 = vmatpush.msra.mxu0 %v4682_v53  ;;  %3300 = vmatpush.msra.mxu1 %v4683_v29  ;;  %v10322_v53 = vld [vmem:[#allocation2 + $0x58] sm:$0x1e] }
 0x3bb   : > { %3245 = vmatpush.msrb.mxu2 %v4684_v31  ;;  %3172 = vmatpush.msra.mxu3 %v4685_v45  ;;  %v4717_v31 = vld [vmem:[%s11045_s3 + $0xbf0] sm:$0xff]  ;;  %v4718_v45 = vld [vmem:[%s11045_s3 + $0x868] sm:$0xff] }
 0x3bc   : > { %3281 = vmatpush.msra.mxu0 %v4686_v46  ;;  %3301 = vmatpush.msra.mxu1 %v4687_v9  ;;  %v4720_v46 = vld [vmem:[%s11045_s3 + $0xa10] sm:$0xff] }
 0x3bd   : > { %3246 = vmatpush.msrb.mxu2 %v4688_v38  ;;  %3173 = vmatpush.msra.mxu3 %v4689_v40  ;;  %v4722_v38 = vld [vmem:[%s11045_s3 + $0x858] sm:$0xff]  ;;  %v3194_v40 = vrot.slane %v10322_v53, 1  ;;  %v4106_v53 = vld [vmem:[%s11047_s5 + $0x110] sm:$0xff] }
 0x3be   : > { %3282 = vmatpush.msra.mxu0 %v4690_v36  ;;  %3302 = vmatpush.msra.mxu1 %v4691_v54  ;;  %v4723_v36 = vld [vmem:[%s11045_s3 + $0x958] sm:$0xff]  ;;  %v4724_v54 = vld [vmem:[%s11045_s3 + $0xa00] sm:$0xff] }
 0x3bf   : > { %3247 = vmatpush.msrb.mxu2 %v4692_v1  ;;  %3174 = vmatpush.msra.mxu3 %v4693_v41  ;;  %v4726_v1 = vld [vmem:[%s11045_s3 + $0x848] sm:$0xff] }
 0x3c0   : > { %3283 = vmatpush.msra.mxu0 %v4694_v42  ;;  %3303 = vmatpush.msra.mxu1 %v4695_v52  ;;  %v4727_v41 = vld [vmem:[%s11045_s3 + $0x948] sm:$0xff]  ;;  %v4730_v42 = vld [vmem:[%s11045_s3 + $0x838] sm:$0xff] }
 0x3c1   : > { %3248 = vmatpush.msrb.mxu2 %v4696_v5  ;;  %3175 = vmatpush.msra.mxu3 %v4697_v59  ;;  %v4731_v52 = vld [vmem:[%s11045_s3 + $0x938] sm:$0xff]  ;;  %v4732_v5 = vld [vmem:[%s11045_s3 + $0xae8] sm:$0xff]  ;;  %v4733_v59 = vld [vmem:[%s11045_s3 + $0xbb0] sm:$0xff] }
 0x3c2   : > { %3284 = vmatpush.msra.mxu0 %v4698_v58  ;;  %3304 = vmatpush.msra.mxu1 %v4699_v8  ;;  %v4735_v58 = vld [vmem:[%s11045_s3 + $0x928] sm:$0xff]  ;;  %v4736_v8 = vld [vmem:[%s11045_s3 + $0xad8] sm:$0xff] }
 0x3c3   : > { %3249 = vmatpush.msrb.mxu2 %v4700_v35  ;;  %3176 = vmatpush.msra.mxu3 %v4701_v48  ;;  %v4739_v35 = vld [vmem:[%s11045_s3 + $0x918] sm:$0xff]  ;;  %v4740_v48 = vld [vmem:[%s11045_s3 + $0xac8] sm:$0xff] }
 0x3c4   : > { %3285 = vmatpush.msra.mxu0 %v4702_v3  ;;  %3305 = vmatpush.msra.mxu1 %v4703_v26  ;;  %v4741_v3 = vld [vmem:[%s11045_s3 + $0xb90] sm:$0xff]  ;;  %v4742_v26 = vld [vmem:[%s11045_s3 + $0x808] sm:$0xff] }
 0x3c5   : > { %3250 = vmatpush.msrb.mxu2 %v4704_v15  ;;  %3177 = vmatpush.msra.mxu3 %v4705_v14  ;;  %v4743_v15 = vld [vmem:[%s11045_s3 + $0xab8] sm:$0xff]  ;;  %v4744_v14 = vld [vmem:[%s11045_s3 + $0xb80] sm:$0xff] }
 0x3c6   : > { %3286 = vmatpush.msra.mxu0 %v4706_v63  ;;  %3306 = vmatpush.msra.mxu1 %v4707_v30  ;;  %v2846_v22 = vpop.f32.mrf.mxu3  ;;  %v4134_v63 = vld [vmem:[%s11047_s5 + $0x1f0] sm:$0xff]  ;;  %v4745_v30 = vld [vmem:[%s11045_s3 + $0xaa8] sm:$0xff] }
 0x3c7   : > { %3251 = vmatpush.msrb.mxu2 %v4708_v16  ;;  %3178 = vmatpush.msra.mxu3 %v4709_v56  ;;  %v2847_v17 = vadd.f32 %v2846_v22, %v2827_v2  ;;  %v4135_v2 = vld [vmem:[%s11047_s5 + $0x1f8] sm:$0xff]  ;;  %v4748_v22 = vld [vmem:[%s11045_s3 + $0xb60] sm:$0xff]  ;;  %v4749_v56 = vld [vmem:[%s11045_s3 + $0xa88] sm:$0xff] }
 0x3c8   : > { %3287 = vmatpush.msra.mxu0 %v4710_v37  ;;  %3307 = vmatpush.msra.mxu1 %v4711_v47  ;;  %v4132_v16 = vld [vmem:[%s11047_s5 + $0x1e0] sm:$0xff]  ;;  %v4115_v37 = vld [vmem:[%s11047_s5 + $0x158] sm:$0xff] }
 0x3c9   : > { %3252 = vmatpush.msrb.mxu2 %v4712_v51  ;;  %3179 = vmatpush.msra.mxu3 %v4713_v21  ;;  %v2850_v62 = vadd.f32 %v2847_v17, %v2554_v12  ;;  %v4116_v12 = vld [vmem:[%s11047_s5 + $0x160] sm:$0xff]  ;;  %v4750_v17 = vld [vmem:[%s11045_s3 + $0xb50] sm:$0xff]  ;;  %v4131_v47 = vld [vmem:[%s11047_s5 + $0x1d8] sm:$0xff] }
 0x3ca   : > { %3288 = vmatpush.msra.mxu0 %v4714_v18  ;;  %3308 = vmatpush.msra.mxu1 %v4715_v32  ;;  %v4751_v51 = vld [vmem:[%s11045_s3 + $0xa78] sm:$0xff]  ;;  %v4752_v21 = vld [vmem:[%s11045_s3 + $0xb40] sm:$0xff]  ;;  %v4130_v18 = vld [vmem:[%s11047_s5 + $0x1d0] sm:$0xff] }
 0x3cb   : > { %3180 = vmatmul.f32.vlgmr.msra.gmra.mxu3 %v9230_v57  ;;  %3253 = vmatpush.msrb.mxu2 %v4716_v33  ;;  %v2857_v29 = vadd.f32 %v2853_v50, %v2850_v62  ;;  %v4719_v57 = vld [vmem:[%s11045_s3 + $0x968] sm:$0xff]  ;;  %v4114_v62 = vld [vmem:[%s11047_s5 + $0x150] sm:$0xff] }
 0x3cc   : > { %3260 = vmatpush.msrb.mxu3 %v4717_v31  ;;  %3289 = vmatpush.msra.mxu0 %v4718_v45  ;;  %v4753_v32 = vld [vmem:[%s11045_s3 + $0xa68] sm:$0xff]  ;;  %v4754_v33 = vld [vmem:[%s11045_s3 + $0xb30] sm:$0xff]  ;;  %v4755_v45 = vld [vmem:[%s11045_s3 + $0xa58] sm:$0xff] }
 0x3cd   : > { %3309 = vmatpush.msra.mxu1 %v4719_v57  ;;  %3254 = vmatpush.msrb.mxu2 %v4720_v46  ;;  %v2859_v9 = vmax.f32 %v2857_v29, 0.0  ;;  %v4113_v29 = vld [vmem:[%s11047_s5 + $0x148] sm:$0xff]  ;;  %v4756_v57 = vld [vmem:[%s11045_s3 + $0xb20] sm:$0xff] }
 0x3ce   : > { %3261 = vmatpush.msrb.mxu3 %v4721_v13  ;;  %3290 = vmatpush.msra.mxu0 %v4722_v38  ;;  %v4129_v31 = vld [vmem:[%s11047_s5 + $0x1c8] sm:$0xff]  ;;  %v4112_v46 = vld [vmem:[%s11047_s5 + $0x140] sm:$0xff] }
 0x3cf   : > { %3310 = vmatpush.msra.mxu1 %v4723_v36  ;;  %3255 = vmatpush.msrb.mxu2 %v4724_v54  ;;  %3368 = vst [vmem:[#allocation3 + $0x18] sm:$0xf] %v2859_v9  ;;  %v4128_v9 = vld [vmem:[%s11047_s5 + $0x1c0] sm:$0xff]  ;;  %v4757_v38 = vld [vmem:[%s11045_s3 + $0xa48] sm:$0xff]  ;;  %v4758_v36 = vld [vmem:[%s11045_s3 + $0xb10] sm:$0xff] }
 0x3d0   : > { %3262 = vmatpush.msrb.mxu3 %v4725_v25  ;;  %3256 = vmatmul.f32.vlgmr.msrb.gmra.mxu2 %v3194_v40  ;;  %v10502_v13 = vld [vmem:[#allocation2 + $0x18] sm:$0x1e]  ;;  %v4111_v54 = vld [vmem:[%s11047_s5 + $0x138] sm:$0xff] }
 0x3d1   : > { %3291 = vmatpush.msra.mxu0 %v4726_v1  ;;  %3311 = vmatpush.msra.mxu1 %v4727_v41  ;;  %v4127_v25 = vld [vmem:[%s11047_s5 + $0x1b8] sm:$0xff]  ;;  %v4760_v41 = vld [vmem:[%s11045_s3 + $0xb00] sm:$0xff] }
 0x3d2   : > { %3320 = vmatpush.msra.mxu2 %v4728_v55  ;;  %3263 = vmatpush.msrb.mxu3 %v4729_v60  ;;  %v4759_v1 = vld [vmem:[%s11045_s3 + $0xa38] sm:$0xff]  ;;  %v3195_v55 = vrot.slane %v10502_v13, 1  ;;  %v4110_v60 = vld [vmem:[%s11047_s5 + $0x130] sm:$0xff] }
 0x3d3   : > { %3292 = vmatpush.msra.mxu0 %v4730_v42  ;;  %3312 = vmatpush.msra.mxu1 %v4731_v52  ;;  %v4126_v42 = vld [vmem:[%s11047_s5 + $0x1b0] sm:$0xff]  ;;  %v4761_v52 = vld [vmem:[%s11045_s3 + $0xa28] sm:$0xff]  ;;  %v4143_v13 = vld [vmem:[%s11047_s5 + $0x238] sm:$0xff] }
 0x3d4   : > { %3321 = vmatpush.msra.mxu2 %v4732_v5  ;;  %3264 = vmatpush.msrb.mxu3 %v4733_v59  ;;  %v4109_v5 = vld [vmem:[%s11047_s5 + $0x128] sm:$0xff]  ;;  %v4762_v59 = vld [vmem:[%s11045_s3 + $0xbf8] sm:$0xff] }
 0x3d5   : > { %3293 = vmatpush.msra.mxu0 %v4734_v34  ;;  %3313 = vmatpush.msra.mxu1 %v4735_v58  ;;  %v4125_v34 = vld [vmem:[%s11047_s5 + $0x1a8] sm:$0xff]  ;;  %v4763_v58 = vld [vmem:[%s11045_s3 + $0xa18] sm:$0xff] }
 0x3d6   : > { %3322 = vmatpush.msra.mxu2 %v4736_v8  ;;  %3265 = vmatpush.msrb.mxu3 %v4737_v10  ;;  %v4764_v8 = vld [vmem:[%s11045_s3 + $0xbe8] sm:$0xff]  ;;  %v4108_v10 = vld [vmem:[%s11047_s5 + $0x120] sm:$0xff] }
 0x3d7   : > { %3294 = vmatpush.msra.mxu0 %v4738_v0  ;;  %3314 = vmatpush.msra.mxu1 %v4739_v35  ;;  %v4124_v0 = vld [vmem:[%s11047_s5 + $0x1a0] sm:$0xff]  ;;  %v4765_v35 = vld [vmem:[%s11045_s3 + $0xa08] sm:$0xff] }
 0x3d8   : > { %3323 = vmatpush.msra.mxu2 %v4740_v48  ;;  %3266 = vmatpush.msrb.mxu3 %v4741_v3  ;;  %v4766_v48 = vld [vmem:[%s11045_s3 + $0xbd8] sm:$0xff] }
 0x3d9   : > { %3295 = vmatpush.msra.mxu0 %v4742_v26  ;;  %3315 = vmatpush.msra.mxu1 %v9138_v7  ;;  %v4118_v7 = vld [vmem:[%s11047_s5 + $0x170] sm:$0xff]  ;;  %v4107_v3 = vld [vmem:[%s11047_s5 + $0x118] sm:$0xff] }
 0x3da   : > { %3324 = vmatpush.msra.mxu2 %v4743_v15  ;;  %3267 = vmatpush.msrb.mxu3 %v4744_v14  ;;  %v4123_v26 = vld [vmem:[%s11047_s5 + $0x198] sm:$0xff]  ;;  %v4105_v15 = vld [vmem:[%s11047_s5 + $0x108] sm:$0xff] }
 0x3db   : > { %3296 = vmatmul.f32.vlgmr.msra.gmra.mxu0 %v3192_v27  ;;  %3316 = vmatmul.f32.vlgmr.msra.gmra.mxu1 %v3193_v6  ;;  %v4133_v27 = vld [vmem:[%s11047_s5 + $0x1e8] sm:$0xff]  ;;  %v4747_v6 = vld [vmem:[%s11045_s3 + $0xa98] sm:$0xff] }
 0x3dc   : > { %3446 = vmatpush.msrb.mxu0 %v4119_v20  ;;  %3466 = vmatpush.msrb.mxu1 %v4135_v2  ;;  %v4767_v20 = vld [vmem:[%s11045_s3 + $0xbc8] sm:$0xff]  ;;  %v4768_v2 = vld [vmem:[%s11045_s3 + $0xbb8] sm:$0xff] }
 0x3dd   : > { %3325 = vmatpush.msra.mxu2 %v4745_v30  ;;  %3268 = vmatpush.msrb.mxu3 %v4746_v23  ;;  %v4121_v14 = vld [vmem:[%s11047_s5 + $0x188] sm:$0xff]  ;;  %v4120_v30 = vld [vmem:[%s11047_s5 + $0x180] sm:$0xff]  ;;  %v4770_v23 = vld [vmem:[%s11045_s3 + $0xb98] sm:$0xff] }
 0x3de   : > { %3447 = vmatpush.msrb.mxu0 %v4118_v7  ;;  %3467 = vmatpush.msrb.mxu1 %v4134_v63  ;;  %v4769_v7 = vld [vmem:[%s11045_s3 + $0xba8] sm:$0xff]  ;;  %v4104_v63 = vld [vmem:[%s11047_s5 + $0x100] sm:$0xff] }
 0x3df   : > { %3326 = vmatpush.msra.mxu2 %v4747_v6  ;;  %3269 = vmatpush.msrb.mxu3 %v4748_v22  ;;  %v3412_v6 = vld [vmem:[#allocation3 + $0x18] sm:$0xf]  ;;  %v4772_v22 = vld [vmem:[%s11045_s3 + $0xb78] sm:$0xff] }
 0x3e0   : > { %3448 = vmatpush.msrb.mxu0 %v4117_v39  ;;  %3468 = vmatpush.msrb.mxu1 %v4133_v27  ;;  %v3411_v39 = vld [vmem:[#allocation3 + $0x10] sm:$0xf]  ;;  %v4771_v27 = vld [vmem:[%s11045_s3 + $0xb88] sm:$0xff] }
 0x3e1   : > { %3327 = vmatpush.msra.mxu2 %v4749_v56  ;;  %3270 = vmatpush.msrb.mxu3 %v4750_v17  ;;  %v4147_v56 = vld [vmem:[%s11047_s5 + $0x258] sm:$0xff]  ;;  %v3389_v17 = vld [vmem:[%s11047_s5 + $0x50] sm:$0xff] }
 0x3e2   : > { %3449 = vmatpush.msrb.mxu0 %v4116_v12  ;;  %3469 = vmatpush.msrb.mxu1 %v4132_v16  ;;  %v3394_v12 = vld [vmem:[%s11047_s5 + $0x78] sm:$0xff] }
 0x3e3   : > { %3328 = vmatpush.msra.mxu2 %v4751_v51  ;;  %3271 = vmatpush.msrb.mxu3 %v4752_v21  ;;  %v3390_v16 = vld [vmem:[%s11047_s5 + $0x58] sm:$0xff]  ;;  %v2921_v51 = vpop.f32.mrf.mxu2 }
 0x3e4   : > { %3450 = vmatpush.msrb.mxu0 %v4115_v37  ;;  %3470 = vmatpush.msrb.mxu1 %v4131_v47  ;;  %v2881_v37 = vpop.f32.mrf.mxu0  ;;  %v2901_v47 = vpop.f32.mrf.mxu1 }
 0x3e5   : > { %3329 = vmatpush.msra.mxu2 %v4753_v32  ;;  %3272 = vmatpush.msrb.mxu3 %v4754_v33 }
 0x3e6   : > { %3451 = vmatpush.msrb.mxu0 %v4114_v62  ;;  %3471 = vmatpush.msrb.mxu1 %v4130_v18  ;;  %v3388_v62 = vld [vmem:[%s11047_s5 + $0x48] sm:$0xff]  ;;  %v4146_v18 = vld [vmem:[%s11047_s5 + $0x250] sm:$0xff] }
 0x3e7   : > { %3330 = vmatpush.msra.mxu2 %v4755_v45  ;;  %3273 = vmatpush.msrb.mxu3 %v4756_v57  ;;  %v3386_v57 = vld [vmem:[%s11047_s5 + $0x38] sm:$0xff] }
 0x3e8   : > { %3452 = vmatpush.msrb.mxu0 %v4113_v29  ;;  %3472 = vmatpush.msrb.mxu1 %v4129_v31  ;;  %v10647_v21 = vpop.f32.mrf.mxu3  ;;  %v3387_v29 = vld [vmem:[%s11047_s5 + $0x40] sm:$0xff]  ;;  %v4145_v31 = vld [vmem:[%s11047_s5 + $0x248] sm:$0xff] }
 0x3e9   : > { %3331 = vmatpush.msra.mxu2 %v4757_v38  ;;  %3274 = vmatpush.msrb.mxu3 %v4758_v36  ;;  %v3384_v36 = vld [vmem:[%s11047_s5 + $0x28] sm:$0xff] }
 0x3ea   : > { %3453 = vmatpush.msrb.mxu0 %v4112_v46  ;;  %3473 = vmatpush.msrb.mxu1 %v4128_v9  ;;  %v4144_v46 = vld [vmem:[%s11047_s5 + $0x240] sm:$0xff]  ;;  %v3385_v9 = vld [vmem:[%s11047_s5 + $0x30] sm:$0xff] }
 0x3eb   : > { %3332 = vmatpush.msra.mxu2 %v4759_v1  ;;  %3275 = vmatpush.msrb.mxu3 %v4760_v41  ;;  %v3383_v41 = vld [vmem:[%s11047_s5 + $0x20] sm:$0xff] }
 0x3ec   : > { %3454 = vmatpush.msrb.mxu0 %v4111_v54  ;;  %3474 = vmatpush.msrb.mxu1 %v4127_v25  ;;  %v10655_v32 = vpop.f32.mrf.mxu0  ;;  %v10657_v33 = vpop.f32.mrf.mxu1  ;;  %v4142_v54 = vld [vmem:[%s11047_s5 + $0x230] sm:$0xff] }
 0x3ed   : > { %3276 = vmatmul.f32.vlgmr.msrb.gmra.mxu3 %v3195_v55  ;;  %3333 = vmatpush.msra.mxu2 %v4761_v52  ;;  %v10665_v45 = vpop.f32.mrf.mxu2  ;;  %v4140_v52 = vld [vmem:[%s11047_s5 + $0x220] sm:$0xff] }
 0x3ee   : > { %3340 = vmatpush.msra.mxu3 %v4762_v59  ;;  %3455 = vmatpush.msrb.mxu0 %v4110_v60  ;;  %v3382_v60 = vld [vmem:[%s11047_s5 + $0x18] sm:$0xff] }
 0x3ef   : > { %3475 = vmatpush.msrb.mxu1 %v4126_v42  ;;  %3334 = vmatpush.msra.mxu2 %v4763_v58  ;;  %v4139_v59 = vld [vmem:[%s11047_s5 + $0x218] sm:$0xff]  ;;  %v4138_v58 = vld [vmem:[%s11047_s5 + $0x210] sm:$0xff] }
 0x3f0   : > { %3341 = vmatpush.msra.mxu3 %v4764_v8  ;;  %3456 = vmatpush.msrb.mxu0 %v4109_v5  ;;  %v3381_v5 = vld [vmem:[%s11047_s5 + $0x10] sm:$0xff] }
 0x3f1   : > { %3476 = vmatpush.msrb.mxu1 %v4125_v34  ;;  %3335 = vmatpush.msra.mxu2 %v4765_v35  ;;  %v3380_v34 = vld [vmem:[%s11047_s5 + $0x8] sm:$0xff] }
 0x3f2   : > { %3342 = vmatpush.msra.mxu3 %v4766_v48  ;;  %3336 = vmatmul.f32.vlgmr.msra.gmra.mxu2 %v3194_v40  ;;  %v4122_v40 = vld [vmem:[%s11047_s5 + $0x190] sm:$0xff] }
 0x3f3   : > { %3457 = vmatpush.msrb.mxu0 %v4108_v10  ;;  %3477 = vmatpush.msrb.mxu1 %v4124_v0  ;;  %v3379_v10 = vld [vmem:[%s11047_s5] sm:$0xff]  ;;  %v4137_v0 = vld [vmem:[%s11047_s5 + $0x208] sm:$0xff] }
 0x3f4   : > { %3343 = vmatpush.msra.mxu3 %v4767_v20  ;;  %3486 = vmatpush.msrb.mxu2 %v3394_v12  ;;  %v3041_v25 = vpop.f32.mrf.mxu0  ;;  %v3061_v1 = vpop.f32.mrf.mxu1  ;;  %v4136_v20 = vld [vmem:[%s11047_s5 + $0x200] sm:$0xff] }
 0x3f5   : > { %3458 = vmatpush.msrb.mxu0 %v4107_v3  ;;  %3478 = vmatpush.msrb.mxu1 %v4123_v26  ;;  %v2902_v3 = vadd.f32 %v2901_v47, %v2881_v37  ;;  %v3410_v26 = vld [vmem:[%s11047_s5 + $0xf8] sm:$0xff]  ;;  %v4162_v37 = vld [vmem:[%s11047_s5 + $0x2d0] sm:$0xff] }
 0x3f6   : > { %3344 = vmatpush.msra.mxu3 %v4768_v2 }
 0x3f7   : > { %3459 = vmatpush.msrb.mxu0 %v4106_v53  ;;  %3479 = vmatpush.msrb.mxu1 %v4122_v40  ;;  %v3409_v40 = vld [vmem:[%s11047_s5 + $0xf0] sm:$0xff]  ;;  %v2922_v2 = vadd.f32 %v2921_v51, %v2902_v3  ;;  %v4152_v3 = vld [vmem:[%s11047_s5 + $0x280] sm:$0xff] }
 0x3f8   : > { %3345 = vmatpush.msra.mxu3 %v4769_v7  ;;  %v3408_v7 = vld [vmem:[%s11047_s5 + $0xe8] sm:$0xff] }
 0x3f9   : > { %3460 = vmatpush.msrb.mxu0 %v4105_v15  ;;  %3480 = vmatpush.msrb.mxu1 %v4121_v14  ;;  %v4167_v15 = vld [vmem:[%s11047_s5 + $0x2f8] sm:$0xff]  ;;  %v4166_v14 = vld [vmem:[%s11047_s5 + $0x2f0] sm:$0xff] }
 0x3fa   : > { %3346 = vmatpush.msra.mxu3 %v4770_v23 }
 0x3fb   : > { %3461 = vmatpush.msrb.mxu0 %v4104_v63  ;;  %3481 = vmatpush.msrb.mxu1 %v4120_v30  ;;  %v2942_v63 = vadd.f32 %v10647_v21, %v2922_v2  ;;  %v4165_v30 = vld [vmem:[%s11047_s5 + $0x2e8] sm:$0xff]  ;;  %v3403_v21 = vld [vmem:[%s11047_s5 + $0xc0] sm:$0xff] }
 0x3fc   : > { %3347 = vmatpush.msra.mxu3 %v4771_v27  ;;  %3462 = vmatmul.f32.vlgmr.msrb.gmra.mxu0 %v3411_v39  ;;  %v3407_v39 = vld [vmem:[%s11047_s5 + $0xe0] sm:$0xff] }
 0x3fd   : > { %3482 = vmatmul.f32.vlgmr.msrb.gmra.mxu1 %v3412_v6  ;;  %v3042_v27 = vadd.f32 %v3041_v25, %v2942_v63  ;;  %v4164_v6 = vld [vmem:[%s11047_s5 + $0x2e0] sm:$0xff] }
 0x3fe   : > { %3348 = vmatpush.msra.mxu3 %v4772_v22  ;;  %3587 = vmatpush.msra.mxu1 %v4167_v15  ;;  %v3399_v25 = vld [vmem:[%s11047_s5 + $0xa0] sm:$0xff] }
 0x400   : > { %3349 = vmatpush.msra.mxu3 %v9354_v28  ;;  %v3393_v28 = vld [vmem:[%s11047_s5 + $0x70] sm:$0xff]  ;;  %3588 = vmatpush.msra.mxu1 %v4166_v14 }
 0x401   : > { %3487 = vmatpush.msrb.mxu2 %v3393_v28  ;;  %v3406_v28 = vld [vmem:[%s11047_s5 + $0xd8] sm:$0xff] }
 0x402   : > { %3350 = vmatpush.msra.mxu3 %v9368_v49  ;;  %v4151_v49 = vld [vmem:[%s11047_s5 + $0x278] sm:$0xff]  ;;  %3589 = vmatpush.msra.mxu1 %v4165_v30 }
 0x403   : > { %3567 = vmatpush.msra.mxu0 %v4151_v49  ;;  %v4163_v49 = vld [vmem:[%s11047_s5 + $0x2d8] sm:$0xff] }
 0x404   : > { %3351 = vmatpush.msra.mxu3 %v9383_v44  ;;  %v4150_v44 = vld [vmem:[%s11047_s5 + $0x270] sm:$0xff]  ;;  %3590 = vmatpush.msra.mxu1 %v4164_v6 }
 0x405   : > { %3568 = vmatpush.msra.mxu0 %v4150_v44 }
 0x406   : > { %3352 = vmatpush.msra.mxu3 %v9398_v43  ;;  %v3392_v43 = vld [vmem:[%s11047_s5 + $0x68] sm:$0xff]  ;;  %3591 = vmatpush.msra.mxu1 %v4163_v49 }
 0x407   : > { %3488 = vmatpush.msrb.mxu2 %v3392_v43  ;;  %v3405_v43 = vld [vmem:[%s11047_s5 + $0xd0] sm:$0xff]  ;;  %v3628_v49 = vld [vmem:[%s11049_s7 + $0x68] sm:$0xff] }
 0x408   : > { %3353 = vmatpush.msra.mxu3 %v9413_v24  ;;  %v4149_v24 = vld [vmem:[%s11047_s5 + $0x268] sm:$0xff]  ;;  %3592 = vmatpush.msra.mxu1 %v4162_v37  ;;  %v3704_v37 = vld [vmem:[%s11049_s7 + $0x160] sm:$0xff] }
 0x409   : > { %3569 = vmatpush.msra.mxu0 %v4149_v24  ;;  %v3062_v24 = vadd.f32 %v3061_v1, %v3042_v27  ;;  %v4157_v1 = vld [vmem:[%s11047_s5 + $0x2a8] sm:$0xff] }
 0x40a   : > { %3354 = vmatpush.msra.mxu3 %v9428_v4  ;;  %v3391_v4 = vld [vmem:[%s11047_s5 + $0x60] sm:$0xff]  ;;  %v10679_v38 = vpop.f32.mrf.mxu3 }
 0x40b   : > { %3489 = vmatpush.msrb.mxu2 %v3391_v4 }
 0x40c   : > { %3355 = vmatpush.msra.mxu3 %v9443_v11  ;;  %v4148_v11 = vld [vmem:[%s11047_s5 + $0x260] sm:$0xff] }
 0x40d   : > { %3356 = vmatmul.f32.vlgmr.msra.gmra.mxu3 %v3195_v55  ;;  %3570 = vmatpush.msra.mxu0 %v4148_v11  ;;  %v4141_v55 = vld [vmem:[%s11047_s5 + $0x228] sm:$0xff] }
 0x40e   : > { %3490 = vmatpush.msrb.mxu2 %v3390_v16  ;;  %3506 = vmatpush.msrb.mxu3 %v3410_v26 }
 0x40f   : > { %3571 = vmatpush.msra.mxu0 %v4147_v56  ;;  %v3081_v42 = vpop.f32.mrf.mxu2 }
 0x410   : > { %3491 = vmatpush.msrb.mxu2 %v3389_v17  ;;  %3507 = vmatpush.msrb.mxu3 %v3409_v40  ;;  %v3082_v11 = vadd.f32 %v3081_v42, %v3062_v24  ;;  %v3404_v17 = vld [vmem:[%s11047_s5 + $0xc8] sm:$0xff]  ;;  %v4155_v42 = vld [vmem:[%s11047_s5 + $0x298] sm:$0xff]  ;;  %v3745_v24 = vld [vmem:[%s11049_s7 + $0x1f0] sm:$0xff] }
 0x411   : > { %3572 = vmatpush.msra.mxu0 %v4146_v18 }
 0x412   : > { %3492 = vmatpush.msrb.mxu2 %v3388_v62  ;;  %3508 = vmatpush.msrb.mxu3 %v3408_v7  ;;  %v4161_v62 = vld [vmem:[%s11047_s5 + $0x2c8] sm:$0xff] }
 0x413   : > { %3573 = vmatpush.msra.mxu0 %v4145_v31  ;;  %3593 = vmatpush.msra.mxu1 %v4161_v62  ;;  %v4160_v31 = vld [vmem:[%s11047_s5 + $0x2c0] sm:$0xff]  ;;  %v3703_v62 = vld [vmem:[%s11049_s7 + $0x158] sm:$0xff] }
 0x414   : > { %3493 = vmatpush.msrb.mxu2 %v3387_v29  ;;  %v10717_v35 = vpop.f32.mrf.mxu0  ;;  %v10719_v48 = vpop.f32.mrf.mxu1  ;;  %3509 = vmatpush.msrb.mxu3 %v3407_v39  ;;  %v3402_v29 = vld [vmem:[%s11047_s5 + $0xb8] sm:$0xff] }
 0x415   : > { %3574 = vmatpush.msra.mxu0 %v4144_v46  ;;  %3594 = vmatpush.msra.mxu1 %v4160_v31  ;;  %v3401_v46 = vld [vmem:[%s11047_s5 + $0xb0] sm:$0xff] }
 0x416   : > { %3494 = vmatpush.msrb.mxu2 %v3386_v57  ;;  %3510 = vmatpush.msrb.mxu3 %v3406_v28  ;;  %v3662_v31 = vld [vmem:[%s11049_s7 + $0xd0] sm:$0xff] }
 0x417   : > { %3575 = vmatpush.msra.mxu0 %v4143_v13 }
 0x418   : > { %3495 = vmatpush.msrb.mxu2 %v3385_v9  ;;  %3511 = vmatpush.msrb.mxu3 %v3405_v43  ;;  %v4159_v9 = vld [vmem:[%s11047_s5 + $0x2b8] sm:$0xff]  ;;  %v3706_v43 = vld [vmem:[%s11049_s7 + $0x170] sm:$0xff] }
 0x419   : > { %3576 = vmatpush.msra.mxu0 %v4142_v54  ;;  %3595 = vmatpush.msra.mxu1 %v4159_v9  ;;  %v3624_v9 = vld [vmem:[%s11049_s7 + $0x48] sm:$0xff] }
 0x41a   : > { %3496 = vmatpush.msrb.mxu2 %v3384_v36  ;;  %3512 = vmatpush.msrb.mxu3 %v3404_v17  ;;  %v3400_v36 = vld [vmem:[%s11047_s5 + $0xa8] sm:$0xff]  ;;  %v3664_v17 = vld [vmem:[%s11049_s7 + $0xe0] sm:$0xff] }
 0x41b   : > { %3577 = vmatpush.msra.mxu0 %v4141_v55  ;;  %v4156_v55 = vld [vmem:[%s11047_s5 + $0x2a0] sm:$0xff] }
 0x41c   : > { %3497 = vmatpush.msrb.mxu2 %v3383_v41  ;;  %3513 = vmatpush.msrb.mxu3 %v3403_v21  ;;  %v3398_v41 = vld [vmem:[%s11047_s5 + $0x98] sm:$0xff] }
 0x41d   : > { %3578 = vmatpush.msra.mxu0 %v4140_v52  ;;  %v3396_v52 = vld [vmem:[%s11047_s5 + $0x88] sm:$0xff]  ;;  %v3663_v21 = vld [vmem:[%s11049_s7 + $0xd8] sm:$0xff] }
 0x41e   : > { %3498 = vmatpush.msrb.mxu2 %v3382_v60  ;;  %3514 = vmatpush.msrb.mxu3 %v3402_v29  ;;  %v3397_v60 = vld [vmem:[%s11047_s5 + $0x90] sm:$0xff] }
 0x41f   : > { %3579 = vmatpush.msra.mxu0 %v4139_v59  ;;  %v3395_v59 = vld [vmem:[%s11047_s5 + $0x80] sm:$0xff]  ;;  %v3625_v29 = vld [vmem:[%s11049_s7 + $0x50] sm:$0xff] }
 0x420   : > { %3499 = vmatpush.msrb.mxu2 %v3381_v5  ;;  %3515 = vmatpush.msrb.mxu3 %v3401_v46  ;;  %v4154_v5 = vld [vmem:[%s11047_s5 + $0x290] sm:$0xff] }
 0x421   : > { %3580 = vmatpush.msra.mxu0 %v4138_v58  ;;  %v3741_v46 = vld [vmem:[%s11049_s7 + $0x1d0] sm:$0xff] }
 0x422   : > { %3500 = vmatpush.msrb.mxu2 %v3380_v34  ;;  %3516 = vmatpush.msrb.mxu3 %v3400_v36  ;;  %v4153_v34 = vld [vmem:[%s11047_s5 + $0x288] sm:$0xff] }
 0x423   : > { %3581 = vmatpush.msra.mxu0 %v4137_v0  ;;  %v3701_v36 = vld [vmem:[%s11049_s7 + $0x148] sm:$0xff] }
 0x424   : > { %3501 = vmatpush.msrb.mxu2 %v3379_v10  ;;  %3517 = vmatpush.msrb.mxu3 %v3399_v25  ;;  %v2982_v10 = vadd.f32 %v10657_v33, %v10655_v32  ;;  %v3660_v25 = vld [vmem:[%s11049_s7 + $0xc0] sm:$0xff] }
 0x425   : > { %3582 = vmatpush.msra.mxu0 %v4136_v20 }
 0x426   : > { %3518 = vmatpush.msrb.mxu3 %v3398_v41  ;;  %v3002_v26 = vadd.f32 %v10665_v45, %v2982_v10  ;;  %v3739_v41 = vld [vmem:[%s11049_s7 + $0x1c0] sm:$0xff] }
 0x427   : > { %v3619_v10 = vld [vmem:[%s11049_s7 + $0x20] sm:$0xff] }
 0x428   : > { %3519 = vmatpush.msrb.mxu3 %v3397_v60  ;;  %v3022_v20 = vadd.f32 %v10679_v38, %v3002_v26  ;;  %v3621_v60 = vld [vmem:[%s11049_s7 + $0x30] sm:$0xff]  ;;  %v3736_v26 = vld [vmem:[%s11049_s7 + $0x1a8] sm:$0xff] }
 0x42a   : > { %3520 = vmatpush.msrb.mxu3 %v3396_v52  ;;  %v3122_v40 = vadd.f32 %v10717_v35, %v3022_v20  ;;  %v3699_v52 = vld [vmem:[%s11049_s7 + $0x138] sm:$0xff] }
 0x42b   : > { %v3618_v20 = vld [vmem:[%s11049_s7 + $0x18] sm:$0xff] }
 0x42c   : > { %v3101_v8 = vpop.f32.mrf.mxu3  ;;  %3521 = vmatpush.msrb.mxu3 %v3395_v59  ;;  %v3142_v32 = vadd.f32 %v10719_v48, %v3122_v40  ;;  %v3630_v48 = vld [vmem:[%s11049_s7 + $0x78] sm:$0xff]  ;;  %v3620_v59 = vld [vmem:[%s11049_s7 + $0x28] sm:$0xff]  ;;  %v3656_v40 = vld [vmem:[%s11049_s7 + $0xa0] sm:$0xff] }
 0x42d   : > { %v3102_v47 = vadd.f32 %v3101_v8, %v3082_v11  ;;  %3631 = vmatpush.msra.mxu2 %v3630_v48  ;;  %v3705_v11 = vld [vmem:[%s11049_s7 + $0x168] sm:$0xff] }
 0x42e   : > { %3671 = vmatpush.msra.mxu3 %v3667_v19 }
 0x431   : > { %v10727_v53 = vpop.f32.mrf.mxu2 }
 0x432   : > { %v3162_v7 = vadd.f32 %v10727_v53, %v3142_v32  ;;  %v3629_v53 = vld [vmem:[%s11049_s7 + $0x70] sm:$0xff]  ;;  %v3655_v32 = vld [vmem:[%s11049_s7 + $0x98] sm:$0xff] }
 0x433   : > { %3632 = vmatpush.msra.mxu2 %v3629_v53 }
 0x435   : > { %3633 = vmatpush.msra.mxu2 %v3628_v49 }
 0x436   : > { %v3217_v22 = vpop.f32.mrf.mxu0  ;;  %v3237_v12 = vpop.f32.mrf.mxu1 }
 0x437   : > { %v3238_v4 = vadd.f32 %v3237_v12, %v3217_v22 }
 0x44e   : > { %v10745_v23 = vpop.f32.mrf.mxu3 }
 0x44f   : > { %v3182_v39 = vadd.f32 %v10745_v23, %v3162_v7  ;;  %v3746_v23 = vld [vmem:[%s11049_s7 + $0x1f8] sm:$0xff] }
 0x450   : > { %v3734_v7 = vld [vmem:[%s11049_s7 + $0x198] sm:$0xff] }
 0x453   : > { %v3257_v44 = vpop.f32.mrf.mxu2 }
 0x454   : > { %v3258_v16 = vadd.f32 %v3257_v44, %v3238_v4  ;;  %v3666_v44 = vld [vmem:[%s11049_s7 + $0xf0] sm:$0xff]  ;;  %v3665_v4 = vld [vmem:[%s11049_s7 + $0xe8] sm:$0xff] }
 0x455   : > { %3672 = vmatpush.msra.mxu3 %v3666_v44 }
 0x457   : > { %3673 = vmatpush.msra.mxu3 %v3665_v4 }
 0x458   : > { %v3297_v2 = vpop.f32.mrf.mxu0  ;;  %v3317_v15 = vpop.f32.mrf.mxu1 }
 0x459   : > { %v3318_v33 = vadd.f32 %v3317_v15, %v3297_v2  ;;  %3674 = vmatpush.msra.mxu3 %v3664_v17  ;;  %v3696_v2 = vld [vmem:[%s11049_s7 + $0x120] sm:$0xff] }
 0x45a   : > { %v3735_v15 = vld [vmem:[%s11049_s7 + $0x1a0] sm:$0xff] }
 0x45b   : > { %3675 = vmatpush.msra.mxu3 %v3663_v21  ;;  %v3614_v21 = vld [vmem:[%s11050_s8] sm:$0x1] }
 0x45d   : > { %3676 = vmatpush.msra.mxu3 %v3662_v31 }
 0x470   : > { %v3277_v56 = vpop.f32.mrf.mxu3 }
 0x471   : > { %v3278_v51 = vadd.f32 %v3277_v56, %v3258_v16  ;;  %v3627_v16 = vld [vmem:[%s11049_s7 + $0x60] sm:$0xff]  ;;  %v3744_v56 = vld [vmem:[%s11049_s7 + $0x1e8] sm:$0xff] }
 0x472   : > { %3634 = vmatpush.msra.mxu2 %v3627_v16 }
 0x473   : > { %v3360_v18 = vadd.f32 %v3278_v51, %v3102_v47  ;;  %v3743_v47 = vld [vmem:[%s11049_s7 + $0x1e0] sm:$0xff]  ;;  %v3626_v51 = vld [vmem:[%s11049_s7 + $0x58] sm:$0xff] }
 0x474   : > { %3635 = vmatpush.msra.mxu2 %v3626_v51 }
 0x475   : > { %v3362_v57 = vadd.f32 %v3360_v18, %v2852_v61  ;;  %v4158_v61 = vld [vmem:[%s11047_s5 + $0x2b0] sm:$0xff]  ;;  %v3337_v14 = vpop.f32.mrf.mxu2  ;;  %v3742_v18 = vld [vmem:[%s11049_s7 + $0x1d8] sm:$0xff] }
 0x476   : > { %3596 = vmatpush.msra.mxu1 %v4158_v61  ;;  %v3338_v63 = vadd.f32 %v3337_v14, %v3318_v33  ;;  %3636 = vmatpush.msra.mxu2 %v3625_v29  ;;  %v3740_v61 = vld [vmem:[%s11049_s7 + $0x1c8] sm:$0xff]  ;;  %v3617_v14 = vld [vmem:[%s11049_s7 + $0x10] sm:$0xff]  ;;  %v3695_v33 = vld [vmem:[%s11049_s7 + $0x118] sm:$0xff] }
 0x477   : > { %v3364_v13 = vmax.f32 %v3362_v57, 0.0  ;;  %v3702_v57 = vld [vmem:[%s11049_s7 + $0x150] sm:$0xff] }
 0x478   : > { %3597 = vmatpush.msra.mxu1 %v4157_v1  ;;  %3637 = vmatpush.msra.mxu2 %v3624_v9  ;;  %v3700_v1 = vld [vmem:[%s11049_s7 + $0x140] sm:$0xff] }
 0x479   : > { %v3371_v54 = vrot.slane %v3364_v13, 7  ;;  %v3661_v13 = vld [vmem:[%s11049_s7 + $0xc8] sm:$0xff]  ;;  %v3463_v53 = vpop.f32.mrf.mxu0 }
 0x47a   : > { %3598 = vmatpush.msra.mxu1 %v4156_v55  ;;  %3677 = vmatpush.msra.mxu3 %v3661_v13  ;;  %v3622_v55 = vld [vmem:[%s11049_s7 + $0x38] sm:$0xff]  ;;  %v3483_v48 = vpop.f32.mrf.mxu1 }
 0x47b   : > { %3375 = vst [vmem:[#allocation3 + $0x8] sm:$0x1e] %v3371_v54  ;;  %v3623_v54 = vld [vmem:[%s11049_s7 + $0x40] sm:$0xff] }
 0x47c   : > { %3599 = vmatpush.msra.mxu1 %v4155_v42  ;;  %3638 = vmatpush.msra.mxu2 %v3623_v54  ;;  %v3659_v42 = vld [vmem:[%s11049_s7 + $0xb8] sm:$0xff] }
 0x47d   : > { %3678 = vmatpush.msra.mxu3 %v3660_v25 }
 0x47e   : > { %3600 = vmatpush.msra.mxu1 %v4154_v5  ;;  %3639 = vmatpush.msra.mxu2 %v3622_v55  ;;  %v3738_v5 = vld [vmem:[%s11049_s7 + $0x1b8] sm:$0xff] }
 0x47f   : > { %3679 = vmatpush.msra.mxu3 %v3659_v42 }
 0x480   : > { %3601 = vmatpush.msra.mxu1 %v4153_v34  ;;  %3640 = vmatpush.msra.mxu2 %v3621_v60  ;;  %v3658_v34 = vld [vmem:[%s11049_s7 + $0xb0] sm:$0xff] }
 0x481   : > { %3680 = vmatpush.msra.mxu3 %v3658_v34 }
 0x482   : > { %v3377_v58 = vld [vmem:[#allocation3 + $0x8] sm:$0xf]  ;;  %3602 = vmatpush.msra.mxu1 %v4152_v3  ;;  %3641 = vmatpush.msra.mxu2 %v3620_v59  ;;  %v3697_v3 = vld [vmem:[%s11049_s7 + $0x128] sm:$0xff] }
 0x483   : > { %v3526_v8 = vld [vmem:[#allocation3 + $0x8] sm:$0x1e]  ;;  %3502 = vmatmul.f32.vlgmr.msrb.gmra.mxu2 %v3377_v58 }
 0x484   : > { %v3563_v0 = vrot.slane %v3526_v8, 1  ;;  %3749 = vmatpush.msrb.mxu1 %v3746_v23  ;;  %v3698_v58 = vld [vmem:[%s11049_s7 + $0x130] sm:$0xff]  ;;  %3642 = vmatpush.msra.mxu2 %v3619_v10 }
 0x485   : > { %v3737_v8 = vld [vmem:[%s11049_s7 + $0x1b0] sm:$0xff] }
 0x486   : > { %3583 = vmatmul.f32.vlgmr.msra.gmra.mxu0 %v3563_v0  ;;  %3750 = vmatpush.msrb.mxu1 %v3745_v24  ;;  %v3657_v0 = vld [vmem:[%s11049_s7 + $0xa8] sm:$0xff] }
 0x487   : > { %3681 = vmatpush.msra.mxu3 %v3657_v0  ;;  %3643 = vmatpush.msra.mxu2 %v3618_v20 }
 0x488   : > { %3751 = vmatpush.msrb.mxu1 %v3744_v56 }
 0x489   : > { %3682 = vmatpush.msra.mxu3 %v3656_v40  ;;  %3644 = vmatpush.msra.mxu2 %v3617_v14 }
 0x48a   : > { %3752 = vmatpush.msrb.mxu1 %v3743_v47 }
 0x48b   : > { %3683 = vmatpush.msra.mxu3 %v3655_v32 }
 0x48c   : > { %3753 = vmatpush.msrb.mxu1 %v3742_v18 }
 0x48e   : > { %3754 = vmatpush.msrb.mxu1 %v3741_v46 }
 0x490   : > { %v3357_v30 = vpop.f32.mrf.mxu3  ;;  %3755 = vmatpush.msrb.mxu1 %v3740_v61 }
 0x491   : > { %v3358_v27 = vadd.f32 %v3357_v30, %v3338_v63  ;;  %v3616_v63 = vld [vmem:[%s11049_s7 + $0x8] sm:$0xff]  ;;  %v3654_v30 = vld [vmem:[%s11049_s7 + $0x90] sm:$0xff] }
 0x492   : > { %3756 = vmatpush.msrb.mxu1 %v3739_v41  ;;  %3645 = vmatpush.msra.mxu2 %v3616_v63 }
 0x493   : > { %v3361_v45 = vadd.f32 %v3358_v27, %v3182_v39  ;;  %v3694_v39 = vld [vmem:[%s11049_s7 + $0x110] sm:$0xff]  ;;  %3684 = vmatpush.msra.mxu3 %v3654_v30 }
 0x494   : > { %3757 = vmatpush.msrb.mxu1 %v3738_v5  ;;  %v3733_v27 = vld [vmem:[%s11049_s7 + $0x190] sm:$0xff] }
 0x495   : > { %v3363_v6 = vadd.f32 %v3361_v45, %v2853_v50  ;;  %v3707_v50 = vld [vmem:[%s11049_s7 + $0x178] sm:$0xff]  ;;  %v3615_v45 = vld [vmem:[%s11049_s7] sm:$0xff] }
 0x496   : > { %3710 = vmatpush.msrb.mxu0 %v3707_v50  ;;  %3758 = vmatpush.msrb.mxu1 %v3737_v8  ;;  %v3484_v50 = vadd.f32 %v3483_v48, %v3463_v53 }
 0x497   : > { %v3365_v38 = vmax.f32 %v3363_v6, 0.0  ;;  %v3653_v6 = vld [vmem:[%s11049_s7 + $0x88] sm:$0xff]  ;;  %3646 = vmatpush.msra.mxu2 %v3615_v45 }
 0x498   : > { %3711 = vmatpush.msrb.mxu0 %v3706_v43  ;;  %3759 = vmatpush.msrb.mxu1 %v3736_v26 }
 0x499   : > { %v3372_v22 = vrot.slane %v3365_v38, 7  ;;  %v3693_v38 = vld [vmem:[%s11049_s7 + $0x108] sm:$0xff]  ;;  %3685 = vmatpush.msra.mxu3 %v3653_v6 }
 0x49a   : > { %3712 = vmatpush.msrb.mxu0 %v3705_v11  ;;  %3760 = vmatpush.msrb.mxu1 %v3735_v15  ;;  %v4180_v11 = vld [vmem:[%s11048_s6] ss:$0 sm:$0xff] }
 0x49b   : > { %3376 = vst [vmem:[#allocation3] sm:$0x1e] %v3372_v22  ;;  %v3732_v22 = vld [vmem:[%s11049_s7 + $0x188] sm:$0xff] }
 0x49c   : > { %3713 = vmatpush.msrb.mxu0 %v3704_v37  ;;  %3761 = vmatpush.msrb.mxu1 %v3734_v7 }
 0x49e   : > { %3714 = vmatpush.msrb.mxu0 %v3703_v62  ;;  %3762 = vmatpush.msrb.mxu1 %v3733_v27 }
 0x4a0   : > { %3715 = vmatpush.msrb.mxu0 %v3702_v57  ;;  %3763 = vmatpush.msrb.mxu1 %v3732_v22 }
 0x4a2   : > { %v3378_v35 = vld [vmem:[#allocation3] sm:$0xf]  ;;  %3716 = vmatpush.msrb.mxu0 %v3701_v36 }
 0x4a3   : > { %v3527_v12 = vld [vmem:[#allocation3] sm:$0x1e]  ;;  %3522 = vmatmul.f32.vlgmr.msrb.gmra.mxu3 %v3378_v35  ;;  %v3652_v35 = vld [vmem:[%s11049_s7 + $0x80] sm:$0xff] }
 0x4a4   : > { %v3564_v28 = vrot.slane %v3527_v12, 1  ;;  %3717 = vmatpush.msrb.mxu0 %v3700_v1  ;;  %v3692_v12 = vld [vmem:[%s11049_s7 + $0x100] sm:$0xff]  ;;  %3686 = vmatpush.msra.mxu3 %v3652_v35 }
 0x4a6   : > { %3603 = vmatmul.f32.vlgmr.msra.gmra.mxu1 %v3564_v28  ;;  %3718 = vmatpush.msrb.mxu0 %v3699_v52  ;;  %v3731_v28 = vld [vmem:[%s11049_s7 + $0x180] sm:$0xff] }
 0x4a7   : > { %3764 = vmatpush.msrb.mxu1 %v3731_v28 }
 0x4a8   : > { %3719 = vmatpush.msrb.mxu0 %v3698_v58 }
 0x4aa   : > { %3720 = vmatpush.msrb.mxu0 %v3697_v3 }
 0x4ac   : > { %3721 = vmatpush.msrb.mxu0 %v3696_v2 }
 0x4ae   : > { %3722 = vmatpush.msrb.mxu0 %v3695_v33 }
 0x4b0   : > { %3723 = vmatpush.msrb.mxu0 %v3694_v39 }
 0x4b2   : > { %3724 = vmatpush.msrb.mxu0 %v3693_v38 }
 0x4b4   : > { %3725 = vmatpush.msrb.mxu0 %v3692_v12 }
 0x503   : > { %v3584_v44 = vpop.f32.mrf.mxu0 }
 0x506   : > { %v3503_v19 = vpop.f32.mrf.mxu2 }
 0x507   : > { %v3504_v49 = vadd.f32 %v3503_v19, %v3484_v50 }
 0x523   : > { %v3604_v23 = vpop.f32.mrf.mxu1 }
 0x524   : > { %v3605_v24 = vadd.f32 %v3604_v23, %v3584_v44 }
 0x526   : > { %v3523_v43 = vpop.f32.mrf.mxu3 }
 0x527   : > { %v3524_v4 = vadd.f32 %v3523_v43, %v3504_v49 }
 0x529   : > { %v3607_v16 = vadd.f32 %v3605_v24, %v3524_v4 }
 0x52b   : > { %v3612_v56 = vadd.f32 %v4180_v11, %v3607_v16 }
 0x52d   : > { %v3613_v17 = vmax.f32 %v3612_v56, 0.0 }
 0x52f   : > { %3647 = vmatmul.f32.vlgmr.msra.gmra.mxu2 %v3613_v17  ;;  %v3669_v37 = vrot.slane %v3613_v17, 1  ;;  %v3708_v47 = vrot.slane %v3613_v17, 2  ;;  %v3747_v51 = vrot.slane %v3613_v17, 3 }
 0x531   : > { %3687 = vmatmul.f32.vlgmr.msra.gmra.mxu3 %v3669_v37  ;;  %3726 = vmatmul.f32.vlgmr.msrb.gmra.mxu0 %v3708_v47 }
 0x532   : > { %3765 = vmatmul.f32.vlgmr.msrb.gmra.mxu1 %v3747_v51 }
 0x5ae   : > { %v3727_v57 = vpop.f32.mrf.mxu0 }
 0x5af   : > { %v3766_v9 = vpop.f32.mrf.mxu1 }
 0x5b2   : > { %v3648_v62 = vpop.f32.mrf.mxu2 }
 0x5b3   : > { %v3651_v18 = vadd.f32 %v3648_v62, %v3614_v21 }
 0x5b4   : > { %v3688_v29 = vpop.f32.mrf.mxu3 }
 0x5b5   : > { %v3691_v31 = vadd.f32 %v3688_v29, %v3651_v18 }
 0x5b7   : > { %v3730_v46 = vadd.f32 %v3727_v57, %v3691_v31 }
 0x5b9   : > { %v3769_v13 = vadd.f32 %v3766_v9, %v3730_v46 }
 0x5bb   : > { %3771 = vst.msk [vmem:[%s328_s16] sm:$0x1] %vm3770_vm1, %v3769_v13 }
 0x5bc PF: > { %s19_s30 = sadd.s32 1, %s4779_s30  }
 0x5bd   : > { %p16_p4 = scmp.ge.s32.totalorder %s19_s30, 4  }
 0x5bf   :  { %18 = sbr.rel (!%p16_p4) target bundleno = 1 (0x1), region = 101 }

</bundles_post_ra>
